<compile_context>
chip_gen: v6e
topology: v6e:2x2x1
jax: 0.10.0
libtpu: 0.0.40
codegen_flags: <defaults>
</compile_context>

<pallas_src>
import functools

import jax
import jax.numpy as jnp
from jax.experimental import pallas as pl
from jax.experimental.pallas import tpu as pltpu

MULT_FACTOR = 1.0     # module-level constant in CAR.py (MULT_FACTOR = 1)
LEAKY_SLOPE = 0.2     # nn.LeakyReLU(0.2)
KSIZE = 3             # default ksize of ResidualBlock


# ----------------------------------------------------------------------------
# Fused ResidualBlock kernel
# ----------------------------------------------------------------------------
def _pack_taps(xs_ref, load_tap, C):
    """Pack the 9 shifted 3x3 taps into xs_ref as a (rows, 9*C) im2col block.

    `load_tap(dy, dx)` must return a (rows, C) value sliced straight from the
    source Ref.  Adjacent taps are concatenated along the channel axis before
    storing, so each store is 2*C lanes wide and 2*C-lane aligned (for C=64
    that is a full, unmasked 128-lane vst); only the final unpaired tap is a
    half-width (but lane-aligned) store.
    """
    n_taps = KSIZE * KSIZE                 # 9
    pair_taps = (C % 128) != 0             # pairing only helps when C under-fills lanes
    k = 0
    while k < n_taps:
        if pair_taps and k + 1 < n_taps:
            a = load_tap(k // KSIZE, k % KSIZE)
            b = load_tap((k + 1) // KSIZE, (k + 1) % KSIZE)
            xs_ref[:, k * C:(k + 2) * C] = jnp.concatenate([a, b], axis=-1)
            k += 2
        else:
            xs_ref[:, k * C:(k + 1) * C] = load_tap(k // KSIZE, k % KSIZE)
            k += 1


def _residual_block_kernel(xp_ref, w1_ref, b1_ref, w2_ref, b2_ref, o_ref,
                           xs_ref, tp_ref, *, H, W):
    # xp_ref: (1, H+2, W+2, C)  reflect-padded input image (compute dtype)
    # w1_ref: (9*C, C)  w2_ref: (9*C, C)   (compute dtype)
    # b1_ref: (1, C)    b2_ref: (1, C)     (f32)
    # o_ref : (1, H, W, C)                 (output dtype)
    # xs_ref: (H*W, 9*C) VMEM scratch  -- packed im2col taps (reused by both convs)
    # tp_ref: (H+2, W+2, C) VMEM scratch -- reflect-padded intermediate activation
    C = o_ref.shape[-1]
    HW = H * W

    # ---- conv1: one (H*W, 9C) @ (9C, C) MXU matmul, f32 accumulation --------
    def tap_from_input(dy, dx):
        # Ref-sliced load: only the needed window ever becomes a vreg value.
        return xp_ref[0, dy:dy + H, dx:dx + W, :].reshape(HW, C)

    _pack_taps(xs_ref, tap_from_input, C)
    t = jnp.dot(xs_ref[...], w1_ref[...], preferred_element_type=jnp.float32)
    t = t + b1_ref[...]
    t = jnp.where(t >= 0.0, t, LEAKY_SLOPE * t)      # LeakyReLU(0.2) on f32 acc

    # ---- reflect-pad the intermediate (width 1) entirely inside VMEM --------
    t3 = t.astype(tp_ref.dtype).reshape(H, W, C)
    tp_ref[1:H + 1, 1:W + 1, :] = t3
    # Top/bottom rows come straight from the register value (no read-back of
    # rows just stored); left/right columns read tp_ref so the corners resolve
    # to t[1,1] etc., matching jnp.pad(..., mode="reflect").
    tp_ref[0:1, 1:W + 1, :] = t3[1:2]                          # top    <- row 1
    tp_ref[H + 1:H + 2, 1:W + 1, :] = t3[H - 2:H - 1]          # bottom <- row H-2
    tp_ref[:, 0:1, :] = tp_ref[:, 2:3, :]                      # left   <- col 1
    tp_ref[:, W + 1:W + 2, :] = tp_ref[:, W - 1:W, :]          # right  <- col W-2

    # ---- conv2: second fused-contraction matmul ------------------------------
    def tap_from_intermediate(dy, dx):
        return tp_ref[dy:dy + H, dx:dx + W, :].reshape(HW, C)

    _pack_taps(xs_ref, tap_from_intermediate, C)
    y = jnp.dot(xs_ref[...], w2_ref[...], preferred_element_type=jnp.float32)
    y = y + b2_ref[...]

    # ---- residual add on f32, single HBM store --------------------------------
    x_center = xp_ref[0, 1:H + 1, 1:W + 1, :].reshape(HW, C).astype(jnp.float32)
    out = x_center + y * MULT_FACTOR
    o_ref[0] = out.reshape(H, W, C).astype(o_ref.dtype)


# ----------------------------------------------------------------------------
# Wrappers
# ----------------------------------------------------------------------------
def residual_block_nhwc(x, params, *, compute_dtype=jnp.bfloat16):
    """x: (N, H, W, C) NHWC.  params: weights in (kh, kw, Cin, Cout) HWIO layout
    (a PyTorch Conv2d weight (Cout, Cin, kh, kw) maps via transpose(2, 3, 1, 0))."""
    N, H, W, Cin = x.shape
    w1, b1, w2, b2 = params["w1"], params["b1"], params["w2"], params["b2"]
    kh, kw, wcin, C = w1.shape
    assert (kh, kw) == (KSIZE, KSIZE) and wcin == Cin
    assert w2.shape == (KSIZE, KSIZE, C, C)
    # `input + transform(input)` in the module requires matching channel counts.
    assert Cin == C, "ResidualBlock residual add needs input_channels == channels"
    assert H >= 2 and W >= 2, "width-1 reflection padding needs H, W >= 2"

    # Single reflect pad of x outside the kernel (one cheap XLA op); everything
    # else (taps, intermediate, its padding, residual) stays in VMEM.
    # NOTE: the skip-add uses this bf16-quantized copy of x (matches the
    # reference below); feed x in f32 if last-bit fidelity vs PyTorch matters.
    xp = jnp.pad(x, ((0, 0), (1, 1), (1, 1), (0, 0)), mode="reflect")
    xp = xp.astype(compute_dtype)

    w1m = w1.reshape(KSIZE * KSIZE * Cin, C).astype(compute_dtype)
    w2m = w2.reshape(KSIZE * KSIZE * C, C).astype(compute_dtype)
    b1m = b1.reshape(1, C).astype(jnp.float32)
    b2m = b2.reshape(1, C).astype(jnp.float32)

    # Advisory cost estimate so XLA schedules the surrounding transposes / pad
    # around the custom call correctly.
    flops = 2 * 2 * N * H * W * (KSIZE * KSIZE * C) * C          # two convs
    bytes_accessed = (xp.size * xp.dtype.itemsize
                      + w1m.size * w1m.dtype.itemsize
                      + w2m.size * w2m.dtype.itemsize
                      + (b1m.size + b2m.size) * 4
                      + N * H * W * C * x.dtype.itemsize)

    kernel = functools.partial(_residual_block_kernel, H=H, W=W)
    out = pl.pallas_call(
        kernel,
        out_shape=jax.ShapeDtypeStruct((N, H, W, C), x.dtype),
        grid=(N,),
        in_specs=[
            pl.BlockSpec((1, H + 2, W + 2, Cin), lambda n: (n, 0, 0, 0)),
            pl.BlockSpec((KSIZE * KSIZE * Cin, C), lambda n: (0, 0)),
            pl.BlockSpec((1, C), lambda n: (0, 0)),
            pl.BlockSpec((KSIZE * KSIZE * C, C), lambda n: (0, 0)),
            pl.BlockSpec((1, C), lambda n: (0, 0)),
        ],
        out_specs=pl.BlockSpec((1, H, W, C), lambda n: (n, 0, 0, 0)),
        scratch_shapes=[
            # im2col taps (dominant scratch; a row-tiled v7x variant should use
            # dy-grouped K=3*C accumulation to shrink this 3x).
            pltpu.VMEM((H * W, KSIZE * KSIZE * C), compute_dtype),
            pltpu.VMEM((H + 2, W + 2, C), compute_dtype),     # padded intermediate
        ],
        compiler_params=pltpu.CompilerParams(
            dimension_semantics=("parallel",),       # N even -> both v7x TCs busy
            vmem_limit_bytes=16 * 1024 * 1024),       # footprint ~1 MiB; 16 MiB ample
        cost_estimate=pl.CostEstimate(flops=flops, transcendentals=0,
                                      bytes_accessed=bytes_accessed),
    )(xp, w1m, b1m, w2m, b2m)
    return out


def residual_block_forward(params, x_nchw, *, compute_dtype=jnp.bfloat16):
    """NCHW in / NCHW out, matching the PyTorch module's interface."""
    x = jnp.transpose(x_nchw, (0, 2, 3, 1))
    y = residual_block_nhwc(x, params, compute_dtype=compute_dtype)
    return jnp.transpose(y, (0, 3, 1, 2))


# ----------------------------------------------------------------------------
# Pure-JAX reference (mirrors the kernel's bf16-storage / f32-accumulate math)
# ----------------------------------------------------------------------------
def _conv3x3_valid(x, w):
    return jax.lax.conv_general_dilated(
        x, w, window_strides=(1, 1), padding="VALID",
        dimension_numbers=("NHWC", "HWIO", "NHWC"),
        precision=jax.lax.Precision.HIGHEST)


def residual_block_ref(params, x_nchw, compute_dtype=jnp.bfloat16):
    cd = compute_dtype
    x = jnp.transpose(x_nchw, (0, 2, 3, 1)).astype(jnp.float32)
    w1 = params["w1"].astype(cd).astype(jnp.float32)
    w2 = params["w2"].astype(cd).astype(jnp.float32)
    b1 = params["b1"].astype(jnp.float32)
    b2 = params["b2"].astype(jnp.float32)
    xp = jnp.pad(x, ((0, 0), (1, 1), (1, 1), (0, 0)), mode="reflect")
    xp = xp.astype(cd).astype(jnp.float32)
    t = _conv3x3_valid(xp, w1) + b1
    t = jnp.where(t >= 0.0, t, LEAKY_SLOPE * t)
    t = t.astype(cd).astype(jnp.float32)
    tp = jnp.pad(t, ((0, 0), (1, 1), (1, 1), (0, 0)), mode="reflect")
    y = _conv3x3_valid(tp, w2) + b2
    out = xp[:, 1:-1, 1:-1, :] + y * MULT_FACTOR
    return jnp.transpose(out, (0, 3, 1, 2)).astype(x_nchw.dtype)


if __name__ == "__main__":
    key = jax.random.PRNGKey(0)
    kx, kw1, kb1, kw2, kb2 = jax.random.split(key, 5)

    # Small shapes consistent with the module: NCHW image batch, 3x3 convs,
    # input_channels == channels (required by the residual add).
    N, C, H, W = 2, 64, 16, 16
    x_nchw = jax.random.normal(kx, (N, C, H, W), jnp.float32)

    fan_in = KSIZE * KSIZE * C
    params = {
        "w1": jax.random.normal(kw1, (KSIZE, KSIZE, C, C), jnp.float32) / jnp.sqrt(fan_in),
        "b1": 0.01 * jax.random.normal(kb1, (C,), jnp.float32),
        "w2": jax.random.normal(kw2, (KSIZE, KSIZE, C, C), jnp.float32) / jnp.sqrt(fan_in),
        "b2": 0.01 * jax.random.normal(kb2, (C,), jnp.float32),
    }

    fwd = jax.jit(functools.partial(residual_block_forward, params))
    y = fwd(x_nchw)
    jax.block_until_ready(y)

    assert y.shape == (N, C, H, W), y.shape
    assert bool(jnp.all(jnp.isfinite(y)))

    y_ref = residual_block_ref(params, x_nchw)
    err = float(jnp.max(jnp.abs(y.astype(jnp.float32) - y_ref.astype(jnp.float32))))
    assert err < 2e-2, f"max abs error {err}"
    print("KERNEL_OK")
</pallas_src>

<mosaic_0001>
module attributes {stable_mosaic.version = 11 : i64} {
  func.func @_residual_block_kernel(%arg0: i32, %arg1: memref<1x18x18x64xbf16, #tpu.memory_space<vmem>>, %arg2: memref<576x64xbf16, #tpu.memory_space<vmem>>, %arg3: memref<1x64xf32, #tpu.memory_space<vmem>>, %arg4: memref<576x64xbf16, #tpu.memory_space<vmem>>, %arg5: memref<1x64xf32, #tpu.memory_space<vmem>>, %arg6: memref<1x16x16x64xf32, #tpu.memory_space<vmem>>, %arg7: memref<256x576xbf16, #tpu.memory_space<vmem>>, %arg8: memref<18x18x64xbf16, #tpu.memory_space<vmem>>) attributes {dimension_semantics = [#tpu.dimension_semantics<parallel>], iteration_bounds = array<i64: 2>, scalar_prefetch = 0 : i64, scratch_operands = 2 : i64, tpu.core_type = #tpu.core_type<tc>, window_params = [{transform_indices = @transform_0, window_bounds = array<i64: 1, 18, 18, 64>}, {pipeline_mode = #tpu.pipeline_mode<synchronous>, transform_indices = @transform_1, window_bounds = array<i64: 576, 64>}, {pipeline_mode = #tpu.pipeline_mode<synchronous>, transform_indices = @transform_2, window_bounds = array<i64: 1, 64>}, {pipeline_mode = #tpu.pipeline_mode<synchronous>, transform_indices = @transform_3, window_bounds = array<i64: 576, 64>}, {pipeline_mode = #tpu.pipeline_mode<synchronous>, transform_indices = @transform_4, window_bounds = array<i64: 1, 64>}, {transform_indices = @transform_5, window_bounds = array<i64: 1, 16, 16, 64>}]} {
    %c0 = arith.constant 0 : index
    %c0_0 = arith.constant 0 : index
    %c0_1 = arith.constant 0 : index
    %c0_2 = arith.constant 0 : index
    %0 = vector.load %arg1[%c0, %c0_0, %c0_1, %c0_2] : memref<1x18x18x64xbf16, #tpu.memory_space<vmem>>, vector<1x16x16x64xbf16>
    %1 = vector.shape_cast %0 : vector<1x16x16x64xbf16> to vector<16x16x64xbf16>
    %2 = vector.shape_cast %1 : vector<16x16x64xbf16> to vector<256x64xbf16>
    %c0_3 = arith.constant 0 : index
    %c0_4 = arith.constant 0 : index
    %c1 = arith.constant 1 : index
    %c0_5 = arith.constant 0 : index
    %3 = vector.load %arg1[%c0_3, %c0_4, %c1, %c0_5] : memref<1x18x18x64xbf16, #tpu.memory_space<vmem>>, vector<1x16x16x64xbf16>
    %4 = vector.shape_cast %3 : vector<1x16x16x64xbf16> to vector<16x16x64xbf16>
    %5 = vector.shape_cast %4 : vector<16x16x64xbf16> to vector<256x64xbf16>
    %6 = tpu.concatenate %2, %5 in 1 : vector<256x64xbf16>, vector<256x64xbf16> -> vector<256x128xbf16>
    %c0_6 = arith.constant 0 : index
    %c0_7 = arith.constant 0 : index
    %7 = vector.load %arg7[%c0_6, %c0_7] : memref<256x576xbf16, #tpu.memory_space<vmem>>, vector<256x128xbf16>
    tpu.vector_store %arg7[%c0_6, %c0_7], %6 {strides = array<i32>} : memref<256x576xbf16, #tpu.memory_space<vmem>>, vector<256x128xbf16>,
    %c0_8 = arith.constant 0 : index
    %c0_9 = arith.constant 0 : index
    %c2 = arith.constant 2 : index
    %c0_10 = arith.constant 0 : index
    %8 = vector.load %arg1[%c0_8, %c0_9, %c2, %c0_10] : memref<1x18x18x64xbf16, #tpu.memory_space<vmem>>, vector<1x16x16x64xbf16>
    %9 = vector.shape_cast %8 : vector<1x16x16x64xbf16> to vector<16x16x64xbf16>
    %10 = vector.shape_cast %9 : vector<16x16x64xbf16> to vector<256x64xbf16>
    %c0_11 = arith.constant 0 : index
    %c1_12 = arith.constant 1 : index
    %c0_13 = arith.constant 0 : index
    %c0_14 = arith.constant 0 : index
    %11 = vector.load %arg1[%c0_11, %c1_12, %c0_13, %c0_14] : memref<1x18x18x64xbf16, #tpu.memory_space<vmem>>, vector<1x16x16x64xbf16>
    %12 = vector.shape_cast %11 : vector<1x16x16x64xbf16> to vector<16x16x64xbf16>
    %13 = vector.shape_cast %12 : vector<16x16x64xbf16> to vector<256x64xbf16>
    %14 = tpu.concatenate %10, %13 in 1 : vector<256x64xbf16>, vector<256x64xbf16> -> vector<256x128xbf16>
    %c0_15 = arith.constant 0 : index
    %c128 = arith.constant 128 : index
    %15 = vector.load %arg7[%c0_15, %c128] : memref<256x576xbf16, #tpu.memory_space<vmem>>, vector<256x128xbf16>
    tpu.vector_store %arg7[%c0_15, %c128], %14 {strides = array<i32>} : memref<256x576xbf16, #tpu.memory_space<vmem>>, vector<256x128xbf16>,
    %c0_16 = arith.constant 0 : index
    %c1_17 = arith.constant 1 : index
    %c1_18 = arith.constant 1 : index
    %c0_19 = arith.constant 0 : index
    %16 = vector.load %arg1[%c0_16, %c1_17, %c1_18, %c0_19] : memref<1x18x18x64xbf16, #tpu.memory_space<vmem>>, vector<1x16x16x64xbf16>
    %17 = vector.shape_cast %16 : vector<1x16x16x64xbf16> to vector<16x16x64xbf16>
    %18 = vector.shape_cast %17 : vector<16x16x64xbf16> to vector<256x64xbf16>
    %c0_20 = arith.constant 0 : index
    %c1_21 = arith.constant 1 : index
    %c2_22 = arith.constant 2 : index
    %c0_23 = arith.constant 0 : index
    %19 = vector.load %arg1[%c0_20, %c1_21, %c2_22, %c0_23] : memref<1x18x18x64xbf16, #tpu.memory_space<vmem>>, vector<1x16x16x64xbf16>
    %20 = vector.shape_cast %19 : vector<1x16x16x64xbf16> to vector<16x16x64xbf16>
    %21 = vector.shape_cast %20 : vector<16x16x64xbf16> to vector<256x64xbf16>
    %22 = tpu.concatenate %18, %21 in 1 : vector<256x64xbf16>, vector<256x64xbf16> -> vector<256x128xbf16>
    %c0_24 = arith.constant 0 : index
    %c256 = arith.constant 256 : index
    %23 = vector.load %arg7[%c0_24, %c256] : memref<256x576xbf16, #tpu.memory_space<vmem>>, vector<256x128xbf16>
    tpu.vector_store %arg7[%c0_24, %c256], %22 {strides = array<i32>} : memref<256x576xbf16, #tpu.memory_space<vmem>>, vector<256x128xbf16>,
    %c0_25 = arith.constant 0 : index
    %c2_26 = arith.constant 2 : index
    %c0_27 = arith.constant 0 : index
    %c0_28 = arith.constant 0 : index
    %24 = vector.load %arg1[%c0_25, %c2_26, %c0_27, %c0_28] : memref<1x18x18x64xbf16, #tpu.memory_space<vmem>>, vector<1x16x16x64xbf16>
    %25 = vector.shape_cast %24 : vector<1x16x16x64xbf16> to vector<16x16x64xbf16>
    %26 = vector.shape_cast %25 : vector<16x16x64xbf16> to vector<256x64xbf16>
    %c0_29 = arith.constant 0 : index
    %c2_30 = arith.constant 2 : index
    %c1_31 = arith.constant 1 : index
    %c0_32 = arith.constant 0 : index
    %27 = vector.load %arg1[%c0_29, %c2_30, %c1_31, %c0_32] : memref<1x18x18x64xbf16, #tpu.memory_space<vmem>>, vector<1x16x16x64xbf16>
    %28 = vector.shape_cast %27 : vector<1x16x16x64xbf16> to vector<16x16x64xbf16>
    %29 = vector.shape_cast %28 : vector<16x16x64xbf16> to vector<256x64xbf16>
    %30 = tpu.concatenate %26, %29 in 1 : vector<256x64xbf16>, vector<256x64xbf16> -> vector<256x128xbf16>
    %c0_33 = arith.constant 0 : index
    %c384 = arith.constant 384 : index
    %31 = vector.load %arg7[%c0_33, %c384] : memref<256x576xbf16, #tpu.memory_space<vmem>>, vector<256x128xbf16>
    tpu.vector_store %arg7[%c0_33, %c384], %30 {strides = array<i32>} : memref<256x576xbf16, #tpu.memory_space<vmem>>, vector<256x128xbf16>,
    %c0_34 = arith.constant 0 : index
    %c2_35 = arith.constant 2 : index
    %c2_36 = arith.constant 2 : index
    %c0_37 = arith.constant 0 : index
    %32 = vector.load %arg1[%c0_34, %c2_35, %c2_36, %c0_37] : memref<1x18x18x64xbf16, #tpu.memory_space<vmem>>, vector<1x16x16x64xbf16>
    %33 = vector.shape_cast %32 : vector<1x16x16x64xbf16> to vector<16x16x64xbf16>
    %34 = vector.shape_cast %33 : vector<16x16x64xbf16> to vector<256x64xbf16>
    %c0_38 = arith.constant 0 : index
    %c512 = arith.constant 512 : index
    %35 = vector.load %arg7[%c0_38, %c512] : memref<256x576xbf16, #tpu.memory_space<vmem>>, vector<256x64xbf16>
    tpu.vector_store %arg7[%c0_38, %c512], %34 {strides = array<i32>} : memref<256x576xbf16, #tpu.memory_space<vmem>>, vector<256x64xbf16>,
    %c0_39 = arith.constant 0 : index
    %c0_40 = arith.constant 0 : index
    %36 = vector.load %arg7[%c0_39, %c0_40] : memref<256x576xbf16, #tpu.memory_space<vmem>>, vector<256x576xbf16>
    %c0_41 = arith.constant 0 : index
    %c0_42 = arith.constant 0 : index
    %37 = vector.load %arg2[%c0_41, %c0_42] : memref<576x64xbf16, #tpu.memory_space<vmem>>, vector<576x64xbf16>
    %cst = arith.constant dense<0.000000e+00> : vector<256x64xf32>
    %38 = tpu.matmul %36, %37, %cst {dimension_numbers = #tpu.dot_dimension_numbers<[1], [0], [0], [1], [0, 0, 1, 1], [], []>} : vector<256x576xbf16>, vector<576x64xbf16>, vector<256x64xf32> -> vector<256x64xf32>
    %c0_43 = arith.constant 0 : index
    %c0_44 = arith.constant 0 : index
    %39 = vector.load %arg3[%c0_43, %c0_44] : memref<1x64xf32, #tpu.memory_space<vmem>>, vector<1x64xf32>
    %40 = vector.broadcast %39 : vector<1x64xf32> to vector<256x64xf32>
    %41 = arith.addf %38, %40 : vector<256x64xf32>
    %cst_45 = arith.constant 0.000000e+00 : f32
    %42 = vector.broadcast %cst_45 : f32 to vector<256x64xf32>
    %43 = arith.cmpf oge, %41, %42 : vector<256x64xf32>
    %cst_46 = arith.constant 2.000000e-01 : f32
    %44 = vector.broadcast %cst_46 : f32 to vector<256x64xf32>
    %45 = arith.mulf %44, %41 : vector<256x64xf32>
    %46 = arith.select %43, %41, %45 : vector<256x64xi1>, vector<256x64xf32>
    %47 = arith.truncf %46 : vector<256x64xf32> to vector<256x64xbf16>
    %48 = vector.shape_cast %47 : vector<256x64xbf16> to vector<16x16x64xbf16>
    %c1_47 = arith.constant 1 : index
    %c1_48 = arith.constant 1 : index
    %c0_49 = arith.constant 0 : index
    %49 = vector.load %arg8[%c1_47, %c1_48, %c0_49] : memref<18x18x64xbf16, #tpu.memory_space<vmem>>, vector<16x16x64xbf16>
    tpu.vector_store %arg8[%c1_47, %c1_48, %c0_49], %48 {strides = array<i32>} : memref<18x18x64xbf16, #tpu.memory_space<vmem>>, vector<16x16x64xbf16>,
    %50 = vector.extract_strided_slice %48 {offsets = [1, 0, 0], sizes = [1, 16, 64], strides = [1, 1, 1]} : vector<16x16x64xbf16> to vector<1x16x64xbf16>
    %c0_50 = arith.constant 0 : index
    %c1_51 = arith.constant 1 : index
    %c0_52 = arith.constant 0 : index
    %51 = vector.load %arg8[%c0_50, %c1_51, %c0_52] : memref<18x18x64xbf16, #tpu.memory_space<vmem>>, vector<1x16x64xbf16>
    tpu.vector_store %arg8[%c0_50, %c1_51, %c0_52], %50 {strides = array<i32>} : memref<18x18x64xbf16, #tpu.memory_space<vmem>>, vector<1x16x64xbf16>,
    %52 = vector.extract_strided_slice %48 {offsets = [14, 0, 0], sizes = [1, 16, 64], strides = [1, 1, 1]} : vector<16x16x64xbf16> to vector<1x16x64xbf16>
    %c17 = arith.constant 17 : index
    %c1_53 = arith.constant 1 : index
    %c0_54 = arith.constant 0 : index
    %53 = vector.load %arg8[%c17, %c1_53, %c0_54] : memref<18x18x64xbf16, #tpu.memory_space<vmem>>, vector<1x16x64xbf16>
    tpu.vector_store %arg8[%c17, %c1_53, %c0_54], %52 {strides = array<i32>} : memref<18x18x64xbf16, #tpu.memory_space<vmem>>, vector<1x16x64xbf16>,
    %c0_55 = arith.constant 0 : index
    %c2_56 = arith.constant 2 : index
    %c0_57 = arith.constant 0 : index
    %54 = vector.load %arg8[%c0_55, %c2_56, %c0_57] : memref<18x18x64xbf16, #tpu.memory_space<vmem>>, vector<18x1x64xbf16>
    %c0_58 = arith.constant 0 : index
    %c0_59 = arith.constant 0 : index
    %c0_60 = arith.constant 0 : index
    %55 = vector.load %arg8[%c0_58, %c0_59, %c0_60] : memref<18x18x64xbf16, #tpu.memory_space<vmem>>, vector<18x1x64xbf16>
    tpu.vector_store %arg8[%c0_58, %c0_59, %c0_60], %54 {strides = array<i32>} : memref<18x18x64xbf16, #tpu.memory_space<vmem>>, vector<18x1x64xbf16>,
    %c0_61 = arith.constant 0 : index
    %c15 = arith.constant 15 : index
    %c0_62 = arith.constant 0 : index
    %56 = vector.load %arg8[%c0_61, %c15, %c0_62] : memref<18x18x64xbf16, #tpu.memory_space<vmem>>, vector<18x1x64xbf16>
    %c0_63 = arith.constant 0 : index
    %c17_64 = arith.constant 17 : index
    %c0_65 = arith.constant 0 : index
    %57 = vector.load %arg8[%c0_63, %c17_64, %c0_65] : memref<18x18x64xbf16, #tpu.memory_space<vmem>>, vector<18x1x64xbf16>
    tpu.vector_store %arg8[%c0_63, %c17_64, %c0_65], %56 {strides = array<i32>} : memref<18x18x64xbf16, #tpu.memory_space<vmem>>, vector<18x1x64xbf16>,
    %c0_66 = arith.constant 0 : index
    %c0_67 = arith.constant 0 : index
    %c0_68 = arith.constant 0 : index
    %58 = vector.load %arg8[%c0_66, %c0_67, %c0_68] : memref<18x18x64xbf16, #tpu.memory_space<vmem>>, vector<16x16x64xbf16>
    %59 = vector.shape_cast %58 : vector<16x16x64xbf16> to vector<256x64xbf16>
    %c0_69 = arith.constant 0 : index
    %c1_70 = arith.constant 1 : index
    %c0_71 = arith.constant 0 : index
    %60 = vector.load %arg8[%c0_69, %c1_70, %c0_71] : memref<18x18x64xbf16, #tpu.memory_space<vmem>>, vector<16x16x64xbf16>
    %61 = vector.shape_cast %60 : vector<16x16x64xbf16> to vector<256x64xbf16>
    %62 = tpu.concatenate %59, %61 in 1 : vector<256x64xbf16>, vector<256x64xbf16> -> vector<256x128xbf16>
    %c0_72 = arith.constant 0 : index
    %c0_73 = arith.constant 0 : index
    %63 = vector.load %arg7[%c0_72, %c0_73] : memref<256x576xbf16, #tpu.memory_space<vmem>>, vector<256x128xbf16>
    tpu.vector_store %arg7[%c0_72, %c0_73], %62 {strides = array<i32>} : memref<256x576xbf16, #tpu.memory_space<vmem>>, vector<256x128xbf16>,
    %c0_74 = arith.constant 0 : index
    %c2_75 = arith.constant 2 : index
    %c0_76 = arith.constant 0 : index
    %64 = vector.load %arg8[%c0_74, %c2_75, %c0_76] : memref<18x18x64xbf16, #tpu.memory_space<vmem>>, vector<16x16x64xbf16>
    %65 = vector.shape_cast %64 : vector<16x16x64xbf16> to vector<256x64xbf16>
    %c1_77 = arith.constant 1 : index
    %c0_78 = arith.constant 0 : index
    %c0_79 = arith.constant 0 : index
    %66 = vector.load %arg8[%c1_77, %c0_78, %c0_79] : memref<18x18x64xbf16, #tpu.memory_space<vmem>>, vector<16x16x64xbf16>
    %67 = vector.shape_cast %66 : vector<16x16x64xbf16> to vector<256x64xbf16>
    %68 = tpu.concatenate %65, %67 in 1 : vector<256x64xbf16>, vector<256x64xbf16> -> vector<256x128xbf16>
    %c0_80 = arith.constant 0 : index
    %c128_81 = arith.constant 128 : index
    %69 = vector.load %arg7[%c0_80, %c128_81] : memref<256x576xbf16, #tpu.memory_space<vmem>>, vector<256x128xbf16>
    tpu.vector_store %arg7[%c0_80, %c128_81], %68 {strides = array<i32>} : memref<256x576xbf16, #tpu.memory_space<vmem>>, vector<256x128xbf16>,
    %c1_82 = arith.constant 1 : index
    %c1_83 = arith.constant 1 : index
    %c0_84 = arith.constant 0 : index
    %70 = vector.load %arg8[%c1_82, %c1_83, %c0_84] : memref<18x18x64xbf16, #tpu.memory_space<vmem>>, vector<16x16x64xbf16>
    %71 = vector.shape_cast %70 : vector<16x16x64xbf16> to vector<256x64xbf16>
    %c1_85 = arith.constant 1 : index
    %c2_86 = arith.constant 2 : index
    %c0_87 = arith.constant 0 : index
    %72 = vector.load %arg8[%c1_85, %c2_86, %c0_87] : memref<18x18x64xbf16, #tpu.memory_space<vmem>>, vector<16x16x64xbf16>
    %73 = vector.shape_cast %72 : vector<16x16x64xbf16> to vector<256x64xbf16>
    %74 = tpu.concatenate %71, %73 in 1 : vector<256x64xbf16>, vector<256x64xbf16> -> vector<256x128xbf16>
    %c0_88 = arith.constant 0 : index
    %c256_89 = arith.constant 256 : index
    %75 = vector.load %arg7[%c0_88, %c256_89] : memref<256x576xbf16, #tpu.memory_space<vmem>>, vector<256x128xbf16>
    tpu.vector_store %arg7[%c0_88, %c256_89], %74 {strides = array<i32>} : memref<256x576xbf16, #tpu.memory_space<vmem>>, vector<256x128xbf16>,
    %c2_90 = arith.constant 2 : index
    %c0_91 = arith.constant 0 : index
    %c0_92 = arith.constant 0 : index
    %76 = vector.load %arg8[%c2_90, %c0_91, %c0_92] : memref<18x18x64xbf16, #tpu.memory_space<vmem>>, vector<16x16x64xbf16>
    %77 = vector.shape_cast %76 : vector<16x16x64xbf16> to vector<256x64xbf16>
    %c2_93 = arith.constant 2 : index
    %c1_94 = arith.constant 1 : index
    %c0_95 = arith.constant 0 : index
    %78 = vector.load %arg8[%c2_93, %c1_94, %c0_95] : memref<18x18x64xbf16, #tpu.memory_space<vmem>>, vector<16x16x64xbf16>
    %79 = vector.shape_cast %78 : vector<16x16x64xbf16> to vector<256x64xbf16>
    %80 = tpu.concatenate %77, %79 in 1 : vector<256x64xbf16>, vector<256x64xbf16> -> vector<256x128xbf16>
    %c0_96 = arith.constant 0 : index
    %c384_97 = arith.constant 384 : index
    %81 = vector.load %arg7[%c0_96, %c384_97] : memref<256x576xbf16, #tpu.memory_space<vmem>>, vector<256x128xbf16>
    tpu.vector_store %arg7[%c0_96, %c384_97], %80 {strides = array<i32>} : memref<256x576xbf16, #tpu.memory_space<vmem>>, vector<256x128xbf16>,
    %c2_98 = arith.constant 2 : index
    %c2_99 = arith.constant 2 : index
    %c0_100 = arith.constant 0 : index
    %82 = vector.load %arg8[%c2_98, %c2_99, %c0_100] : memref<18x18x64xbf16, #tpu.memory_space<vmem>>, vector<16x16x64xbf16>
    %83 = vector.shape_cast %82 : vector<16x16x64xbf16> to vector<256x64xbf16>
    %c0_101 = arith.constant 0 : index
    %c512_102 = arith.constant 512 : index
    %84 = vector.load %arg7[%c0_101, %c512_102] : memref<256x576xbf16, #tpu.memory_space<vmem>>, vector<256x64xbf16>
    tpu.vector_store %arg7[%c0_101, %c512_102], %83 {strides = array<i32>} : memref<256x576xbf16, #tpu.memory_space<vmem>>, vector<256x64xbf16>,
    %c0_103 = arith.constant 0 : index
    %c0_104 = arith.constant 0 : index
    %85 = vector.load %arg7[%c0_103, %c0_104] : memref<256x576xbf16, #tpu.memory_space<vmem>>, vector<256x576xbf16>
    %c0_105 = arith.constant 0 : index
    %c0_106 = arith.constant 0 : index
    %86 = vector.load %arg4[%c0_105, %c0_106] : memref<576x64xbf16, #tpu.memory_space<vmem>>, vector<576x64xbf16>
    %cst_107 = arith.constant dense<0.000000e+00> : vector<256x64xf32>
    %87 = tpu.matmul %85, %86, %cst_107 {dimension_numbers = #tpu.dot_dimension_numbers<[1], [0], [0], [1], [0, 0, 1, 1], [], []>} : vector<256x576xbf16>, vector<576x64xbf16>, vector<256x64xf32> -> vector<256x64xf32>
    %c0_108 = arith.constant 0 : index
    %c0_109 = arith.constant 0 : index
    %88 = vector.load %arg5[%c0_108, %c0_109] : memref<1x64xf32, #tpu.memory_space<vmem>>, vector<1x64xf32>
    %89 = vector.broadcast %88 : vector<1x64xf32> to vector<256x64xf32>
    %90 = arith.addf %87, %89 : vector<256x64xf32>
    %c0_110 = arith.constant 0 : index
    %c1_111 = arith.constant 1 : index
    %c1_112 = arith.constant 1 : index
    %c0_113 = arith.constant 0 : index
    %91 = vector.load %arg1[%c0_110, %c1_111, %c1_112, %c0_113] : memref<1x18x18x64xbf16, #tpu.memory_space<vmem>>, vector<1x16x16x64xbf16>
    %92 = vector.shape_cast %91 : vector<1x16x16x64xbf16> to vector<16x16x64xbf16>
    %93 = vector.shape_cast %92 : vector<16x16x64xbf16> to vector<256x64xbf16>
    %94 = arith.extf %93 : vector<256x64xbf16> to vector<256x64xf32>
    %cst_114 = arith.constant 1.000000e+00 : f32
    %95 = vector.broadcast %cst_114 : f32 to vector<256x64xf32>
    %96 = arith.mulf %90, %95 : vector<256x64xf32>
    %97 = arith.addf %94, %96 : vector<256x64xf32>
    %98 = vector.shape_cast %97 : vector<256x64xf32> to vector<16x16x64xf32>
    %c0_115 = arith.constant 0 : index
    %c0_116 = arith.constant 0 : index
    %c0_117 = arith.constant 0 : index
    %c0_118 = arith.constant 0 : index
    %99 = vector.load %arg6[%c0_115, %c0_116, %c0_117, %c0_118] : memref<1x16x16x64xf32, #tpu.memory_space<vmem>>, vector<1x16x16x64xf32>
    %100 = vector.shape_cast %99 : vector<1x16x16x64xf32> to vector<16x16x64xf32>
    %101 = vector.shape_cast %98 : vector<16x16x64xf32> to vector<1x16x16x64xf32>
    tpu.vector_store %arg6[%c0_115, %c0_116, %c0_117, %c0_118], %101 {strides = array<i32>} : memref<1x16x16x64xf32, #tpu.memory_space<vmem>>, vector<1x16x16x64xf32>,
    return
  }
  func.func @transform_0(%arg0: i32) -> (i32, i32, i32, i32) {
    %c0_i32 = arith.constant 0 : i32
    %c0_i32_0 = arith.constant 0 : i32
    %c0_i32_1 = arith.constant 0 : i32
    %c0_i32_2 = arith.constant 0 : i32
    return %arg0, %c0_i32, %c0_i32_0, %c0_i32_1 : i32, i32, i32, i32
  }
  func.func @transform_1(%arg0: i32) -> (i32, i32) {
    %c0_i32 = arith.constant 0 : i32
    %c0_i32_0 = arith.constant 0 : i32
    %c0_i32_1 = arith.constant 0 : i32
    return %c0_i32, %c0_i32_0 : i32, i32
  }
  func.func @transform_2(%arg0: i32) -> (i32, i32) {
    %c0_i32 = arith.constant 0 : i32
    %c0_i32_0 = arith.constant 0 : i32
    %c0_i32_1 = arith.constant 0 : i32
    return %c0_i32, %c0_i32_0 : i32, i32
  }
  func.func @transform_3(%arg0: i32) -> (i32, i32) {
    %c0_i32 = arith.constant 0 : i32
    %c0_i32_0 = arith.constant 0 : i32
    %c0_i32_1 = arith.constant 0 : i32
    return %c0_i32, %c0_i32_0 : i32, i32
  }
  func.func @transform_4(%arg0: i32) -> (i32, i32) {
    %c0_i32 = arith.constant 0 : i32
    %c0_i32_0 = arith.constant 0 : i32
    %c0_i32_1 = arith.constant 0 : i32
    return %c0_i32, %c0_i32_0 : i32, i32
  }
  func.func @transform_5(%arg0: i32) -> (i32, i32, i32, i32) {
    %c0_i32 = arith.constant 0 : i32
    %c0_i32_0 = arith.constant 0 : i32
    %c0_i32_1 = arith.constant 0 : i32
    %c0_i32_2 = arith.constant 0 : i32
    return %arg0, %c0_i32, %c0_i32_0, %c0_i32_1 : i32, i32, i32, i32
  }
}

</mosaic_0001>

<bundles_post_ra>
// kernel: residual_block_forward.1
= control target key start
LH: loop header
LB: loop body
LE: loop exit
PB: predicated region body
PF: predicated region fallthrough
CT: control target
= control target key end

     0   :  { %10 = vsyncpa [#allocation5], 0  ;;  %s17735_s0 = inlined_call_operand.vmem [shape: bf16[2,18,18,64], index: 0, kind: input, shape index: {}]   ;;  %s17736_s1 = inlined_call_operand.vmem [shape: bf16[576,64], index: 1, kind: input, shape index: {}]   ;;  %s17737_s2 = inlined_call_operand.vmem [shape: f32[1,64], index: 2, kind: input, shape index: {}]   ;;  %s17738_s3 = inlined_call_operand.vmem [shape: bf16[576,64], index: 3, kind: input, shape index: {}]   ;;  %s17739_s4 = inlined_call_operand.vmem [shape: f32[1,64], index: 4, kind: input, shape index: {}]   ;;  %s17740_s5 = inlined_call_operand.hbm [shape: f32[2,16,16,64], index: 5, kind: output, shape index: {}]  }
   0x1   :  { %12 = vsyncpa [#allocation5 + $0x1], 0  ;;  %s13650_s18 = smov 0   ;;  %s13652_s19 = smov 0  }
   0x2   :  { %s13654_s20 = smov 0   ;;  %s13656_s21 = smov 0  }
   0x3 LB: > { %s13671_s22 = sadd.s32 4294967295, %s13614_s21   ;;  %s11172_s23 = sadd.s32 4294967294, %s13614_s21   ;;  %s13614_s21 = sphi %s13656_s21, %s18102_s21   ;;  %s13610_s20 = sphi %s13654_s20, %s18101_s20   ;;  %s13606_s19 = sphi %s13652_s19, %s18100_s19   ;;  %s13602_s18 = sphi %s13650_s18, %s18099_s18  }
   0x4   : > { %s13675_s24 = sadd.s32 1, %s13614_s21   ;;  %s135_s25 = sadd.s32 1, %s13610_s20 }
   0x5   : > { %s132_s26 = ssub.s32 %s13614_s21, %s13675_s24  ;;  %p145_p0 = scmp.ne.s32.totalorder %s13610_s20, %s13606_s19 }
   0x6   : > { %p133_p1 = scmp.eq.s32.totalorder %s132_s26, 0  ;;  %p146_p2 = scmp.eq.s32.totalorder %s13671_s22, 1 }
   0x7   : > { %p151_p3 = scmp.ne.s32.totalorder %s13606_s19, %s13602_s18  ;;  %p152_p4 = scmp.eq.s32.totalorder %s11172_s23, 1 }
   0x8   : > { %s13686_s27 = scalar_select %p133_p1, %s13610_s20, %s135_s25  }
   0x9   : > { %p13688_p5 = por %p146_p2, %p145_p0  ;;  %p13692_p6 = por %p152_p4, %p151_p3 }
   0xa   : > { %p11175_p7 = scmp.ge.s32.totalorder %s13614_s21, 1  ;;  %p190_p8 = scmp.lt.s32.totalorder %s13614_s21, 3 }
   0xc   : > { %p191_p9 = pnand %p11175_p7, %p190_p8 }
   0xe   : > { %194 = sbr.rel (%p191_p9) target bundleno = 1305 (0x519), region = 40 }
  0x13   : > { %p218_p10 = scmp.lt.s32.totalorder %s13671_s22, 1  ;;  %vm272_vm0 = vsmask.f32 3328  ;;  %vm273_vm1 = vsmask.f32 7440  ;;  %v13025_v0 = vld [vmem:[%s17736_s1 + $0x78] sm:$0xff]  }
  0x14   : > { %v13026_v1 = vld [vmem:[%s17736_s1 + $0x38] sm:$0xff]   ;;  %12398 = vmatprep.subr.bf16.mxu0 %v13025_v0  ;;  %v13027_v2 = vld [vmem:[%s17736_s1 + $0x70] sm:$0xff]   ;;  %v13029_v4 = vld [vmem:[%s17736_s1 + $0x68] sm:$0xff]   ;;  %v17788_v30 = vmov 0  ;;  %s13616_s26 = smov 64   ;;  %vm1108_vm3 = vcmask 1042432  }
  0x15   : > { %s219_s30 = scalar_select %p218_p10, %s13671_s22, 1  ;;  %12399 = vmatpush3.bf16.msra.mxu0 %v13026_v1  ;;  %v13028_v3 = vld [vmem:[%s17736_s1 + $0x30] sm:$0xff]   ;;  %vm13746_vm2 = vmor %vm272_vm0, %vm273_vm1  ;;  %vm1109_vm4 = vcmask 1046532   ;;  %vm819_vm6 = vcmask 523264   ;;  %vm3561_vm7 = vcmask 519168   ;;  %vm5439_vm12 = vcmask 516096  }
  0x16   : > { %12400 = vmatprep.subr.bf16.mxu0 %v13027_v2  ;;  %v17789_v30 = vsel %vm13746_vm2, 4294967295, %v17788_v30  ;;  %vm13955_vm5 = vmor %vm1108_vm3, %vm1109_vm4  ;;  %vm5433_vm8 = vsmask.f32 7938  ;;  %vm5108_vm11 = vsmask.f32 256  ;;  %s215_s6 = sand.u32 1, %s13606_s19  }
  0x17   : > { %s12966_s10 = smul.u32 216, %s219_s30  ;;  %17790 = vst [vmem:[#allocation7_spill] sm:$0xff] %v17789_v30  ;;  %vm5109_vm13 = vsmask.f32 4368  ;;  %vm15306_vm0 = vmand %vm3561_vm7, %vm5433_vm8  ;;  %s17359_s7 = sshll.u32 %s215_s6, 8 }
  0x18   : > { %vm15339_vm4 = vmand %vm5439_vm12, %vm5108_vm11  ;;  %s17389_s8 = scalar_lea.vmem [#allocation4], %s17359_s7  ;;  %s13617_s16 = smov [#allocation4]  }
  0x19   : > { %s13715_s17 = scalar_lea.vmem %s17735_s0, %s12966_s10  ;;  %12401 = vmatpush3.bf16.msra.mxu0 %v13028_v3  ;;  %s11110_s11 = sshll.u32 %s17389_s8, 4  ;;  %s17687_s11 = int_to_ptr.vmem [resolvable:$true] %s11110_s11 }
  0x1a   : > { %v13721_v5 = vld [vmem:[%s13715_s17 + $0xc] sm:$0xf]  ;;  %v13724_v6 = vld [vmem:[%s13715_s17 + $0x10] sm:$0xf]  ;;  %v257_v7 = vld [vmem:[%s13715_s17 + $0x14] sm:$0x1]  ;;  %12402 = vmatprep.subr.bf16.mxu0 %v13029_v4 }
  0x1b   : > { %v300_v8 = vshrl.u32 %v13721_v5, 16  ;;  %v303_v9 = vshll.u32 %v13721_v5, 16  ;;  %v309_v10 = vshll.u32 %v13724_v6, 16  ;;  %v313_v11 = vshrl.u32 %v13724_v6, 16  ;;  %v13732_v12 = vld [vmem:[%s13715_s17] sm:$0xf] }
  0x1c   : > { %v319_v13 = vshll.u32 %v257_v7, 16  ;;  %v13735_v14 = vld [vmem:[%s13715_s17 + $0x4] sm:$0xf]  ;;  %v256_v15 = vld [vmem:[%s13715_s17 + $0x8] sm:$0x1]  ;;  %v276_v16 = vshrl.u32 %v13732_v12, 16  ;;  %v11179_v17 = vcombine.low %v13721_v5, %v13724_v6 }
  0x1d   : > { %v302_v18 = vrot.slane %v300_v8, 4  ;;  %v305_v19 = vrot.slane %v303_v9, 5  ;;  %v311_v20 = vrot.slane %v309_v10, 5  ;;  %v315_v21 = vrot.slane %v313_v11, 4  ;;  %v13753_v39 = vld [vmem:[%s13715_s17 + $0x18] sm:$0xf] }
  0x1e   : > { %v321_v22 = vrot.slane %v319_v13, 5  ;;  %v278_v23 = vrot.slane %v276_v16, 4  ;;  %v279_v24 = vshll.u32 %v13732_v12, 16  ;;  %v285_v25 = vshll.u32 %v13735_v14, 16  ;;  %v13756_v40 = vld [vmem:[%s13715_s17 + $0x1c] sm:$0xf] }
  0x1f   : > { %v306_v26 = vor.u32 %v305_v19, %v302_v18  ;;  %v316_v27 = vor.u32 %v315_v21, %v311_v20  ;;  %v289_v28 = vshrl.u32 %v13735_v14, 16  ;;  %v295_v29 = vshll.u32 %v256_v15, 16  ;;  %v258_v44 = vld [vmem:[%s13715_s17 + $0x20] sm:$0x1]  ;;  %v13009_v48 = vld [vmem:[%s13715_s17 + $0x18] sm:$0xff]   ;;  %v13010_v3 = vld [vmem:[%s13715_s17 + $0xc] sm:$0xff]  }
  0x20   : > { %v281_v31 = vrot.slane %v279_v24, 5  ;;  %v287_v32 = vrot.slane %v285_v25, 5  ;;  %v11178_v33 = vcombine.low %v13732_v12, %v13735_v14  ;;  %v324_v45 = vshrl.u32 %v13753_v39, 16  ;;  %v230_v55 = vld [vmem:[%s13715_s17 + $0x24] sm:$0xf]  ;;  %s13554_s15 = scalar_lea.vmem %s17687_s11, 4096 }
  0x21   : > { %v307_v34 = vrot.slane %v306_v26, 4  ;;  %v317_v35 = vrot.slane %v316_v27, 4  ;;  %v291_v36 = vrot.slane %v289_v28, 4  ;;  %v297_v38 = vrot.slane %v295_v29, 5  ;;  %v231_v59 = vld [vmem:[%s13715_s17 + $0x28] sm:$0xf]  ;;  %p13555_p11 = scmp.ne.s32.totalorder %s17687_s11, %s13554_s15 }
  0x22   : > { %v282_v37 = vor.u32 %v281_v31, %v278_v23  ;;  %v327_v49 = vshll.u32 %v13753_v39, 16  ;;  %v333_v50 = vshll.u32 %v13756_v40, 16  ;;  %v326_v52 = vrot.slane %v324_v45, 4  ;;  %v259_v60 = vld [vmem:[%s13715_s17 + $0x2c] sm:$0x1]  ;;  %v13011_v10 = vld [vmem:[%s13715_s17 + $0x24] sm:$0xff]  }
  0x23   : > { %v312_v41 = vsel %vm13746_vm2, %v307_v34, %v311_v20  ;;  %v322_v42 = vsel %vm13746_vm2, %v317_v35, %v321_v22  ;;  %v292_v43 = vor.u32 %v291_v36, %v287_v32  ;;  %v337_v53 = vshrl.u32 %v13756_v40, 16  ;;  %v232_v9 = vld [vmem:[%s13715_s17 + $0x30] sm:$0xf]  ;;  %v233_v18 = vld [vmem:[%s13715_s17 + $0x34] sm:$0xf]  ;;  %p13556_p12 = pnand %p13555_p11, %p13688_p5  ;;  %s13558_s23 = sshll.u32 %s13617_s16, 4  ;;  %s13559_s23 = int_to_ptr.vmem [resolvable:$false] %s13558_s23 }
  0x24   : > { %v11195_v46 = vcombine.low %v312_v41, %v322_v42  ;;  %v283_v47 = vrot.slane %v282_v37, 4  ;;  %v343_v54 = vshll.u32 %v258_v44, 16  ;;  %v329_v57 = vrot.slane %v327_v49, 5  ;;  %v260_v22 = vld [vmem:[%s13715_s17 + $0x38] sm:$0x1]  ;;  %s13560_s25 = scalar_lea.vmem %s13559_s23, 8192  ;;  %p13561_p0 = scmp.lt.s32.totalorder %s17687_s11, %s13559_s23 }
  0x25   : > { %v293_v51 = vrot.slane %v292_v43, 4  ;;  %v335_v58 = vrot.slane %v333_v50, 5  ;;  %v11180_v61 = vcombine.low %v13753_v39, %v13756_v40  ;;  %v339_v63 = vrot.slane %v337_v53, 4  ;;  %v234_v34 = vld [vmem:[%s13715_s17 + $0x3c] sm:$0xf]  ;;  %v13012_v43 = vld [vmem:[%s13715_s17 + $0x30] sm:$0xff]   ;;  %p13557_p13 = pneg %p13556_p12  ;;  %p13562_p1 = scmp.lt.s32.totalorder %s13560_s25, %s13554_s15 }
  0x26   : > { %789 = vrot.lane.b32.xlu1 %v11195_v46, %s13616_s26  ;;  %v288_v56 = vsel %vm13746_vm2, %v283_v47, %v287_v32  ;;  %v345_v0 = vrot.slane %v343_v54, 5  ;;  %v348_v1 = vshrl.u32 %v230_v55, 16  ;;  %v330_v4 = vor.u32 %v329_v57, %v326_v52  ;;  %v235_v41 = vld [vmem:[%s13715_s17 + $0x40] sm:$0xf]  ;;  %v261_v47 = vld [vmem:[%s13715_s17 + $0x44] sm:$0x1] }
  0x27   : > { %v298_v62 = vsel %vm13746_vm2, %v293_v51, %v297_v38  ;;  %v351_v7 = vshll.u32 %v230_v55, 16  ;;  %v357_v8 = vshll.u32 %v231_v59, 16  ;;  %v340_v11 = vor.u32 %v339_v63, %v335_v58  ;;  %p13563_p2 = por %p13562_p1, %p13561_p0 }
  0x28   : > { %v11194_v2 = vcombine.low %v288_v56, %v298_v62  ;;  %v350_v13 = vrot.slane %v348_v1, 4  ;;  %v361_v15 = vshrl.u32 %v231_v59, 16  ;;  %v367_v16 = vshll.u32 %v259_v60, 16  ;;  %v236_v56 = vld [vmem:[%s13715_s17 + $0x48] sm:$0xf] }
  0x29   : > { %v331_v19 = vrot.slane %v330_v4, 4  ;;  %v353_v20 = vrot.slane %v351_v7, 5  ;;  %v359_v21 = vrot.slane %v357_v8, 5  ;;  %v372_v23 = vshrl.u32 %v232_v9, 16  ;;  %v237_v62 = vld [vmem:[%s13715_s17 + $0x4c] sm:$0xf]  ;;  %p13564_p3 = pnand %p13563_p2, %p13557_p13 }
  0x2a   : > { %787 = vrot.lane.b32.xlu0 %v11194_v2, %s13616_s26  ;;  %1386 = vrot.lane.b32.xlu1 %v13009_v48, %s13616_s26  ;;  %v341_v24 = vrot.slane %v340_v11, 4  ;;  %v363_v25 = vrot.slane %v361_v15, 4  ;;  %v369_v26 = vrot.slane %v367_v16, 5  ;;  %v375_v27 = vshll.u32 %v232_v9, 16  ;;  %v262_v4 = vld [vmem:[%s13715_s17 + $0x50] sm:$0x1] }
  0x2b   : > { %v336_v28 = vsel %vm13746_vm2, %v331_v19, %v335_v58  ;;  %v354_v29 = vor.u32 %v353_v20, %v350_v13  ;;  %v374_v31 = vrot.slane %v372_v23, 4  ;;  %v381_v32 = vshll.u32 %v233_v18, 16  ;;  %v13014_v20 = vld [vmem:[%s13715_s17 + $0x48] sm:$0xff]  }
  0x2c   : > { %v346_v35 = vsel %vm13746_vm2, %v341_v24, %v345_v0  ;;  %v364_v36 = vor.u32 %v363_v25, %v359_v21  ;;  %v377_v37 = vrot.slane %v375_v27, 5  ;;  %v385_v38 = vshrl.u32 %v233_v18, 16  ;;  %v13013_v0 = vld [vmem:[%s13715_s17 + $0x3c] sm:$0xff]   ;;  %v238_v18 = vld [vmem:[%s13715_s17 + $0x54] sm:$0xf] }
  0x2d   : > { %v11196_v42 = vcombine.low %v336_v28, %v346_v35  ;;  %v355_v44 = vrot.slane %v354_v29, 4  ;;  %v383_v45 = vrot.slane %v381_v32, 5  ;;  %v391_v46 = vshll.u32 %v260_v22, 16  ;;  %v239_v28 = vld [vmem:[%s13715_s17 + $0x58] sm:$0xf] }
  0x2e   : > { %1384 = vrot.lane.b32.xlu0 %v13010_v3, %s13616_s26  ;;  %1388 = vrot.lane.b32.xlu1 %v13011_v10, %s13616_s26  ;;  %v365_v48 = vrot.slane %v364_v36, 4  ;;  %v378_v49 = vor.u32 %v377_v37, %v374_v31  ;;  %v387_v50 = vrot.slane %v385_v38, 4  ;;  %v396_v51 = vshrl.u32 %v234_v34, 16  ;;  %v263_v38 = vld [vmem:[%s13715_s17 + $0x5c] sm:$0x1] }
  0x2f   : > { %v360_v52 = vsel %vm13746_vm2, %v355_v44, %v359_v21  ;;  %v393_v53 = vrot.slane %v391_v46, 5  ;;  %v399_v54 = vshll.u32 %v234_v34, 16  ;;  %v405_v55 = vshll.u32 %v235_v41, 16 }
  0x30   : > { %v370_v57 = vsel %vm13746_vm2, %v365_v48, %v369_v26  ;;  %v379_v58 = vrot.slane %v378_v49, 4  ;;  %v388_v59 = vor.u32 %v387_v50, %v383_v45  ;;  %v398_v60 = vrot.slane %v396_v51, 4  ;;  %v13015_v49 = vld [vmem:[%s13715_s17 + $0x54] sm:$0xff]  }
  0x31   : > { %v11197_v63 = vcombine.low %v360_v52, %v370_v57  ;;  %v401_v1 = vrot.slane %v399_v54, 5  ;;  %v407_v2 = vrot.slane %v405_v55, 5  ;;  %v409_v3 = vshrl.u32 %v235_v41, 16  ;;  %v13030_v57 = vld [vmem:[%s17736_s1 + $0x28] sm:$0xff]  }
  0x32   : > { %791 = vrot.lane.b32.xlu0 %v11196_v42, %s13616_s26  ;;  %1390 = vrot.lane.b32.xlu1 %v13012_v43, %s13616_s26  ;;  %v384_v7 = vsel %vm13746_vm2, %v379_v58, %v383_v45  ;;  %v389_v8 = vrot.slane %v388_v59, 4  ;;  %v415_v9 = vshll.u32 %v261_v47, 16  ;;  %v420_v10 = vshrl.u32 %v236_v56, 16  ;;  %v240_v42 = vld [vmem:[%s13715_s17 + $0x60] sm:$0xf] }
  0x33   : > { %v402_v11 = vor.u32 %v401_v1, %v398_v60  ;;  %v411_v13 = vrot.slane %v409_v3, 4  ;;  %v423_v15 = vshll.u32 %v236_v56, 16  ;;  %v429_v16 = vshll.u32 %v237_v62, 16  ;;  %v241_v47 = vld [vmem:[%s13715_s17 + $0x64] sm:$0xf]  ;;  %12403 = vmatpush3.bf16.msra.mxu0 %v13030_v57 }
  0x34   : > { %v394_v19 = vsel %vm13746_vm2, %v389_v8, %v393_v53  ;;  %v417_v21 = vrot.slane %v415_v9, 5  ;;  %v422_v22 = vrot.slane %v420_v10, 4  ;;  %v433_v23 = vshrl.u32 %v237_v62, 16  ;;  %v13016_v59 = vld [vmem:[%s13715_s17 + $0x60] sm:$0xff]   ;;  %v242_v1 = vld [vmem:[%s13715_s17 + $0x6c] sm:$0xf] }
  0x35   : > { %v11198_v24 = vcombine.low %v384_v7, %v394_v19  ;;  %v403_v25 = vrot.slane %v402_v11, 4  ;;  %v412_v26 = vor.u32 %v411_v13, %v407_v2  ;;  %v425_v27 = vrot.slane %v423_v15, 5  ;;  %v243_v8 = vld [vmem:[%s13715_s17 + $0x70] sm:$0xf]  ;;  %v13031_v9 = vld [vmem:[%s17736_s1 + $0x60] sm:$0xff]  }
  0x36   : > { %793 = vrot.lane.b32.xlu0 %v11197_v63, %s13616_s26  ;;  %1392 = vrot.lane.b32.xlu1 %v13013_v0, %s13616_s26  ;;  %v431_v29 = vrot.slane %v429_v16, 5  ;;  %v435_v31 = vrot.slane %v433_v23, 4  ;;  %v439_v32 = vshll.u32 %v262_v4, 16  ;;  %v444_v34 = vshrl.u32 %v238_v18, 16  ;;  %v264_v63 = vld [vmem:[%s13715_s17 + $0x68] sm:$0x1] }
  0x37   : > { %v408_v35 = vsel %vm13746_vm2, %v403_v25, %v407_v2  ;;  %v413_v36 = vrot.slane %v412_v26, 4  ;;  %v426_v37 = vor.u32 %v425_v27, %v422_v22  ;;  %v447_v41 = vshll.u32 %v238_v18, 16  ;;  %12404 = vmatprep.subr.bf16.mxu0 %v13031_v9  ;;  %v244_v26 = vld [vmem:[%s13715_s17 + $0x78] sm:$0xf]  ;;  %v13032_v27 = vld [vmem:[%s17736_s1 + $0x20] sm:$0xff]  }
  0x38   : > { %v436_v43 = vor.u32 %v435_v31, %v431_v29  ;;  %v441_v44 = vrot.slane %v439_v32, 5  ;;  %v446_v45 = vrot.slane %v444_v34, 4  ;;  %v453_v46 = vshll.u32 %v239_v28, 16  ;;  %v245_v34 = vld [vmem:[%s13715_s17 + $0x7c] sm:$0xf]  ;;  %12405 = vmatpush3.bf16.msra.mxu0 %v13032_v27 }
  0x39   : > { %v418_v48 = vsel %vm13746_vm2, %v413_v36, %v417_v21  ;;  %v427_v50 = vrot.slane %v426_v37, 4  ;;  %v449_v51 = vrot.slane %v447_v41, 5  ;;  %v457_v52 = vshrl.u32 %v239_v28, 16  ;;  %v265_v21 = vld [vmem:[%s13715_s17 + $0x74] sm:$0x1]  ;;  %v13017_v37 = vld [vmem:[%s13715_s17 + $0x6c] sm:$0xff]  }
  0x3a   : > { %795 = vrot.lane.b32.xlu0 %v11198_v24, %s13616_s26  ;;  %1394 = vrot.lane.b32.xlu1 %v13014_v20, %s13616_s26  ;;  %v11199_v53 = vcombine.low %v408_v35, %v418_v48  ;;  %v437_v54 = vrot.slane %v436_v43, 4  ;;  %v455_v55 = vrot.slane %v453_v46, 5  ;;  %v463_v56 = vshll.u32 %v263_v38, 16  ;;  %v13035_v35 = vld [vmem:[%s17736_s1 + $0x58] sm:$0xff]  }
  0x3b   : > { %v432_v58 = vsel %vm13746_vm2, %v427_v50, %v431_v29  ;;  %v450_v60 = vor.u32 %v449_v51, %v446_v45  ;;  %v459_v62 = vrot.slane %v457_v52, 4  ;;  %v468_v0 = vshrl.u32 %v240_v42, 16  ;;  %v13036_v48 = vld [vmem:[%s17736_s1 + $0x18] sm:$0xff]   ;;  %12406 = vmatprep.subr.bf16.mxu0 %v13035_v35  ;;  %v249_v35 = vld [vmem:[%s13715_s17 + $0x94] sm:$0xf] }
  0x3c   : > { %v442_v2 = vsel %vm13746_vm2, %v437_v54, %v441_v44  ;;  %v465_v3 = vrot.slane %v463_v56, 5  ;;  %v471_v4 = vshll.u32 %v240_v42, 16  ;;  %v477_v7 = vshll.u32 %v241_v47, 16  ;;  %v13037_v54 = vld [vmem:[%s17736_s1 + $0x50] sm:$0xff]   ;;  %12407 = vmatpush3.bf16.msra.mxu0 %v13036_v48 }
  0x3d   : > { %v11200_v10 = vcombine.low %v432_v58, %v442_v2  ;;  %v451_v11 = vrot.slane %v450_v60, 4  ;;  %v460_v13 = vor.u32 %v459_v62, %v455_v55  ;;  %v470_v15 = vrot.slane %v468_v0, 4  ;;  %v13018_v60 = vld [vmem:[%s13715_s17 + $0x78] sm:$0xff]   ;;  %12408 = vmatprep.subr.bf16.mxu0 %v13037_v54 }
  0x3e   : > { %797 = vrot.lane.b32.xlu0 %v11199_v53, %s13616_s26  ;;  %1396 = vrot.lane.b32.xlu1 %v13015_v49, %s13616_s26  ;;  %v473_v16 = vrot.slane %v471_v4, 5  ;;  %v479_v18 = vrot.slane %v477_v7, 5  ;;  %v481_v19 = vshrl.u32 %v241_v47, 16  ;;  %v487_v20 = vshll.u32 %v264_v63, 16  ;;  %v266_v47 = vld [vmem:[%s13715_s17 + $0x80] sm:$0x1] }
  0x3f   : > { %v456_v22 = vsel %vm13746_vm2, %v451_v11, %v455_v55  ;;  %v461_v23 = vrot.slane %v460_v13, 4  ;;  %v492_v24 = vshrl.u32 %v242_v1, 16  ;;  %v495_v25 = vshll.u32 %v242_v1, 16  ;;  %v246_v53 = vld [vmem:[%s13715_s17 + $0x84] sm:$0xf] }
  0x40   : > { %v474_v28 = vor.u32 %v473_v16, %v470_v15  ;;  %v483_v29 = vrot.slane %v481_v19, 4  ;;  %v489_v31 = vrot.slane %v487_v20, 5  ;;  %v501_v32 = vshll.u32 %v243_v8, 16  ;;  %v267_v15 = vld [vmem:[%s13715_s17 + $0x8c] sm:$0x1] }
  0x41   : > { %v466_v36 = vsel %vm13746_vm2, %v461_v23, %v465_v3  ;;  %v494_v38 = vrot.slane %v492_v24, 4  ;;  %v497_v41 = vrot.slane %v495_v25, 5  ;;  %v505_v42 = vshrl.u32 %v243_v8, 16  ;;  %v13038_v8 = vld [vmem:[%s17736_s1 + $0x10] sm:$0xff]   ;;  %v13040_v16 = vld [vmem:[%s17736_s1 + $0x48] sm:$0xff]  }
  0x42   : > { %799 = vrot.lane.b32.xlu0 %v11200_v10, %s13616_s26  ;;  %1398 = vrot.lane.b32.xlu1 %v13016_v59, %s13616_s26  ;;  %v11201_v43 = vcombine.low %v456_v22, %v466_v36  ;;  %v475_v44 = vrot.slane %v474_v28, 4  ;;  %v484_v45 = vor.u32 %v483_v29, %v479_v18  ;;  %v503_v46 = vrot.slane %v501_v32, 5  ;;  %v247_v59 = vld [vmem:[%s13715_s17 + $0x88] sm:$0xf]  ;;  %v248_v23 = vld [vmem:[%s13715_s17 + $0x90] sm:$0xf] }
  0x43   : > { %v498_v49 = vor.u32 %v497_v41, %v494_v38  ;;  %v507_v50 = vrot.slane %v505_v42, 4  ;;  %v511_v51 = vshll.u32 %v265_v21, 16  ;;  %v516_v52 = vshrl.u32 %v244_v26, 16  ;;  %v13041_v28 = vld [vmem:[%s17736_s1 + $0x8] sm:$0xff]   ;;  %12409 = vmatpush3.bf16.msra.mxu0 %v13038_v8  ;;  %v268_v42 = vld [vmem:[%s13715_s17 + $0x98] sm:$0x1] }
  0x44   : > { %v480_v55 = vsel %vm13746_vm2, %v475_v44, %v479_v18  ;;  %v485_v56 = vrot.slane %v484_v45, 4  ;;  %v519_v57 = vshll.u32 %v244_v26, 16  ;;  %v525_v58 = vshll.u32 %v245_v34, 16  ;;  %v13019_v18 = vld [vmem:[%s13715_s17 + $0x84] sm:$0xff]   ;;  %12410 = vmatprep.subr.bf16.mxu0 %v13040_v16 }
  0x45   : > { %v499_v62 = vrot.slane %v498_v49, 4  ;;  %v508_v63 = vor.u32 %v507_v50, %v503_v46  ;;  %v513_v0 = vrot.slane %v511_v51, 5  ;;  %v518_v1 = vrot.slane %v516_v52, 4  ;;  %v250_v49 = vld [vmem:[%s13715_s17 + $0x9c] sm:$0xf] }
  0x46   : > { %801 = vrot.lane.b32.xlu0 %v11201_v43, %s13616_s26  ;;  %1400 = vrot.lane.b32.xlu1 %v13017_v37, %s13616_s26  ;;  %v490_v2 = vsel %vm13746_vm2, %v485_v56, %v489_v31  ;;  %v521_v3 = vrot.slane %v519_v57, 5  ;;  %v527_v4 = vrot.slane %v525_v58, 5  ;;  %v529_v7 = vshrl.u32 %v245_v34, 16  ;;  %v13043_v43 = vld [vmem:[%s17736_s1 + $0x40] sm:$0xff]   ;;  %v252_v16 = vld [vmem:[%s13715_s17 + $0xa8] sm:$0xf] }
  0x47   : > { %v11202_v9 = vcombine.low %v480_v55, %v490_v2  ;;  %v504_v10 = vsel %vm13746_vm2, %v499_v62, %v503_v46  ;;  %v509_v11 = vrot.slane %v508_v63, 4  ;;  %v535_v13 = vshll.u32 %v266_v47, 16  ;;  %v13020_v46 = vld [vmem:[%s13715_s17 + $0x90] sm:$0xff]   ;;  %v251_v58 = vld [vmem:[%s13715_s17 + $0xa0] sm:$0xf]  ;;  %12411 = vmatpush3.bf16.msra.mxu0 %v13041_v28 }
  0x48   : > { %v522_v19 = vor.u32 %v521_v3, %v518_v1  ;;  %v531_v20 = vrot.slane %v529_v7, 4  ;;  %v540_v21 = vshrl.u32 %v246_v53, 16  ;;  %v543_v22 = vshll.u32 %v246_v53, 16  ;;  %12412 = vmatprep.subr.bf16.mxu0 %v13043_v43  ;;  %v13046_v1 = vld [vmem:[%s17736_s1 + $0x118] sm:$0xff]  }
  0x49   : > { %v514_v24 = vsel %vm13746_vm2, %v509_v11, %v513_v0  ;;  %v537_v25 = vrot.slane %v535_v13, 5  ;;  %v549_v26 = vshll.u32 %v247_v59, 16  ;;  %v553_v27 = vshrl.u32 %v247_v59, 16  ;;  %v13044_v59 = vld [vmem:[%s17736_s1] sm:$0xff]  }
  0x4a   : > { %803 = vrot.lane.b32.xlu0 %v11202_v9, %s13616_s26  ;;  %1402 = vrot.lane.b32.xlu1 %v13018_v60, %s13616_s26  ;;  %v11203_v29 = vcombine.low %v504_v10, %v514_v24  ;;  %v523_v31 = vrot.slane %v522_v19, 4  ;;  %v532_v32 = vor.u32 %v531_v20, %v527_v4  ;;  %v542_v34 = vrot.slane %v540_v21, 4  ;;  %v13021_v2 = vld [vmem:[%s13715_s17 + $0x9c] sm:$0xff]   ;;  %v269_v11 = vld [vmem:[%s13715_s17 + $0xa4] sm:$0x1] }
  0x4b   : > { %v545_v36 = vrot.slane %v543_v22, 5  ;;  %v551_v37 = vrot.slane %v549_v26, 5  ;;  %v555_v38 = vrot.slane %v553_v27, 4  ;;  %v559_v41 = vshll.u32 %v267_v15, 16  ;;  %v253_v22 = vld [vmem:[%s13715_s17 + $0xac] sm:$0xf]  ;;  %12413 = vmatpush3.bf16.msra.mxu0 %v13044_v59 }
  0x4c   : > { %v528_v44 = vsel %vm13746_vm2, %v523_v31, %v527_v4  ;;  %v533_v45 = vrot.slane %v532_v32, 4  ;;  %v564_v47 = vshrl.u32 %v248_v23, 16  ;;  %v567_v48 = vshll.u32 %v248_v23, 16  ;;  %v270_v27 = vld [vmem:[%s13715_s17 + $0xb0] sm:$0x1]  ;;  %12886 = vmatprep.subr.bf16.mxu0 %v13046_v1 }
  0x4d   : > { %v546_v50 = vor.u32 %v545_v36, %v542_v34  ;;  %v556_v51 = vor.u32 %v555_v38, %v551_v37  ;;  %v561_v52 = vrot.slane %v559_v41, 5  ;;  %v573_v53 = vshll.u32 %v249_v35, 16  ;;  %v11498_v34 = vld [vmem:[%s13715_s17 + $0x18] sm:$0xf]  ;;  %v11530_v59 = vld [vmem:[%s13715_s17 + $0x20] sm:$0x1] }
  0x4e   : > { %805 = vrot.lane.b32.xlu0 %v11203_v29, %s13616_s26  ;;  %1404 = vrot.lane.b32.xlu1 %v13019_v18, %s13616_s26  ;;  %v538_v54 = vsel %vm13746_vm2, %v533_v45, %v537_v25  ;;  %v566_v55 = vrot.slane %v564_v47, 4  ;;  %v569_v56 = vrot.slane %v567_v48, 5  ;;  %v577_v57 = vshrl.u32 %v249_v35, 16  ;;  %v13022_v35 = vld [vmem:[%s13715_s17 + $0xa8] sm:$0xff]  }
  0x4f   : > { %v11204_v60 = vcombine.low %v528_v44, %v538_v54  ;;  %v547_v62 = vrot.slane %v546_v50, 4  ;;  %v557_v63 = vrot.slane %v556_v51, 4  ;;  %v575_v0 = vrot.slane %v573_v53, 5  ;;  %v11499_v50 = vld [vmem:[%s13715_s17 + $0x1c] sm:$0xf] }
  0x50   : > { %v570_v3 = vor.u32 %v569_v56, %v566_v55  ;;  %v579_v4 = vrot.slane %v577_v57, 4  ;;  %v583_v7 = vshll.u32 %v268_v42, 16  ;;  %v588_v8 = vshrl.u32 %v250_v49, 16  ;;  %v13023_v57 = vld [vmem:[%s13715_s17 + $0xb4] sm:$0xff]  }
  0x51   : > { %v552_v9 = vsel %vm13746_vm2, %v547_v62, %v551_v37  ;;  %v562_v10 = vsel %vm13746_vm2, %v557_v63, %v561_v52  ;;  %v591_v13 = vshll.u32 %v250_v49, 16  ;;  %v597_v15 = vshll.u32 %v251_v58, 16 }
  0x52   : > { %807 = vrot.lane.b32.xlu0 %v11204_v60, %s13616_s26  ;;  %1406 = vrot.lane.b32.xlu1 %v13020_v46, %s13616_s26  ;;  %v11205_v18 = vcombine.low %v552_v9, %v562_v10  ;;  %v571_v19 = vrot.slane %v570_v3, 4  ;;  %v580_v20 = vor.u32 %v579_v4, %v575_v0  ;;  %v585_v21 = vrot.slane %v583_v7, 5  ;;  %v11402_v9 = vld [vmem:[%s13715_s17 + $0xc] sm:$0xe] }
  0x53   : > { %v590_v23 = vrot.slane %v588_v8, 4  ;;  %v593_v24 = vrot.slane %v591_v13, 5  ;;  %v599_v25 = vrot.slane %v597_v15, 5  ;;  %v601_v26 = vshrl.u32 %v251_v58, 16 }
  0x54   : > { %v576_v28 = vsel %vm13746_vm2, %v571_v19, %v575_v0  ;;  %v581_v29 = vrot.slane %v580_v20, 4  ;;  %v607_v31 = vshll.u32 %v269_v11, 16  ;;  %v612_v32 = vshrl.u32 %v252_v16, 16 }
  0x55   : > { %v594_v36 = vor.u32 %v593_v24, %v590_v23  ;;  %v603_v37 = vrot.slane %v601_v26, 4  ;;  %v615_v38 = vshll.u32 %v252_v16, 16  ;;  %v621_v41 = vshll.u32 %v253_v22, 16  ;;  %v13943_v16 = vld [vmem:[%s13715_s17 + $0x14] sm:$0x1] }
  0x56   : > { %809 = vrot.lane.b32.xlu0 %v11205_v18, %s13616_s26  ;;  %1408 = vrot.lane.b32.xlu1 %v13021_v2, %s13616_s26  ;;  %v586_v42 = vsel %vm13746_vm2, %v581_v29, %v585_v21  ;;  %v609_v43 = vrot.slane %v607_v31, 5  ;;  %v614_v44 = vrot.slane %v612_v32, 4  ;;  %v625_v45 = vshrl.u32 %v253_v22, 16  ;;  %v13937_v2 = vld [vmem:[%s13715_s17 + $0x10] sm:$0xf] }
  0x57   : > { %v11206_v46 = vcombine.low %v576_v28, %v586_v42  ;;  %v595_v47 = vrot.slane %v594_v36, 4  ;;  %v604_v48 = vor.u32 %v603_v37, %v599_v25  ;;  %v617_v49 = vrot.slane %v615_v38, 5  ;;  %v254_v21 = vld [vmem:[%s13715_s17 + $0xb4] sm:$0xf]  ;;  %v255_v22 = vld [vmem:[%s13715_s17 + $0xb8] sm:$0xf] }
  0x58   : > { %v623_v51 = vrot.slane %v621_v41, 5  ;;  %v627_v52 = vrot.slane %v625_v45, 4  ;;  %v631_v53 = vshll.u32 %v270_v27, 16  ;;  %v2586_v54 = vshrl.u32 %v11498_v34, 16  ;;  %v13065_v27 = vld [vmem:[%s17736_s1 + $0xf8] sm:$0xff]  }
  0x59   : > { %v600_v55 = vsel %vm13746_vm2, %v595_v47, %v599_v25  ;;  %v605_v56 = vrot.slane %v604_v48, 4  ;;  %v618_v58 = vor.u32 %v617_v49, %v614_v44  ;;  %v2589_v60 = vshll.u32 %v11498_v34, 16  ;;  %v271_v34 = vld [vmem:[%s13715_s17 + $0xbc] sm:$0x1]  ;;  %v11500_v41 = vld [vmem:[%s13715_s17 + $0x24] sm:$0xf]  ;;  %12510 = vmatprep.subr.bf16.mxu1 %v13065_v27 }
  0x5a   : > { %811 = vrot.lane.b32.xlu0 %v11206_v46, %s13616_s26  ;;  %1410 = vrot.lane.b32.xlu1 %v13022_v35, %s13616_s26  ;;  %v628_v62 = vor.u32 %v627_v52, %v623_v51  ;;  %v633_v63 = vrot.slane %v631_v53, 5  ;;  %v2588_v0 = vrot.slane %v2586_v54, 4  ;;  %v2595_v1 = vshll.u32 %v11499_v50, 16  ;;  %v11531_v54 = vld [vmem:[%s13715_s17 + $0x2c] sm:$0x1] }
  0x5b   : > { %v610_v3 = vsel %vm13746_vm2, %v605_v56, %v609_v43  ;;  %v619_v4 = vrot.slane %v618_v58, 4  ;;  %v2591_v7 = vrot.slane %v2589_v60, 5  ;;  %v2599_v8 = vshrl.u32 %v11499_v50, 16  ;;  %v11501_v50 = vld [vmem:[%s13715_s17 + $0x28] sm:$0xf]  ;;  %v13024_v58 = vld [vmem:[%s13715_s17 + $0xc0] sm:$0xff]  }
  0x5c   : > { %v11207_v10 = vcombine.low %v600_v55, %v610_v3  ;;  %v629_v11 = vrot.slane %v628_v62, 4  ;;  %v2597_v13 = vrot.slane %v2595_v1, 5  ;;  %v2605_v15 = vshll.u32 %v11530_v59, 16  ;;  %v13979_v62 = vld [vmem:[%s13715_s17 + $0x1c] sm:$0xf] }
  0x5d   : > { %v624_v18 = vsel %vm13746_vm2, %v619_v4, %v623_v51  ;;  %v2592_v19 = vor.u32 %v2591_v7, %v2588_v0  ;;  %v2601_v20 = vrot.slane %v2599_v8, 4  ;;  %v17791_v25 = vmov 0  ;;  %v13985_v7 = vld [vmem:[%s13715_s17 + $0x20] sm:$0x1] }
  0x5e   : > { %1412 = vrot.lane.b32.xlu1 %v13023_v57, %s13616_s26  ;;  %813 = vrot.lane.b32.xlu0 %v11207_v10, %s13616_s26  ;;  %v634_v23 = vsel %vm13746_vm2, %v629_v11, %v633_v63  ;;  %v2607_v24 = vrot.slane %v2605_v15, 5  ;;  %v17792_v25 = vsel %vm13955_vm5, 4294967295, %v17791_v25  ;;  %v11418_v26 = vrot.slane %v11402_v9, 9  ;;  %v13066_v63 = vld [vmem:[%s17736_s1 + $0xb8] sm:$0xff]   ;;  %v13068_v15 = vld [vmem:[%s17736_s1 + $0xf0] sm:$0xff]  }
  0x5f   : > { %17793 = vst [vmem:[#allocation8_spill] sm:$0xff] %v17792_v25  ;;  %v11208_v28 = vcombine.low %v624_v18, %v634_v23  ;;  %v2593_v29 = vrot.slane %v2592_v19, 4  ;;  %v2602_v31 = vor.u32 %v2601_v20, %v2597_v13  ;;  %v2106_v32 = vrot.slane %v13937_v2, 5  ;;  %12511 = vmatpush3.bf16.msra.mxu1 %v13066_v63  ;;  %v14022_v63 = vld [vmem:[%s13715_s17 + $0x2c] sm:$0x1] }
  0x60   : > { %v2109_v35 = vrot.slane %v13943_v16, 5  ;;  %v636_v36 = vshrl.u32 %v254_v21, 16  ;;  %v639_v37 = vshll.u32 %v254_v21, 16  ;;  %v645_v38 = vshll.u32 %v255_v22, 16  ;;  %12512 = vmatprep.subr.bf16.mxu1 %v13068_v15 }
  0x61   : > { %v2598_v42 = vsel %vm13746_vm2, %v2593_v29, %v2597_v13  ;;  %v2603_v43 = vrot.slane %v2602_v31, 4  ;;  %v2107_v44 = vsel %vm13955_vm5, %v11418_v26, %v2106_v32  ;;  %v2108_v45 = vrot.slane %v2106_v32, 4  ;;  %v11403_v13 = vld [vmem:[%s13715_s17 + $0x18] sm:$0xe] }
  0x62   : > { %815 = vrot.lane.b32.xlu0 %v11208_v28, %s13616_s26  ;;  %v638_v46 = vrot.slane %v636_v36, 4  ;;  %v641_v47 = vrot.slane %v639_v37, 5  ;;  %v647_v48 = vrot.slane %v645_v38, 5  ;;  %v649_v49 = vshrl.u32 %v255_v22, 16  ;;  %v11502_v22 = vld [vmem:[%s13715_s17 + $0x30] sm:$0xf] }
  0x63   : > { %v2608_v51 = vsel %vm13746_vm2, %v2603_v43, %v2607_v24  ;;  %v2110_v52 = vsel %vm13955_vm5, %v2108_v45, %v2109_v35  ;;  %v655_v53 = vshll.u32 %v271_v34, 16  ;;  %v2610_v55 = vshrl.u32 %v11500_v41, 16  ;;  %v13069_v28 = vld [vmem:[%s17736_s1 + $0xb0] sm:$0xff]   ;;  %v11532_v38 = vld [vmem:[%s13715_s17 + $0x38] sm:$0x1] }
  0x64   : > { %v11562_v56 = vcombine.low %v2598_v42, %v2608_v51  ;;  %v11450_v57 = vcombine.low %v2107_v44, %v2110_v52  ;;  %v642_v59 = vor.u32 %v641_v47, %v638_v46  ;;  %v651_v60 = vrot.slane %v649_v49, 4  ;;  %v11503_v35 = vld [vmem:[%s13715_s17 + $0x34] sm:$0xf]  ;;  %12513 = vmatpush3.bf16.msra.mxu1 %v13069_v28 }
  0x65   : > { %v657_v0 = vrot.slane %v655_v53, 5  ;;  %v2612_v1 = vrot.slane %v2610_v55, 4  ;;  %v2613_v3 = vshll.u32 %v11500_v41, 16  ;;  %v2619_v4 = vshll.u32 %v11501_v50, 16  ;;  %v14016_v55 = vld [vmem:[%s13715_s17 + $0x28] sm:$0xf] }
  0x66   : > { %3097 = vrot.lane.b32.xlu1 %v11562_v56, %s13616_s26  ;;  %2312 = vrot.lane.b32.xlu0 %v11450_v57, %s13616_s26  ;;  %v643_v8 = vrot.slane %v642_v59, 4  ;;  %v652_v9 = vor.u32 %v651_v60, %v647_v48  ;;  %v2623_v10 = vshrl.u32 %v11501_v50, 16  ;;  %v2629_v11 = vshll.u32 %v11531_v54, 16  ;;  %v11404_v56 = vld [vmem:[%s13715_s17 + $0x24] sm:$0xe] }
  0x67   : > { %v1670_v18 = vshrl.u32 %v13937_v2, 16  ;;  %v1676_v19 = vshll.u32 %v13943_v16, 16  ;;  %v2615_v20 = vrot.slane %v2613_v3, 5  ;;  %v2621_v21 = vrot.slane %v2619_v4, 5 }
  0x68   : > { %v648_v23 = vsel %vm13746_vm2, %v643_v8, %v647_v48  ;;  %v653_v24 = vrot.slane %v652_v9, 4  ;;  %v2625_v26 = vrot.slane %v2623_v10, 4  ;;  %v2631_v27 = vrot.slane %v2629_v11, 5  ;;  %v11505_v9 = vld [vmem:[%s13715_s17 + $0x40] sm:$0xf]  ;;  %v13075_v10 = vld [vmem:[%s17736_s1 + $0xe8] sm:$0xff]  }
  0x69   : > { %v2616_v29 = vor.u32 %v2615_v20, %v2612_v1  ;;  %v11419_v31 = vrot.slane %v11403_v13, 9  ;;  %v2113_v32 = vrot.slane %v13979_v62, 5  ;;  %v2116_v34 = vrot.slane %v13985_v7, 5  ;;  %12514 = vmatprep.subr.bf16.mxu1 %v13075_v10 }
  0x6a   : > { %1414 = vrot.lane.b32.xlu1 %v13024_v58, %s13616_s26  ;;  %v658_v36 = vsel %vm13746_vm2, %v653_v24, %v657_v0  ;;  %v2626_v37 = vor.u32 %v2625_v26, %v2621_v21  ;;  %v2634_v41 = vshrl.u32 %v11502_v22, 16  ;;  %v2637_v42 = vshll.u32 %v11502_v22, 16  ;;  %v11504_v0 = vld [vmem:[%s13715_s17 + $0x3c] sm:$0xf] }
  0x6b   : > { %v11209_v43 = vcombine.low %v648_v23, %v658_v36  ;;  %v2617_v44 = vrot.slane %v2616_v29, 4  ;;  %v2114_v45 = vsel %vm13955_vm5, %v11419_v31, %v2113_v32  ;;  %v2115_v46 = vrot.slane %v2113_v32, 4  ;;  %v11533_v23 = vld [vmem:[%s13715_s17 + $0x44] sm:$0x1]  ;;  %v11405_v36 = vld [vmem:[%s13715_s17 + $0x30] sm:$0xe] }
  0x6c   : > { %v2627_v47 = vrot.slane %v2626_v37, 4  ;;  %v2636_v48 = vrot.slane %v2634_v41, 4  ;;  %v2639_v49 = vrot.slane %v2637_v42, 5  ;;  %v2643_v50 = vshll.u32 %v11503_v35, 16 }
  0x6d   : > { %817 = vrot.lane.b32.xlu0 %v11209_v43, %s13616_s26  ;;  %v2622_v51 = vsel %vm13746_vm2, %v2617_v44, %v2621_v21  ;;  %v2117_v52 = vsel %vm13955_vm5, %v2115_v46, %v2116_v34  ;;  %v2647_v53 = vshrl.u32 %v11503_v35, 16  ;;  %v2653_v54 = vshll.u32 %v11532_v38, 16  ;;  %v14044_v34 = vld [vmem:[%s13715_s17 + $0x34] sm:$0xf]  ;;  %v14047_v35 = vld [vmem:[%s13715_s17 + $0x38] sm:$0x1] }
  0x6e   : > { %v2632_v57 = vsel %vm13746_vm2, %v2627_v47, %v2631_v27  ;;  %v11451_v58 = vcombine.low %v2114_v45, %v2117_v52  ;;  %v2640_v59 = vor.u32 %v2639_v49, %v2636_v48  ;;  %v2645_v60 = vrot.slane %v2643_v50, 5  ;;  %v13076_v27 = vld [vmem:[%s17736_s1 + $0xa8] sm:$0xff]   ;;  %v13078_v49 = vld [vmem:[%s17736_s1 + $0xe0] sm:$0xff]  }
  0x6f   : > { %v11563_v1 = vcombine.low %v2622_v51, %v2632_v57  ;;  %v1694_v3 = vshrl.u32 %v13979_v62, 16  ;;  %v1700_v4 = vshll.u32 %v13985_v7, 16  ;;  %v2649_v8 = vrot.slane %v2647_v53, 4  ;;  %v11506_v43 = vld [vmem:[%s13715_s17 + $0x48] sm:$0xf]  ;;  %12515 = vmatpush3.bf16.msra.mxu1 %v13076_v27 }
  0x70   : > { %v2641_v11 = vrot.slane %v2640_v59, 4  ;;  %v2655_v13 = vrot.slane %v2653_v54, 5  ;;  %v11420_v15 = vrot.slane %v11404_v56, 9  ;;  %v2120_v20 = vrot.slane %v14016_v55, 5  ;;  %v11507_v44 = vld [vmem:[%s13715_s17 + $0x4c] sm:$0xf]  ;;  %12516 = vmatprep.subr.bf16.mxu1 %v13078_v49 }
  0x71   : > { %3099 = vrot.lane.b32.xlu1 %v11563_v1, %s13616_s26  ;;  %2314 = vrot.lane.b32.xlu0 %v11451_v58, %s13616_s26  ;;  %v2650_v21 = vor.u32 %v2649_v8, %v2645_v60  ;;  %v2123_v22 = vrot.slane %v14022_v63, 5  ;;  %v2658_v24 = vshrl.u32 %v11504_v0, 16  ;;  %v2661_v26 = vshll.u32 %v11504_v0, 16  ;;  %v13079_v54 = vld [vmem:[%s17736_s1 + $0xa0] sm:$0xff]   ;;  %v14470_v49 = vld [vmem:[%s13715_s17 + $0xbc] sm:$0x1] }
  0x72   : > { %v2646_v28 = vsel %vm13746_vm2, %v2641_v11, %v2645_v60  ;;  %v2121_v29 = vsel %vm13955_vm5, %v11420_v15, %v2120_v20  ;;  %v2122_v31 = vrot.slane %v2120_v20, 4  ;;  %v2667_v32 = vshll.u32 %v11505_v9, 16 }
  0x73   : > { %v2651_v37 = vrot.slane %v2650_v21, 4  ;;  %v2660_v38 = vrot.slane %v2658_v24, 4  ;;  %v2663_v41 = vrot.slane %v2661_v26, 5  ;;  %v2671_v42 = vshrl.u32 %v11505_v9, 16  ;;  %12517 = vmatpush3.bf16.msra.mxu1 %v13079_v54  ;;  %v11534_v9 = vld [vmem:[%s13715_s17 + $0x50] sm:$0x1] }
  0x74   : > { %v1718_v45 = vshrl.u32 %v14016_v55, 16  ;;  %v2124_v46 = vsel %vm13955_vm5, %v2122_v31, %v2123_v22  ;;  %v2669_v47 = vrot.slane %v2667_v32, 5  ;;  %v2677_v48 = vshll.u32 %v11533_v23, 16  ;;  %v14074_v24 = vld [vmem:[%s13715_s17 + $0x40] sm:$0xf] }
  0x75   : > { %v2656_v50 = vsel %vm13746_vm2, %v2651_v37, %v2655_v13  ;;  %v11452_v51 = vcombine.low %v2121_v29, %v2124_v46  ;;  %v2664_v52 = vor.u32 %v2663_v41, %v2660_v38  ;;  %v2673_v53 = vrot.slane %v2671_v42, 4  ;;  %v11406_v31 = vld [vmem:[%s13715_s17 + $0x3c] sm:$0xe]  ;;  %v14083_v41 = vld [vmem:[%s13715_s17 + $0x44] sm:$0x1] }
  0x76   : > { %v11564_v56 = vcombine.low %v2646_v28, %v2656_v50  ;;  %v1724_v57 = vshll.u32 %v14022_v63, 16  ;;  %v2679_v58 = vrot.slane %v2677_v48, 5  ;;  %v11421_v59 = vrot.slane %v11405_v36, 9  ;;  %v11508_v42 = vld [vmem:[%s13715_s17 + $0x54] sm:$0xf] }
  0x77   : > { %2316 = vrot.lane.b32.xlu0 %v11452_v51, %s13616_s26  ;;  %v2665_v60 = vrot.slane %v2664_v52, 4  ;;  %v2674_v0 = vor.u32 %v2673_v53, %v2669_v47  ;;  %v2127_v1 = vrot.slane %v14044_v34, 5  ;;  %v2130_v8 = vrot.slane %v14047_v35, 5  ;;  %v11509_v48 = vld [vmem:[%s13715_s17 + $0x58] sm:$0xf] }
  0x78   : > { %3101 = vrot.lane.b32.xlu1 %v11564_v56, %s13616_s26  ;;  %v2682_v10 = vshrl.u32 %v11506_v43, 16  ;;  %v2685_v11 = vshll.u32 %v11506_v43, 16  ;;  %v2691_v13 = vshll.u32 %v11507_v44, 16  ;;  %v2695_v15 = vshrl.u32 %v11507_v44, 16  ;;  %v11535_v53 = vld [vmem:[%s13715_s17 + $0x5c] sm:$0x1] }
  0x79   : > { %v2670_v20 = vsel %vm13746_vm2, %v2665_v60, %v2669_v47  ;;  %v2675_v21 = vrot.slane %v2674_v0, 4  ;;  %v2128_v22 = vsel %vm13955_vm5, %v11421_v59, %v2127_v1  ;;  %v2129_v23 = vrot.slane %v2127_v1, 4  ;;  %v14094_v60 = vld [vmem:[%s13715_s17 + $0x4c] sm:$0xf] }
  0x7a   : > { %v2684_v26 = vrot.slane %v2682_v10, 4  ;;  %v2687_v27 = vrot.slane %v2685_v11, 5  ;;  %v2693_v28 = vrot.slane %v2691_v13, 5  ;;  %v2697_v29 = vrot.slane %v2695_v15, 4  ;;  %v14099_v10 = vld [vmem:[%s13715_s17 + $0x50] sm:$0x1] }
  0x7b   : > { %v2680_v32 = vsel %vm13746_vm2, %v2675_v21, %v2679_v58  ;;  %v2131_v37 = vsel %vm13955_vm5, %v2129_v23, %v2130_v8  ;;  %v2701_v38 = vshll.u32 %v11534_v9, 16  ;;  %v11422_v51 = vrot.slane %v11406_v31, 9  ;;  %v13084_v11 = vld [vmem:[%s17736_s1 + $0xd8] sm:$0xff]   ;;  %v11510_v23 = vld [vmem:[%s13715_s17 + $0x60] sm:$0xf] }
  0x7c   : > { %v11565_v43 = vcombine.low %v2670_v20, %v2680_v32  ;;  %v11453_v44 = vcombine.low %v2128_v22, %v2131_v37  ;;  %v2688_v46 = vor.u32 %v2687_v27, %v2684_v26  ;;  %v2698_v47 = vor.u32 %v2697_v29, %v2693_v28  ;;  %v11407_v22 = vld [vmem:[%s13715_s17 + $0x48] sm:$0xe]  ;;  %v11511_v32 = vld [vmem:[%s13715_s17 + $0x64] sm:$0xf]  ;;  %12518 = vmatprep.subr.bf16.mxu1 %v13084_v11 }
  0x7d   : > { %v2703_v50 = vrot.slane %v2701_v38, 5  ;;  %v2134_v52 = vrot.slane %v14074_v24, 5  ;;  %v2137_v58 = vrot.slane %v14083_v41, 5  ;;  %v2706_v59 = vshrl.u32 %v11508_v42, 16 }
  0x7e   : > { %3103 = vrot.lane.b32.xlu1 %v11565_v43, %s13616_s26  ;;  %2318 = vrot.lane.b32.xlu0 %v11453_v44, %s13616_s26  ;;  %v2689_v54 = vrot.slane %v2688_v46, 4  ;;  %v2699_v56 = vrot.slane %v2698_v47, 4  ;;  %v2709_v8 = vshll.u32 %v11508_v42, 16  ;;  %v2715_v9 = vshll.u32 %v11509_v48, 16  ;;  %v13085_v43 = vld [vmem:[%s17736_s1 + $0x98] sm:$0xff]  }
  0x7f   : > { %v2135_v0 = vsel %vm13955_vm5, %v11422_v51, %v2134_v52  ;;  %v2136_v1 = vrot.slane %v2134_v52, 4  ;;  %v2708_v20 = vrot.slane %v2706_v59, 4  ;;  %v2719_v21 = vshrl.u32 %v11509_v48, 16  ;;  %12519 = vmatpush3.bf16.msra.mxu1 %v13085_v43  ;;  %v14142_v43 = vld [vmem:[%s13715_s17 + $0x5c] sm:$0x1] }
  0x80   : > { %v2694_v13 = vsel %vm13746_vm2, %v2689_v54, %v2693_v28  ;;  %v2704_v15 = vsel %vm13746_vm2, %v2699_v56, %v2703_v50  ;;  %v2711_v29 = vrot.slane %v2709_v8, 5  ;;  %v2717_v31 = vrot.slane %v2715_v9, 5  ;;  %v13087_v50 = vld [vmem:[%s17736_s1 + $0xd0] sm:$0xff]   ;;  %v11536_v54 = vld [vmem:[%s13715_s17 + $0x68] sm:$0x1] }
  0x81   : > { %v11566_v26 = vcombine.low %v2694_v13, %v2704_v15  ;;  %v2138_v27 = vsel %vm13955_vm5, %v2136_v1, %v2137_v58  ;;  %v2721_v28 = vrot.slane %v2719_v21, 4  ;;  %v2725_v42 = vshll.u32 %v11535_v53, 16  ;;  %v13088_v58 = vld [vmem:[%s17736_s1 + $0x90] sm:$0xff]   ;;  %v14132_v9 = vld [vmem:[%s13715_s17 + $0x58] sm:$0xf]  ;;  %12520 = vmatprep.subr.bf16.mxu1 %v13087_v50 }
  0x82   : > { %v11454_v38 = vcombine.low %v2135_v0, %v2138_v27  ;;  %v2712_v46 = vor.u32 %v2711_v29, %v2708_v20  ;;  %v11423_v47 = vrot.slane %v11407_v22, 9  ;;  %v2141_v48 = vrot.slane %v14094_v60, 5  ;;  %v11408_v21 = vld [vmem:[%s13715_s17 + $0x54] sm:$0xe]  ;;  %v11513_v50 = vld [vmem:[%s13715_s17 + $0x70] sm:$0xf] }
  0x83   : > { %3105 = vrot.lane.b32.xlu1 %v11566_v26, %s13616_s26  ;;  %v2722_v51 = vor.u32 %v2721_v28, %v2717_v31  ;;  %v2727_v52 = vrot.slane %v2725_v42, 5  ;;  %v2144_v53 = vrot.slane %v14099_v10, 5  ;;  %v2730_v56 = vshrl.u32 %v11510_v23, 16  ;;  %12521 = vmatpush3.bf16.msra.mxu1 %v13088_v58  ;;  %v13093_v58 = vld [vmem:[%s17736_s1 + $0xc8] sm:$0xff]   ;;  %v1019_v44 = vld [vmem:[%s13715_s17 + $0x1c] sm:$0xf] }
  0x84   : > { %2320 = vrot.lane.b32.xlu0 %v11454_v38, %s13616_s26  ;;  %v2713_v59 = vrot.slane %v2712_v46, 4  ;;  %v2142_v0 = vsel %vm13955_vm5, %v11423_v47, %v2141_v48  ;;  %v2143_v1 = vrot.slane %v2141_v48, 4  ;;  %v2733_v8 = vshll.u32 %v11510_v23, 16  ;;  %12522 = vmatprep.subr.bf16.mxu1 %v13093_v58  ;;  %v1017_v58 = vld [vmem:[%s13715_s17 + $0x14] sm:$0x1] }
  0x85   : > { %v2723_v11 = vrot.slane %v2722_v51, 4  ;;  %v2732_v13 = vrot.slane %v2730_v56, 4  ;;  %v2739_v15 = vshll.u32 %v11511_v32, 16  ;;  %v2743_v20 = vshrl.u32 %v11511_v32, 16  ;;  %v11512_v32 = vld [vmem:[%s13715_s17 + $0x6c] sm:$0xf] }
  0x86   : > { %v2718_v22 = vsel %vm13746_vm2, %v2713_v59, %v2717_v31  ;;  %v2145_v26 = vsel %vm13955_vm5, %v2143_v1, %v2144_v53  ;;  %v2735_v27 = vrot.slane %v2733_v8, 5  ;;  %v2749_v29 = vshll.u32 %v11536_v54, 16  ;;  %v11537_v56 = vld [vmem:[%s13715_s17 + $0x74] sm:$0x1]  ;;  %v1012_v31 = vld [vmem:[%s13715_s17] sm:$0xe] }
  0x87   : > { %v2728_v23 = vsel %vm13746_vm2, %v2723_v11, %v2727_v52  ;;  %v11455_v38 = vcombine.low %v2142_v0, %v2145_v26  ;;  %v2741_v28 = vrot.slane %v2739_v15, 5  ;;  %v2745_v42 = vrot.slane %v2743_v20, 4  ;;  %v11409_v11 = vld [vmem:[%s13715_s17 + $0x60] sm:$0xe]  ;;  %v14163_v26 = vld [vmem:[%s13715_s17 + $0x68] sm:$0x1] }
  0x88   : > { %v11567_v46 = vcombine.low %v2718_v22, %v2728_v23  ;;  %v2736_v48 = vor.u32 %v2735_v27, %v2732_v13  ;;  %v2751_v52 = vrot.slane %v2749_v29, 5  ;;  %v11424_v53 = vrot.slane %v11408_v21, 9  ;;  %v14160_v22 = vld [vmem:[%s13715_s17 + $0x64] sm:$0xf]  ;;  %v13094_v27 = vld [vmem:[%s17736_s1 + $0x88] sm:$0xff]  }
  0x89   : > { %2322 = vrot.lane.b32.xlu0 %v11455_v38, %s13616_s26  ;;  %v2746_v51 = vor.u32 %v2745_v42, %v2741_v28  ;;  %v2148_v54 = vrot.slane %v14132_v9, 5  ;;  %v2151_v0 = vrot.slane %v14142_v43, 5  ;;  %v2754_v1 = vshrl.u32 %v11512_v32, 16  ;;  %12523 = vmatpush3.bf16.msra.mxu1 %v13094_v27  ;;  %v1014_v47 = vld [vmem:[%s13715_s17 + $0x8] sm:$0x1] }
  0x8a   : > { %3107 = vrot.lane.b32.xlu1 %v11567_v46, %s13616_s26  ;;  %v2737_v59 = vrot.slane %v2736_v48, 4  ;;  %v2757_v8 = vshll.u32 %v11512_v32, 16  ;;  %v2763_v21 = vshll.u32 %v11513_v50, 16  ;;  %v2767_v42 = vshrl.u32 %v11513_v50, 16  ;;  %v1015_v32 = vld [vmem:[%s13715_s17 + $0xc] sm:$0xe] }
  0x8b   : > { %v2747_v13 = vrot.slane %v2746_v51, 4  ;;  %v2149_v15 = vsel %vm13955_vm5, %v11424_v53, %v2148_v54  ;;  %v2150_v20 = vrot.slane %v2148_v54, 4  ;;  %v2756_v23 = vrot.slane %v2754_v1, 4  ;;  %v1016_v46 = vld [vmem:[%s13715_s17 + $0x10] sm:$0xf] }
  0x8c   : > { %v2742_v29 = vsel %vm13746_vm2, %v2737_v59, %v2741_v28  ;;  %v2759_v38 = vrot.slane %v2757_v8, 5  ;;  %v2765_v53 = vrot.slane %v2763_v21, 5  ;;  %v2773_v54 = vshll.u32 %v11537_v56, 16  ;;  %v1013_v8 = vld [vmem:[%s13715_s17 + $0x4] sm:$0xf] }
  0x8d   : > { %v2752_v48 = vsel %vm13746_vm2, %v2747_v13, %v2751_v52  ;;  %v2152_v51 = vsel %vm13955_vm5, %v2150_v20, %v2151_v0  ;;  %v2769_v1 = vrot.slane %v2767_v42, 4  ;;  %v13096_v52 = vld [vmem:[%s17736_s1 + $0xc0] sm:$0xff]   ;;  %v11425_v20 = vrot.slane %v11409_v11, 9  ;;  %v1018_v21 = vld [vmem:[%s13715_s17 + $0x18] sm:$0xe] }
  0x8e   : > { %v11568_v28 = vcombine.low %v2742_v29, %v2752_v48  ;;  %v11456_v59 = vcombine.low %v2149_v15, %v2152_v51  ;;  %v2760_v50 = vor.u32 %v2759_v38, %v2756_v23  ;;  %v2775_v13 = vrot.slane %v2773_v54, 5  ;;  %v13097_v38 = vld [vmem:[%s17736_s1 + $0x80] sm:$0xff]   ;;  %12524 = vmatprep.subr.bf16.mxu1 %v13096_v52 }
  0x8f   : > { %v2770_v27 = vor.u32 %v2769_v1, %v2765_v53  ;;  %v2155_v29 = vrot.slane %v14160_v22, 5  ;;  %v2158_v23 = vrot.slane %v14163_v26, 5  ;;  %v11243_v42 = vrot.slane %v1015_v32, 9  ;;  %v1020_v1 = vld [vmem:[%s13715_s17 + $0x20] sm:$0x1]  ;;  %12525 = vmatpush3.bf16.msra.mxu1 %v13097_v38 }
  0x90   : > { %3109 = vrot.lane.b32.xlu1 %v11568_v28, %s13616_s26  ;;  %2324 = vrot.lane.b32.xlu0 %v11456_v59, %s13616_s26  ;;  %v2761_v15 = vrot.slane %v2760_v50, 4  ;;  %v1120_v11 = vrot.slane %v1016_v46, 5  ;;  %v1123_v48 = vrot.slane %v1017_v58, 5  ;;  %v11242_v51 = vrot.slane %v1012_v31, 9  ;;  %v11514_v58 = vld [vmem:[%s13715_s17 + $0x78] sm:$0xf] }
  0x91   : > { %v2771_v28 = vrot.slane %v2770_v27, 4  ;;  %v2156_v59 = vsel %vm13955_vm5, %v11425_v20, %v2155_v29  ;;  %v2157_v50 = vrot.slane %v2155_v29, 4  ;;  %v1113_v32 = vrot.slane %v1013_v8, 5  ;;  %v11515_v8 = vld [vmem:[%s13715_s17 + $0x7c] sm:$0xf] }
  0x92   : > { %v2766_v54 = vsel %vm13746_vm2, %v2761_v15, %v2765_v53  ;;  %v1121_v56 = vsel %vm13955_vm5, %v11243_v42, %v1120_v11  ;;  %v1122_v0 = vrot.slane %v1120_v11, 4  ;;  %v1116_v46 = vrot.slane %v1014_v47, 5 }
  0x93   : > { %v2776_v31 = vsel %vm13746_vm2, %v2771_v28, %v2775_v13  ;;  %v2159_v53 = vsel %vm13955_vm5, %v2157_v50, %v2158_v23  ;;  %v11244_v52 = vrot.slane %v1018_v21, 9  ;;  %v1127_v20 = vrot.slane %v1019_v44, 5  ;;  %v11538_v21 = vld [vmem:[%s13715_s17 + $0x80] sm:$0x1] }
  0x94   : > { %v11569_v15 = vcombine.low %v2766_v54, %v2776_v31  ;;  %v11457_v27 = vcombine.low %v2156_v59, %v2159_v53  ;;  %v1124_v29 = vsel %vm13955_vm5, %v1122_v0, %v1123_v48  ;;  %v1114_v38 = vsel %vm13955_vm5, %v11242_v51, %v1113_v32 }
  0x95   : > { %v11291_v42 = vcombine.low %v1121_v56, %v1124_v29  ;;  %v1115_v11 = vrot.slane %v1113_v32, 4  ;;  %v1128_v13 = vsel %vm13955_vm5, %v11244_v52, %v1127_v20  ;;  %v1129_v28 = vrot.slane %v1127_v20, 4  ;;  %v14226_v20 = vld [vmem:[%s13715_s17 + $0x70] sm:$0xf] }
  0x96   : > { %3111 = vrot.lane.b32.xlu1 %v11569_v15, %s13616_s26  ;;  %2326 = vrot.lane.b32.xlu0 %v11457_v27, %s13616_s26  ;;  %v1130_v0 = vrot.slane %v1020_v1, 5  ;;  %v2778_v23 = vshrl.u32 %v11514_v58, 16  ;;  %v2781_v48 = vshll.u32 %v11514_v58, 16  ;;  %v2787_v59 = vshll.u32 %v11515_v8, 16 }
  0x97   : > { %v1117_v54 = vsel %vm13955_vm5, %v1115_v11, %v1116_v46  ;;  %v2791_v53 = vshrl.u32 %v11515_v8, 16  ;;  %v2797_v52 = vshll.u32 %v11538_v21, 16  ;;  %v14229_v46 = vld [vmem:[%s13715_s17 + $0x74] sm:$0x1]  ;;  %v11410_v11 = vld [vmem:[%s13715_s17 + $0x6c] sm:$0xe] }
  0x98   : > { %v790_v47 = vpop.permute.xlu1 %789  ;;  %v1131_v6 = vsel %vm13955_vm5, %v1129_v28, %v1130_v0  ;;  %v2783_v50 = vrot.slane %v2781_v48, 5  ;;  %v11290_v58 = vcombine.low %v1114_v38, %v1117_v54  ;;  %v1021_v28 = vld [vmem:[%s13715_s17 + $0x24] sm:$0xe]  ;;  %v14375_v0 = vld [vmem:[%s13715_s17 + $0xa4] sm:$0x1]  ;;  %v1678_v2 = vrot.slane %v1676_v19, 5 }
  0x99   : > { %v825_v44 = vsel %vm819_vm6, %v11179_v17, %v790_v47  ;;  %v2780_v17 = vrot.slane %v2778_v23, 4  ;;  %v11292_v31 = vcombine.low %v1128_v13, %v1131_v6  ;;  %v2789_v47 = vrot.slane %v2787_v59, 5 }
  0x9a   : > { %v11212_v51 = vcombine.low %v825_v44, %v825_v44  ;;  %v11213_v56 = vcombine.high %v825_v44, %v825_v44  ;;  %v2793_v23 = vrot.slane %v2791_v53, 4  ;;  %v2799_v48 = vrot.slane %v2797_v52, 5  ;;  %v1025_v53 = vld [vmem:[%s13715_s17 + $0x34] sm:$0xf] }
  0x9b   : > { %v2784_v29 = vor.u32 %v2783_v50, %v2780_v17  ;;  %v11245_v54 = vrot.slane %v1021_v28, 9 }
  0x9c   : > { %982 = vst [vmem:[#allocation2 + $0x28] sm:$0xf] %v11212_v51  ;;  %983 = vst [vmem:[#allocation2 + $0x3c] sm:$0xf] %v11213_v56  ;;  %v788_v1 = vpop.permute.xlu0 %787  ;;  %v1387_v32 = vpop.permute.xlu1 %1386  ;;  %v2165_v51 = vrot.slane %v14229_v46, 5  ;;  %v2794_v50 = vor.u32 %v2793_v23, %v2789_v47 }
  0x9d   : > { %v822_v15 = vsel %vm819_vm6, %v11178_v33, %v788_v1  ;;  %v1421_v27 = vsel %vm819_vm6, %v11291_v42, %v1387_v32  ;;  %v2785_v21 = vrot.slane %v2784_v29, 4  ;;  %v11426_v33 = vrot.slane %v11410_v11, 9  ;;  %v1022_v56 = vld [vmem:[%s13715_s17 + $0x28] sm:$0xf]  ;;  %v1023_v1 = vld [vmem:[%s13715_s17 + $0x2c] sm:$0x1] }
  0x9e   : > { %v11210_v44 = vcombine.low %v822_v15, %v822_v15  ;;  %v11211_v38 = vcombine.high %v822_v15, %v822_v15  ;;  %v11324_v8 = vcombine.low %v1421_v27, %v1421_v27  ;;  %v11325_v13 = vcombine.high %v1421_v27, %v1421_v27  ;;  %v1024_v32 = vld [vmem:[%s13715_s17 + $0x30] sm:$0xe] }
  0x9f   : > { %v2162_v42 = vrot.slane %v14226_v20, 5  ;;  %v2790_v17 = vsel %vm13746_vm2, %v2785_v21, %v2789_v47  ;;  %v2795_v11 = vrot.slane %v2794_v50, 4  ;;  %v1026_v21 = vld [vmem:[%s13715_s17 + $0x38] sm:$0x1]  ;;  %v11246_v23 = vrot.slane %v1024_v32, 9 }
  0xa0   : > { %980 = vst [vmem:[#allocation2] sm:$0xf] %v11210_v44  ;;  %981 = vst [vmem:[#allocation2 + $0x14] sm:$0xf] %v11211_v38  ;;  %v1385_v12 = vpop.permute.xlu0 %1384  ;;  %v1389_v14 = vpop.permute.xlu1 %1388  ;;  %v1137_v44 = vrot.slane %v1023_v1, 5 }
  0xa1   : > { %1578 = vst [vmem:[#allocation2 + $0x2c] sm:$0xf] %v11324_v8  ;;  %1579 = vst [vmem:[#allocation2 + $0x40] sm:$0xf] %v11325_v13  ;;  %v1418_v59 = vsel %vm819_vm6, %v11290_v58, %v1385_v12  ;;  %v1424_v6 = vsel %vm819_vm6, %v11292_v31, %v1389_v14  ;;  %v2163_v58 = vsel %vm13955_vm5, %v11426_v33, %v2162_v42  ;;  %v2164_v28 = vrot.slane %v2162_v42, 4 }
  0xa2   : > { %v11322_v52 = vcombine.low %v1418_v59, %v1418_v59  ;;  %v11323_v15 = vcombine.high %v1418_v59, %v1418_v59  ;;  %v11326_v27 = vcombine.low %v1424_v6, %v1424_v6  ;;  %v11327_v29 = vcombine.high %v1424_v6, %v1424_v6  ;;  %v13384_v38 = vld [vmem:[%s13715_s17 + $0x24] sm:$0xf]  ;;  %v13385_v8 = vld [vmem:[%s13715_s17 + $0x28] sm:$0xf] }
  0xa3   : > { %v1134_v31 = vrot.slane %v1022_v56, 5  ;;  %v11181_v13 = vcombine.low %v13384_v38, %v13385_v8  ;;  %v1141_v12 = vrot.slane %v1025_v53, 5  ;;  %v2800_v33 = vsel %vm13746_vm2, %v2795_v11, %v2799_v48  ;;  %v11516_v6 = vld [vmem:[%s13715_s17 + $0x84] sm:$0xf]  ;;  %v11517_v50 = vld [vmem:[%s13715_s17 + $0x88] sm:$0xf] }
  0xa4   : > { %1576 = vst [vmem:[#allocation2 + $0x4] sm:$0xf] %v11322_v52  ;;  %1577 = vst [vmem:[#allocation2 + $0x18] sm:$0xf] %v11323_v15  ;;  %v792_v47 = vpop.permute.xlu0 %791  ;;  %v2166_v42 = vsel %vm13955_vm5, %v2164_v28, %v2165_v51  ;;  %v1391_v59 = vpop.permute.xlu1 %1390  ;;  %v11570_v53 = vcombine.low %v2790_v17, %v2800_v33  ;;  %v1144_v52 = vrot.slane %v1026_v21, 5  ;;  %v2802_v17 = vshrl.u32 %v11516_v6, 16 }
  0xa5   : > { %1580 = vst [vmem:[#allocation2 + $0x54] sm:$0xf] %v11326_v27  ;;  %1581 = vst [vmem:[#allocation2 + $0x68] sm:$0xf] %v11327_v29  ;;  %v828_v14 = vsel %vm819_vm6, %v11180_v61, %v792_v47  ;;  %v1135_v56 = vsel %vm13955_vm5, %v11245_v54, %v1134_v31  ;;  %v11458_v39 = vcombine.low %v2163_v58, %v2166_v42  ;;  %v1136_v40 = vrot.slane %v1134_v31, 4 }
  0xa6   : > { %v11214_v1 = vcombine.low %v828_v14, %v828_v14  ;;  %v11215_v32 = vcombine.high %v828_v14, %v828_v14  ;;  %v1142_v61 = vsel %vm13955_vm5, %v11246_v23, %v1141_v12  ;;  %v1143_v48 = vrot.slane %v1141_v12, 4  ;;  %3113 = vrot.lane.b32.xlu1 %v11570_v53, %s13616_s26  ;;  %v13386_v54 = vld [vmem:[%s13715_s17 + $0x30] sm:$0xf]  ;;  %v13387_v15 = vld [vmem:[%s13715_s17 + $0x34] sm:$0xf] }
  0xa7   : > { %2328 = vrot.lane.b32.xlu0 %v11458_v39, %s13616_s26  ;;  %v11182_v27 = vcombine.low %v13386_v54, %v13387_v15  ;;  %v2805_v29 = vshll.u32 %v11516_v6, 16  ;;  %v2811_v11 = vshll.u32 %v11517_v50, 16  ;;  %v1138_v58 = vsel %vm13955_vm5, %v1136_v40, %v1137_v44  ;;  %v11539_v47 = vld [vmem:[%s13715_s17 + $0x8c] sm:$0x1]  ;;  %v14279_v14 = vld [vmem:[%s13715_s17 + $0x78] sm:$0xe] }
  0xa8   : > { %984 = vst [vmem:[#allocation2 + $0x50] sm:$0xf] %v11214_v1  ;;  %985 = vst [vmem:[#allocation2 + $0x64] sm:$0xf] %v11215_v32  ;;  %v794_v51 = vpop.permute.xlu0 %793  ;;  %v1145_v31 = vsel %vm13955_vm5, %v1143_v48, %v1144_v52  ;;  %v2815_v38 = vshrl.u32 %v11517_v50, 16  ;;  %v11293_v8 = vcombine.low %v1135_v56, %v1138_v58  ;;  %v1393_v42 = vpop.permute.xlu1 %1392  ;;  %v2804_v6 = vrot.slane %v2802_v17, 4 }
  0xa9   : > { %v831_v28 = vsel %vm819_vm6, %v11181_v13, %v794_v51  ;;  %v11294_v12 = vcombine.low %v1142_v61, %v1145_v31  ;;  %v13051_v33 = vld [vmem:[#allocation2 + $0x2c] ss:$20 sps:$4 sm:$0xff]   ;;  %v2807_v1 = vrot.slane %v2805_v29, 5  ;;  %v2813_v32 = vrot.slane %v2811_v11, 5  ;;  %v14284_v13 = vld [vmem:[%s17736_s1 + $0x110] sm:$0xff]  }
  0xaa   : > { %v11216_v21 = vcombine.low %v831_v28, %v831_v28  ;;  %v11217_v23 = vcombine.high %v831_v28, %v831_v28  ;;  %v2817_v44 = vrot.slane %v2815_v38, 4  ;;  %v1427_v50 = vsel %vm819_vm6, %v11293_v8, %v1391_v59  ;;  %v13049_v48 = vld [vmem:[#allocation2] ss:$20 sps:$4 sm:$0xff]   ;;  %v14290_v17 = vld [vmem:[%s13715_s17 + $0x7c] sm:$0xf] }
  0xab   : > { %v1430_v53 = vsel %vm819_vm6, %v11294_v12, %v1393_v42  ;;  %v2821_v40 = vshll.u32 %v11539_v47, 16  ;;  %v13047_v61 = vld [vmem:[#allocation2 + $0x4] ss:$20 sps:$4 sm:$0xff]   ;;  %v11328_v52 = vcombine.low %v1427_v50, %v1427_v50  ;;  %v11329_v51 = vcombine.high %v1427_v50, %v1427_v50  ;;  %v14293_v29 = vld [vmem:[%s13715_s17 + $0x80] sm:$0x1] }
  0xac   : > { %986 = vst [vmem:[#allocation2 + $0x78] sm:$0xf] %v11216_v21  ;;  %987 = vst [vmem:[#allocation2 + $0x8c] sm:$0xf] %v11217_v23  ;;  %v796_v39 = vpop.permute.xlu0 %795  ;;  %v11330_v54 = vcombine.low %v1430_v53, %v1430_v53  ;;  %v11331_v15 = vcombine.high %v1430_v53, %v1430_v53  ;;  %v1027_v11 = vld [vmem:[%s13715_s17 + $0x3c] sm:$0xe]  ;;  %v2808_v58 = vor.u32 %v2807_v1, %v2804_v6  ;;  %4465 = vmatprep.mubr.bf16.mxu0 %v13047_v61 }
  0xad   : > { %v834_v59 = vsel %vm819_vm6, %v11182_v27, %v796_v39  ;;  %v2818_v28 = vor.u32 %v2817_v44, %v2813_v32  ;;  %v2823_v31 = vrot.slane %v2821_v40, 5  ;;  %v1028_v47 = vld [vmem:[%s13715_s17 + $0x40] sm:$0xf]  ;;  %v1029_v38 = vld [vmem:[%s13715_s17 + $0x44] sm:$0x1]  ;;  %v11427_v12 = vrot.slane %v14279_v14, 9  ;;  %4466 = vmatmul.mubr.bf16.vlgmr.msra.gmra.mxu0 %v13049_v48 }
  0xae   : > { %1582 = vst [vmem:[#allocation2 + $0x7c] sm:$0xf] %v11328_v52  ;;  %1583 = vst [vmem:[#allocation2 + $0x90] sm:$0xf] %v11329_v51  ;;  %v11218_v21 = vcombine.low %v834_v59, %v834_v59  ;;  %v11219_v23 = vcombine.high %v834_v59, %v834_v59  ;;  %v1030_v27 = vld [vmem:[%s13715_s17 + $0x48] sm:$0xe]  ;;  %4473 = vmatprep.mubr.bf16.mxu0 %v13051_v33 }
  0xaf   : > { %1584 = vst [vmem:[#allocation2 + $0xa4] sm:$0xf] %v11330_v54  ;;  %1585 = vst [vmem:[#allocation2 + $0xb8] sm:$0xf] %v11331_v15  ;;  %v2809_v42 = vrot.slane %v2808_v58, 4  ;;  %v2819_v6 = vrot.slane %v2818_v28, 4 }
  0xb0   : > { %v2169_v1 = vrot.slane %v14290_v17, 5  ;;  %v2172_v44 = vrot.slane %v14293_v29, 5  ;;  %v13388_v50 = vld [vmem:[%s17736_s1 + $0x118] sm:$0xff]   ;;  %v1031_v53 = vld [vmem:[%s13715_s17 + $0x4c] sm:$0xf]  ;;  %v11247_v14 = vrot.slane %v1027_v11, 9  ;;  %v798_v54 = vpop.permute.xlu0 %797 }
  0xb1   : > { %12887 = vmatpush3.bf16.msra.mxu0 %v13388_v50  ;;  %v14309_v39 = vld [vmem:[%s13715_s17 + $0x50] sm:$0x1]  ;;  %988 = vst [vmem:[#allocation2 + $0xa0] sm:$0xf] %v11218_v21  ;;  %989 = vst [vmem:[#allocation2 + $0xb4] sm:$0xf] %v11219_v23  ;;  %v2814_v59 = vsel %vm13746_vm2, %v2809_v42, %v2813_v32  ;;  %v2824_v11 = vsel %vm13746_vm2, %v2819_v6, %v2823_v31 }
  0xb2   : > { %v1148_v40 = vrot.slane %v1028_v47, 5  ;;  %v1151_v61 = vrot.slane %v1029_v38, 5  ;;  %v13389_v48 = vld [vmem:[%s13715_s17 + $0x3c] sm:$0xf]  ;;  %v13390_v52 = vld [vmem:[%s13715_s17 + $0x40] sm:$0xf]  ;;  %12888 = vmatprep.subr.bf16.mxu0 %v14284_v13  ;;  %v2170_v58 = vsel %vm13955_vm5, %v11427_v12, %v2169_v1  ;;  %v11571_v47 = vcombine.low %v2814_v59, %v2824_v11 }
  0xb3   : > { %v11183_v51 = vcombine.low %v13389_v48, %v13390_v52  ;;  %v11518_v15 = vld [vmem:[%s13715_s17 + $0x90] sm:$0xf]  ;;  %v13109_v33 = vld [vmem:[%s17736_s1 + $0x108] sm:$0xff]   ;;  %v2171_v28 = vrot.slane %v2169_v1, 4  ;;  %v11248_v32 = vrot.slane %v1030_v27, 9  ;;  %v1395_v1 = vpop.permute.xlu1 %1394 }
  0xb4   : > { %v1149_v38 = vsel %vm13955_vm5, %v11247_v14, %v1148_v40  ;;  %v1150_v21 = vrot.slane %v1148_v40, 4  ;;  %v11519_v31 = vld [vmem:[%s13715_s17 + $0x94] sm:$0xf]  ;;  %3115 = vrot.lane.b32.xlu1 %v11571_v47, %s13616_s26  ;;  %v1155_v14 = vrot.slane %v1031_v53, 5  ;;  %v13054_v40 = vld [vmem:[#allocation2 + $0x28] ss:$20 sps:$4 sm:$0xff]  }
  0xb5   : > { %v837_v23 = vsel %vm819_vm6, %v11183_v51, %v798_v54  ;;  %v2173_v50 = vsel %vm13955_vm5, %v2171_v28, %v2172_v44  ;;  %v13057_v42 = vld [vmem:[#allocation2 + $0x54] ss:$20 sps:$4 sm:$0xff]   ;;  %12889 = vmatpush3.bf16.msra.mxu0 %v14284_v13  ;;  %v1158_v44 = vrot.slane %v14309_v39, 5  ;;  %v13392_v54 = vld [vmem:[%s13715_s17 + $0x4c] sm:$0xf]  ;;  %v2826_v11 = vshrl.u32 %v11518_v15, 16 }
  0xb6   : > { %v11220_v48 = vcombine.low %v837_v23, %v837_v23  ;;  %v11221_v52 = vcombine.high %v837_v23, %v837_v23  ;;  %v11459_v12 = vcombine.low %v2170_v58, %v2173_v50  ;;  %v1152_v6 = vsel %vm13955_vm5, %v1150_v21, %v1151_v61  ;;  %12890 = vmatprep.subr.bf16.mxu0 %v13109_v33  ;;  %v13391_v51 = vld [vmem:[%s13715_s17 + $0x48] sm:$0xf]  ;;  %v11540_v13 = vld [vmem:[%s13715_s17 + $0x98] sm:$0x1]  ;;  %v800_v58 = vpop.permute.xlu0 %799  ;;  %v13138_v21 = vld [vmem:[%s17736_s1 + $0x100] sm:$0xff]  }
  0xb7   : > { %v11295_v27 = vcombine.low %v1149_v38, %v1152_v6  ;;  %v11184_v59 = vcombine.low %v13391_v51, %v13392_v54  ;;  %v2829_v28 = vshll.u32 %v11518_v15, 16  ;;  %v1156_v61 = vsel %vm13955_vm5, %v11248_v32, %v1155_v14  ;;  %v14342_v38 = vld [vmem:[%s13715_s17 + $0x88] sm:$0xf]  ;;  %4474 = vmatmul.mubr.bf16.gmra.mxu0 %v13054_v40  ;;  %v14352_v6 = vld [vmem:[%s13715_s17 + $0x8c] sm:$0x1] }
  0xb8   : > { %990 = vst [vmem:[#allocation2 + $0xc8] sm:$0xf] %v11220_v48  ;;  %991 = vst [vmem:[#allocation2 + $0xdc] sm:$0xf] %v11221_v52  ;;  %2330 = vrot.lane.b32.xlu0 %v11459_v12, %s13616_s26  ;;  %v1157_v53 = vrot.slane %v1155_v14, 4  ;;  %v2835_v39 = vshll.u32 %v11519_v31, 16  ;;  %4481 = vmatprep.mubr.bf16.mxu0 %v13057_v42 }
  0xb9   : > { %v2839_v47 = vshrl.u32 %v11519_v31, 16  ;;  %v1433_v15 = vsel %vm819_vm6, %v11295_v27, %v1395_v1  ;;  %v840_v23 = vsel %vm819_vm6, %v11184_v59, %v800_v58  ;;  %v2828_v50 = vrot.slane %v2826_v11, 4  ;;  %12891 = vmatpush3.bf16.msra.mxu0 %v13109_v33  ;;  %v11412_v14 = vld [vmem:[%s13715_s17 + $0x84] sm:$0xe]  ;;  %v1033_v54 = vld [vmem:[%s13715_s17 + $0x54] sm:$0xe]  ;;  %v1397_v33 = vpop.permute.xlu1 %1396 }
  0xba   : > { %v2831_v48 = vrot.slane %v2829_v28, 5  ;;  %v11332_v52 = vcombine.low %v1433_v15, %v1433_v15  ;;  %v11333_v32 = vcombine.high %v1433_v15, %v1433_v15  ;;  %v1159_v31 = vsel %vm13955_vm5, %v1157_v53, %v1158_v44  ;;  %12892 = vmatprep.subr.bf16.mxu0 %v13138_v21  ;;  %v1034_v59 = vld [vmem:[%s13715_s17 + $0x58] sm:$0xf]  ;;  %v1035_v11 = vld [vmem:[%s13715_s17 + $0x5c] sm:$0x1] }
  0xbb   : > { %v11222_v12 = vcombine.low %v840_v23, %v840_v23  ;;  %v11296_v1 = vcombine.low %v1156_v61, %v1159_v31  ;;  %v11223_v40 = vcombine.high %v840_v23, %v840_v23  ;;  %v2837_v51 = vrot.slane %v2835_v39, 5  ;;  %v13059_v28 = vld [vmem:[#allocation2 + $0x50] ss:$20 sps:$4 sm:$0xff]   ;;  %v11521_v56 = vld [vmem:[%s13715_s17 + $0xa0] sm:$0xf] }
  0xbc   : > { %v2832_v27 = vor.u32 %v2831_v48, %v2828_v50  ;;  %1586 = vst [vmem:[#allocation2 + $0xcc] sm:$0xf] %v11332_v52  ;;  %1587 = vst [vmem:[#allocation2 + $0xe0] sm:$0xf] %v11333_v32  ;;  %v2841_v42 = vrot.slane %v2839_v47, 4  ;;  %v2845_v44 = vshll.u32 %v11540_v13, 16 }
  0xbd   : > { %992 = vst [vmem:[#allocation2 + $0xf0] sm:$0xf] %v11222_v12  ;;  %v1436_v53 = vsel %vm819_vm6, %v11296_v1, %v1397_v33  ;;  %993 = vst [vmem:[#allocation2 + $0x104] sm:$0xf] %v11223_v40  ;;  %v11428_v58 = vrot.slane %v11412_v14, 9  ;;  %v2176_v39 = vrot.slane %v14342_v38, 5  ;;  %12893 = vmatpush3.bf16.msra.mxu0 %v13138_v21 }
  0xbe   : > { %v2833_v61 = vrot.slane %v2832_v27, 4  ;;  %v13062_v15 = vld [vmem:[#allocation2 + $0x7c] ss:$20 sps:$4 sm:$0xff]   ;;  %v11334_v23 = vcombine.low %v1436_v53, %v1436_v53  ;;  %v11335_v50 = vcombine.high %v1436_v53, %v1436_v53  ;;  %v2842_v48 = vor.u32 %v2841_v42, %v2837_v51  ;;  %v1036_v47 = vld [vmem:[%s13715_s17 + $0x60] sm:$0xe]  ;;  %v802_v42 = vpop.permute.xlu0 %801 }
  0xbf   : > { %v2847_v52 = vrot.slane %v2845_v44, 5  ;;  %v1037_v32 = vld [vmem:[%s13715_s17 + $0x64] sm:$0xf]  ;;  %v2177_v31 = vsel %vm13955_vm5, %v11428_v58, %v2176_v39  ;;  %v2178_v12 = vrot.slane %v2176_v39, 4  ;;  %v2179_v14 = vrot.slane %v14352_v6, 5  ;;  %4482 = vmatmul.mubr.bf16.gmra.mxu0 %v13059_v28 }
  0xc0   : > { %v2838_v13 = vsel %vm13746_vm2, %v2833_v61, %v2837_v51  ;;  %v1038_v1 = vld [vmem:[%s13715_s17 + $0x68] sm:$0x1]  ;;  %1588 = vst [vmem:[#allocation2 + $0xf4] sm:$0xf] %v11334_v23  ;;  %1589 = vst [vmem:[#allocation2 + $0x108] sm:$0xf] %v11335_v50  ;;  %4489 = vmatprep.mubr.bf16.mxu0 %v13062_v15  ;;  %v1399_v23 = vpop.permute.xlu1 %1398 }
  0xc1   : > { %v2843_v21 = vrot.slane %v2842_v48, 4  ;;  %v11249_v40 = vrot.slane %v1033_v54, 9  ;;  %v1162_v27 = vrot.slane %v1034_v59, 5  ;;  %v1165_v33 = vrot.slane %v1035_v11, 5  ;;  %v11520_v44 = vld [vmem:[%s13715_s17 + $0x9c] sm:$0xf] }
  0xc2   : > { %v2180_v51 = vsel %vm13955_vm5, %v2178_v12, %v2179_v14  ;;  %v13393_v53 = vld [vmem:[%s13715_s17 + $0x54] sm:$0xf]  ;;  %v13394_v61 = vld [vmem:[%s13715_s17 + $0x58] sm:$0xf]  ;;  %v11250_v39 = vrot.slane %v1036_v47, 9  ;;  %v1169_v8 = vrot.slane %v1037_v32, 5 }
  0xc3   : > { %v11185_v58 = vcombine.low %v13393_v53, %v13394_v61  ;;  %v2848_v54 = vsel %vm13746_vm2, %v2843_v21, %v2847_v52  ;;  %v11460_v59 = vcombine.low %v2177_v31, %v2180_v51  ;;  %v1163_v11 = vsel %vm13955_vm5, %v11249_v40, %v1162_v27  ;;  %v13064_v14 = vld [vmem:[#allocation2 + $0x78] ss:$20 sps:$4 sm:$0xff]   ;;  %v13395_v40 = vld [vmem:[%s13715_s17 + $0x60] sm:$0xf] }
  0xc4   : > { %v1164_v28 = vrot.slane %v1162_v27, 4  ;;  %v11572_v50 = vcombine.low %v2838_v13, %v2848_v54  ;;  %v1170_v47 = vsel %vm13955_vm5, %v11250_v39, %v1169_v8  ;;  %v1171_v32 = vrot.slane %v1169_v8, 4  ;;  %v13396_v13 = vld [vmem:[%s13715_s17 + $0x64] sm:$0xf] }
  0xc5   : > { %v843_v48 = vsel %vm819_vm6, %v11185_v58, %v802_v42  ;;  %2332 = vrot.lane.b32.xlu0 %v11460_v59, %s13616_s26  ;;  %v1172_v12 = vrot.slane %v1038_v1, 5  ;;  %v11186_v27 = vcombine.low %v13395_v40, %v13396_v13  ;;  %v2850_v42 = vshrl.u32 %v11520_v44, 16  ;;  %v13071_v53 = vld [vmem:[#allocation2 + $0xa4] ss:$20 sps:$4 sm:$0xff]   ;;  %v11522_v13 = vld [vmem:[%s13715_s17 + $0xa8] sm:$0xf] }
  0xc6   : > { %v1166_v15 = vsel %vm13955_vm5, %v1164_v28, %v1165_v33  ;;  %v11224_v52 = vcombine.low %v843_v48, %v843_v48  ;;  %v11225_v31 = vcombine.high %v843_v48, %v843_v48  ;;  %3117 = vrot.lane.b32.xlu1 %v11572_v50, %s13616_s26  ;;  %v2853_v51 = vshll.u32 %v11520_v44, 16  ;;  %v804_v33 = vpop.permute.xlu0 %803  ;;  %v1401_v48 = vpop.permute.xlu1 %1400  ;;  %v11523_v40 = vld [vmem:[%s13715_s17 + $0xac] sm:$0xf]  ;;  %v13092_v36 = vld [vmem:[#allocation2 + $0xf0] ss:$20 sps:$4 sm:$0xff]  }
  0xc7   : > { %v11297_v21 = vcombine.low %v1163_v11, %v1166_v15  ;;  %v1173_v8 = vsel %vm13955_vm5, %v1171_v32, %v1172_v12  ;;  %v2859_v1 = vshll.u32 %v11521_v56, 16  ;;  %v2863_v61 = vshrl.u32 %v11521_v56, 16  ;;  %v14396_v11 = vld [vmem:[%s13715_s17 + $0x94] sm:$0xf]  ;;  %v1039_v56 = vld [vmem:[%s13715_s17 + $0x6c] sm:$0xe]  ;;  %4490 = vmatmul.mubr.bf16.gmra.mxu0 %v13064_v14 }
  0xc8   : > { %994 = vst [vmem:[#allocation2 + $0x118] sm:$0xf] %v11224_v52  ;;  %995 = vst [vmem:[#allocation2 + $0x12c] sm:$0xf] %v11225_v31  ;;  %v2869_v58 = vshll.u32 %v14375_v0, 16  ;;  %v11298_v54 = vcombine.low %v1170_v47, %v1173_v8  ;;  %v846_v59 = vsel %vm819_vm6, %v11186_v27, %v804_v33  ;;  %v2852_v44 = vrot.slane %v2850_v42, 4  ;;  %4497 = vmatprep.mubr.bf16.mxu0 %v13071_v53 }
  0xc9   : > { %v1439_v39 = vsel %vm819_vm6, %v11297_v21, %v1399_v23  ;;  %v11226_v32 = vcombine.low %v846_v59, %v846_v59  ;;  %v11227_v15 = vcombine.high %v846_v59, %v846_v59  ;;  %v14399_v52 = vld [vmem:[%s13715_s17 + $0x98] sm:$0x1]  ;;  %v11413_v31 = vld [vmem:[%s13715_s17 + $0x90] sm:$0xe]  ;;  %v2855_v23 = vrot.slane %v2853_v51, 5 }
  0xca   : > { %v11336_v28 = vcombine.low %v1439_v39, %v1439_v39  ;;  %v11337_v50 = vcombine.high %v1439_v39, %v1439_v39  ;;  %v1442_v0 = vsel %vm819_vm6, %v11298_v54, %v1401_v48  ;;  %v2861_v47 = vrot.slane %v2859_v1, 5  ;;  %v1040_v21 = vld [vmem:[%s13715_s17 + $0x70] sm:$0xf]  ;;  %v1041_v14 = vld [vmem:[%s13715_s17 + $0x74] sm:$0x1] }
  0xcb   : > { %v2865_v12 = vrot.slane %v2863_v61, 4  ;;  %v11338_v27 = vcombine.low %v1442_v0, %v1442_v0  ;;  %v11339_v42 = vcombine.high %v1442_v0, %v1442_v0  ;;  %996 = vst [vmem:[#allocation2 + $0x140] sm:$0xf] %v11226_v32  ;;  %997 = vst [vmem:[#allocation2 + $0x154] sm:$0xf] %v11227_v15  ;;  %v2856_v8 = vor.u32 %v2855_v23, %v2852_v44 }
  0xcc   : > { %1590 = vst [vmem:[#allocation2 + $0x11c] sm:$0xf] %v11336_v28  ;;  %1591 = vst [vmem:[#allocation2 + $0x130] sm:$0xf] %v11337_v50  ;;  %v2871_v33 = vrot.slane %v2869_v58, 5  ;;  %v11429_v1 = vrot.slane %v11413_v31, 9  ;;  %v806_v31 = vpop.permute.xlu0 %805 }
  0xcd   : > { %v2866_v51 = vor.u32 %v2865_v12, %v2861_v47  ;;  %v1042_v61 = vld [vmem:[%s13715_s17 + $0x78] sm:$0xe]  ;;  %1592 = vst [vmem:[#allocation2 + $0x144] sm:$0xf] %v11338_v27  ;;  %1593 = vst [vmem:[#allocation2 + $0x158] sm:$0xf] %v11339_v42 }
  0xce   : > { %v2183_v53 = vrot.slane %v14396_v11, 5  ;;  %v2186_v39 = vrot.slane %v14399_v52, 5  ;;  %v11251_v54 = vrot.slane %v1039_v56, 9  ;;  %v1176_v59 = vrot.slane %v1040_v21, 5  ;;  %v1043_v28 = vld [vmem:[%s13715_s17 + $0x7c] sm:$0xf] }
  0xcf   : > { %v13074_v50 = vld [vmem:[#allocation2 + $0xa0] ss:$20 sps:$4 sm:$0xff]   ;;  %v2857_v48 = vrot.slane %v2856_v8, 4  ;;  %v2867_v44 = vrot.slane %v2866_v51, 4  ;;  %v1179_v32 = vrot.slane %v1041_v14, 5 }
  0xd0   : > { %v13397_v15 = vld [vmem:[%s13715_s17 + $0x6c] sm:$0xf]  ;;  %v13398_v0 = vld [vmem:[%s13715_s17 + $0x70] sm:$0xf]  ;;  %v1044_v23 = vld [vmem:[%s13715_s17 + $0x80] sm:$0x1]  ;;  %v2184_v27 = vsel %vm13955_vm5, %v11429_v1, %v2183_v53  ;;  %v1177_v56 = vsel %vm13955_vm5, %v11251_v54, %v1176_v59  ;;  %v1403_v54 = vpop.permute.xlu1 %1402  ;;  %4498 = vmatmul.mubr.bf16.gmra.mxu0 %v13074_v50 }
  0xd1   : > { %v11187_v58 = vcombine.low %v13397_v15, %v13398_v0  ;;  %v13081_v12 = vld [vmem:[#allocation2 + $0xcc] ss:$20 sps:$4 sm:$0xff]   ;;  %v2185_v42 = vrot.slane %v2183_v53, 4  ;;  %v1178_v21 = vrot.slane %v1176_v59, 4  ;;  %v2862_v8 = vsel %vm13746_vm2, %v2857_v48, %v2861_v47 }
  0xd2   : > { %v2872_v14 = vsel %vm13746_vm2, %v2867_v44, %v2871_v33  ;;  %v11252_v15 = vrot.slane %v1042_v61, 9  ;;  %v1183_v33 = vrot.slane %v1043_v28, 5  ;;  %4505 = vmatprep.mubr.bf16.mxu0 %v13081_v12  ;;  %v1186_v61 = vrot.slane %v1044_v23, 5  ;;  %v13399_v44 = vld [vmem:[%s13715_s17 + $0x78] sm:$0xf] }
  0xd3   : > { %v849_v51 = vsel %vm819_vm6, %v11187_v58, %v806_v31  ;;  %v11573_v0 = vcombine.low %v2862_v8, %v2872_v14  ;;  %v2187_v1 = vsel %vm13955_vm5, %v2185_v42, %v2186_v39  ;;  %v1180_v53 = vsel %vm13955_vm5, %v1178_v21, %v1179_v32  ;;  %v13400_v39 = vld [vmem:[%s13715_s17 + $0x7c] sm:$0xf]  ;;  %v11542_v42 = vld [vmem:[%s13715_s17 + $0xb0] sm:$0x1] }
  0xd4   : > { %v11228_v59 = vcombine.low %v849_v51, %v849_v51  ;;  %v11461_v47 = vcombine.low %v2184_v27, %v2187_v1  ;;  %v11299_v48 = vcombine.low %v1177_v56, %v1180_v53  ;;  %v11229_v5 = vcombine.high %v849_v51, %v849_v51  ;;  %v808_v27 = vpop.permute.xlu0 %807  ;;  %v14439_v56 = vld [vmem:[%s13715_s17 + $0xa0] sm:$0xf]  ;;  %v11414_v51 = vld [vmem:[%s13715_s17 + $0x9c] sm:$0xe] }
  0xd5   : > { %3119 = vrot.lane.b32.xlu1 %v11573_v0, %s13616_s26  ;;  %v11188_v58 = vcombine.low %v13399_v44, %v13400_v39  ;;  %v2874_v32 = vshrl.u32 %v11522_v13, 16  ;;  %v2877_v31 = vshll.u32 %v11522_v13, 16  ;;  %v1184_v28 = vsel %vm13955_vm5, %v11252_v15, %v1183_v33  ;;  %v13083_v0 = vld [vmem:[#allocation2 + $0xc8] ss:$20 sps:$4 sm:$0xff]  }
  0xd6   : > { %998 = vst [vmem:[#allocation2 + $0x168] sm:$0xf] %v11228_v59  ;;  %2334 = vrot.lane.b32.xlu0 %v11461_v47, %s13616_s26  ;;  %v1445_v50 = vsel %vm819_vm6, %v11299_v48, %v1403_v54  ;;  %999 = vst [vmem:[#allocation2 + $0x17c] sm:$0xf] %v11229_v5  ;;  %v1185_v12 = vrot.slane %v1183_v33, 4  ;;  %v2883_v23 = vshll.u32 %v11523_v40, 16  ;;  %v1405_v48 = vpop.permute.xlu1 %1404 }
  0xd7   : > { %v11340_v21 = vcombine.low %v1445_v50, %v1445_v50  ;;  %v11341_v8 = vcombine.high %v1445_v50, %v1445_v50  ;;  %v852_v13 = vsel %vm819_vm6, %v11188_v58, %v808_v27  ;;  %v2876_v14 = vrot.slane %v2874_v32, 4  ;;  %v14446_v54 = vld [vmem:[%s13715_s17 + $0xa4] sm:$0x1]  ;;  %v1045_v59 = vld [vmem:[%s13715_s17 + $0x84] sm:$0xe] }
  0xd8   : > { %v1187_v5 = vsel %vm13955_vm5, %v1185_v12, %v1186_v61  ;;  %v11230_v15 = vcombine.low %v852_v13, %v852_v13  ;;  %v11231_v1 = vcombine.high %v852_v13, %v852_v13  ;;  %v2879_v53 = vrot.slane %v2877_v31, 5  ;;  %v1046_v58 = vld [vmem:[%s13715_s17 + $0x88] sm:$0xf]  ;;  %v1047_v12 = vld [vmem:[%s13715_s17 + $0x8c] sm:$0x1]  ;;  %4506 = vmatmul.mubr.bf16.gmra.mxu0 %v13083_v0  ;;  %v810_v32 = vpop.permute.xlu0 %809 }
  0xd9   : > { %1594 = vst [vmem:[#allocation2 + $0x16c] sm:$0xf] %v11340_v21  ;;  %1595 = vst [vmem:[#allocation2 + $0x180] sm:$0xf] %v11341_v8  ;;  %v11300_v47 = vcombine.low %v1184_v28, %v1187_v5  ;;  %v2885_v33 = vrot.slane %v2883_v23, 5  ;;  %v2887_v44 = vshrl.u32 %v11523_v40, 16 }
  0xda   : > { %v2893_v39 = vshll.u32 %v11542_v42, 16  ;;  %1000 = vst [vmem:[#allocation2 + $0x190] sm:$0xf] %v11230_v15  ;;  %1001 = vst [vmem:[#allocation2 + $0x1a4] sm:$0xf] %v11231_v1  ;;  %v2880_v31 = vor.u32 %v2879_v53, %v2876_v14  ;;  %v11430_v50 = vrot.slane %v11414_v51, 9 }
  0xdb   : > { %v1448_v27 = vsel %vm819_vm6, %v11300_v47, %v1405_v48  ;;  %v2889_v28 = vrot.slane %v2887_v44, 4  ;;  %v2190_v23 = vrot.slane %v14439_v56, 5  ;;  %v1048_v40 = vld [vmem:[%s13715_s17 + $0x90] sm:$0xe]  ;;  %v2193_v5 = vrot.slane %v14446_v54, 5 }
  0xdc   : > { %v2895_v21 = vrot.slane %v2893_v39, 5  ;;  %v11342_v42 = vcombine.low %v1448_v27, %v1448_v27  ;;  %v11343_v8 = vcombine.high %v1448_v27, %v1448_v27  ;;  %v2881_v13 = vrot.slane %v2880_v31, 4  ;;  %v1049_v15 = vld [vmem:[%s13715_s17 + $0x94] sm:$0xf]  ;;  %v1050_v48 = vld [vmem:[%s13715_s17 + $0x98] sm:$0x1] }
  0xdd   : > { %v13090_v14 = vld [vmem:[#allocation2 + $0xf4] ss:$20 sps:$4 sm:$0xff]   ;;  %v2890_v51 = vor.u32 %v2889_v28, %v2885_v33  ;;  %v2191_v1 = vsel %vm13955_vm5, %v11430_v50, %v2190_v23  ;;  %v2192_v53 = vrot.slane %v2190_v23, 4  ;;  %v11253_v47 = vrot.slane %v1045_v59, 9  ;;  %v13401_v31 = vld [vmem:[%s13715_s17 + $0x84] sm:$0xf]  ;;  %v1407_v50 = vpop.permute.xlu1 %1406 }
  0xde   : > { %1596 = vst [vmem:[#allocation2 + $0x194] sm:$0xf] %v11342_v42  ;;  %1597 = vst [vmem:[#allocation2 + $0x1a8] sm:$0xf] %v11343_v8  ;;  %v2886_v0 = vsel %vm13746_vm2, %v2881_v13, %v2885_v33  ;;  %v1190_v44 = vrot.slane %v1046_v58, 5  ;;  %v1193_v39 = vrot.slane %v1047_v12, 5  ;;  %4513 = vmatprep.mubr.bf16.mxu0 %v13090_v14 }
  0xdf   : > { %v13402_v27 = vld [vmem:[%s13715_s17 + $0x88] sm:$0xf]  ;;  %v11524_v28 = vld [vmem:[%s13715_s17 + $0xb4] sm:$0xf]  ;;  %v2891_v37 = vrot.slane %v2890_v51, 4  ;;  %v2194_v59 = vsel %vm13955_vm5, %v2192_v53, %v2193_v5  ;;  %v11254_v23 = vrot.slane %v1048_v40, 9 }
  0xe0   : > { %v11189_v61 = vcombine.low %v13401_v31, %v13402_v27  ;;  %v1197_v42 = vrot.slane %v1049_v15, 5  ;;  %v11525_v8 = vld [vmem:[%s13715_s17 + $0xb8] sm:$0xf]  ;;  %v11462_v33 = vcombine.low %v2191_v1, %v2194_v59  ;;  %v1191_v58 = vsel %vm13955_vm5, %v11253_v47, %v1190_v44  ;;  %v13098_v15 = vld [vmem:[#allocation2 + $0x11c] ss:$20 sps:$4 sm:$0xff]   ;;  %4514 = vmatmul.mubr.bf16.gmra.mxu0 %v13092_v36  ;;  %v812_v59 = vpop.permute.xlu0 %811 }
  0xe1   : > { %v1192_v12 = vrot.slane %v1190_v44, 4  ;;  %v2896_v14 = vsel %vm13746_vm2, %v2891_v37, %v2895_v21  ;;  %v1200_v44 = vrot.slane %v1050_v48, 5  ;;  %v2898_v21 = vshrl.u32 %v11524_v28, 16  ;;  %4521 = vmatprep.mubr.bf16.mxu0 %v13098_v15  ;;  %v13124_v16 = vld [vmem:[#allocation2 + $0x190] ss:$20 sps:$4 sm:$0xff]  }
  0xe2   : > { %v855_v13 = vsel %vm819_vm6, %v11189_v61, %v810_v32  ;;  %v1198_v40 = vsel %vm13955_vm5, %v11254_v23, %v1197_v42  ;;  %v11574_v53 = vcombine.low %v2886_v0, %v2896_v14  ;;  %2336 = vrot.lane.b32.xlu0 %v11462_v33, %s13616_s26  ;;  %v1199_v47 = vrot.slane %v1197_v42, 4  ;;  %v13403_v32 = vld [vmem:[%s13715_s17 + $0x90] sm:$0xf]  ;;  %v13404_v61 = vld [vmem:[%s13715_s17 + $0x94] sm:$0xf] }
  0xe3   : > { %v11232_v5 = vcombine.low %v855_v13, %v855_v13  ;;  %v11233_v51 = vcombine.high %v855_v13, %v855_v13  ;;  %v1194_v1 = vsel %vm13955_vm5, %v1192_v12, %v1193_v39  ;;  %v11190_v37 = vcombine.low %v13403_v32, %v13404_v61  ;;  %v14491_v12 = vld [vmem:[%s13715_s17 + $0xac] sm:$0xf]  ;;  %v14494_v13 = vld [vmem:[%s13715_s17 + $0xb0] sm:$0x1] }
  0xe4   : > { %v11301_v31 = vcombine.low %v1191_v58, %v1194_v1  ;;  %v2901_v27 = vshll.u32 %v11524_v28, 16  ;;  %3121 = vrot.lane.b32.xlu1 %v11574_v53, %s13616_s26  ;;  %v1201_v0 = vsel %vm13955_vm5, %v1199_v47, %v1200_v44  ;;  %v2907_v39 = vshll.u32 %v11525_v8, 16  ;;  %v1409_v58 = vpop.permute.xlu1 %1408  ;;  %v1051_v1 = vld [vmem:[%s13715_s17 + $0x9c] sm:$0xe]  ;;  %v13102_v44 = vld [vmem:[#allocation2 + $0x118] ss:$20 sps:$4 sm:$0xff]  }
  0xe5   : > { %1002 = vst [vmem:[#allocation2 + $0x1b8] sm:$0xf] %v11232_v5  ;;  %1003 = vst [vmem:[#allocation2 + $0x1cc] sm:$0xf] %v11233_v51  ;;  %v2911_v48 = vshrl.u32 %v11525_v8, 16  ;;  %v2917_v23 = vshll.u32 %v14470_v49, 16  ;;  %v11302_v33 = vcombine.low %v1198_v40, %v1201_v0  ;;  %v858_v36 = vsel %vm819_vm6, %v11190_v37, %v812_v59 }
  0xe6   : > { %v1451_v42 = vsel %vm819_vm6, %v11301_v31, %v1407_v50  ;;  %v2900_v28 = vrot.slane %v2898_v21, 4  ;;  %v11234_v51 = vcombine.low %v858_v36, %v858_v36  ;;  %v11235_v53 = vcombine.high %v858_v36, %v858_v36  ;;  %v11415_v8 = vld [vmem:[%s13715_s17 + $0xa8] sm:$0xe]  ;;  %v1052_v49 = vld [vmem:[%s13715_s17 + $0xa0] sm:$0xf] }
  0xe7   : > { %v11344_v14 = vcombine.low %v1451_v42, %v1451_v42  ;;  %v11345_v5 = vcombine.high %v1451_v42, %v1451_v42  ;;  %v1454_v15 = vsel %vm819_vm6, %v11302_v33, %v1409_v58  ;;  %v2903_v50 = vrot.slane %v2901_v27, 5  ;;  %v1053_v21 = vld [vmem:[%s13715_s17 + $0xa4] sm:$0x1]  ;;  %v1054_v42 = vld [vmem:[%s13715_s17 + $0xa8] sm:$0xe] }
  0xe8   : > { %v2909_v40 = vrot.slane %v2907_v39, 5  ;;  %v2913_v47 = vrot.slane %v2911_v48, 4  ;;  %v11346_v61 = vcombine.low %v1454_v15, %v1454_v15  ;;  %v11347_v37 = vcombine.high %v1454_v15, %v1454_v15  ;;  %1004 = vst [vmem:[#allocation2 + $0x1e0] sm:$0xf] %v11234_v51  ;;  %1005 = vst [vmem:[#allocation2 + $0x1f4] sm:$0xf] %v11235_v53  ;;  %v1411_v15 = vpop.permute.xlu1 %1410  ;;  %4522 = vmatmul.mubr.bf16.gmra.mxu0 %v13102_v44 }
  0xe9   : > { %1598 = vst [vmem:[#allocation2 + $0x1bc] sm:$0xf] %v11344_v14  ;;  %1599 = vst [vmem:[#allocation2 + $0x1d0] sm:$0xf] %v11345_v5  ;;  %v13105_v0 = vld [vmem:[#allocation2 + $0x144] ss:$20 sps:$4 sm:$0xff]   ;;  %v2904_v59 = vor.u32 %v2903_v50, %v2900_v28 }
  0xea   : > { %v2914_v27 = vor.u32 %v2913_v47, %v2909_v40  ;;  %v2919_v39 = vrot.slane %v2917_v23, 5  ;;  %v11431_v48 = vrot.slane %v11415_v8, 9  ;;  %1600 = vst [vmem:[#allocation2 + $0x1e4] sm:$0xf] %v11346_v61  ;;  %1601 = vst [vmem:[#allocation2 + $0x1f8] sm:$0xf] %v11347_v37  ;;  %v814_v8 = vpop.permute.xlu0 %813  ;;  %4529 = vmatprep.mubr.bf16.mxu0 %v13105_v0 }
  0xeb   : > { %v2197_v33 = vrot.slane %v14491_v12, 5  ;;  %v2200_v58 = vrot.slane %v14494_v13, 5  ;;  %v11255_v36 = vrot.slane %v1051_v1, 9  ;;  %v1204_v14 = vrot.slane %v1052_v49, 5  ;;  %v13405_v28 = vld [vmem:[%s13715_s17 + $0x9c] sm:$0xf] }
  0xec   : > { %v2905_v5 = vrot.slane %v2904_v59, 4  ;;  %v2915_v51 = vrot.slane %v2914_v27, 4  ;;  %v1207_v53 = vrot.slane %v1053_v21, 5  ;;  %v13406_v50 = vld [vmem:[%s13715_s17 + $0xa0] sm:$0xf] }
  0xed   : > { %v11191_v23 = vcombine.low %v13405_v28, %v13406_v50  ;;  %v2198_v47 = vsel %vm13955_vm5, %v11431_v48, %v2197_v33  ;;  %v2199_v61 = vrot.slane %v2197_v33, 4  ;;  %v1205_v1 = vsel %vm13955_vm5, %v11255_v36, %v1204_v14  ;;  %v1055_v37 = vld [vmem:[%s13715_s17 + $0xac] sm:$0xf]  ;;  %v1056_v44 = vld [vmem:[%s13715_s17 + $0xb0] sm:$0x1] }
  0xee   : > { %v1206_v49 = vrot.slane %v1204_v14, 4  ;;  %v2910_v21 = vsel %vm13746_vm2, %v2905_v5, %v2909_v40  ;;  %v2920_v59 = vsel %vm13746_vm2, %v2915_v51, %v2919_v39  ;;  %v11256_v28 = vrot.slane %v1054_v42, 9  ;;  %v11526_v48 = vld [vmem:[%s13715_s17 + $0xc0] sm:$0xf]  ;;  %v11527_v50 = vld [vmem:[%s13715_s17 + $0xc4] sm:$0xf] }
  0xef   : > { %v861_v27 = vsel %vm819_vm6, %v11191_v23, %v814_v8  ;;  %v11575_v33 = vcombine.low %v2910_v21, %v2920_v59  ;;  %v2201_v36 = vsel %vm13955_vm5, %v2199_v61, %v2200_v58  ;;  %v1211_v39 = vrot.slane %v1055_v37, 5  ;;  %v13110_v51 = vld [vmem:[#allocation2 + $0x140] ss:$20 sps:$4 sm:$0xff]   ;;  %v13407_v23 = vld [vmem:[%s13715_s17 + $0xa8] sm:$0xf]  ;;  %v816_v37 = vpop.permute.xlu0 %815 }
  0xf0   : > { %v1208_v0 = vsel %vm13955_vm5, %v1206_v49, %v1207_v53  ;;  %v11236_v14 = vcombine.low %v861_v27, %v861_v27  ;;  %v11463_v40 = vcombine.low %v2198_v47, %v2201_v36  ;;  %v11237_v32 = vcombine.high %v861_v27, %v861_v27  ;;  %v13408_v8 = vld [vmem:[%s13715_s17 + $0xac] sm:$0xf]  ;;  %v1413_v49 = vpop.permute.xlu1 %1412  ;;  %v11544_v27 = vld [vmem:[%s13715_s17 + $0xc8] sm:$0x1]  ;;  %4530 = vmatmul.mubr.bf16.gmra.mxu0 %v13110_v51  ;;  %v11398_v31 = vld [vmem:[%s13715_s17 + $0xbc] sm:$0x1] }
  0xf1   : > { %v11303_v5 = vcombine.low %v1205_v1, %v1208_v0  ;;  %3123 = vrot.lane.b32.xlu1 %v11575_v33, %s13616_s26  ;;  %v1214_v42 = vrot.slane %v1056_v44, 5  ;;  %v11192_v21 = vcombine.low %v13407_v23, %v13408_v8  ;;  %v2922_v59 = vshrl.u32 %v11526_v48, 16  ;;  %v13113_v61 = vld [vmem:[#allocation2 + $0x16c] ss:$20 sps:$4 sm:$0xff]   ;;  %v11397_v23 = vld [vmem:[%s13715_s17 + $0xb8] sm:$0xf] }
  0xf2   : > { %1006 = vst [vmem:[#allocation2 + $0x208] sm:$0xf] %v11236_v14  ;;  %v2925_v58 = vshll.u32 %v11526_v48, 16  ;;  %2338 = vrot.lane.b32.xlu0 %v11463_v40, %s13616_s26  ;;  %1007 = vst [vmem:[#allocation2 + $0x21c] sm:$0xf] %v11237_v32  ;;  %v1212_v47 = vsel %vm13955_vm5, %v11256_v28, %v1211_v39  ;;  %v1213_v1 = vrot.slane %v1211_v39, 4  ;;  %4537 = vmatprep.mubr.bf16.mxu0 %v13113_v61 }
  0xf3   : > { %v1457_v53 = vsel %vm819_vm6, %v11303_v5, %v1411_v15  ;;  %v2931_v44 = vshll.u32 %v11527_v50, 16  ;;  %v864_v48 = vsel %vm819_vm6, %v11192_v21, %v816_v37  ;;  %v2924_v0 = vrot.slane %v2922_v59, 4  ;;  %v11416_v14 = vld [vmem:[%s13715_s17 + $0xb4] sm:$0xe] }
  0xf4   : > { %v11348_v33 = vcombine.low %v1457_v53, %v1457_v53  ;;  %v11349_v36 = vcombine.high %v1457_v53, %v1457_v53  ;;  %v1215_v15 = vsel %vm13955_vm5, %v1213_v1, %v1214_v42  ;;  %v11238_v32 = vcombine.low %v864_v48, %v864_v48 }
  0xf5   : > { %v11239_v40 = vcombine.high %v864_v48, %v864_v48  ;;  %v2927_v5 = vrot.slane %v2925_v58, 5  ;;  %v11304_v28 = vcombine.low %v1212_v47, %v1215_v15  ;;  %v2933_v39 = vrot.slane %v2931_v44, 5  ;;  %v11354_v44 = vld [vmem:[%s13715_s17 + $0xc] sm:$0xf]  ;;  %v13117_v48 = vld [vmem:[#allocation2 + $0x168] ss:$20 sps:$4 sm:$0xff]  }
  0xf6   : > { %1602 = vst [vmem:[#allocation2 + $0x20c] sm:$0xf] %v11348_v33  ;;  %1603 = vst [vmem:[#allocation2 + $0x220] sm:$0xf] %v11349_v36  ;;  %v2935_v8 = vshrl.u32 %v11527_v50, 16  ;;  %v2941_v53 = vshll.u32 %v11544_v27, 16  ;;  %v3098_v36 = vpop.permute.xlu1 %3097 }
  0xf7   : > { %v1958_v21 = vshrl.u32 %v14439_v56, 16  ;;  %1008 = vst [vmem:[#allocation2 + $0x230] sm:$0xf] %v11238_v32  ;;  %1009 = vst [vmem:[#allocation2 + $0x244] sm:$0xf] %v11239_v40  ;;  %v2928_v42 = vor.u32 %v2927_v5, %v2924_v0  ;;  %v11432_v58 = vrot.slane %v11416_v14, 9  ;;  %v1460_v51 = vsel %vm819_vm6, %v11304_v28, %v1413_v49 }
  0xf8   : > { %v2937_v1 = vrot.slane %v2935_v8, 4  ;;  %v2943_v47 = vrot.slane %v2941_v53, 5  ;;  %v2204_v37 = vrot.slane %v11397_v23, 5  ;;  %v11350_v50 = vcombine.low %v1460_v51, %v1460_v51  ;;  %v13409_v32 = vld [vmem:[%s13715_s17 + $0x18] sm:$0xf]  ;;  %4538 = vmatmul.mubr.bf16.gmra.mxu0 %v13117_v48 }
  0xf9   : > { %v11351_v27 = vcombine.high %v1460_v51, %v1460_v51  ;;  %v2929_v33 = vrot.slane %v2928_v42, 4  ;;  %v2207_v61 = vrot.slane %v11398_v31, 5  ;;  %v13410_v40 = vld [vmem:[%s13715_s17 + $0x1c] sm:$0xf]  ;;  %v13120_v5 = vld [vmem:[#allocation2 + $0x194] ss:$20 sps:$4 sm:$0xff]   ;;  %v14550_v42 = vpop.permute.xlu0 %2312 }
  0xfa   : > { %v2938_v15 = vor.u32 %v2937_v1, %v2933_v39  ;;  %v2205_v0 = vsel %vm13955_vm5, %v11432_v58, %v2204_v37  ;;  %v2206_v14 = vrot.slane %v2204_v37, 4  ;;  %v11546_v49 = vcombine.low %v13409_v32, %v13410_v40  ;;  %1604 = vst [vmem:[#allocation2 + $0x234] sm:$0xf] %v11350_v50  ;;  %v13411_v8 = vld [vmem:[%s13715_s17 + $0x10] sm:$0xf]  ;;  %4545 = vmatprep.mubr.bf16.mxu0 %v13120_v5 }
  0xfb   : > { %1605 = vst [vmem:[#allocation2 + $0x248] sm:$0xf] %v11351_v27  ;;  %v2934_v23 = vsel %vm13746_vm2, %v2929_v33, %v2933_v39  ;;  %v1657_v31 = vshrl.u32 %v11354_v44, 16  ;;  %v1660_v28 = vshll.u32 %v11354_v44, 16  ;;  %v1666_v53 = vshll.u32 %v13411_v8, 16 }
  0xfc   : > { %v1057_v58 = vld [vmem:[%s13715_s17 + $0xb4] sm:$0xe]  ;;  %v2939_v51 = vrot.slane %v2938_v15, 4  ;;  %v2208_v1 = vsel %vm13955_vm5, %v2206_v14, %v2207_v61  ;;  %v3131_v37 = vsel %vm819_vm6, %v11546_v49, %v3098_v36  ;;  %v1672_v50 = vrot.slane %v1670_v18, 4  ;;  %v1058_v27 = vld [vmem:[%s13715_s17 + $0xb8] sm:$0xf] }
  0xfd   : > { %v1059_v39 = vld [vmem:[%s13715_s17 + $0xbc] sm:$0x1]  ;;  %v11464_v33 = vcombine.low %v2205_v0, %v2208_v1  ;;  %v11578_v32 = vcombine.low %v3131_v37, %v3131_v37  ;;  %v11579_v44 = vcombine.high %v3131_v37, %v3131_v37  ;;  %v1659_v40 = vrot.slane %v1657_v31, 4  ;;  %v11528_v8 = vld [vmem:[%s13715_s17 + $0xcc] sm:$0xf] }
  0xfe   : > { %v2944_v15 = vsel %vm13746_vm2, %v2939_v51, %v2943_v47  ;;  %v1662_v59 = vrot.slane %v1660_v28, 5  ;;  %v1668_v61 = vrot.slane %v1666_v53, 5  ;;  %v11529_v18 = vld [vmem:[%s13715_s17 + $0xd0] sm:$0xf]  ;;  %v11257_v0 = vrot.slane %v1057_v58, 9 }
  0xff   : > { %v11576_v36 = vcombine.low %v2934_v23, %v2944_v15  ;;  %2340 = vrot.lane.b32.xlu0 %v11464_v33, %s13616_s26  ;;  %3289 = vst [vmem:[#allocation2 + $0xc] sm:$0xf] %v11578_v32  ;;  %3290 = vst [vmem:[#allocation2 + $0x20] sm:$0xf] %v11579_v44  ;;  %v1218_v48 = vrot.slane %v1058_v27, 5  ;;  %v1221_v14 = vrot.slane %v1059_v39, 5  ;;  %v818_v23 = vpop.permute.xlu0 %817 }
 0x100   : > { %v1663_v49 = vor.u32 %v1662_v59, %v1659_v40  ;;  %v1673_v31 = vor.u32 %v1672_v50, %v1668_v61  ;;  %v13412_v47 = vld [vmem:[%s13715_s17 + $0xb4] sm:$0xf]  ;;  %v13413_v51 = vld [vmem:[%s13715_s17 + $0xb8] sm:$0xf]  ;;  %v2946_v1 = vshrl.u32 %v11528_v8, 16  ;;  %v2949_v37 = vshll.u32 %v11528_v8, 16  ;;  %v1415_v50 = vpop.permute.xlu1 %1414  ;;  %4546 = vmatmul.mubr.bf16.gmra.mxu0 %v13124_v16 }
 0x101   : > { %v11193_v28 = vcombine.low %v13412_v47, %v13413_v51  ;;  %v11545_v53 = vld [vmem:[%s13715_s17 + $0xd4] sm:$0x1]  ;;  %3125 = vrot.lane.b32.xlu1 %v11576_v36, %s13616_s26  ;;  %v1219_v19 = vsel %vm13955_vm5, %v11257_v0, %v1218_v48  ;;  %v1220_v5 = vrot.slane %v1218_v48, 4  ;;  %v2955_v58 = vshll.u32 %v11529_v18, 16  ;;  %v13127_v27 = vld [vmem:[#allocation2 + $0x1bc] ss:$20 sps:$4 sm:$0xff]  }
 0x102   : > { %v1664_v39 = vrot.slane %v1663_v49, 4  ;;  %v1674_v59 = vrot.slane %v1673_v31, 4  ;;  %v2948_v32 = vrot.slane %v2946_v1, 4  ;;  %v2951_v36 = vrot.slane %v2949_v37, 5  ;;  %v11417_v47 = vld [vmem:[%s13715_s17 + $0xc0] sm:$0xe]  ;;  %4553 = vmatprep.mubr.bf16.mxu0 %v13127_v27 }
 0x103   : > { %v867_v33 = vsel %vm819_vm6, %v11193_v28, %v818_v23  ;;  %v1222_v44 = vsel %vm13955_vm5, %v1220_v5, %v1221_v14  ;;  %v1982_v0 = vshrl.u32 %v14491_v12, 16  ;;  %v2959_v14 = vshrl.u32 %v11529_v18, 16  ;;  %v11400_v1 = vld [vmem:[%s13715_s17 + $0xc4] sm:$0xf]  ;;  %v11357_v18 = vld [vmem:[%s13715_s17 + $0x18] sm:$0xf] }
 0x104   : > { %v11240_v40 = vcombine.low %v867_v33, %v867_v33  ;;  %v11241_v15 = vcombine.high %v867_v33, %v867_v33  ;;  %v1669_v8 = vsel %vm13746_vm2, %v1664_v39, %v1668_v61  ;;  %v1679_v48 = vsel %vm13746_vm2, %v1674_v59, %v1678_v2  ;;  %v11401_v33 = vld [vmem:[%s13715_s17 + $0xc8] sm:$0x1]  ;;  %v13450_v56 = vld [vmem:[%s13715_s17 + $0xac] sm:$0xf] }
 0x105   : > { %v11305_v49 = vcombine.low %v1219_v19, %v1222_v44  ;;  %v11434_v31 = vcombine.low %v1669_v8, %v1679_v48  ;;  %v2952_v51 = vor.u32 %v2951_v36, %v2948_v32  ;;  %v2965_v28 = vshll.u32 %v11545_v53, 16  ;;  %v11631_v12 = vld [vmem:[%s13715_s17 + $0x6c] sm:$0xe] }
 0x106   : > { %1010 = vst [vmem:[#allocation2 + $0x258] sm:$0xf] %v11240_v40  ;;  %1011 = vst [vmem:[#allocation2 + $0x26c] sm:$0xf] %v11241_v15  ;;  %v1988_v5 = vshll.u32 %v14494_v13, 16  ;;  %v2957_v37 = vrot.slane %v2955_v58, 5  ;;  %v3100_v40 = vpop.permute.xlu1 %3099 }
 0x107   : > { %v1463_v23 = vsel %vm819_vm6, %v11305_v49, %v1415_v50  ;;  %v11433_v61 = vrot.slane %v11417_v47, 9  ;;  %v2346_v2 = vsel %vm819_vm6, %v11434_v31, %v14550_v42  ;;  %v2953_v59 = vrot.slane %v2952_v51, 4  ;;  %v13414_v15 = vld [vmem:[%s13715_s17 + $0x24] sm:$0xf]  ;;  %v13415_v42 = vld [vmem:[%s13715_s17 + $0x28] sm:$0xf] }
 0x108   : > { %v11352_v19 = vcombine.low %v1463_v23, %v1463_v23  ;;  %v11353_v39 = vcombine.high %v1463_v23, %v1463_v23  ;;  %v11466_v53 = vcombine.low %v2346_v2, %v2346_v2  ;;  %v11467_v32 = vcombine.high %v2346_v2, %v2346_v2  ;;  %v13131_v47 = vld [vmem:[#allocation2 + $0x1b8] ss:$20 sps:$4 sm:$0xff]   ;;  %v13416_v31 = vld [vmem:[%s13715_s17 + $0x1c] sm:$0xf]  ;;  %v11360_v2 = vld [vmem:[%s13715_s17 + $0x24] sm:$0xf] }
 0x109   : > { %v2961_v16 = vrot.slane %v2959_v14, 4  ;;  %v2967_v44 = vrot.slane %v2965_v28, 5  ;;  %v2958_v58 = vsel %vm13746_vm2, %v2953_v59, %v2957_v37  ;;  %v2211_v27 = vrot.slane %v11400_v1, 5  ;;  %v13134_v14 = vld [vmem:[#allocation2 + $0x1e4] ss:$20 sps:$4 sm:$0xff]   ;;  %4554 = vmatmul.mubr.bf16.gmra.mxu0 %v13131_v47 }
 0x10a   : > { %1606 = vst [vmem:[#allocation2 + $0x25c] sm:$0xf] %v11352_v19  ;;  %1607 = vst [vmem:[#allocation2 + $0x270] sm:$0xf] %v11353_v39  ;;  %v2214_v50 = vrot.slane %v11401_v33, 5  ;;  %v11547_v36 = vcombine.low %v13414_v15, %v13415_v42  ;;  %v1681_v48 = vshrl.u32 %v11357_v18, 16  ;;  %4561 = vmatprep.mubr.bf16.mxu0 %v13134_v14 }
 0x10b   : > { %2504 = vst [vmem:[#allocation2 + $0x8] sm:$0xf] %v11466_v53  ;;  %2505 = vst [vmem:[#allocation2 + $0x1c] sm:$0xf] %v11467_v32  ;;  %v2962_v8 = vor.u32 %v2961_v16, %v2957_v37  ;;  %v1684_v49 = vshll.u32 %v11357_v18, 16  ;;  %v1690_v51 = vshll.u32 %v13416_v31, 16  ;;  %v2212_v28 = vsel %vm13955_vm5, %v11433_v61, %v2211_v27  ;;  %v3102_v16 = vpop.permute.xlu1 %3101 }
 0x10c   : > { %v2213_v23 = vrot.slane %v2211_v27, 4  ;;  %v3134_v1 = vsel %vm819_vm6, %v11547_v36, %v3100_v40  ;;  %v1696_v33 = vrot.slane %v1694_v3, 4  ;;  %v1683_v59 = vrot.slane %v1681_v48, 4  ;;  %v13417_v40 = vld [vmem:[%s13715_s17 + $0x30] sm:$0xf] }
 0x10d   : > { %v2963_v19 = vrot.slane %v2962_v8, 4  ;;  %v11580_v39 = vcombine.low %v3134_v1, %v3134_v1  ;;  %v11581_v37 = vcombine.high %v3134_v1, %v3134_v1  ;;  %v1686_v53 = vrot.slane %v1684_v49, 5  ;;  %v13418_v27 = vld [vmem:[%s13715_s17 + $0x34] sm:$0xf]  ;;  %v13419_v49 = vld [vmem:[%s13715_s17 + $0x28] sm:$0xf] }
 0x10e   : > { %v2215_v18 = vsel %vm13955_vm5, %v2213_v23, %v2214_v50  ;;  %v1692_v32 = vrot.slane %v1690_v51, 5  ;;  %v1702_v61 = vrot.slane %v1700_v4, 5  ;;  %v11548_v15 = vcombine.low %v13417_v40, %v13418_v27  ;;  %v11363_v4 = vld [vmem:[%s13715_s17 + $0x30] sm:$0xf]  ;;  %v13139_v48 = vld [vmem:[#allocation2 + $0x1e0] ss:$20 sps:$4 sm:$0xff]  }
 0x10f   : > { %v2968_v62 = vsel %vm13746_vm2, %v2963_v19, %v2967_v44  ;;  %v11465_v3 = vcombine.low %v2212_v28, %v2215_v18  ;;  %3291 = vst [vmem:[#allocation2 + $0x34] sm:$0xf] %v11580_v39  ;;  %3292 = vst [vmem:[#allocation2 + $0x48] sm:$0xf] %v11581_v37  ;;  %v1705_v42 = vshrl.u32 %v11360_v2, 16  ;;  %v1687_v36 = vor.u32 %v1686_v53, %v1683_v59 }
 0x110   : > { %v11577_v50 = vcombine.low %v2958_v58, %v2968_v62  ;;  %v1697_v8 = vor.u32 %v1696_v33, %v1692_v32  ;;  %v1708_v7 = vshll.u32 %v11360_v2, 16  ;;  %v3137_v47 = vsel %vm819_vm6, %v11548_v15, %v3102_v16  ;;  %v13142_v28 = vld [vmem:[#allocation2 + $0x20c] ss:$20 sps:$4 sm:$0xff]   ;;  %v3104_v2 = vpop.permute.xlu1 %3103  ;;  %v13420_v18 = vld [vmem:[%s13715_s17 + $0x3c] sm:$0xf]  ;;  %v2315_v62 = vpop.permute.xlu0 %2314 }
 0x111   : > { %2342 = vrot.lane.b32.xlu0 %v11465_v3, %s13616_s26  ;;  %v1707_v44 = vrot.slane %v1705_v42, 4  ;;  %v1714_v31 = vshll.u32 %v13419_v49, 16  ;;  %v1720_v51 = vrot.slane %v1718_v45, 4  ;;  %v1688_v58 = vrot.slane %v1687_v36, 4  ;;  %v13100_v23 = vld [vmem:[#allocation2 + $0xc] ss:$20 sps:$4 sm:$0xff]   ;;  %4562 = vmatmul.mubr.bf16.gmra.mxu0 %v13139_v48 }
 0x112   : > { %3127 = vrot.lane.b32.xlu1 %v11577_v50, %s13616_s26  ;;  %v1698_v14 = vrot.slane %v1697_v8, 4  ;;  %v11582_v1 = vcombine.low %v3137_v47, %v3137_v47  ;;  %v11583_v33 = vcombine.high %v3137_v47, %v3137_v47  ;;  %v13103_v19 = vld [vmem:[#allocation2 + $0x8] ss:$20 sps:$4 sm:$0xff]   ;;  %v1710_v39 = vrot.slane %v1708_v7, 5  ;;  %v13421_v53 = vld [vmem:[%s13715_s17 + $0x40] sm:$0xf]  ;;  %4626 = vmatprep.mubr.bf16.mxu1 %v13100_v23 }
 0x113   : > { %v1716_v37 = vrot.slane %v1714_v31, 5  ;;  %v1726_v59 = vrot.slane %v1724_v57, 5  ;;  %v11549_v16 = vcombine.low %v13420_v18, %v13421_v53  ;;  %v1693_v55 = vsel %vm13746_vm2, %v1688_v58, %v1692_v32  ;;  %4627 = vmatmul.mubr.bf16.vlgmr.msra.gmra.mxu1 %v13103_v19  ;;  %v13422_v47 = vld [vmem:[%s13715_s17 + $0x34] sm:$0xf]  ;;  %v11366_v31 = vld [vmem:[%s13715_s17 + $0x3c] sm:$0xf]  ;;  %4569 = vmatprep.mubr.bf16.mxu0 %v13142_v28 }
 0x114   : > { %v1703_v45 = vsel %vm13746_vm2, %v1698_v14, %v1702_v61  ;;  %3293 = vst [vmem:[#allocation2 + $0x5c] sm:$0xf] %v11582_v1  ;;  %3294 = vst [vmem:[#allocation2 + $0x70] sm:$0xf] %v11583_v33  ;;  %v1729_v3 = vshrl.u32 %v11363_v4, 16  ;;  %v1732_v40 = vshll.u32 %v11363_v4, 16  ;;  %v1711_v63 = vor.u32 %v1710_v39, %v1707_v44  ;;  %v2317_v1 = vpop.permute.xlu0 %2316  ;;  %v3106_v19 = vpop.permute.xlu1 %3105 }
 0x115   : > { %v11435_v27 = vcombine.low %v1693_v55, %v1703_v45  ;;  %v1721_v57 = vor.u32 %v1720_v51, %v1716_v37  ;;  %v3140_v15 = vsel %vm819_vm6, %v11549_v16, %v3104_v2  ;;  %v1738_v49 = vshll.u32 %v13422_v47, 16  ;;  %v13424_v53 = vld [vmem:[%s13715_s17 + $0x4c] sm:$0xf]  ;;  %v11369_v45 = vld [vmem:[%s13715_s17 + $0x48] sm:$0xf] }
 0x116   : > { %v11584_v42 = vcombine.low %v3140_v15, %v3140_v15  ;;  %v11585_v50 = vcombine.high %v3140_v15, %v3140_v15  ;;  %v1731_v32 = vrot.slane %v1729_v3, 4  ;;  %v1734_v36 = vrot.slane %v1732_v40, 5  ;;  %v13425_v40 = vld [vmem:[%s13715_s17 + $0x40] sm:$0xf] }
 0x117   : > { %v2349_v61 = vsel %vm819_vm6, %v11435_v27, %v2315_v62  ;;  %v1712_v8 = vrot.slane %v1711_v63, 4  ;;  %v1722_v7 = vrot.slane %v1721_v57, 4  ;;  %v17794_v51 = vshrl.u32 %v14044_v34, 16  ;;  %v13423_v34 = vld [vmem:[%s13715_s17 + $0x48] sm:$0xf] }
 0x118   : > { %v11468_v4 = vcombine.low %v2349_v61, %v2349_v61  ;;  %v11469_v58 = vcombine.high %v2349_v61, %v2349_v61  ;;  %3295 = vst [vmem:[#allocation2 + $0x84] sm:$0xf] %v11584_v42  ;;  %3296 = vst [vmem:[#allocation2 + $0x98] sm:$0xf] %v11585_v50  ;;  %v1735_v44 = vor.u32 %v1734_v36, %v1731_v32  ;;  %v1740_v33 = vrot.slane %v1738_v49, 5 }
 0x119   : > { %v1744_v14 = vrot.slane %v17794_v51, 4  ;;  %v1717_v48 = vsel %vm13746_vm2, %v1712_v8, %v1716_v37  ;;  %v1727_v23 = vsel %vm13746_vm2, %v1722_v7, %v1726_v59  ;;  %v17795_v28 = vshll.u32 %v14047_v35, 16  ;;  %v13146_v37 = vld [vmem:[#allocation2 + $0x208] ss:$20 sps:$4 sm:$0xff]   ;;  %v13426_v51 = vld [vmem:[%s13715_s17 + $0x54] sm:$0xf] }
 0x11a   : > { %2506 = vst [vmem:[#allocation2 + $0x30] sm:$0xf] %v11468_v4  ;;  %2507 = vst [vmem:[#allocation2 + $0x44] sm:$0xf] %v11469_v58  ;;  %v11436_v39 = vcombine.low %v1717_v48, %v1727_v23  ;;  %v1736_v18 = vrot.slane %v1735_v44, 4  ;;  %v11550_v16 = vcombine.low %v13423_v34, %v13424_v53  ;;  %v1753_v55 = vshrl.u32 %v11366_v31, 16  ;;  %v3108_v4 = vpop.permute.xlu1 %3107  ;;  %4570 = vmatmul.mubr.bf16.gmra.mxu0 %v13146_v37  ;;  %v2319_v44 = vpop.permute.xlu0 %2318 }
 0x11b   : > { %v1750_v2 = vrot.slane %v17795_v28, 5  ;;  %v13149_v62 = vld [vmem:[#allocation2 + $0x234] ss:$20 sps:$4 sm:$0xff]   ;;  %v1745_v3 = vor.u32 %v1744_v14, %v1740_v33  ;;  %v1756_v59 = vshll.u32 %v11366_v31, 16  ;;  %v1762_v27 = vshll.u32 %v13425_v40, 16 }
 0x11c   : > { %v17796_v35 = vshrl.u32 %v14074_v24, 16  ;;  %v2352_v57 = vsel %vm819_vm6, %v11436_v39, %v2317_v1  ;;  %v1741_v15 = vsel %vm13746_vm2, %v1736_v18, %v1740_v33  ;;  %v3143_v42 = vsel %vm819_vm6, %v11550_v16, %v3106_v19  ;;  %v13427_v14 = vld [vmem:[%s13715_s17 + $0x58] sm:$0xf]  ;;  %4577 = vmatprep.mubr.bf16.mxu0 %v13149_v62  ;;  %v13428_v19 = vld [vmem:[%s13715_s17 + $0x4c] sm:$0xf] }
 0x11d   : > { %v1755_v50 = vrot.slane %v1753_v55, 4  ;;  %v11470_v32 = vcombine.low %v2352_v57, %v2352_v57  ;;  %v11471_v36 = vcombine.high %v2352_v57, %v2352_v57  ;;  %v1746_v61 = vrot.slane %v1745_v3, 4  ;;  %v13107_v18 = vld [vmem:[#allocation2 + $0x34] ss:$20 sps:$4 sm:$0xff]   ;;  %v13429_v16 = vld [vmem:[%s13715_s17 + $0x60] sm:$0xf] }
 0x11e   : > { %v1768_v63 = vrot.slane %v17796_v35, 4  ;;  %v11586_v8 = vcombine.low %v3143_v42, %v3143_v42  ;;  %v11587_v7 = vcombine.high %v3143_v42, %v3143_v42  ;;  %v1758_v47 = vrot.slane %v1756_v59, 5  ;;  %v13430_v55 = vld [vmem:[%s13715_s17 + $0x64] sm:$0xf]  ;;  %v11372_v3 = vld [vmem:[%s13715_s17 + $0x54] sm:$0xf]  ;;  %v3110_v57 = vpop.permute.xlu1 %3109  ;;  %4634 = vmatprep.mubr.bf16.mxu1 %v13107_v18 }
 0x11f   : > { %v1764_v49 = vrot.slane %v1762_v27, 5  ;;  %v17797_v24 = vshll.u32 %v14083_v41, 16  ;;  %2508 = vst [vmem:[#allocation2 + $0x58] sm:$0xf] %v11470_v32  ;;  %2509 = vst [vmem:[#allocation2 + $0x6c] sm:$0xf] %v11471_v36  ;;  %v1751_v58 = vsel %vm13746_vm2, %v1746_v61, %v1750_v2  ;;  %v11551_v48 = vcombine.low %v13426_v51, %v13427_v14 }
 0x120   : > { %3297 = vst [vmem:[#allocation2 + $0xac] sm:$0xf] %v11586_v8  ;;  %v1777_v23 = vshrl.u32 %v11369_v45, 16  ;;  %v1780_v1 = vshll.u32 %v11369_v45, 16  ;;  %v11437_v41 = vcombine.low %v1741_v15, %v1751_v58  ;;  %3298 = vst [vmem:[#allocation2 + $0xc0] sm:$0xf] %v11587_v7  ;;  %v1759_v33 = vor.u32 %v1758_v47, %v1755_v50  ;;  %v2321_v8 = vpop.permute.xlu0 %2320 }
 0x121   : > { %v1774_v31 = vrot.slane %v17797_v24, 5  ;;  %v1769_v28 = vor.u32 %v1768_v63, %v1764_v49  ;;  %v1786_v39 = vshll.u32 %v13428_v19, 16  ;;  %v3146_v2 = vsel %vm819_vm6, %v11551_v48, %v3108_v4  ;;  %v13156_v59 = vld [vmem:[#allocation2 + $0x25c] ss:$20 sps:$4 sm:$0xff]   ;;  %v11375_v14 = vld [vmem:[%s13715_s17 + $0x60] sm:$0xf] }
 0x122   : > { %v1779_v34 = vrot.slane %v1777_v23, 4  ;;  %v1782_v53 = vrot.slane %v1780_v1, 5  ;;  %v11552_v37 = vcombine.low %v13429_v16, %v13430_v55  ;;  %v13111_v40 = vld [vmem:[#allocation2 + $0x30] ss:$20 sps:$4 sm:$0xff]   ;;  %v2355_v45 = vsel %vm819_vm6, %v11437_v41, %v2319_v44 }
 0x123   : > { %v1760_v62 = vrot.slane %v1759_v33, 4  ;;  %v1770_v27 = vrot.slane %v1769_v28, 4  ;;  %v11588_v35 = vcombine.low %v3146_v2, %v3146_v2  ;;  %v13153_v63 = vld [vmem:[#allocation2 + $0x230] ss:$20 sps:$4 sm:$0xff]   ;;  %v11472_v15 = vcombine.low %v2355_v45, %v2355_v45  ;;  %4635 = vmatmul.mubr.bf16.gmra.mxu1 %v13111_v40 }
 0x124   : > { %v11473_v42 = vcombine.high %v2355_v45, %v2355_v45  ;;  %v11589_v50 = vcombine.high %v3146_v2, %v3146_v2  ;;  %v1783_v32 = vor.u32 %v1782_v53, %v1779_v34  ;;  %v1788_v7 = vrot.slane %v1786_v39, 5  ;;  %v13115_v48 = vld [vmem:[#allocation2 + $0x5c] ss:$20 sps:$4 sm:$0xff]   ;;  %4578 = vmatmul.mubr.bf16.gmra.mxu0 %v13153_v63  ;;  %v13431_v39 = vld [vmem:[%s13715_s17 + $0x58] sm:$0xf] }
 0x125   : > { %v1765_v36 = vsel %vm13746_vm2, %v1760_v62, %v1764_v49  ;;  %v1775_v61 = vsel %vm13746_vm2, %v1770_v27, %v1774_v31  ;;  %3299 = vst [vmem:[#allocation2 + $0xd4] sm:$0xf] %v11588_v35  ;;  %v17798_v47 = vshrl.u32 %v14094_v60, 16  ;;  %2510 = vst [vmem:[#allocation2 + $0x80] sm:$0xf] %v11472_v15  ;;  %v17799_v44 = vshll.u32 %v14099_v10, 16  ;;  %4585 = vmatprep.mubr.bf16.mxu0 %v13156_v59  ;;  %v3112_v62 = vpop.permute.xlu1 %3111  ;;  %v2323_v27 = vpop.permute.xlu0 %2322 }
 0x126   : > { %2511 = vst [vmem:[#allocation2 + $0x94] sm:$0xf] %v11473_v42  ;;  %v11438_v4 = vcombine.low %v1765_v36, %v1775_v61  ;;  %3300 = vst [vmem:[#allocation2 + $0xe8] sm:$0xf] %v11589_v50  ;;  %v1784_v58 = vrot.slane %v1783_v32, 4  ;;  %v3149_v49 = vsel %vm819_vm6, %v11552_v37, %v3110_v57  ;;  %v1801_v41 = vshrl.u32 %v11372_v3, 16  ;;  %4642 = vmatprep.mubr.bf16.mxu1 %v13115_v48 }
 0x127   : > { %v1792_v24 = vrot.slane %v17798_v47, 4  ;;  %v1798_v51 = vrot.slane %v17799_v44, 5  ;;  %v11590_v23 = vcombine.low %v3149_v49, %v3149_v49  ;;  %v11591_v1 = vcombine.high %v3149_v49, %v3149_v49  ;;  %v13118_v60 = vld [vmem:[#allocation2 + $0x58] ss:$20 sps:$4 sm:$0xff]   ;;  %v13433_v57 = vld [vmem:[%s13715_s17 + $0x70] sm:$0xf] }
 0x128   : > { %v2358_v33 = vsel %vm819_vm6, %v11438_v4, %v2321_v8  ;;  %v1789_v28 = vsel %vm13746_vm2, %v1784_v58, %v1788_v7  ;;  %v1804_v19 = vshll.u32 %v11372_v3, 16  ;;  %v1810_v18 = vshll.u32 %v13431_v39, 16  ;;  %v13432_v35 = vld [vmem:[%s13715_s17 + $0x6c] sm:$0xf]  ;;  %v13122_v61 = vld [vmem:[#allocation2 + $0x84] ss:$20 sps:$4 sm:$0xff]  }
 0x129   : > { %v1793_v31 = vor.u32 %v1792_v24, %v1788_v7  ;;  %v11474_v10 = vcombine.low %v2358_v33, %v2358_v33  ;;  %v11475_v2 = vcombine.high %v2358_v33, %v2358_v33  ;;  %3301 = vst [vmem:[#allocation2 + $0xfc] sm:$0xf] %v11590_v23  ;;  %3302 = vst [vmem:[#allocation2 + $0x110] sm:$0xf] %v11591_v1  ;;  %v1803_v53 = vrot.slane %v1801_v41, 4 }
 0x12a   : > { %v1806_v16 = vrot.slane %v1804_v19, 5  ;;  %v1812_v55 = vrot.slane %v1810_v18, 5  ;;  %v17800_v37 = vshrl.u32 %v14132_v9, 16  ;;  %v17801_v3 = vshll.u32 %v14142_v43, 16  ;;  %v13434_v43 = vld [vmem:[%s13715_s17 + $0x64] sm:$0xf]  ;;  %v2325_v18 = vpop.permute.xlu0 %2324 }
 0x12b   : > { %v1794_v34 = vrot.slane %v1793_v31, 4  ;;  %2512 = vst [vmem:[#allocation2 + $0xa8] sm:$0xf] %v11474_v10  ;;  %2513 = vst [vmem:[#allocation2 + $0xbc] sm:$0xf] %v11475_v2  ;;  %v11553_v63 = vcombine.low %v13432_v35, %v13433_v57  ;;  %v1825_v15 = vshrl.u32 %v11375_v14, 16  ;;  %4643 = vmatmul.mubr.bf16.gmra.mxu1 %v13118_v60  ;;  %v3114_v31 = vpop.permute.xlu1 %3113 }
 0x12c   : > { %v1816_v40 = vrot.slane %v17800_v37, 4  ;;  %v1822_v45 = vrot.slane %v17801_v3, 5  ;;  %v1828_v9 = vshll.u32 %v11375_v14, 16  ;;  %v1807_v50 = vor.u32 %v1806_v16, %v1803_v53  ;;  %v13435_v24 = vld [vmem:[%s13715_s17 + $0x78] sm:$0xf]  ;;  %4650 = vmatprep.mubr.bf16.mxu1 %v13122_v61 }
 0x12d   : > { %v1799_v59 = vsel %vm13746_vm2, %v1794_v34, %v1798_v51  ;;  %v1834_v36 = vshll.u32 %v13434_v43, 16  ;;  %v3152_v8 = vsel %vm819_vm6, %v11553_v63, %v3112_v62  ;;  %v1827_v7 = vrot.slane %v1825_v15, 4  ;;  %v13436_v4 = vld [vmem:[%s13715_s17 + $0x7c] sm:$0xf]  ;;  %v11378_v44 = vld [vmem:[%s13715_s17 + $0x6c] sm:$0xf] }
 0x12e   : > { %v11439_v42 = vcombine.low %v1789_v28, %v1799_v59  ;;  %v1817_v32 = vor.u32 %v1816_v40, %v1812_v55  ;;  %v1830_v47 = vrot.slane %v1828_v9, 5  ;;  %v11554_v58 = vcombine.low %v13435_v24, %v13436_v4  ;;  %v13160_v23 = vld [vmem:[#allocation2 + $0x258] ss:$20 sps:$4 sm:$0xff]   ;;  %v13125_v1 = vld [vmem:[#allocation2 + $0x80] ss:$20 sps:$4 sm:$0xff]  }
 0x12f   : > { %v1808_v49 = vrot.slane %v1807_v50, 4  ;;  %v11592_v14 = vcombine.low %v3152_v8, %v3152_v8  ;;  %v11593_v33 = vcombine.high %v3152_v8, %v3152_v8  ;;  %v1836_v10 = vrot.slane %v1834_v36, 5  ;;  %4586 = vmatmul.mubr.bf16.gmra.mxu0 %v13160_v23  ;;  %v13129_v3 = vld [vmem:[#allocation2 + $0xac] ss:$20 sps:$4 sm:$0xff]   ;;  %v13437_v63 = vld [vmem:[%s13715_s17 + $0x70] sm:$0xf]  ;;  %v3116_v24 = vpop.permute.xlu1 %3115 }
 0x130   : > { %v2361_v51 = vsel %vm819_vm6, %v11439_v42, %v2323_v27  ;;  %v1818_v48 = vrot.slane %v1817_v32, 4  ;;  %v1831_v28 = vor.u32 %v1830_v47, %v1827_v7  ;;  %v17802_v2 = vshrl.u32 %v14160_v22, 16  ;;  %v11381_v9 = vld [vmem:[%s13715_s17 + $0x78] sm:$0xf]  ;;  %v13440_v23 = vld [vmem:[%s13715_s17 + $0x7c] sm:$0xf] }
 0x131   : > { %v11476_v41 = vcombine.low %v2361_v51, %v2361_v51  ;;  %v11477_v60 = vcombine.high %v2361_v51, %v2361_v51  ;;  %v1813_v19 = vsel %vm13746_vm2, %v1808_v49, %v1812_v55  ;;  %3303 = vst [vmem:[#allocation2 + $0x124] sm:$0xf] %v11592_v14  ;;  %3304 = vst [vmem:[#allocation2 + $0x138] sm:$0xf] %v11593_v33  ;;  %v17803_v37 = vshll.u32 %v14163_v26, 16 }
 0x132   : > { %v1823_v39 = vsel %vm13746_vm2, %v1818_v48, %v1822_v45  ;;  %v1840_v34 = vrot.slane %v17802_v2, 4  ;;  %v1832_v16 = vrot.slane %v1831_v28, 4  ;;  %v3155_v40 = vsel %vm819_vm6, %v11554_v58, %v3114_v31  ;;  %v2327_v58 = vpop.permute.xlu0 %2326  ;;  %v13439_v51 = vld [vmem:[%s13715_s17 + $0x88] sm:$0xf] }
 0x133   : > { %2514 = vst [vmem:[#allocation2 + $0xd0] sm:$0xf] %v11476_v41  ;;  %2515 = vst [vmem:[#allocation2 + $0xe4] sm:$0xf] %v11477_v60  ;;  %v11440_v53 = vcombine.low %v1813_v19, %v1823_v39  ;;  %v1846_v55 = vrot.slane %v17803_v37, 5  ;;  %v11594_v62 = vcombine.low %v3155_v40, %v3155_v40  ;;  %v11595_v59 = vcombine.high %v3155_v40, %v3155_v40 }
 0x134   : > { %v1841_v45 = vor.u32 %v1840_v34, %v1836_v10  ;;  %v1849_v27 = vshrl.u32 %v11378_v44, 16  ;;  %v1837_v35 = vsel %vm13746_vm2, %v1832_v16, %v1836_v10  ;;  %v1852_v57 = vshll.u32 %v11378_v44, 16  ;;  %4651 = vmatmul.mubr.bf16.gmra.mxu1 %v13125_v1  ;;  %v13438_v44 = vld [vmem:[%s13715_s17 + $0x84] sm:$0xf]  ;;  %v13132_v60 = vld [vmem:[#allocation2 + $0xa8] ss:$20 sps:$4 sm:$0xff]  }
 0x135   : > { %v2364_v22 = vsel %vm819_vm6, %v11440_v53, %v2325_v18  ;;  %v1858_v15 = vshll.u32 %v13437_v63, 16  ;;  %3305 = vst [vmem:[#allocation2 + $0x14c] sm:$0xf] %v11594_v62  ;;  %3306 = vst [vmem:[#allocation2 + $0x160] sm:$0xf] %v11595_v59  ;;  %v17804_v61 = vshrl.u32 %v14226_v20, 16  ;;  %4658 = vmatprep.mubr.bf16.mxu1 %v13129_v3  ;;  %v11555_v49 = vcombine.low %v13438_v44, %v13439_v51 }
 0x136   : > { %v11478_v42 = vcombine.low %v2364_v22, %v2364_v22  ;;  %v11479_v50 = vcombine.high %v2364_v22, %v2364_v22  ;;  %v1842_v26 = vrot.slane %v1841_v45, 4  ;;  %v1851_v32 = vrot.slane %v1849_v27, 4  ;;  %v11384_v41 = vld [vmem:[%s13715_s17 + $0x84] sm:$0xf]  ;;  %v13441_v39 = vld [vmem:[%s13715_s17 + $0x90] sm:$0xf]  ;;  %v2329_v27 = vpop.permute.xlu0 %2328 }
 0x137   : > { %v1854_v43 = vrot.slane %v1852_v57, 5  ;;  %v1860_v36 = vrot.slane %v1858_v15, 5  ;;  %v1864_v8 = vrot.slane %v17804_v61, 4  ;;  %v17805_v7 = vshll.u32 %v14229_v46, 16  ;;  %v13442_v18 = vld [vmem:[%s13715_s17 + $0x94] sm:$0xf] }
 0x138   : > { %2516 = vst [vmem:[#allocation2 + $0xf8] sm:$0xf] %v11478_v42  ;;  %2517 = vst [vmem:[#allocation2 + $0x10c] sm:$0xf] %v11479_v50  ;;  %v1847_v4 = vsel %vm13746_vm2, %v1842_v26, %v1846_v55  ;;  %v1873_v20 = vshrl.u32 %v11381_v9, 16  ;;  %v1876_v48 = vshll.u32 %v11381_v9, 16  ;;  %v3158_v33 = vsel %vm819_vm6, %v11555_v49, %v3116_v24 }
 0x139   : > { %v1870_v47 = vrot.slane %v17805_v7, 5  ;;  %v11441_v14 = vcombine.low %v1837_v35, %v1847_v4  ;;  %v1855_v46 = vor.u32 %v1854_v43, %v1851_v32  ;;  %v1865_v31 = vor.u32 %v1864_v8, %v1860_v36  ;;  %v13136_v2 = vld [vmem:[#allocation2 + $0xd4] ss:$20 sps:$4 sm:$0xff]   ;;  %v11610_v42 = vld [vmem:[%s13715_s17 + $0x18] sm:$0xe] }
 0x13a   : > { %v1882_v1 = vshll.u32 %v13440_v23, 16  ;;  %v1875_v28 = vrot.slane %v1873_v20, 4  ;;  %v1878_v19 = vrot.slane %v1876_v48, 5  ;;  %v11556_v10 = vcombine.low %v13441_v39, %v13442_v18  ;;  %v11611_v50 = vld [vmem:[%s13715_s17 + $0x1c] sm:$0xf] }
 0x13b   : > { %v2367_v34 = vsel %vm819_vm6, %v11441_v14, %v2327_v58  ;;  %v1856_v53 = vrot.slane %v1855_v46, 4  ;;  %v1866_v16 = vrot.slane %v1865_v31, 4  ;;  %v11596_v37 = vcombine.low %v3158_v33, %v3158_v33  ;;  %v13443_v61 = vld [vmem:[%s13715_s17 + $0x88] sm:$0xf]  ;;  %v11612_v44 = vld [vmem:[%s13715_s17 + $0x20] sm:$0x1] }
 0x13c   : > { %v11480_v55 = vcombine.low %v2367_v34, %v2367_v34  ;;  %v11481_v40 = vcombine.high %v2367_v34, %v2367_v34  ;;  %v11597_v3 = vcombine.high %v3158_v33, %v3158_v33  ;;  %v1879_v45 = vor.u32 %v1878_v19, %v1875_v28  ;;  %4659 = vmatmul.mubr.bf16.gmra.mxu1 %v13132_v60  ;;  %v13140_v51 = vld [vmem:[#allocation2 + $0xd0] ss:$20 sps:$4 sm:$0xff]   ;;  %v11614_v60 = vld [vmem:[%s13715_s17 + $0x28] sm:$0xf]  ;;  %v2331_v33 = vpop.permute.xlu0 %2330 }
 0x13d   : > { %v1861_v62 = vsel %vm13746_vm2, %v1856_v53, %v1860_v36  ;;  %v1871_v59 = vsel %vm13746_vm2, %v1866_v16, %v1870_v47  ;;  %3307 = vst [vmem:[#allocation2 + $0x174] sm:$0xf] %v11596_v37  ;;  %v1884_v22 = vrot.slane %v1882_v1, 5  ;;  %v17806_v35 = vshrl.u32 %v14290_v17, 16  ;;  %4666 = vmatprep.mubr.bf16.mxu1 %v13136_v2  ;;  %v3118_v47 = vpop.permute.xlu1 %3117  ;;  %v11613_v14 = vld [vmem:[%s13715_s17 + $0x24] sm:$0xe] }
 0x13e   : > { %2518 = vst [vmem:[#allocation2 + $0x120] sm:$0xf] %v11480_v55  ;;  %2519 = vst [vmem:[#allocation2 + $0x134] sm:$0xf] %v11481_v40  ;;  %v11442_v63 = vcombine.low %v1861_v62, %v1871_v59  ;;  %v1880_v15 = vrot.slane %v1879_v45, 4  ;;  %v1897_v9 = vshrl.u32 %v11384_v41, 16  ;;  %v3161_v48 = vsel %vm819_vm6, %v11556_v10, %v3118_v47 }
 0x13f   : > { %v1888_v57 = vrot.slane %v17806_v35, 4  ;;  %3308 = vst [vmem:[#allocation2 + $0x188] sm:$0xf] %v11597_v3  ;;  %v17807_v32 = vshll.u32 %v14293_v29, 16  ;;  %v1900_v36 = vshll.u32 %v11384_v41, 16  ;;  %v1906_v8 = vshll.u32 %v13443_v61, 16 }
 0x140   : > { %v2370_v17 = vsel %vm819_vm6, %v11442_v63, %v2329_v27  ;;  %v1885_v7 = vsel %vm13746_vm2, %v1880_v15, %v1884_v22  ;;  %v1899_v24 = vrot.slane %v1897_v9, 4  ;;  %v17808_v4 = vshrl.u32 %v14342_v38, 16  ;;  %v13144_v46 = vld [vmem:[#allocation2 + $0xfc] ss:$20 sps:$4 sm:$0xff]   ;;  %v11615_v10 = vld [vmem:[%s13715_s17 + $0x2c] sm:$0x1]  ;;  %v2333_v15 = vpop.permute.xlu0 %2332 }
 0x141   : > { %v1889_v26 = vor.u32 %v1888_v57, %v1884_v22  ;;  %v1894_v43 = vrot.slane %v17807_v32, 5  ;;  %v11482_v29 = vcombine.low %v2370_v17, %v2370_v17  ;;  %v11483_v49 = vcombine.high %v2370_v17, %v2370_v17  ;;  %v11387_v40 = vld [vmem:[%s13715_s17 + $0x90] sm:$0xf]  ;;  %v14753_v32 = vld [vmem:[%s13715_s17 + $0x38] sm:$0x1] }
 0x142   : > { %v1912_v58 = vrot.slane %v17808_v4, 4  ;;  %v11598_v31 = vcombine.low %v3161_v48, %v3161_v48  ;;  %v11599_v23 = vcombine.high %v3161_v48, %v3161_v48  ;;  %v1902_v1 = vrot.slane %v1900_v36, 5  ;;  %v11619_v17 = vld [vmem:[%s13715_s17 + $0x3c] sm:$0xe]  ;;  %v13147_v47 = vld [vmem:[#allocation2 + $0xf8] ss:$20 sps:$4 sm:$0xff]  }
 0x143   : > { %v1890_v20 = vrot.slane %v1889_v26, 4  ;;  %v1908_v41 = vrot.slane %v1906_v8, 5  ;;  %2520 = vst [vmem:[#allocation2 + $0x148] sm:$0xf] %v11482_v29  ;;  %2521 = vst [vmem:[#allocation2 + $0x15c] sm:$0xf] %v11483_v49 }
 0x144   : > { %v17809_v28 = vshll.u32 %v14352_v6, 16  ;;  %v11658_v39 = vrot.slane %v11610_v42, 9  ;;  %v3419_v18 = vrot.slane %v11611_v50, 5  ;;  %3309 = vst [vmem:[#allocation2 + $0x19c] sm:$0xf] %v11598_v31  ;;  %v1903_v34 = vor.u32 %v1902_v1, %v1899_v24  ;;  %4667 = vmatmul.mubr.bf16.gmra.mxu1 %v13140_v51 }
 0x145   : > { %v1895_v38 = vsel %vm13746_vm2, %v1890_v20, %v1894_v43  ;;  %3310 = vst [vmem:[#allocation2 + $0x1b0] sm:$0xf] %v11599_v23  ;;  %v1913_v53 = vor.u32 %v1912_v58, %v1908_v41  ;;  %v3422_v16 = vrot.slane %v11612_v44, 5  ;;  %v11659_v62 = vrot.slane %v11613_v14, 9  ;;  %4674 = vmatprep.mubr.bf16.mxu1 %v13144_v46  ;;  %v11616_v50 = vld [vmem:[%s13715_s17 + $0x30] sm:$0xe] }
 0x146   : > { %v1918_v19 = vrot.slane %v17809_v28, 5  ;;  %v11443_v2 = vcombine.low %v1885_v7, %v1895_v38  ;;  %v3420_v37 = vsel %vm13955_vm5, %v11658_v39, %v3419_v18  ;;  %v3421_v55 = vrot.slane %v3419_v18, 4  ;;  %v11617_v26 = vld [vmem:[%s13715_s17 + $0x34] sm:$0xf]  ;;  %v11620_v7 = vld [vmem:[%s13715_s17 + $0x40] sm:$0xf] }
 0x147   : > { %v1904_v45 = vrot.slane %v1903_v34, 4  ;;  %v1914_v6 = vrot.slane %v1913_v53, 4  ;;  %3562 = vst.msk [vmem:[#allocation2 + $0x10] sm:$0xf] %vm3561_vm7, %v3420_v37  ;;  %v3426_v35 = vrot.slane %v11614_v60, 5  ;;  %v3429_v9 = vrot.slane %v11615_v10, 5  ;;  %v3120_v28 = vpop.permute.xlu1 %3119 }
 0x148   : > { %v2373_v3 = vsel %vm819_vm6, %v11443_v2, %v2331_v33  ;;  %v3423_v22 = vsel %vm13955_vm5, %v3421_v55, %v3422_v16  ;;  %v1921_v42 = vshrl.u32 %v11387_v40, 16  ;;  %v1924_v8 = vshll.u32 %v11387_v40, 16  ;;  %v13444_v24 = vld [vmem:[%s13715_s17 + $0x9c] sm:$0xf]  ;;  %v13445_v4 = vld [vmem:[%s13715_s17 + $0xa0] sm:$0xf] }
 0x149   : > { %v11484_v59 = vcombine.low %v2373_v3, %v2373_v3  ;;  %v11485_v27 = vcombine.high %v2373_v3, %v2373_v3  ;;  %v1909_v57 = vsel %vm13746_vm2, %v1904_v45, %v1908_v41  ;;  %v1919_v63 = vsel %vm13746_vm2, %v1914_v6, %v1918_v19  ;;  %3563 = vst.msk [vmem:[#allocation2 + $0x24] sm:$0xf] %vm3561_vm7, %v3423_v22  ;;  %v13446_v51 = vld [vmem:[%s13715_s17 + $0x94] sm:$0xf]  ;;  %v13151_v49 = vld [vmem:[#allocation2 + $0x124] ss:$20 sps:$4 sm:$0xff]  }
 0x14a   : > { %v11444_v43 = vcombine.low %v1909_v57, %v1919_v63  ;;  %v3427_v36 = vsel %vm13955_vm5, %v11659_v62, %v3426_v35  ;;  %v3428_v61 = vrot.slane %v3426_v35, 4  ;;  %v11557_v58 = vcombine.low %v13444_v24, %v13445_v4  ;;  %v11621_v33 = vld [vmem:[%s13715_s17 + $0x44] sm:$0x1]  ;;  %v11390_v2 = vld [vmem:[%s13715_s17 + $0x9c] sm:$0xf] }
 0x14b   : > { %2522 = vst [vmem:[#allocation2 + $0x170] sm:$0xf] %v11484_v59  ;;  %2523 = vst [vmem:[#allocation2 + $0x184] sm:$0xf] %v11485_v27  ;;  %v1923_v44 = vrot.slane %v1921_v42, 4  ;;  %v1930_v29 = vshll.u32 %v13446_v51, 16  ;;  %v2335_v42 = vpop.permute.xlu0 %2334 }
 0x14c   : > { %3564 = vst.msk [vmem:[#allocation2 + $0x38] sm:$0xf] %vm3561_vm7, %v3427_v36  ;;  %v2376_v20 = vsel %vm819_vm6, %v11444_v43, %v2333_v15  ;;  %v3430_v48 = vsel %vm13955_vm5, %v3428_v61, %v3429_v9  ;;  %v1926_v14 = vrot.slane %v1924_v8, 5  ;;  %v17810_v46 = vshrl.u32 %v14396_v11, 16  ;;  %4675 = vmatmul.mubr.bf16.gmra.mxu1 %v13147_v47  ;;  %v11622_v59 = vld [vmem:[%s13715_s17 + $0x48] sm:$0xe] }
 0x14d   : > { %v11486_v23 = vcombine.low %v2376_v20, %v2376_v20  ;;  %v11487_v1 = vcombine.high %v2376_v20, %v2376_v20  ;;  %3565 = vst.msk [vmem:[#allocation2 + $0x4c] sm:$0xf] %vm3561_vm7, %v3430_v48  ;;  %v1932_v41 = vrot.slane %v1930_v29, 5  ;;  %v17811_v60 = vshll.u32 %v14399_v52, 16  ;;  %4682 = vmatprep.mubr.bf16.mxu1 %v13151_v49  ;;  %v11623_v27 = vld [vmem:[%s13715_s17 + $0x4c] sm:$0xf] }
 0x14e   : > { %v1936_v31 = vrot.slane %v17810_v46, 4  ;;  %v1927_v19 = vor.u32 %v1926_v14, %v1923_v44  ;;  %v11660_v39 = vrot.slane %v11616_v50, 9  ;;  %v3433_v18 = vrot.slane %v11617_v26, 5  ;;  %v13154_v22 = vld [vmem:[#allocation2 + $0x120] ss:$20 sps:$4 sm:$0xff]  }
 0x14f   : > { %v1942_v38 = vrot.slane %v17811_v60, 5  ;;  %v3436_v10 = vrot.slane %v14753_v32, 5  ;;  %2524 = vst [vmem:[#allocation2 + $0x198] sm:$0xf] %v11486_v23  ;;  %2525 = vst [vmem:[#allocation2 + $0x1ac] sm:$0xf] %v11487_v1  ;;  %v3164_v11 = vsel %vm819_vm6, %v11557_v58, %v3120_v28 }
 0x150   : > { %v1937_v34 = vor.u32 %v1936_v31, %v1932_v41  ;;  %v11661_v53 = vrot.slane %v11619_v17, 9  ;;  %v3440_v16 = vrot.slane %v11620_v7, 5  ;;  %v13165_v52 = vld [vmem:[#allocation2 + $0x10] ss:$20 sps:$4 sm:$0xff]   ;;  %v11600_v37 = vcombine.low %v3164_v11, %v3164_v11  ;;  %v13158_v15 = vld [vmem:[#allocation2 + $0x14c] ss:$20 sps:$4 sm:$0xff]  }
 0x151   : > { %v11601_v55 = vcombine.high %v3164_v11, %v3164_v11  ;;  %v1928_v40 = vrot.slane %v1927_v19, 4  ;;  %v3434_v3 = vsel %vm13955_vm5, %v11660_v39, %v3433_v18  ;;  %v3435_v6 = vrot.slane %v3433_v18, 4  ;;  %12894 = vmatprep.mubr.msk.bf16.mxu0 %vm819_vm6, %v13165_v52  ;;  %v11624_v43 = vld [vmem:[%s13715_s17 + $0x50] sm:$0x1]  ;;  %v13447_v17 = vld [vmem:[%s13715_s17 + $0xa0] sm:$0xf] }
 0x152   : > { %v1938_v45 = vrot.slane %v1937_v34, 4  ;;  %3566 = vst.msk [vmem:[#allocation2 + $0x60] sm:$0xf] %vm3561_vm7, %v3434_v3  ;;  %v3441_v62 = vsel %vm13955_vm5, %v11661_v53, %v3440_v16  ;;  %3311 = vst [vmem:[#allocation2 + $0x1c4] sm:$0xf] %v11600_v37  ;;  %v3442_v57 = vrot.slane %v3440_v16, 4 }
 0x153   : > { %3312 = vst [vmem:[#allocation2 + $0x1d8] sm:$0xf] %v11601_v55  ;;  %v1933_v35 = vsel %vm13746_vm2, %v1928_v40, %v1932_v41  ;;  %v3443_v63 = vrot.slane %v11621_v33, 5  ;;  %3568 = vst.msk [vmem:[#allocation2 + $0x88] sm:$0xf] %vm3561_vm7, %v3441_v62  ;;  %v3437_v50 = vsel %vm13955_vm5, %v3435_v6, %v3436_v10  ;;  %v1945_v26 = vshrl.u32 %v11390_v2, 16 }
 0x154   : > { %v1943_v9 = vsel %vm13746_vm2, %v1938_v45, %v1942_v38  ;;  %v1948_v32 = vshll.u32 %v11390_v2, 16  ;;  %v13166_v36 = vld [vmem:[#allocation2 + $0x38] ss:$20 sps:$4 sm:$0xff]   ;;  %3567 = vst.msk [vmem:[#allocation2 + $0x74] sm:$0xf] %vm3561_vm7, %v3437_v50  ;;  %v1954_v7 = vshll.u32 %v13447_v17, 16  ;;  %4683 = vmatmul.mubr.bf16.gmra.mxu1 %v13154_v22 }
 0x155   : > { %v11445_v61 = vcombine.low %v1933_v35, %v1943_v9  ;;  %v3444_v8 = vsel %vm13955_vm5, %v3442_v57, %v3443_v63  ;;  %v1960_v47 = vrot.slane %v1958_v21, 4  ;;  %v11625_v24 = vld [vmem:[%s13715_s17 + $0x54] sm:$0xe]  ;;  %v14799_v4 = vld [vmem:[%s13715_s17 + $0xb8] sm:$0xf]  ;;  %v1947_v44 = vrot.slane %v1945_v26, 4  ;;  %12895 = vmatmul.mubr.msk.bf16.vlgmr.msra.gmra.mxu0 %vm819_vm6, %v13166_v36  ;;  %4690 = vmatprep.mubr.bf16.mxu1 %v13158_v15  ;;  %v2337_v35 = vpop.permute.xlu0 %2336 }
 0x156   : > { %v2006_v58 = vshrl.u32 %v14799_v4, 16  ;;  %3569 = vst.msk [vmem:[#allocation2 + $0x9c] sm:$0xf] %vm3561_vm7, %v3444_v8  ;;  %v1950_v51 = vrot.slane %v1948_v32, 5  ;;  %v11662_v29 = vrot.slane %v11622_v59, 9  ;;  %v1956_v21 = vrot.slane %v1954_v7, 5  ;;  %v3122_v9 = vpop.permute.xlu1 %3121 }
 0x157   : > { %v2379_v49 = vsel %vm819_vm6, %v11445_v61, %v2335_v42  ;;  %v13449_v20 = vld [vmem:[%s13715_s17 + $0xa8] sm:$0xf]  ;;  %v3447_v14 = vrot.slane %v11623_v27, 5  ;;  %v11626_v46 = vld [vmem:[%s13715_s17 + $0x58] sm:$0xf]  ;;  %v17812_v60 = vshll.u32 %v14446_v54, 16 }
 0x158   : > { %v11558_v48 = vcombine.low %v13449_v20, %v13450_v56  ;;  %v11627_v31 = vld [vmem:[%s13715_s17 + $0x5c] sm:$0x1]  ;;  %v11488_v23 = vcombine.low %v2379_v49, %v2379_v49  ;;  %v11489_v1 = vcombine.high %v2379_v49, %v2379_v49  ;;  %v1951_v41 = vor.u32 %v1950_v51, %v1947_v44  ;;  %v11393_v33 = vld [vmem:[%s13715_s17 + $0xa8] sm:$0xf]  ;;  %v14816_v34 = vld [vmem:[%s13715_s17 + $0x60] sm:$0xe] }
 0x159   : > { %v1966_v38 = vrot.slane %v17812_v60, 5  ;;  %v1961_v28 = vor.u32 %v1960_v47, %v1956_v21  ;;  %v3448_v19 = vsel %vm13955_vm5, %v11662_v29, %v3447_v14  ;;  %v3449_v39 = vrot.slane %v3447_v14, 4  ;;  %v13161_v53 = vld [vmem:[#allocation2 + $0x148] ss:$20 sps:$4 sm:$0xff]   ;;  %v13451_v62 = vld [vmem:[%s13715_s17 + $0xac] sm:$0xf] }
 0x15a   : > { %v3450_v18 = vrot.slane %v11624_v43, 5  ;;  %2526 = vst [vmem:[#allocation2 + $0x1c0] sm:$0xf] %v11488_v23  ;;  %2527 = vst [vmem:[#allocation2 + $0x1d4] sm:$0xf] %v11489_v1  ;;  %v1952_v10 = vrot.slane %v1951_v41, 4  ;;  %v3167_v36 = vsel %vm819_vm6, %v11558_v48, %v3122_v9 }
 0x15b   : > { %3570 = vst.msk [vmem:[#allocation2 + $0xb0] sm:$0xf] %vm3561_vm7, %v3448_v19  ;;  %v11663_v2 = vrot.slane %v11625_v24, 9  ;;  %v3454_v11 = vrot.slane %v11626_v46, 5  ;;  %v3457_v54 = vrot.slane %v11627_v31, 5  ;;  %v1962_v16 = vrot.slane %v1961_v28, 4 }
 0x15c   : > { %v3451_v52 = vsel %vm13955_vm5, %v3449_v39, %v3450_v18  ;;  %v1969_v37 = vshrl.u32 %v11393_v33, 16  ;;  %v1972_v55 = vshll.u32 %v11393_v33, 16  ;;  %v13169_v40 = vld [vmem:[#allocation2 + $0x60] ss:$20 sps:$4 sm:$0xff]   ;;  %v1957_v3 = vsel %vm13746_vm2, %v1952_v10, %v1956_v21  ;;  %v11629_v43 = vld [vmem:[%s13715_s17 + $0x64] sm:$0xf]  ;;  %4691 = vmatmul.mubr.bf16.gmra.mxu1 %v13161_v53 }
 0x15d   : > { %3571 = vst.msk [vmem:[#allocation2 + $0xc4] sm:$0xf] %vm3561_vm7, %v3451_v52  ;;  %v3455_v45 = vsel %vm13955_vm5, %v11663_v2, %v3454_v11  ;;  %v3456_v6 = vrot.slane %v3454_v11, 4  ;;  %v1978_v59 = vshll.u32 %v13451_v62, 16  ;;  %v13170_v27 = vld [vmem:[#allocation2 + $0x88] ss:$20 sps:$4 sm:$0xff]   ;;  %v1967_v22 = vsel %vm13746_vm2, %v1962_v16, %v1966_v38  ;;  %12898 = vmatprep.mubr.msk.bf16.mxu0 %vm819_vm6, %v13169_v40 }
 0x15e   : > { %3572 = vst.msk [vmem:[#allocation2 + $0xd8] sm:$0xf] %vm3561_vm7, %v3455_v45  ;;  %v1971_v57 = vrot.slane %v1969_v37, 4  ;;  %v1974_v63 = vrot.slane %v1972_v55, 5  ;;  %v13163_v15 = vld [vmem:[#allocation2 + $0x174] ss:$20 sps:$4 sm:$0xff]   ;;  %v11446_v42 = vcombine.low %v1957_v3, %v1967_v22  ;;  %12899 = vmatmul.mubr.msk.bf16.gmra.mxu0 %vm819_vm6, %v13170_v27  ;;  %v11602_v24 = vcombine.low %v3167_v36, %v3167_v36 }
 0x15f   : > { %v3458_v50 = vsel %vm13955_vm5, %v3456_v6, %v3457_v54  ;;  %v14832_v26 = vrot.slane %v1978_v59, 5  ;;  %v1984_v32 = vrot.slane %v1982_v0, 4  ;;  %v1990_v8 = vrot.slane %v1988_v5, 5  ;;  %v11630_v17 = vld [vmem:[%s13715_s17 + $0x68] sm:$0x1]  ;;  %v3649_v0 = vld [vmem:[#allocation2 + $0x170] sm:$0xff]  ;;  %4698 = vmatprep.mubr.bf16.mxu1 %v13163_v15 }
 0x160   : > { %3573 = vst.msk [vmem:[#allocation2 + $0xec] sm:$0xf] %vm3561_vm7, %v3458_v50  ;;  %v1975_v61 = vor.u32 %v1974_v63, %v1971_v57  ;;  %v11664_v7 = vrot.slane %v14816_v34, 9  ;;  %v3652_v47 = vld [vmem:[#allocation2 + $0x184] sm:$0xff]  ;;  %v11603_v44 = vcombine.high %v3167_v36, %v3167_v36  ;;  %v2382_v51 = vsel %vm819_vm6, %v11446_v42, %v2337_v35  ;;  %v11632_v49 = vld [vmem:[%s13715_s17 + $0x70] sm:$0xf] }
 0x161   : > { %v1985_v29 = vor.u32 %v1984_v32, %v14832_v26  ;;  %v11490_v20 = vcombine.low %v2382_v51, %v2382_v51  ;;  %v11491_v13 = vcombine.high %v2382_v51, %v2382_v51  ;;  %v3461_v56 = vrot.slane %v11629_v43, 5  ;;  %v11633_v48 = vld [vmem:[%s13715_s17 + $0x74] sm:$0x1]  ;;  %v13452_v14 = vld [vmem:[%s13715_s17 + $0xbc] sm:$0x1] }
 0x162   : > { %v1976_v5 = vrot.slane %v1975_v61, 4  ;;  %v11396_v21 = vld [vmem:[%s13715_s17 + $0xb4] sm:$0xf]  ;;  %v2012_v46 = vshll.u32 %v13452_v14, 16  ;;  %3313 = vst [vmem:[#allocation2 + $0x1ec] sm:$0xf] %v11602_v24  ;;  %v11722_v41 = vcombine.low %v3649_v0, %v3652_v47 }
 0x163   : > { %3314 = vst [vmem:[#allocation2 + $0x200] sm:$0xf] %v11603_v44  ;;  %v1986_v31 = vrot.slane %v1985_v29, 4  ;;  %v3464_v23 = vrot.slane %v11630_v17, 5  ;;  %v11665_v1 = vrot.slane %v11631_v12, 9  ;;  %v3462_v38 = vsel %vm13955_vm5, %v11664_v7, %v3461_v56  ;;  %v3124_v17 = vpop.permute.xlu1 %3123 }
 0x164   : > { %2528 = vst [vmem:[#allocation2 + $0x1e8] sm:$0xf] %v11490_v20  ;;  %2529 = vst [vmem:[#allocation2 + $0x1fc] sm:$0xf] %v11491_v13  ;;  %v13173_v60 = vld [vmem:[#allocation2 + $0xb0] ss:$20 sps:$4 sm:$0xff]   ;;  %v1981_v18 = vsel %vm13746_vm2, %v1976_v5, %v14832_v26  ;;  %4699 = vmatmul.mubr.bf16.gmra.mxu1 %v11722_v41  ;;  %v2339_v24 = vpop.permute.xlu0 %2338 }
 0x165   : > { %v3463_v33 = vrot.slane %v3461_v56, 4  ;;  %v3468_v28 = vrot.slane %v11632_v49, 5  ;;  %v11634_v19 = vld [vmem:[%s13715_s17 + $0x78] sm:$0xe]  ;;  %v11635_v39 = vld [vmem:[%s13715_s17 + $0x7c] sm:$0xf]  ;;  %12902 = vmatprep.mubr.msk.bf16.mxu0 %vm819_vm6, %v13173_v60  ;;  %v1991_v16 = vsel %vm13746_vm2, %v1986_v31, %v1990_v8 }
 0x166   : > { %3574 = vst.msk [vmem:[#allocation2 + $0x100] sm:$0xf] %vm3561_vm7, %v3462_v38  ;;  %v3471_v10 = vrot.slane %v11633_v48, 5  ;;  %v1993_v2 = vshrl.u32 %v11396_v21, 16  ;;  %v1996_v11 = vshll.u32 %v11396_v21, 16  ;;  %v2002_v35 = vshll.u32 %v14799_v4, 16 }
 0x167   : > { %v11636_v54 = vld [vmem:[%s13715_s17 + $0x80] sm:$0x1]  ;;  %v11637_v34 = vld [vmem:[%s13715_s17 + $0x84] sm:$0xe]  ;;  %v13167_v53 = vld [vmem:[#allocation2 + $0x19c] ss:$20 sps:$4 sm:$0xff]   ;;  %v3465_v52 = vsel %vm13955_vm5, %v3463_v33, %v3464_v23  ;;  %v3469_v37 = vsel %vm13955_vm5, %v11665_v1, %v3468_v28  ;;  %v11447_v63 = vcombine.low %v1981_v18, %v1991_v16 }
 0x168   : > { %v3470_v55 = vrot.slane %v3468_v28, 4  ;;  %v11638_v40 = vld [vmem:[%s13715_s17 + $0x88] sm:$0xf]  ;;  %v13174_v3 = vld [vmem:[#allocation2 + $0xd8] ss:$20 sps:$4 sm:$0xff]   ;;  %v1995_v45 = vrot.slane %v1993_v2, 4  ;;  %4706 = vmatprep.mubr.bf16.mxu1 %v13167_v53 }
 0x169   : > { %3575 = vst.msk [vmem:[#allocation2 + $0x114] sm:$0xf] %vm3561_vm7, %v3465_v52  ;;  %3576 = vst.msk [vmem:[#allocation2 + $0x128] sm:$0xf] %vm3561_vm7, %v3469_v37  ;;  %v1998_v6 = vrot.slane %v1996_v11, 5  ;;  %v2008_v57 = vrot.slane %v2006_v58, 4  ;;  %12903 = vmatmul.mubr.msk.bf16.gmra.mxu0 %vm819_vm6, %v13174_v3  ;;  %v2385_v5 = vsel %vm819_vm6, %v11447_v63, %v2339_v24 }
 0x16a   : > { %v13453_v62 = vld [vmem:[%s13715_s17 + $0xb4] sm:$0xf]  ;;  %v13454_v59 = vld [vmem:[%s13715_s17 + $0xb8] sm:$0xf]  ;;  %v3472_v22 = vsel %vm13955_vm5, %v3470_v55, %v3471_v10  ;;  %v11666_v9 = vrot.slane %v11634_v19, 9  ;;  %v3475_v42 = vrot.slane %v11635_v39, 5  ;;  %v11492_v14 = vcombine.low %v2385_v5, %v2385_v5 }
 0x16b   : > { %v11559_v27 = vcombine.low %v13453_v62, %v13454_v59  ;;  %3577 = vst.msk [vmem:[#allocation2 + $0x13c] sm:$0xf] %vm3561_vm7, %v3472_v22  ;;  %v1999_v15 = vor.u32 %v1998_v6, %v1995_v45  ;;  %v14880_v50 = vrot.slane %v2002_v35, 5  ;;  %v3478_v26 = vrot.slane %v11636_v54, 5  ;;  %v11639_v32 = vld [vmem:[%s13715_s17 + $0x8c] sm:$0x1] }
 0x16c   : > { %v11667_v43 = vrot.slane %v11637_v34, 9  ;;  %v3482_v36 = vrot.slane %v11638_v40, 5  ;;  %v14884_v61 = vld [vmem:[%s13715_s17 + $0xc4] sm:$0xf]  ;;  %v3655_v58 = vld [vmem:[#allocation2 + $0x198] sm:$0xff]  ;;  %v3658_v8 = vld [vmem:[#allocation2 + $0x1ac] sm:$0xff]  ;;  %v3476_v12 = vsel %vm13955_vm5, %v11666_v9, %v3475_v42 }
 0x16d   : > { %v2030_v4 = vshrl.u32 %v14884_v61, 16  ;;  %v2014_v7 = vrot.slane %v2012_v46, 5  ;;  %v3477_v0 = vrot.slane %v3475_v42, 4  ;;  %v3170_v47 = vsel %vm819_vm6, %v11559_v27, %v3124_v17  ;;  %3578 = vst.msk [vmem:[#allocation2 + $0x150] sm:$0xf] %vm3561_vm7, %v3476_v12  ;;  %v3661_v3 = vld [vmem:[#allocation2 + $0x1c0] sm:$0xff] }
 0x16e   : > { %v2000_v44 = vrot.slane %v1999_v15, 4  ;;  %v2009_v51 = vor.u32 %v2008_v57, %v14880_v50  ;;  %v3483_v29 = vsel %vm13955_vm5, %v11667_v43, %v3482_v36  ;;  %v11399_v49 = vld [vmem:[%s13715_s17 + $0xc0] sm:$0xf]  ;;  %v11604_v20 = vcombine.low %v3170_v47, %v3170_v47  ;;  %v11640_v48 = vld [vmem:[%s13715_s17 + $0x90] sm:$0xe]  ;;  %v3664_v59 = vld [vmem:[#allocation2 + $0x1d4] sm:$0xff] }
 0x16f   : > { %v11605_v13 = vcombine.high %v3170_v47, %v3170_v47  ;;  %v3485_v56 = vrot.slane %v11639_v32, 5  ;;  %3580 = vst.msk [vmem:[#allocation2 + $0x178] sm:$0xf] %vm3561_vm7, %v3483_v29  ;;  %v11727_v21 = vcombine.low %v3655_v58, %v3658_v8  ;;  %v11493_v46 = vcombine.high %v2385_v5, %v2385_v5  ;;  %v11641_v1 = vld [vmem:[%s13715_s17 + $0x94] sm:$0xf] }
 0x170   : > { %v13177_v31 = vld [vmem:[#allocation2 + $0x100] ss:$20 sps:$4 sm:$0xff]   ;;  %v3479_v23 = vsel %vm13955_vm5, %v3477_v0, %v3478_v26  ;;  %v11642_v41 = vld [vmem:[%s13715_s17 + $0x98] sm:$0x1]  ;;  %v11643_v60 = vld [vmem:[%s13715_s17 + $0x9c] sm:$0xe]  ;;  %v2005_v2 = vsel %vm13746_vm2, %v2000_v44, %v14880_v50  ;;  %v11732_v8 = vcombine.low %v3661_v3, %v3664_v59 }
 0x171   : > { %v13171_v38 = vld [vmem:[#allocation2 + $0x1c4] ss:$20 sps:$4 sm:$0xff]   ;;  %3315 = vst [vmem:[#allocation2 + $0x214] sm:$0xf] %v11604_v20  ;;  %3316 = vst [vmem:[#allocation2 + $0x228] sm:$0xf] %v11605_v13  ;;  %12906 = vmatprep.mubr.msk.bf16.mxu0 %vm819_vm6, %v13177_v31  ;;  %4707 = vmatmul.mubr.bf16.gmra.mxu1 %v11727_v21  ;;  %v2341_v5 = vpop.permute.xlu0 %2340 }
 0x172   : > { %v2010_v33 = vrot.slane %v2009_v51, 4  ;;  %3579 = vst.msk [vmem:[#allocation2 + $0x164] sm:$0xf] %vm3561_vm7, %v3479_v23  ;;  %v3484_v28 = vrot.slane %v3482_v36, 4  ;;  %v2017_v19 = vshrl.u32 %v11399_v49, 16  ;;  %v2020_v39 = vshll.u32 %v11399_v49, 16  ;;  %4714 = vmatprep.mubr.bf16.mxu1 %v13171_v38 }
 0x173   : > { %v11644_v18 = vld [vmem:[%s13715_s17 + $0xa0] sm:$0xf]  ;;  %2530 = vst [vmem:[#allocation2 + $0x210] sm:$0xf] %v11492_v14  ;;  %2531 = vst [vmem:[#allocation2 + $0x224] sm:$0xf] %v11493_v46  ;;  %v3126_v38 = vpop.permute.xlu1 %3125 }
 0x174   : > { %v13178_v10 = vld [vmem:[#allocation2 + $0x128] ss:$20 sps:$4 sm:$0xff]   ;;  %v2026_v11 = vshll.u32 %v14884_v61, 16  ;;  %v2015_v54 = vsel %vm13746_vm2, %v2010_v33, %v2014_v7  ;;  %v3486_v34 = vsel %vm13955_vm5, %v3484_v28, %v3485_v56  ;;  %v2019_v53 = vrot.slane %v2017_v19, 4  ;;  %v11645_v52 = vld [vmem:[%s13715_s17 + $0xa4] sm:$0x1] }
 0x175   : > { %v2022_v16 = vrot.slane %v2020_v39, 5  ;;  %v11646_v37 = vld [vmem:[%s13715_s17 + $0xa8] sm:$0xe]  ;;  %v13456_v55 = vld [vmem:[%s13715_s17 + $0xc8] sm:$0x1]  ;;  %12907 = vmatmul.mubr.msk.bf16.gmra.mxu0 %vm819_vm6, %v13178_v10  ;;  %v14919_v45 = vrot.slane %v2030_v4, 4  ;;  %v11448_v27 = vcombine.low %v2005_v2, %v2015_v54 }
 0x176   : > { %v2036_v40 = vshll.u32 %v13456_v55, 16  ;;  %3581 = vst.msk [vmem:[#allocation2 + $0x18c] sm:$0xf] %vm3561_vm7, %v3486_v34  ;;  %v11668_v6 = vrot.slane %v11640_v48, 9  ;;  %v11647_v62 = vld [vmem:[%s13715_s17 + $0xac] sm:$0xf] }
 0x177   : > { %v3489_v22 = vrot.slane %v11641_v1, 5  ;;  %v3492_v35 = vrot.slane %v11642_v41, 5  ;;  %v11669_v57 = vrot.slane %v11643_v60, 9  ;;  %v11648_v63 = vld [vmem:[%s13715_s17 + $0xb0] sm:$0x1]  ;;  %v2023_v15 = vor.u32 %v2022_v16, %v2019_v53  ;;  %v3667_v2 = vld [vmem:[#allocation2 + $0x1e8] sm:$0xff] }
 0x178   : > { %v3496_v9 = vrot.slane %v11644_v18, 5  ;;  %v3499_v42 = vrot.slane %v11645_v52, 5  ;;  %v11670_v50 = vrot.slane %v11646_v37, 9  ;;  %v11649_v26 = vld [vmem:[%s13715_s17 + $0xb4] sm:$0xe]  ;;  %v14925_v43 = vrot.slane %v2026_v11, 5 }
 0x179   : > { %v11650_v32 = vld [vmem:[%s13715_s17 + $0xb8] sm:$0xf]  ;;  %v3490_v36 = vsel %vm13955_vm5, %v11668_v6, %v3489_v22  ;;  %v3491_v61 = vrot.slane %v3489_v22, 4  ;;  %v3503_v4 = vrot.slane %v11647_v62, 5  ;;  %v11651_v58 = vld [vmem:[%s13715_s17 + $0xbc] sm:$0x1]  ;;  %v2388_v31 = vsel %vm819_vm6, %v11448_v27, %v2341_v5  ;;  %4715 = vmatmul.mubr.bf16.gmra.mxu1 %v11732_v8 }
 0x17a   : > { %v13181_v17 = vld [vmem:[#allocation2 + $0x150] ss:$20 sps:$4 sm:$0xff]   ;;  %3582 = vst.msk [vmem:[#allocation2 + $0x1a0] sm:$0xf] %vm3561_vm7, %v3490_v36  ;;  %v3497_v7 = vsel %vm13955_vm5, %v11669_v57, %v3496_v9  ;;  %v3498_v12 = vrot.slane %v3496_v9, 4  ;;  %v14943_v56 = vrot.slane %v2023_v15, 4  ;;  %v2033_v1 = vor.u32 %v14919_v45, %v14925_v43  ;;  %v12414_v45 = vpop.f32.mrf.mxu0 }
 0x17b   : > { %v11652_v0 = vld [vmem:[%s13715_s17 + $0xc0] sm:$0xe]  ;;  %v13458_v44 = vld [vmem:[%s13715_s17 + $0xc4] sm:$0xf]  ;;  %v3493_v29 = vsel %vm13955_vm5, %v3491_v61, %v3492_v35  ;;  %3584 = vst.msk [vmem:[#allocation2 + $0x1c8] sm:$0xf] %vm3561_vm7, %v3497_v7  ;;  %v3504_v49 = vsel %vm13955_vm5, %v11670_v50, %v3503_v4  ;;  %12910 = vmatprep.mubr.msk.bf16.mxu0 %vm819_vm6, %v13181_v17  ;;  %v11494_v33 = vcombine.low %v2388_v31, %v2388_v31 }
 0x17c   : > { %v13175_v47 = vld [vmem:[#allocation2 + $0x1ec] ss:$20 sps:$4 sm:$0xff]   ;;  %v3505_v20 = vrot.slane %v3503_v4, 4  ;;  %v11653_v13 = vld [vmem:[%s13715_s17 + $0xc4] sm:$0xf]  ;;  %v14945_v48 = vrot.slane %v2036_v40, 5  ;;  %v3500_v21 = vsel %vm13955_vm5, %v3498_v12, %v3499_v42  ;;  %v11495_v28 = vcombine.high %v2388_v31, %v2388_v31  ;;  %v12415_v9 = vpop.f32.mrf.mxu0 }
 0x17d   : > { %v13457_v24 = vld [vmem:[%s13715_s17 + $0xc0] sm:$0xf]  ;;  %3583 = vst.msk [vmem:[#allocation2 + $0x1b4] sm:$0xf] %vm3561_vm7, %v3493_v29  ;;  %v3506_v14 = vrot.slane %v11648_v63, 5  ;;  %v11671_v41 = vrot.slane %v11649_v26, 9  ;;  %4722 = vmatprep.mubr.bf16.mxu1 %v13175_v47  ;;  %v14975_v26 = vadd.f32 %v12415_v9, %v12414_v45 }
 0x17e   : > { %v11560_v51 = vcombine.low %v13457_v24, %v13458_v44  ;;  %3586 = vst.msk [vmem:[#allocation2 + $0x1f0] sm:$0xf] %vm3561_vm7, %v3504_v49  ;;  %v11654_v46 = vld [vmem:[%s13715_s17 + $0xc8] sm:$0x1]  ;;  %v13182_v23 = vld [vmem:[#allocation2 + $0x178] ss:$20 sps:$4 sm:$0xff]   ;;  %v14980_v4 = vpop.f32.mrf.mxu0 }
 0x17f   : > { %3585 = vst.msk [vmem:[#allocation2 + $0x1dc] sm:$0xf] %vm3561_vm7, %v3500_v21  ;;  %v3510_v60 = vrot.slane %v11650_v32, 5  ;;  %v3507_v19 = vsel %vm13955_vm5, %v3505_v20, %v3506_v14  ;;  %v3513_v39 = vrot.slane %v11651_v58, 5  ;;  %v11655_v18 = vld [vmem:[%s13715_s17 + $0xcc] sm:$0xe]  ;;  %12911 = vmatmul.mubr.msk.bf16.gmra.mxu0 %vm819_vm6, %v13182_v23 }
 0x180   : > { %v11656_v10 = vld [vmem:[%s13715_s17 + $0xd0] sm:$0xf]  ;;  %v3670_v11 = vld [vmem:[#allocation2 + $0x1fc] sm:$0xff]  ;;  %v3173_v54 = vsel %vm819_vm6, %v11560_v51, %v3126_v38  ;;  %3587 = vst.msk [vmem:[#allocation2 + $0x204] sm:$0xf] %vm3561_vm7, %v3507_v19  ;;  %v11672_v16 = vrot.slane %v11652_v0, 9  ;;  %v14986_v17 = vpop.f32.mrf.mxu0  ;;  %v2029_v0 = vsel %vm13746_vm2, %v14943_v56, %v14925_v43 }
 0x181   : > { %v3511_v34 = vsel %vm13955_vm5, %v11671_v41, %v3510_v60  ;;  %v3512_v53 = vrot.slane %v3510_v60, 4  ;;  %v11657_v52 = vld [vmem:[%s13715_s17 + $0xd4] sm:$0x1]  ;;  %v11606_v37 = vcombine.low %v3173_v54, %v3173_v54  ;;  %v11607_v55 = vcombine.high %v3173_v54, %v3173_v54  ;;  %2532 = vst [vmem:[#allocation2 + $0x238] sm:$0xf] %v11494_v33  ;;  %v3676_v12 = vld [vmem:[#allocation2 + $0x224] sm:$0xff] }
 0x182   : > { %2533 = vst [vmem:[#allocation2 + $0x24c] sm:$0xf] %v11495_v28  ;;  %3588 = vst.msk [vmem:[#allocation2 + $0x218] sm:$0xf] %vm3561_vm7, %v3511_v34  ;;  %v3517_v40 = vrot.slane %v11653_v13, 5  ;;  %v3520_v3 = vrot.slane %v11654_v46, 5  ;;  %v11737_v22 = vcombine.low %v3667_v2, %v3670_v11  ;;  %v12420_v24 = vpop.f32.mrf.mxu0 }
 0x183   : > { %v2034_v6 = vrot.slane %v2033_v1, 4  ;;  %v3514_v62 = vsel %vm13955_vm5, %v3512_v53, %v3513_v39  ;;  %v11673_v59 = vrot.slane %v11655_v18, 9  ;;  %v3524_v27 = vrot.slane %v11656_v10, 5  ;;  %3317 = vst [vmem:[#allocation2 + $0x23c] sm:$0xf] %v11606_v37  ;;  %v3673_v7 = vld [vmem:[#allocation2 + $0x210] sm:$0xff] }
 0x184   : > { %3318 = vst [vmem:[#allocation2 + $0x250] sm:$0xf] %v11607_v55  ;;  %v13179_v35 = vld [vmem:[#allocation2 + $0x214] ss:$20 sps:$4 sm:$0xff]   ;;  %3589 = vst.msk [vmem:[#allocation2 + $0x22c] sm:$0xf] %vm3561_vm7, %v3514_v62  ;;  %v3518_v57 = vsel %vm13955_vm5, %v11672_v16, %v3517_v40  ;;  %4723 = vmatmul.mubr.bf16.gmra.mxu1 %v11737_v22  ;;  %v11742_v44 = vcombine.low %v3673_v7, %v3676_v12  ;;  %v12421_v29 = vpop.f32.mrf.mxu0  ;;  %v3128_v46 = vpop.permute.xlu1 %3127 }
 0x185   : > { %v3519_v63 = vrot.slane %v3517_v40, 4  ;;  %v3527_v15 = vrot.slane %v11657_v52, 5  ;;  %v13185_v42 = vld [vmem:[#allocation2 + $0x1a0] ss:$20 sps:$4 sm:$0xff]   ;;  %3590 = vst.msk [vmem:[#allocation2 + $0x240] sm:$0xf] %vm3561_vm7, %v3518_v57  ;;  %v3525_v50 = vsel %vm13955_vm5, %v11673_v59, %v3524_v27  ;;  %4730 = vmatprep.mubr.bf16.mxu1 %v13179_v35  ;;  %v2039_v47 = vsel %vm13746_vm2, %v2034_v6, %v14945_v48  ;;  %v2343_v48 = vpop.permute.xlu0 %2342 }
 0x186   : > { %v13186_v32 = vld [vmem:[#allocation2 + $0x1c8] ss:$20 sps:$4 sm:$0xff]   ;;  %v3526_v61 = vrot.slane %v3524_v27, 4  ;;  %3592 = vst.msk [vmem:[#allocation2 + $0x268] sm:$0xf] %vm3561_vm7, %v3525_v50  ;;  %12914 = vmatprep.mubr.msk.bf16.mxu0 %vm819_vm6, %v13185_v42  ;;  %v11449_v51 = vcombine.low %v2029_v0, %v2039_v47  ;;  %v15000_v43 = vadd.f32 %v12421_v29, %v12420_v24  ;;  %v15002_v14 = vpop.f32.mrf.mxu0 }
 0x187   : > { %v3521_v36 = vsel %vm13955_vm5, %v3519_v63, %v3520_v3  ;;  %v13189_v58 = vld [vmem:[#allocation2 + $0x1f0] ss:$20 sps:$4 sm:$0xff]   ;;  %12915 = vmatmul.mubr.msk.bf16.gmra.mxu0 %vm819_vm6, %v13186_v32  ;;  %v13459_v49 = vld [vmem:[%s13715_s17 + $0xcc] sm:$0xf] }
 0x188   : > { %3591 = vst.msk [vmem:[#allocation2 + $0x254] sm:$0xf] %vm3561_vm7, %v3521_v36  ;;  %v3528_v8 = vsel %vm13955_vm5, %v3526_v61, %v3527_v15  ;;  %12918 = vmatprep.mubr.msk.bf16.mxu0 %vm819_vm6, %v13189_v58  ;;  %v13460_v20 = vld [vmem:[%s13715_s17 + $0xd0] sm:$0xf]  ;;  %v2391_v31 = vsel %vm819_vm6, %v11449_v51, %v2343_v48  ;;  %v15005_v23 = vpop.f32.mrf.mxu0 }
 0x189   : > { %3593 = vst.msk [vmem:[#allocation2 + $0x27c] sm:$0xf] %vm3561_vm7, %v3528_v8  ;;  %v11561_v13 = vcombine.low %v13459_v49, %v13460_v20  ;;  %v11496_v41 = vcombine.low %v2391_v31, %v2391_v31  ;;  %v11497_v60 = vcombine.high %v2391_v31, %v2391_v31 }
 0x18a   : > { %v3679_v38 = vld [vmem:[#allocation2 + $0x238] sm:$0xff]  ;;  %v12426_v39 = vpop.f32.mrf.mxu0 }
 0x18b   : > { %v13183_v5 = vld [vmem:[#allocation2 + $0x23c] ss:$20 sps:$4 sm:$0xff]   ;;  %v13190_v21 = vld [vmem:[#allocation2 + $0x218] ss:$20 sps:$4 sm:$0xff]   ;;  %v3176_v1 = vsel %vm819_vm6, %v11561_v13, %v3128_v46  ;;  %2534 = vst [vmem:[#allocation2 + $0x260] sm:$0xf] %v11496_v41 }
 0x18c   : > { %4731 = vmatmul.mubr.bf16.gmra.mxu1 %v11742_v44  ;;  %v3682_v33 = vld [vmem:[#allocation2 + $0x24c] sm:$0xff]  ;;  %v11608_v28 = vcombine.low %v3176_v1, %v3176_v1  ;;  %v11609_v19 = vcombine.high %v3176_v1, %v3176_v1  ;;  %2535 = vst [vmem:[#allocation2 + $0x274] sm:$0xf] %v11497_v60  ;;  %v12427_v10 = vpop.f32.mrf.mxu0 }
 0x18d   : > { %4738 = vmatprep.mubr.bf16.mxu1 %v13183_v5  ;;  %v11747_v18 = vcombine.low %v3679_v38, %v3682_v33  ;;  %v15010_v11 = vadd.f32 %v12427_v10, %v12426_v39 }
 0x18e   : > { %3319 = vst [vmem:[#allocation2 + $0x264] sm:$0xf] %v11608_v28  ;;  %3320 = vst [vmem:[#allocation2 + $0x278] sm:$0xf] %v11609_v19  ;;  %v15012_v54 = vpop.f32.mrf.mxu0 }
 0x18f   : > { %v13191_v56 = vld [vmem:[#allocation2 + $0x240] ss:$20 sps:$4 sm:$0xff]   ;;  %12919 = vmatmul.mubr.msk.bf16.gmra.mxu0 %vm819_vm6, %v13190_v21 }
 0x190   : > { %12922 = vmatprep.mubr.msk.bf16.mxu0 %vm819_vm6, %v13191_v56  ;;  %v13192_v2 = vld [vmem:[#allocation2 + $0x268] ss:$20 sps:$4 sm:$0xff]   ;;  %v15014_v34 = vpop.f32.mrf.mxu0 }
 0x192   : > { %v12432_v53 = vpop.f32.mrf.mxu0 }
 0x194   : > { %4739 = vmatmul.mubr.bf16.gmra.mxu1 %v11747_v18  ;;  %v12433_v40 = vpop.f32.mrf.mxu0 }
 0x195   : > { %v3685_v16 = vld [vmem:[#allocation2 + $0x260] sm:$0xff]  ;;  %v3688_v52 = vld [vmem:[#allocation2 + $0x274] sm:$0xff]  ;;  %v15017_v3 = vadd.f32 %v12433_v40, %v12432_v53 }
 0x196   : > { %v13187_v37 = vld [vmem:[#allocation2 + $0x264] ss:$20 sps:$4 sm:$0xff]   ;;  %v11752_v55 = vcombine.low %v3685_v16, %v3688_v52  ;;  %v15019_v45 = vpop.f32.mrf.mxu0 }
 0x197   : > { %12923 = vmatmul.mubr.msk.bf16.gmra.mxu0 %vm819_vm6, %v13192_v2  ;;  %4746 = vmatprep.mubr.bf16.mxu1 %v13187_v37 }
 0x198   : > { %v15021_v6 = vpop.f32.mrf.mxu0 }
 0x19a   : > { %v12438_v62 = vpop.f32.mrf.mxu0 }
 0x19c   : > { %4747 = vmatmul.mubr.bf16.gmra.mxu1 %v11752_v55  ;;  %v12439_v59 = vpop.f32.mrf.mxu0 }
 0x19d   : > { %v15023_v27 = vadd.f32 %v12439_v59, %v12438_v62 }
 0x19e   : > { %v15025_v22 = vpop.f32.mrf.mxu0 }
 0x1a0   : > { %v15027_v35 = vpop.f32.mrf.mxu0 }
 0x1a2   : > { %v12444_v57 = vpop.f32.mrf.mxu0 }
 0x1a4   : > { %v12445_v63 = vpop.f32.mrf.mxu0 }
 0x1a5   : > { %v15029_v15 = vadd.f32 %v12445_v63, %v12444_v57 }
 0x1a6   : > { %v15031_v9 = vpop.f32.mrf.mxu0 }
 0x1a8   : > { %v15033_v42 = vpop.f32.mrf.mxu0 }
 0x1aa   : > { %v12450_v50 = vpop.f32.mrf.mxu0 }
 0x1ac   : > { %v12451_v32 = vpop.f32.mrf.mxu0 }
 0x1ad   : > { %v15035_v36 = vadd.f32 %v12451_v32, %v12450_v50 }
 0x1ae   : > { %v15037_v61 = vpop.f32.mrf.mxu0 }
 0x1b0   : > { %v15039_v58 = vpop.f32.mrf.mxu0 }
 0x1b2   : > { %v12456_v8 = vpop.f32.mrf.mxu0 }
 0x1b4   : > { %v12457_v7 = vpop.f32.mrf.mxu0 }
 0x1b5   : > { %v15041_v12 = vadd.f32 %v12457_v7, %v12456_v8 }
 0x1b6   : > { %v15043_v0 = vpop.f32.mrf.mxu0 }
 0x1b8   : > { %v15045_v47 = vpop.f32.mrf.mxu0 }
 0x1ba   : > { %v12462_v24 = vpop.f32.mrf.mxu0 }
 0x1bc   : > { %v12463_v44 = vpop.f32.mrf.mxu0 }
 0x1bd   : > { %v15047_v51 = vadd.f32 %v12463_v44, %v12462_v24 }
 0x1be   : > { %v15049_v29 = vpop.f32.mrf.mxu0 }
 0x1c0   : > { %v15051_v49 = vpop.f32.mrf.mxu0 }
 0x1c2   : > { %v12468_v20 = vpop.f32.mrf.mxu0 }
 0x1c4   : > { %v12469_v13 = vpop.f32.mrf.mxu0 }
 0x1c5   : > { %v15053_v5 = vadd.f32 %v12469_v13, %v12468_v20 }
 0x1c6   : > { %v15055_v21 = vpop.f32.mrf.mxu0 }
 0x1c8   : > { %v15057_v56 = vpop.f32.mrf.mxu0 }
 0x1ca   : > { %v12474_v48 = vpop.f32.mrf.mxu0 }
 0x1cc   : > { %v12475_v46 = vpop.f32.mrf.mxu0 }
 0x1cd   : > { %v15059_v31 = vadd.f32 %v12475_v46, %v12474_v48 }
 0x1ce   : > { %v15061_v1 = vpop.f32.mrf.mxu0 }
 0x1d0   : > { %v15063_v41 = vpop.f32.mrf.mxu0 }
 0x1d2   : > { %v12480_v60 = vpop.f32.mrf.mxu0 }
 0x1d3   : > { %v15071_v39 = vpop.f32.mrf.mxu1 }
 0x1d4   : > { %v12481_v38 = vpop.f32.mrf.mxu0 }
 0x1d5   : > { %v15065_v33 = vadd.f32 %v12481_v38, %v12480_v60  ;;  %v15073_v10 = vpop.f32.mrf.mxu1 }
 0x1d6   : > { %v15067_v28 = vpop.f32.mrf.mxu0 }
 0x1d7   : > { %v15077_v52 = vpop.f32.mrf.mxu1 }
 0x1d8   : > { %v15069_v19 = vpop.f32.mrf.mxu0 }
 0x1d9   : > { %v15081_v62 = vpop.f32.mrf.mxu1 }
 0x1da   : > { %v12486_v18 = vpop.f32.mrf.mxu0 }
 0x1dc   : > { %v12487_v2 = vpop.f32.mrf.mxu0 }
 0x1dd   : > { %v15075_v53 = vadd.f32 %v12487_v2, %v12486_v18 }
 0x1de   : > { %v12489_v16 = vpop.f32.mrf.mxu0 }
 0x1e0   : > { %v12490_v37 = vpop.f32.mrf.mxu0 }
 0x1e1   : > { %v15079_v55 = vadd.f32 %v12490_v37, %v12489_v16 }
 0x1e2   : > { %v12492_v40 = vpop.f32.mrf.mxu0 }
 0x1e3   : > { %v12532_v50 = vpop.f32.mrf.mxu1 }
 0x1e4   : > { %v12493_v59 = vpop.f32.mrf.mxu0 }
 0x1e5   : > { %v15083_v57 = vadd.f32 %v12493_v59, %v12492_v40  ;;  %v12533_v7 = vpop.f32.mrf.mxu1 }
 0x1e6   : > { %v12495_v63 = vpop.f32.mrf.mxu0 }
 0x1e7   : > { %v15087_v44 = vpop.f32.mrf.mxu1 }
 0x1e8   : > { %v12496_v32 = vpop.f32.mrf.mxu0 }
 0x1e9   : > { %v15085_v8 = vadd.f32 %v12496_v32, %v12495_v63  ;;  %v15091_v48 = vpop.f32.mrf.mxu1 }
 0x1ea   : > { %v12498_v24 = vpop.f32.mrf.mxu0 }
 0x1eb   : > { %v15093_v60 = vpop.f32.mrf.mxu1 }
 0x1ec   : > { %v12499_v20 = vpop.f32.mrf.mxu0 }
 0x1ed   : > { %v15089_v13 = vadd.f32 %v12499_v20, %v12498_v24  ;;  %v15097_v2 = vpop.f32.mrf.mxu1 }
 0x1ee   : > { %v12501_v46 = vpop.f32.mrf.mxu0 }
 0x1ef   : > { %17813 = vst [vmem:[#allocation9_spill] sm:$0xff] %v15089_v13  ;;  %v15099_v37 = vpop.f32.mrf.mxu1 }
 0x1f0   : > { %v12502_v38 = vpop.f32.mrf.mxu0  ;;  %17815 = vst [vmem:[#allocation11_spill] sm:$0xff] %v15099_v37 }
 0x1f1   : > { %v15095_v18 = vadd.f32 %v12502_v38, %v12501_v46  ;;  %v15101_v59 = vpop.f32.mrf.mxu1 }
 0x1f2   : > { %v12504_v16 = vpop.f32.mrf.mxu0 }
 0x1f3   : > { %17814 = vst [vmem:[#allocation10_spill] sm:$0xff] %v15095_v18 }
 0x1f4   : > { %v12505_v40 = vpop.f32.mrf.mxu0  ;;  %v15105_v24 = vpop.f32.mrf.mxu1 }
 0x1f5   : > { %v15103_v63 = vadd.f32 %v12505_v40, %v12504_v16 }
 0x1f6   : > { %v12507_v32 = vpop.f32.mrf.mxu0  ;;  %v15107_v30 = vpop.f32.mrf.mxu1 }
 0x1f7   : > { %17816 = vst [vmem:[#allocation12_spill] sm:$0xff] %v15103_v63  ;;  %v13195_v63 = vld [vmem:[%s17738_s3 + $0x78] sm:$0xff]  }
 0x1f8   : > { %v12508_v20 = vpop.f32.mrf.mxu0  ;;  %v15111_v46 = vpop.f32.mrf.mxu1  ;;  %12642 = vmatprep.subr.bf16.mxu1 %v13195_v63 }
 0x1f9   : > { %v15109_v25 = vadd.f32 %v12508_v20, %v12507_v32  ;;  %v12419_v20 = vadd.f32 %v14986_v17, %v14980_v4  ;;  %v12443_v4 = vadd.f32 %v15027_v35, %v15025_v22  ;;  %v12461_v35 = vadd.f32 %v15045_v47, %v15043_v0 }
 0x1fa   : > { %v15113_v38 = vpop.f32.mrf.mxu1  ;;  %v12479_v47 = vadd.f32 %v15063_v41, %v15061_v1 }
 0x1fb   : > { %17817 = vst [vmem:[#allocation13_spill] sm:$0xff] %v15109_v25  ;;  %v15135_v25 = vld [vmem:[%s17737_s2] ss:$0 sm:$0xff] }
 0x1fc   : > { %v15115_v18 = vpop.f32.mrf.mxu1  ;;  %v4468_v63 = vadd.f32 %v14975_v26, %v15135_v25  ;;  %v12455_v26 = vadd.f32 %v15039_v58, %v15037_v61  ;;  %v12467_v61 = vadd.f32 %v15051_v49, %v15049_v29  ;;  %v15203_v29 = vadd.f32 %v15035_v36, %v15135_v25 }
 0x1fd   : > { %v15219_v1 = vadd.f32 %v12461_v35, %v15135_v25  ;;  %v15223_v36 = vadd.f32 %v15047_v51, %v15135_v25  ;;  %v15241_v51 = vadd.f32 %v15059_v31, %v15135_v25 }
 0x1fe   : > { %v15117_v37 = vpop.f32.mrf.mxu1  ;;  %v15206_v49 = vadd.f32 %v12455_v26, %v15135_v25 }
 0x1ff   : > { %17818 = vst [vmem:[#allocation14_spill] sm:$0xff] %v15117_v37  ;;  %v4471_v37 = vadd.f32 %v12419_v20, %v15135_v25 }
 0x200   : > { %v15119_v13 = vpop.f32.mrf.mxu1 }
 0x201   : > { %17819 = vst [vmem:[#allocation15_spill] sm:$0xff] %v15119_v13  ;;  %v12431_v13 = vadd.f32 %v15014_v34, %v15012_v54  ;;  %v15159_v34 = vadd.f32 %v15010_v11, %v15135_v25  ;;  %v12534_v11 = vadd.f32 %v12533_v7, %v12532_v50  ;;  %v15244_v50 = vadd.f32 %v12479_v47, %v15135_v25  ;;  %v17833_v47 = vld [vmem:[#allocation11_spill] sm:$0xff] }
 0x202   : > { %v15121_v16 = vpop.f32.mrf.mxu1 }
 0x203   : > { %17820 = vst [vmem:[#allocation16_spill] sm:$0xff] %v15121_v16  ;;  %v12425_v16 = vadd.f32 %v15005_v23, %v15002_v14  ;;  %v4476_v14 = vadd.f32 %v15000_v43, %v15135_v25  ;;  %v12449_v23 = vadd.f32 %v15033_v42, %v15031_v9  ;;  %v15170_v43 = vadd.f32 %v15017_v3, %v15135_v25 }
 0x204   : > { %v15123_v40 = vpop.f32.mrf.mxu1  ;;  %v15179_v9 = vadd.f32 %v15023_v27, %v15135_v25  ;;  %v15182_v42 = vadd.f32 %v12443_v4, %v15135_v25  ;;  %v12473_v3 = vadd.f32 %v15057_v56, %v15055_v21  ;;  %v12528_v27 = vadd.f32 %v15073_v10, %v15071_v39  ;;  %17823 = vst [vmem:[#allocation19_spill] sm:$0xff] %v15244_v50 }
 0x205   : > { %17821 = vst [vmem:[#allocation17_spill] sm:$0xff] %v15123_v40  ;;  %v4479_v54 = vadd.f32 %v12425_v16, %v15135_v25  ;;  %v15195_v0 = vadd.f32 %v12449_v23, %v15135_v25  ;;  %v12485_v21 = vadd.f32 %v15069_v19, %v15067_v28  ;;  %v15216_v39 = vadd.f32 %v15041_v12, %v15135_v25 }
 0x206   : > { %v15128_v32 = vpop.f32.mrf.mxu1  ;;  %v4637_v41 = vadd.f32 %v12534_v11, %v4476_v14  ;;  %v15226_v10 = vadd.f32 %v12467_v61, %v15135_v25  ;;  %v12537_v28 = vadd.f32 %v15091_v48, %v15087_v44  ;;  %v15232_v19 = vadd.f32 %v15053_v5, %v15135_v25 }
 0x207   : > { %17822 = vst [vmem:[#allocation18_spill] sm:$0xff] %v15128_v32  ;;  %v12437_v32 = vadd.f32 %v15021_v6, %v15019_v45  ;;  %v15162_v45 = vadd.f32 %v12431_v13, %v15135_v25  ;;  %v15192_v13 = vadd.f32 %v15029_v15, %v15135_v25  ;;  %v12531_v15 = vadd.f32 %v15081_v62, %v15077_v52 }
 0x208   : > { %v15141_v40 = vpop.f32.mrf.mxu1  ;;  %v15235_v12 = vadd.f32 %v12473_v3, %v15135_v25  ;;  %v4629_v44 = vadd.f32 %v12528_v27, %v4468_v63  ;;  %v15248_v5 = vadd.f32 %v15065_v33, %v15135_v25  ;;  %v15251_v48 = vadd.f32 %v12485_v21, %v15135_v25 }
 0x209   : > { %v15173_v22 = vadd.f32 %v12437_v32, %v15135_v25  ;;  %v15255_v16 = vadd.f32 %v15075_v53, %v15135_v25  ;;  %v4632_v20 = vadd.f32 %v12531_v15, %v4471_v37  ;;  %v12540_v4 = vadd.f32 %v15097_v2, %v15093_v60 }
 0x20a   : > { %v15147_v17 = vpop.f32.mrf.mxu1  ;;  %17824 = vst [vmem:[#allocation20_spill] sm:$0xff] %v15251_v48  ;;  %v12546_v33 = vadd.f32 %v15107_v30, %v15105_v24  ;;  %v15265_v23 = vadd.f32 %v15079_v55, %v15135_v25  ;;  %v15269_v53 = vadd.f32 %v15083_v57, %v15135_v25  ;;  %v4640_v37 = vadd.f32 %v12537_v28, %v4479_v54  ;;  %v13196_v30 = vld [vmem:[%s17738_s3 + $0x38] sm:$0xff]   ;;  %v17829_v55 = vld [vmem:[#allocation9_spill] sm:$0xff]  ;;  %v17831_v54 = vld [vmem:[#allocation10_spill] sm:$0xff] }
 0x20b   : > { %17825 = vst [vmem:[#allocation21_spill] sm:$0xff] %v15255_v16  ;;  %v15275_v60 = vadd.f32 %v15085_v8, %v15135_v25  ;;  %v15282_v24 = vadd.f32 %v17829_v55, %v15135_v25  ;;  %v15288_v61 = vadd.f32 %v17831_v54, %v15135_v25  ;;  %v12543_v15 = vadd.f32 %v15101_v59, %v17833_v47  ;;  %v5549_v55 = vld [vmem:[#allocation3] sm:$0xf]  ;;  %v5441_v16 = vld [vmem:[#allocation3 + $0x14] sm:$0x1] }
 0x20c   : > { %v15166_v6 = vpop.f32.mrf.mxu1  ;;  %17826 = vst [vmem:[#allocation22_spill] sm:$0xff] %v15265_v23  ;;  %17827 = vst [vmem:[#allocation23_spill] sm:$0xff] %v15269_v53  ;;  %v4645_v28 = vadd.f32 %v12540_v4, %v15159_v34  ;;  %12643 = vmatpush3.bf16.msra.mxu1 %v13196_v30 }
 0x20d   : > { %17828 = vst [vmem:[#allocation24_spill] sm:$0xff] %v15275_v60  ;;  %17830 = vst [vmem:[#allocation9_spill] sm:$0xff] %v15282_v24  ;;  %v12549_v24 = vadd.f32 %v15113_v38, %v15111_v46 }
 0x20e   : > { %v15188_v58 = vpop.f32.mrf.mxu1  ;;  %17832 = vst [vmem:[#allocation10_spill] sm:$0xff] %v15288_v61 }
 0x20f   : > { %v4656_v53 = vadd.f32 %v12549_v24, %v15173_v22 }
 0x210   : > { %v15212_v56 = vpop.f32.mrf.mxu1 }
 0x212   : > { %v15237_v52 = vpop.f32.mrf.mxu1 }
 0x214   : > { %v15257_v32 = vpop.f32.mrf.mxu1 }
 0x215   : > { %v12896_v62 = vpop.f32.mrf.mxu0 }
 0x216   : > { %v4798_v7 = vadd.f32 %v12896_v62, %v4637_v41  ;;  %v15271_v26 = vpop.f32.mrf.mxu1 }
 0x217   : > { %v4789_v31 = vpop.f32.mrf.mxu0 }
 0x218   : > { %vm4918_vm9 = vcmp.ge.f32.partialorder %v4798_v7, 0.0  ;;  %v4950_v63 = vmul.f32 0.2, %v4798_v7  ;;  %v4790_v14 = vadd.f32 %v4789_v31, %v4629_v44  ;;  %v15284_v57 = vpop.f32.mrf.mxu1  ;;  %v4653_v31 = vadd.f32 %v12546_v33, %v15170_v43  ;;  %v5444_v33 = vld [vmem:[#allocation3 + $0x18] sm:$0xf] }
 0x219   : > { %v12897_v35 = vpop.f32.mrf.mxu0 }
 0x21a   : > { %v4982_v2 = vsel %vm4918_vm9, %v4798_v7, %v4950_v63  ;;  %vm4916_vm10 = vcmp.ge.f32.partialorder %v4790_v14, 0.0  ;;  %v4948_v11 = vmul.f32 0.2, %v4790_v14  ;;  %v4801_v8 = vadd.f32 %v12897_v35, %v4640_v37  ;;  %v15293_v62 = vpop.f32.mrf.mxu1  ;;  %v17834_v37 = vld [vmem:[#allocation12_spill] sm:$0xff]  ;;  %vm15354_vm9 = vmor %vm5108_vm11, %vm5109_vm13 }
 0x21b   : > { %v12367_v3 = vpack.c.bf16 %v4982_v2, %v4982_v2  ;;  %v4792_v27 = vpop.f32.mrf.mxu0  ;;  %v15298_v35 = vadd.f32 %v17834_v37, %v15135_v25  ;;  %vm15404_vm13 = vmand %vm5439_vm12, %vm5433_vm8 }
 0x21c   : > { %v4980_v21 = vsel %vm4916_vm10, %v4790_v14, %v4948_v11  ;;  %v4793_v41 = vadd.f32 %v4792_v27, %v4632_v20  ;;  %vm4919_vm14 = vcmp.ge.f32.partialorder %v4801_v8, 0.0  ;;  %v4951_v2 = vmul.f32 0.2, %v4801_v8  ;;  %v15300_v14 = vpop.f32.mrf.mxu1 }
 0x21d   : > { %v5129_v7 = vshrl.u32 %v12367_v3, 16  ;;  %v12365_v44 = vpack.c.bf16 %v4980_v21, %v4980_v21  ;;  %17835 = vst [vmem:[#allocation11_spill] sm:$0xff] %v15298_v35  ;;  %v5132_v34 = vshll.u32 %v12367_v3, 16  ;;  %v15312_v21 = vadd.f32 %v12543_v15, %v15162_v45  ;;  %v5435_v35 = vld [vmem:[#allocation3 + $0xc] sm:$0xf] }
 0x21e   : > { %v12900_v63 = vpop.f32.mrf.mxu0  ;;  %vm4917_vm15 = vcmp.ge.f32.partialorder %v4793_v41, 0.0  ;;  %v4949_v59 = vmul.f32 0.2, %v4793_v41  ;;  %v4983_v27 = vsel %vm4919_vm14, %v4801_v8, %v4951_v2 }
 0x21f   : > { %v15302_v20 = vrot.slane %v5129_v7, 7  ;;  %v5112_v4 = vshrl.u32 %v12365_v44, 16  ;;  %v4814_v11 = vadd.f32 %v12900_v63, %v4653_v31  ;;  %v5115_v54 = vshll.u32 %v12365_v44, 16  ;;  %v15314_v7 = vpop.f32.mrf.mxu1 }
 0x220   : > { %v4805_v30 = vpop.f32.mrf.mxu0  ;;  %v4981_v47 = vsel %vm4917_vm15, %v4793_v41, %v4949_v59  ;;  %v12368_v63 = vpack.c.bf16 %v4983_v27, %v4983_v27  ;;  %v17838_v41 = vld [vmem:[#allocation14_spill] sm:$0xff] }
 0x221   : > { %v5134_v3 = vor.u32 %v5132_v34, %v15302_v20  ;;  %v15317_v31 = vrot.slane %v5112_v4, 7  ;;  %v4806_v37 = vadd.f32 %v4805_v30, %v4645_v28  ;;  %v12366_v44 = vpack.c.bf16 %v4981_v47, %v4981_v47  ;;  %v15323_v15 = vpop.f32.mrf.mxu1  ;;  %v17839_v34 = vld [vmem:[#allocation17_spill] sm:$0xff]  ;;  %v17840_v4 = vld [vmem:[#allocation18_spill] sm:$0xff] }
 0x222   : > { %v12901_v61 = vpop.f32.mrf.mxu0  ;;  %vm4922_vm1 = vcmp.ge.f32.partialorder %v4814_v11, 0.0  ;;  %v4954_v8 = vmul.f32 0.2, %v4814_v11  ;;  %v12552_v45 = vadd.f32 %v17838_v41, %v15115_v18  ;;  %v12558_v46 = vadd.f32 %v17840_v4, %v17839_v34  ;;  %v17843_v34 = vld [vmem:[#allocation15_spill] sm:$0xff]  ;;  %v17844_v4 = vld [vmem:[#allocation16_spill] sm:$0xff] }
 0x223   : > { %v5445_v2 = vsel %vm15306_vm0, %v5134_v3, %v5444_v33  ;;  %v5550_v59 = vsel %vm15306_vm0, %v5134_v3, %v5549_v55  ;;  %v5117_v28 = vor.u32 %v5115_v54, %v15317_v31  ;;  %v5137_v38 = vshrl.u32 %v12368_v63, 16  ;;  %v15332_v18 = vpop.f32.mrf.mxu1 }
 0x224   : > { %5446 = vst [vmem:[#allocation3 + $0x18] sm:$0xf] %v5445_v2  ;;  %5551 = vst [vmem:[#allocation3] sm:$0xf] %v5550_v59  ;;  %v5140_v30 = vshll.u32 %v12368_v63, 16  ;;  %v5120_v27 = vshrl.u32 %v12366_v44, 16  ;;  %v4808_v47 = vpop.f32.mrf.mxu0  ;;  %v4986_v33 = vsel %vm4922_vm1, %v4814_v11, %v4954_v8  ;;  %v12555_v23 = vadd.f32 %v17844_v4, %v17843_v34 }
 0x225   : > { %v5436_v41 = vsel %vm15306_vm0, %v5117_v28, %v5435_v35  ;;  %vm4920_vm3 = vcmp.ge.f32.partialorder %v4806_v37, 0.0  ;;  %v4952_v55 = vmul.f32 0.2, %v4806_v37  ;;  %v5139_v3 = vrot.slane %v5137_v38, 7  ;;  %v17845_v35 = vld [vmem:[#allocation13_spill] sm:$0xff]  ;;  %v15349_v11 = vpop.f32.mrf.mxu1 }
 0x226   : > { %5437 = vst [vmem:[#allocation3 + $0xc] sm:$0xf] %v5436_v41  ;;  %v5122_v63 = vrot.slane %v5120_v27, 7  ;;  %v5123_v2 = vshll.u32 %v12366_v44, 16  ;;  %v12371_v59 = vpack.c.bf16 %v4986_v33, %v4986_v33  ;;  %v15347_v28 = vadd.f32 %v17845_v35, %v15135_v25  ;;  %v5448_v38 = vld [vmem:[#allocation3 + $0x20] sm:$0x1] }
 0x227   : > { %v5135_v8 = vrot.slane %v15302_v20, 4  ;;  %v5553_v44 = vld [vmem:[#allocation3 + $0x8] sm:$0x1]  ;;  %v4984_v27 = vsel %vm4920_vm3, %v4806_v37, %v4952_v55  ;;  %v5142_v41 = vor.u32 %v5140_v30, %v5139_v3  ;;  %v5144_v33 = vrot.slane %v5139_v3, 4  ;;  %v15358_v35 = vpop.f32.mrf.mxu1 }
 0x228   : > { %17846 = vst [vmem:[#allocation12_spill] sm:$0xff] %v15347_v28  ;;  %v5125_v34 = vor.u32 %v5123_v2, %v5122_v63  ;;  %v5127_v4 = vrot.slane %v5122_v63, 4  ;;  %v5118_v28 = vrot.slane %v15317_v31, 4  ;;  %v5163_v20 = vshrl.u32 %v12371_v59, 16 }
 0x229   : > { %v12904_v25 = vpop.f32.mrf.mxu0  ;;  %v15363_v50 = vadd.f32 %v12552_v45, %v15179_v9  ;;  %v5143_v48 = vsel %vm15354_vm9, %v5135_v8, %v5142_v41  ;;  %v5449_v37 = vsel %vm15339_vm4, %v5144_v33, %v5448_v38  ;;  %v5554_v30 = vsel %vm15339_vm4, %v5144_v33, %v5553_v44  ;;  %v15372_v31 = vpop.f32.mrf.mxu1 }
 0x22a   : > { %v4669_v55 = vadd.f32 %v12558_v46, %v15192_v13  ;;  %5447 = vst.msk [vmem:[#allocation3 + $0x1c] sm:$0xf] %vm3561_vm7, %v5143_v48  ;;  %5450 = vst [vmem:[#allocation3 + $0x20] sm:$0x1] %v5449_v37  ;;  %v5126_v22 = vsel %vm15354_vm9, %v5118_v28, %v5125_v34  ;;  %v5442_v9 = vsel %vm15339_vm4, %v5127_v4, %v5441_v16 }
 0x22b   : > { %v5564_v3 = vld [vmem:[#allocation3] sm:$0x2]  ;;  %v5566_v63 = vld [vmem:[#allocation3 + $0x18] sm:$0x2]  ;;  %5552 = vst.msk [vmem:[#allocation3 + $0x4] sm:$0xf] %vm3561_vm7, %v5143_v48  ;;  %v12369_v24 = vpack.c.bf16 %v4984_v27, %v4984_v27  ;;  %v4817_v45 = vadd.f32 %v12901_v61, %v4656_v53  ;;  %v4809_v8 = vadd.f32 %v4808_v47, %v15312_v21  ;;  %v4821_v38 = vpop.f32.mrf.mxu0  ;;  %v15383_v48 = vadd.f32 %v12555_v23, %v15182_v42  ;;  %v15387_v16 = vpop.f32.mrf.mxu1 }
 0x22c   : > { %5555 = vst [vmem:[#allocation3 + $0x8] sm:$0x1] %v5554_v30  ;;  %v11839_v2 = vrot.slane %v5564_v3, 9  ;;  %v11841_v13 = vrot.slane %v5566_v63, 9  ;;  %v5654_v46 = vld [vmem:[#allocation3] sm:$0x1]  ;;  %v12561_v28 = vadd.f32 %v15147_v17, %v15141_v40  ;;  %v4830_v27 = vadd.f32 %v12904_v25, %v4669_v55 }
 0x22d   : > { %5438 = vst.msk [vmem:[#allocation3 + $0x10] sm:$0xf] %vm3561_vm7, %v5126_v22  ;;  %5443 = vst [vmem:[#allocation3 + $0x14] sm:$0x1] %v5442_v9  ;;  %v5660_v44 = vld [vmem:[#allocation3 + $0x18] sm:$0x1]  ;;  %v12564_v33 = vadd.f32 %v15188_v58, %v15166_v6  ;;  %v12567_v22 = vadd.f32 %v15237_v52, %v15212_v56  ;;  %v12570_v9 = vadd.f32 %v15271_v26, %v15257_v32 }
 0x22e   : > { %v5565_v41 = vld [vmem:[#allocation3 + $0xc] sm:$0x2]  ;;  %v15389_v53 = vrot.slane %v5163_v20, 7  ;;  %v5166_v61 = vshll.u32 %v12371_v59, 16  ;;  %v5655_v21 = vsel %vm15339_vm4, %v11839_v2, %v5654_v46  ;;  %v5661_v42 = vsel %vm15339_vm4, %v11841_v13, %v5660_v44  ;;  %v5458_v47 = vld [vmem:[#allocation3 + $0x30] sm:$0xf]  ;;  %v12905_v20 = vpop.f32.mrf.mxu0 }
 0x22f   : > { %v11840_v23 = vrot.slane %v5565_v41, 9  ;;  %5656 = vst [vmem:[#allocation3] sm:$0x1] %v5655_v21  ;;  %5662 = vst [vmem:[#allocation3 + $0x18] sm:$0x1] %v5661_v42  ;;  %v5146_v59 = vshrl.u32 %v12369_v24, 16  ;;  %v4822_v26 = vadd.f32 %v4821_v38, %v15363_v50 }
 0x230   : > { %v5657_v40 = vld [vmem:[#allocation3 + $0xc] sm:$0x1]  ;;  %v5168_v34 = vor.u32 %v5166_v61, %v15389_v53  ;;  %v5149_v4 = vshll.u32 %v12369_v24, 16  ;;  %vm4923_vm10 = vcmp.ge.f32.partialorder %v4817_v45, 0.0  ;;  %v4955_v58 = vmul.f32 0.2, %v4817_v45 }
 0x231   : > { %v15397_v17 = vpop.f32.mrf.mxu1  ;;  %v5658_v6 = vsel %vm15339_vm4, %v11840_v23, %v5657_v40  ;;  %vm4921_vm11 = vcmp.ge.f32.partialorder %v4809_v8, 0.0  ;;  %v4953_v25 = vmul.f32 0.2, %v4809_v8  ;;  %v15412_v3 = vrot.slane %v5146_v59, 7  ;;  %v5710_v2 = vld [vmem:[#allocation3 + $0x1c] sm:$0x8] }
 0x232   : > { %5659 = vst [vmem:[#allocation3 + $0xc] sm:$0x1] %v5658_v6  ;;  %v5459_v30 = vsel %vm15306_vm0, %v5168_v34, %v5458_v47  ;;  %vm4926_vm14 = vcmp.ge.f32.partialorder %v4830_v27, 0.0  ;;  %v4958_v63 = vmul.f32 0.2, %v4830_v27  ;;  %v4987_v46 = vsel %vm4923_vm10, %v4817_v45, %v4955_v58  ;;  %v4824_v45 = vpop.f32.mrf.mxu0 }
 0x233   : > { %v15410_v55 = vpop.f32.mrf.mxu1  ;;  %v5708_v24 = vld [vmem:[#allocation3 + $0x4] sm:$0x8]  ;;  %5460 = vst [vmem:[#allocation3 + $0x30] sm:$0xf] %v5459_v30  ;;  %v4985_v44 = vsel %vm4921_vm11, %v4809_v8, %v4953_v25  ;;  %v11859_v61 = vrot.slane %v5710_v2, 11  ;;  %v5151_v21 = vor.u32 %v5149_v4, %v15412_v3  ;;  %v12372_v23 = vpack.c.bf16 %v4987_v46, %v4987_v46 }
 0x234   : > { %v5451_v13 = vld [vmem:[#allocation3 + $0x24] sm:$0xf]  ;;  %v11857_v41 = vrot.slane %v5708_v24, 11  ;;  %v5799_v47 = vld [vmem:[#allocation3 + $0x8] sm:$0x1]  ;;  %v12370_v40 = vpack.c.bf16 %v4985_v44, %v4985_v44  ;;  %v4990_v32 = vsel %vm4926_vm14, %v4830_v27, %v4958_v63  ;;  %v4672_v34 = vadd.f32 %v12561_v28, %v15195_v0 }
 0x235   : > { %v15421_v42 = vpop.f32.mrf.mxu1  ;;  %v5805_v56 = vld [vmem:[#allocation3 + $0x20] sm:$0x1]  ;;  %v5709_v52 = vld [vmem:[#allocation3 + $0x10] sm:$0x8]  ;;  %v5452_v6 = vsel %vm15306_vm0, %v5151_v21, %v5451_v13  ;;  %v5802_v27 = vld [vmem:[#allocation3 + $0x14] sm:$0x1]  ;;  %v4677_v0 = vadd.f32 %v12564_v33, %v15203_v29  ;;  %v15436_v28 = vadd.f32 %v12567_v22, %v15206_v49  ;;  %v15440_v25 = vadd.f32 %v15293_v62, %v15284_v57  ;;  %v12908_v22 = vpop.f32.mrf.mxu0 }
 0x236   : > { %v5800_v8 = vsel %vm15404_vm13, %v11857_v41, %v5799_v47  ;;  %v5806_v59 = vsel %vm15404_vm13, %v11859_v61, %v5805_v56  ;;  %v11858_v4 = vrot.slane %v5709_v52, 11  ;;  %5453 = vst [vmem:[#allocation3 + $0x24] sm:$0xf] %v5452_v6  ;;  %v5171_v50 = vshrl.u32 %v12372_v23, 16  ;;  %v5462_v63 = vld [vmem:[#allocation3 + $0x38] sm:$0x1] }
 0x237   : > { %v15432_v58 = vpop.f32.mrf.mxu1  ;;  %5801 = vst [vmem:[#allocation3 + $0x8] sm:$0x1] %v5800_v8  ;;  %5807 = vst [vmem:[#allocation3 + $0x20] sm:$0x1] %v5806_v59  ;;  %v5154_v38 = vshrl.u32 %v12370_v40, 16  ;;  %v12375_v2 = vpack.c.bf16 %v4990_v32, %v4990_v32  ;;  %v4685_v13 = vadd.f32 %v12570_v9, %v15216_v39  ;;  %v5174_v44 = vshll.u32 %v12372_v23, 16 }
 0x238   : > { %v5803_v30 = vsel %vm15404_vm13, %v11858_v4, %v5802_v27  ;;  %v5173_v46 = vrot.slane %v5171_v50, 7  ;;  %v5455_v33 = vld [vmem:[#allocation3 + $0x2c] sm:$0x1]  ;;  %v4833_v49 = vadd.f32 %v12905_v20, %v4672_v34  ;;  %v5169_v57 = vrot.slane %v15389_v53, 4  ;;  %v4837_v4 = vpop.f32.mrf.mxu0  ;;  %v13194_v6 = vld [vmem:[#allocation3 + $0x18] sm:$0xff]  }
 0x239   : > { %v15444_v24 = vpop.f32.mrf.mxu1  ;;  %5804 = vst [vmem:[#allocation3 + $0x14] sm:$0x1] %v5803_v30  ;;  %v5156_v29 = vrot.slane %v5154_v38, 7  ;;  %v13193_v41 = vld [vmem:[#allocation3 + $0xc] sm:$0xff]   ;;  %v5157_v61 = vshll.u32 %v12370_v40, 16  ;;  %v4825_v56 = vadd.f32 %v4824_v45, %v15383_v48  ;;  %vm4924_vm8 = vcmp.ge.f32.partialorder %v4822_v26, 0.0 }
 0x23a   : > { %v5568_v62 = vld [vmem:[#allocation3 + $0x30] sm:$0x2]  ;;  %v4956_v47 = vmul.f32 0.2, %v4822_v26  ;;  %v5176_v32 = vor.u32 %v5174_v44, %v5173_v46  ;;  %v5178_v39 = vrot.slane %v5173_v46, 4  ;;  %7005 = vrot.lane.b32.xlu1 %v13193_v41, %s13616_s26  ;;  %v5152_v20 = vrot.slane %v15412_v3, 4 }
 0x23b   : > { %v15448_v21 = vpop.f32.mrf.mxu1  ;;  %v11843_v52 = vrot.slane %v5568_v62, 9  ;;  %v5666_v9 = vld [vmem:[#allocation3 + $0x30] sm:$0x1]  ;;  %v5159_v23 = vor.u32 %v5157_v61, %v5156_v29  ;;  %v5161_v34 = vrot.slane %v5156_v29, 4  ;;  %v5197_v8 = vshrl.u32 %v12375_v2, 16 }
 0x23c   : > { %v5177_v48 = vsel %vm15354_vm9, %v5169_v57, %v5176_v32  ;;  %v5463_v45 = vsel %vm15339_vm4, %v5178_v39, %v5462_v63  ;;  %v4846_v59 = vadd.f32 %v12908_v22, %v4685_v13  ;;  %v5472_v38 = vld [vmem:[#allocation3 + $0x48] sm:$0xf]  ;;  %v4988_v30 = vsel %vm4924_vm8, %v4822_v26, %v4956_v47  ;;  %v15483_v32 = vpop.f32.mrf.mxu0 }
 0x23d   : > { %v15453_v53 = vpop.f32.mrf.mxu1  ;;  %v5667_v40 = vsel %vm15339_vm4, %v11843_v52, %v5666_v9  ;;  %v5567_v27 = vld [vmem:[#allocation3 + $0x24] sm:$0x2]  ;;  %5461 = vst.msk [vmem:[#allocation3 + $0x34] sm:$0xf] %vm3561_vm7, %v5177_v48  ;;  %5464 = vst [vmem:[#allocation3 + $0x38] sm:$0x1] %v5463_v45  ;;  %v5160_v3 = vsel %vm15354_vm9, %v5152_v20, %v5159_v23  ;;  %v5456_v50 = vsel %vm15339_vm4, %v5161_v34, %v5455_v33 }
 0x23e   : > { %5668 = vst [vmem:[#allocation3 + $0x30] sm:$0x1] %v5667_v40  ;;  %vm4927_vm12 = vcmp.ge.f32.partialorder %v4833_v49, 0.0  ;;  %v11842_v63 = vrot.slane %v5567_v27, 9  ;;  %v5663_v13 = vld [vmem:[#allocation3 + $0x24] sm:$0x1]  ;;  %v12373_v22 = vpack.c.bf16 %v4988_v30, %v4988_v30  ;;  %7007 = vrot.lane.b32.xlu1 %v13194_v6, %s13616_s26  ;;  %v4838_v62 = vadd.f32 %v4837_v4, %v4677_v0  ;;  %v15501_v27 = vpop.f32.mrf.mxu0 }
 0x23f   : > { %v15467_v46 = vpop.f32.mrf.mxu1  ;;  %5454 = vst.msk [vmem:[#allocation3 + $0x28] sm:$0xf] %vm3561_vm7, %v5160_v3  ;;  %5457 = vst [vmem:[#allocation3 + $0x2c] sm:$0x1] %v5456_v50  ;;  %v15470_v44 = vrot.slane %v5197_v8, 7  ;;  %v5200_v29 = vshll.u32 %v12375_v2, 16  ;;  %v12582_v61 = vadd.f32 %v15358_v35, %v15349_v11  ;;  %v12576_v39 = vadd.f32 %v15314_v7, %v15300_v14 }
 0x240   : > { %v13201_v33 = vld [vmem:[%s17738_s3 + $0x70] sm:$0xff]   ;;  %v4959_v41 = vmul.f32 0.2, %v4833_v49  ;;  %vm4925_vm15 = vcmp.ge.f32.partialorder %v4825_v56, 0.0  ;;  %v4957_v26 = vmul.f32 0.2, %v4825_v56  ;;  %v5664_v47 = vsel %vm15339_vm4, %v11842_v63, %v5663_v13 }
 0x241   : > { %v5202_v2 = vor.u32 %v5200_v29, %v15470_v44  ;;  %v5180_v52 = vshrl.u32 %v12373_v22, 16  ;;  %12644 = vmatprep.subr.bf16.mxu1 %v13201_v33  ;;  %5665 = vst [vmem:[#allocation3 + $0x24] sm:$0x1] %v5664_v47  ;;  %v5183_v9 = vshll.u32 %v12373_v22, 16  ;;  %v5465_v20 = vld [vmem:[#allocation3 + $0x3c] sm:$0xf]  ;;  %v4688_v6 = vadd.f32 %v15440_v25, %v15219_v1 }
 0x242   : > { %v4991_v0 = vsel %vm4927_vm12, %v4833_v49, %v4959_v41  ;;  %v4989_v23 = vsel %vm4925_vm15, %v4825_v56, %v4957_v26  ;;  %v15488_v34 = vld [vmem:[#allocation3 + $0x18] sm:$0xe]  ;;  %v8945_v11 = vld [vmem:[#allocation3 + $0x24] sm:$0xe]  ;;  %vm4930_vm1 = vcmp.ge.f32.partialorder %v4846_v59, 0.0  ;;  %vm4928_vm3 = vcmp.ge.f32.partialorder %v4838_v62, 0.0 }
 0x243   : > { %v5473_v35 = vsel %vm15306_vm0, %v5202_v2, %v5472_v38  ;;  %v15492_v8 = vrot.slane %v5180_v52, 7  ;;  %v12376_v40 = vpack.c.bf16 %v4991_v0, %v4991_v0  ;;  %v12374_v48 = vpack.c.bf16 %v4989_v23, %v4989_v23 }
 0x244   : > { %v15476_v57 = vpop.f32.mrf.mxu1  ;;  %5474 = vst [vmem:[#allocation3 + $0x48] sm:$0xf] %v5473_v35  ;;  %v4962_v45 = vmul.f32 0.2, %v4846_v59  ;;  %v4960_v7 = vmul.f32 0.2, %v4838_v62  ;;  %v12579_v49 = vadd.f32 %v15332_v18, %v15323_v15  ;;  %v15504_v3 = vadd.f32 %v12582_v61, %v15232_v19 }
 0x245   : > { %v5712_v56 = vld [vmem:[#allocation3 + $0x34] sm:$0x8]  ;;  %v5185_v4 = vor.u32 %v5183_v9, %v15492_v8  ;;  %v12164_v38 = vrot.slane %v8945_v11, 9  ;;  %v5811_v29 = vld [vmem:[#allocation3 + $0x38] sm:$0x1]  ;;  %v5205_v1 = vshrl.u32 %v12376_v40, 16  ;;  %v12912_v9 = vpop.f32.mrf.mxu0 }
 0x246   : > { %v15494_v14 = vpop.f32.mrf.mxu1  ;;  %v11861_v30 = vrot.slane %v5712_v56, 11  ;;  %v5711_v63 = vld [vmem:[#allocation3 + $0x28] sm:$0x8]  ;;  %v4994_v13 = vsel %vm4930_vm1, %v4846_v59, %v4962_v45  ;;  %v4992_v25 = vsel %vm4928_vm3, %v4838_v62, %v4960_v7  ;;  %v5808_v33 = vld [vmem:[#allocation3 + $0x2c] sm:$0x1]  ;;  %v5188_v26 = vshrl.u32 %v12374_v48, 16 }
 0x247   : > { %v11860_v15 = vrot.slane %v5711_v63, 11  ;;  %v15508_v18 = vld [vmem:[#allocation3 + $0x28] sm:$0xf]  ;;  %v5466_v22 = vsel %vm15306_vm0, %v5185_v4, %v5465_v20  ;;  %v15519_v59 = vadd.f32 %v12576_v39, %v15223_v36  ;;  %v5207_v2 = vrot.slane %v5205_v1, 7  ;;  %v5476_v56 = vld [vmem:[#allocation3 + $0x50] sm:$0x1] }
 0x248   : > { %v5812_v19 = vsel %vm15404_vm13, %v11861_v30, %v5811_v29  ;;  %v9047_v41 = vrot.slane %v15508_v18, 5  ;;  %5467 = vst [vmem:[#allocation3 + $0x3c] sm:$0xf] %v5466_v22  ;;  %v15516_v61 = vpop.f32.mrf.mxu1  ;;  %v5208_v52 = vshll.u32 %v12376_v40, 16  ;;  %v15523_v62 = vpack.c.bf16 %v4994_v13, %v4994_v13  ;;  %v13197_v20 = vld [vmem:[#allocation3 + $0x24] sm:$0xff]   ;;  %v13198_v22 = vld [vmem:[#allocation3 + $0x30] sm:$0xff]  }
 0x249   : > { %5813 = vst [vmem:[#allocation3 + $0x38] sm:$0x1] %v5812_v19  ;;  %v5809_v47 = vsel %vm15404_vm13, %v11860_v15, %v5808_v33  ;;  %v5190_v11 = vrot.slane %v5188_v26, 7  ;;  %v5191_v35 = vshll.u32 %v12374_v48, 16  ;;  %v12377_v36 = vpack.c.bf16 %v4992_v25, %v4992_v25  ;;  %7009 = vrot.lane.b32.xlu1 %v13197_v20, %s13616_s26  ;;  %v5469_v13 = vld [vmem:[#allocation3 + $0x44] sm:$0x1] }
 0x24a   : > { %5810 = vst [vmem:[#allocation3 + $0x2c] sm:$0x1] %v5809_v47  ;;  %v9048_v23 = vsel %vm13955_vm5, %v12164_v38, %v9047_v41  ;;  %v15531_v39 = vadd.f32 %v15387_v16, %v15372_v31  ;;  %v5203_v40 = vrot.slane %v15470_v44, 4  ;;  %v5210_v7 = vor.u32 %v5208_v52, %v5207_v2  ;;  %v15540_v31 = vpop.f32.mrf.mxu1  ;;  %v5486_v26 = vld [vmem:[#allocation3 + $0x60] sm:$0xf]  ;;  %v13206_v18 = vld [vmem:[%s17738_s3 + $0x68] sm:$0xff]  }
 0x24b   : > { %9184 = vst.msk [vmem:[#allocation2 + $0x38] sm:$0xf] %vm3561_vm7, %v9048_v23  ;;  %v5570_v45 = vld [vmem:[#allocation3 + $0x48] sm:$0x2]  ;;  %v15536_v4 = vadd.f32 %v12579_v49, %v15226_v10  ;;  %v5186_v48 = vrot.slane %v15492_v8, 4  ;;  %v5212_v30 = vrot.slane %v5207_v2, 4  ;;  %v5193_v63 = vor.u32 %v5191_v35, %v5190_v11  ;;  %v4853_v49 = vpop.f32.mrf.mxu0 }
 0x24c   : > { %v11845_v38 = vrot.slane %v5570_v45, 9  ;;  %v5672_v16 = vld [vmem:[#allocation3 + $0x48] sm:$0x1]  ;;  %v5211_v44 = vsel %vm15354_vm9, %v5203_v40, %v5210_v7  ;;  %v5195_v29 = vrot.slane %v5190_v11, 4  ;;  %v5231_v15 = vshrl.u32 %v15523_v62, 16  ;;  %v15571_v35 = vpop.f32.mrf.mxu1 }
 0x24d   : > { %v4849_v10 = vadd.f32 %v15483_v32, %v4688_v6  ;;  %5475 = vst.msk [vmem:[#allocation3 + $0x4c] sm:$0xf] %vm3561_vm7, %v5211_v44  ;;  %v5477_v8 = vsel %vm15339_vm4, %v5212_v30, %v5476_v56  ;;  %v5194_v25 = vsel %vm15354_vm9, %v5186_v48, %v5193_v63  ;;  %v5214_v19 = vshrl.u32 %v12377_v36, 16  ;;  %7011 = vrot.lane.b32.xlu1 %v13198_v22, %s13616_s26  ;;  %v5479_v11 = vld [vmem:[#allocation3 + $0x54] sm:$0xf] }
 0x24e   : > { %v5673_v1 = vsel %vm15339_vm4, %v11845_v38, %v5672_v16  ;;  %v15555_v33 = vadd.f32 %v15410_v55, %v15397_v17  ;;  %5478 = vst [vmem:[#allocation3 + $0x50] sm:$0x1] %v5477_v8  ;;  %5468 = vst.msk [vmem:[#allocation3 + $0x40] sm:$0xf] %vm3561_vm7, %v5194_v25  ;;  %v5470_v6 = vsel %vm15339_vm4, %v5195_v29, %v5469_v13  ;;  %v15566_v55 = vrot.slane %v5231_v15, 7  ;;  %v13202_v30 = vld [vmem:[%s17738_s3 + $0x30] sm:$0xff]   ;;  %v15596_v44 = vpop.f32.mrf.mxu1 }
 0x24f   : > { %5674 = vst [vmem:[#allocation3 + $0x48] sm:$0x1] %v5673_v1  ;;  %v5569_v32 = vld [vmem:[#allocation3 + $0x3c] sm:$0x2]  ;;  %v4841_v47 = vadd.f32 %v15501_v27, %v15436_v28  ;;  %v15563_v2 = vadd.f32 %v12912_v9, %v15504_v3  ;;  %v5669_v17 = vld [vmem:[#allocation3 + $0x3c] sm:$0x1]  ;;  %v12594_v28 = vadd.f32 %v15448_v21, %v15444_v24  ;;  %v12913_v9 = vpop.f32.mrf.mxu0  ;;  %v15602_v15 = vadd.f32 %v15432_v58, %v15421_v42 }
 0x250   : > { %v11844_v52 = vrot.slane %v5569_v32, 9  ;;  %5471 = vst [vmem:[#allocation3 + $0x44] sm:$0x1] %v5470_v6  ;;  %v5234_v20 = vshll.u32 %v15523_v62, 16  ;;  %v15569_v23 = vrot.slane %v5214_v19, 7  ;;  %v5217_v27 = vshll.u32 %v12377_v36, 16  ;;  %12645 = vmatpush3.bf16.msra.mxu1 %v13202_v30 }
 0x251   : > { %v8947_v40 = vld [vmem:[#allocation3 + $0x2c] sm:$0x1]  ;;  %vm4931_vm10 = vcmp.ge.f32.partialorder %v4849_v10, 0.0  ;;  %v4963_v3 = vmul.f32 0.2, %v4849_v10  ;;  %v9049_v62 = vrot.slane %v9047_v41, 4  ;;  %v4854_v36 = vadd.f32 %v4853_v49, %v15519_v59  ;;  %v4856_v22 = vpop.f32.mrf.mxu0  ;;  %12646 = vmatprep.subr.bf16.mxu1 %v13206_v18 }
 0x252   : > { %v15575_v45 = vld [vmem:[#allocation3 + $0x1c] sm:$0xf]  ;;  %v15577_v7 = vld [vmem:[#allocation3 + $0x30] sm:$0xe]  ;;  %v9050_v56 = vrot.slane %v8947_v40, 5  ;;  %v5670_v38 = vsel %vm15339_vm4, %v11844_v52, %v5669_v17  ;;  %v5236_v48 = vor.u32 %v5234_v20, %v15566_v55  ;;  %v5219_v24 = vor.u32 %v5217_v27, %v15569_v23  ;;  %v13207_v18 = vld [vmem:[%s17738_s3 + $0x28] sm:$0xff]  }
 0x253   : > { %5671 = vst [vmem:[#allocation3 + $0x3c] sm:$0x1] %v5670_v38  ;;  %v4995_v21 = vsel %vm4931_vm10, %v4849_v10, %v4963_v3  ;;  %vm4929_vm11 = vcmp.ge.f32.partialorder %v4841_v47, 0.0  ;;  %v4961_v16 = vmul.f32 0.2, %v4841_v47  ;;  %vm4934_vm14 = vcmp.ge.f32.partialorder %v15563_v2, 0.0 }
 0x254   : > { %v9051_v41 = vsel %vm13955_vm5, %v9049_v62, %v9050_v56  ;;  %v5487_v63 = vsel %vm15306_vm0, %v5236_v48, %v5486_v26  ;;  %v12380_v13 = vpack.c.bf16 %v4995_v21, %v4995_v21  ;;  %v5714_v10 = vld [vmem:[#allocation3 + $0x4c] sm:$0x8]  ;;  %v5480_v49 = vsel %vm15306_vm0, %v5219_v24, %v5479_v11  ;;  %v5490_v17 = vld [vmem:[#allocation3 + $0x68] sm:$0x1]  ;;  %v15614_v11 = vpop.f32.mrf.mxu1  ;;  %v12916_v62 = vpop.f32.mrf.mxu0  ;;  %12647 = vmatpush3.bf16.msra.mxu1 %v13207_v18 }
 0x255   : > { %9185 = vst.msk [vmem:[#allocation2 + $0x4c] sm:$0xf] %vm3561_vm7, %v9051_v41  ;;  %5488 = vst [vmem:[#allocation3 + $0x60] sm:$0xf] %v5487_v63  ;;  %v11863_v1 = vrot.slane %v5714_v10, 11  ;;  %v4993_v25 = vsel %vm4929_vm11, %v4841_v47, %v4961_v16  ;;  %v4704_v42 = vadd.f32 %v15531_v39, %v15235_v12  ;;  %vm4932_vm8 = vcmp.ge.f32.partialorder %v4854_v36, 0.0 }
 0x256   : > { %v5713_v8 = vld [vmem:[#allocation3 + $0x40] sm:$0x8]  ;;  %5481 = vst [vmem:[#allocation3 + $0x54] sm:$0xf] %v5480_v49  ;;  %v5817_v58 = vld [vmem:[#allocation3 + $0x50] sm:$0x1]  ;;  %v12378_v6 = vpack.c.bf16 %v4993_v25, %v4993_v25  ;;  %v15617_v47 = vadd.f32 %v4856_v22, %v15536_v4  ;;  %v4717_v12 = vadd.f32 %v12594_v28, %v15248_v5  ;;  %v15630_v16 = vpop.f32.mrf.mxu1 }
 0x257   : > { %v11862_v19 = vrot.slane %v5713_v8, 11  ;;  %v5239_v32 = vshrl.u32 %v12380_v13, 16  ;;  %v5818_v26 = vsel %vm15404_vm13, %v11863_v1, %v5817_v58  ;;  %v5814_v52 = vld [vmem:[#allocation3 + $0x44] sm:$0x1]  ;;  %v4966_v20 = vmul.f32 0.2, %v15563_v2 }
 0x258   : > { %5819 = vst [vmem:[#allocation3 + $0x50] sm:$0x1] %v5818_v26  ;;  %v5242_v27 = vshll.u32 %v12380_v13, 16  ;;  %v5222_v3 = vshrl.u32 %v12378_v6, 16  ;;  %v5237_v56 = vrot.slane %v15566_v55, 4  ;;  %v4865_v4 = vadd.f32 %v12913_v9, %v4704_v42  ;;  %v4869_v26 = vpop.f32.mrf.mxu0 }
 0x259   : > { %v5815_v39 = vsel %vm15404_vm13, %v11862_v19, %v5814_v52  ;;  %v5241_v40 = vrot.slane %v5239_v32, 7  ;;  %v4998_v38 = vsel %vm4934_vm14, %v15563_v2, %v4966_v20  ;;  %v4964_v48 = vmul.f32 0.2, %v4854_v36  ;;  %v5483_v13 = vld [vmem:[#allocation3 + $0x5c] sm:$0x1]  ;;  %v13200_v52 = vld [vmem:[#allocation3 + $0x48] sm:$0xff]  }
 0x25a   : > { %5816 = vst [vmem:[#allocation3 + $0x44] sm:$0x1] %v5815_v39  ;;  %v5224_v5 = vrot.slane %v5222_v3, 7  ;;  %v12383_v28 = vpack.c.bf16 %v4998_v38, %v4998_v38  ;;  %v13199_v30 = vld [vmem:[#allocation3 + $0x3c] sm:$0xff]   ;;  %v5225_v63 = vshll.u32 %v12378_v6, 16  ;;  %v15632_v10 = vadd.f32 %v12916_v62, %v4717_v12 }
 0x25b   : > { %v5244_v24 = vor.u32 %v5242_v27, %v5241_v40  ;;  %v5246_v21 = vrot.slane %v5241_v40, 4  ;;  %v4996_v55 = vsel %vm4932_vm8, %v4854_v36, %v4964_v48  ;;  %v4709_v2 = vadd.f32 %v15555_v33, %v15241_v51  ;;  %v15636_v9 = vld [vmem:[#allocation3 + $0x34] sm:$0xf]  ;;  %7013 = vrot.lane.b32.xlu1 %v13199_v30, %s13616_s26  ;;  %v12610_v40 = vpop.f32.mrf.mxu1  ;;  %v5500_v62 = vld [vmem:[#allocation3 + $0x78] sm:$0xf] }
 0x25c   : > { %v5572_v41 = vld [vmem:[#allocation3 + $0x60] sm:$0x2]  ;;  %v5220_v22 = vrot.slane %v15569_v23, 4  ;;  %v5678_v36 = vld [vmem:[#allocation3 + $0x60] sm:$0x1]  ;;  %v5227_v51 = vor.u32 %v5225_v63, %v5224_v5  ;;  %v5229_v33 = vrot.slane %v5224_v5, 4  ;;  %v12381_v6 = vpack.c.bf16 %v4996_v55, %v4996_v55 }
 0x25d   : > { %v11847_v49 = vrot.slane %v5572_v41, 9  ;;  %v5571_v1 = vld [vmem:[#allocation3 + $0x54] sm:$0x2]  ;;  %v5245_v8 = vsel %vm15354_vm9, %v5237_v56, %v5244_v24  ;;  %v5491_v25 = vsel %vm15339_vm4, %v5246_v21, %v5490_v17  ;;  %v5265_v58 = vshrl.u32 %v12383_v28, 16  ;;  %v5675_v19 = vld [vmem:[#allocation3 + $0x54] sm:$0x1]  ;;  %v12611_v55 = vpop.f32.mrf.mxu1 }
 0x25e   : > { %v11846_v42 = vrot.slane %v5571_v1, 9  ;;  %5489 = vst.msk [vmem:[#allocation3 + $0x64] sm:$0xf] %vm3561_vm7, %v5245_v8  ;;  %5492 = vst [vmem:[#allocation3 + $0x68] sm:$0x1] %v5491_v25  ;;  %v5268_v32 = vshll.u32 %v12383_v28, 16  ;;  %v5228_v20 = vsel %vm15354_vm9, %v5220_v22, %v5227_v51  ;;  %v5484_v12 = vsel %vm15339_vm4, %v5229_v33, %v5483_v13 }
 0x25f   : > { %v5679_v23 = vsel %vm15339_vm4, %v11847_v49, %v5678_v36  ;;  %vm4935_vm12 = vcmp.ge.f32.partialorder %v4865_v4, 0.0  ;;  %v15653_v39 = vrot.slane %v5265_v58, 7  ;;  %v12597_v27 = vadd.f32 %v15467_v46, %v15453_v53  ;;  %5482 = vst.msk [vmem:[#allocation3 + $0x58] sm:$0xf] %vm3561_vm7, %v5228_v20  ;;  %5485 = vst [vmem:[#allocation3 + $0x5c] sm:$0x1] %v5484_v12  ;;  %7015 = vrot.lane.b32.xlu1 %v13200_v52, %s13616_s26 }
 0x260   : > { %5680 = vst [vmem:[#allocation3 + $0x60] sm:$0x1] %v5679_v23  ;;  %v5676_v17 = vsel %vm15339_vm4, %v11846_v42, %v5675_v19  ;;  %v15659_v3 = vadd.f32 %v15494_v14, %v15476_v57  ;;  %v5248_v56 = vshrl.u32 %v12381_v6, 16  ;;  %v4967_v38 = vmul.f32 0.2, %v4865_v4 }
 0x261   : > { %5677 = vst [vmem:[#allocation3 + $0x54] sm:$0x1] %v5676_v17  ;;  %v15664_v24 = vld [vmem:[#allocation3 + $0x48] sm:$0xe]  ;;  %v5270_v21 = vor.u32 %v5268_v32, %v15653_v39  ;;  %v5493_v53 = vld [vmem:[#allocation3 + $0x6c] sm:$0xf]  ;;  %v4870_v46 = vadd.f32 %v4869_v26, %v4709_v2  ;;  %v15682_v49 = vadd.f32 %v15540_v31, %v15516_v61  ;;  %v12917_v26 = vpop.f32.mrf.mxu0  ;;  %v15708_v12 = vadd.f32 %v12611_v55, %v12610_v40 }
 0x262   : > { %17852 = vst [vmem:[#allocation14_spill] sm:$0xff] %v15664_v24  ;;  %vm4933_vm15 = vcmp.ge.f32.partialorder %v15617_v47, 0.0  ;;  %v15668_v57 = vld [vmem:[#allocation3 + $0x3c] sm:$0xe]  ;;  %v15670_v14 = vrot.slane %v5248_v56, 7  ;;  %v5251_v5 = vshll.u32 %v12381_v6, 16  ;;  %v4999_v28 = vsel %vm4935_vm12, %v4865_v4, %v4967_v38  ;;  %v12613_v6 = vpop.f32.mrf.mxu1 }
 0x263   : > { %v4965_v30 = vmul.f32 0.2, %v15617_v47  ;;  %v15674_v18 = vld [vmem:[#allocation3 + $0x40] sm:$0xf]  ;;  %v5501_v41 = vsel %vm15306_vm0, %v5270_v21, %v5500_v62  ;;  %v12384_v63 = vpack.c.bf16 %v4999_v28, %v4999_v28  ;;  %vm4938_vm1 = vcmp.ge.f32.partialorder %v15632_v10, 0.0  ;;  %v17854_v55 = vld [vmem:[#allocation19_spill] sm:$0xff] }
 0x264   : > { %v4970_v13 = vmul.f32 0.2, %v15632_v10  ;;  %5502 = vst [vmem:[#allocation3 + $0x78] sm:$0xf] %v5501_v41  ;;  %v15686_v4 = vadd.f32 %v15596_v44, %v15571_v35  ;;  %v5253_v22 = vor.u32 %v5251_v5, %v15670_v14  ;;  %v17747_v61 = vrot.slane %v15674_v18, 5  ;;  %v17853_v21 = vld [vmem:[#allocation20_spill] sm:$0xff] }
 0x265   : > { %v5716_v2 = vld [vmem:[#allocation3 + $0x64] sm:$0x8]  ;;  %v4997_v1 = vsel %vm4933_vm15, %v15617_v47, %v4965_v30  ;;  %v5273_v42 = vshrl.u32 %v12384_v63, 16  ;;  %v5823_v31 = vld [vmem:[#allocation3 + $0x68] sm:$0x1]  ;;  %v5276_v23 = vshll.u32 %v12384_v63, 16 }
 0x266   : > { %v11865_v36 = vrot.slane %v5716_v2, 11  ;;  %v5494_v51 = vsel %vm15306_vm0, %v5253_v22, %v5493_v53  ;;  %v12382_v35 = vpack.c.bf16 %v4997_v1, %v4997_v1  ;;  %v5002_v44 = vsel %vm4938_vm1, %v15632_v10, %v4970_v13  ;;  %v15700_v33 = vld [vmem:[#allocation3 + $0x4c] sm:$0xf]  ;;  %v5715_v58 = vld [vmem:[#allocation3 + $0x58] sm:$0x8]  ;;  %v4872_v2 = vpop.f32.mrf.mxu0  ;;  %v12614_v22 = vpop.f32.mrf.mxu1 }
 0x267   : > { %5495 = vst [vmem:[#allocation3 + $0x6c] sm:$0xf] %v5494_v51  ;;  %v5504_v19 = vld [vmem:[#allocation3 + $0x80] sm:$0x1]  ;;  %v12387_v32 = vpack.c.bf16 %v5002_v44, %v5002_v44  ;;  %vm4936_vm3 = vcmp.ge.f32.partialorder %v4870_v46, 0.0  ;;  %v11864_v52 = vrot.slane %v5715_v58, 11  ;;  %v15706_v10 = vadd.f32 %v15630_v16, %v15614_v11 }
 0x268   : > { %v5824_v47 = vsel %vm15404_vm13, %v11865_v36, %v5823_v31  ;;  %v5820_v17 = vld [vmem:[#allocation3 + $0x5c] sm:$0x1]  ;;  %v5275_v20 = vrot.slane %v5273_v42, 7  ;;  %v5256_v62 = vshrl.u32 %v12382_v35, 16  ;;  %v4968_v38 = vmul.f32 0.2, %v4870_v46 }
 0x269   : > { %5825 = vst [vmem:[#allocation3 + $0x68] sm:$0x1] %v5824_v47  ;;  %v5299_v56 = vshrl.u32 %v12387_v32, 16  ;;  %v4720_v53 = vadd.f32 %v12597_v27, %v17853_v21  ;;  %v13203_v5 = vld [vmem:[#allocation3 + $0x54] sm:$0xff]   ;;  %v5821_v28 = vsel %vm15404_vm13, %v11864_v52, %v5820_v17  ;;  %v5271_v30 = vrot.slane %v15653_v39, 4  ;;  %v13204_v51 = vld [vmem:[#allocation3 + $0x60] sm:$0xff]  }
 0x26a   : > { %v5278_v41 = vor.u32 %v5276_v23, %v5275_v20  ;;  %v5280_v63 = vrot.slane %v5275_v20, 4  ;;  %v15717_v11 = vrot.slane %v17747_v61, 4  ;;  %5822 = vst [vmem:[#allocation3 + $0x5c] sm:$0x1] %v5821_v28  ;;  %v5000_v40 = vsel %vm4936_vm3, %v4870_v46, %v4968_v38  ;;  %7017 = vrot.lane.b32.xlu1 %v13203_v5, %s13616_s26  ;;  %v5497_v42 = vld [vmem:[#allocation3 + $0x74] sm:$0x1] }
 0x26b   : > { %v5574_v16 = vld [vmem:[#allocation3 + $0x78] sm:$0x2]  ;;  %v4712_v27 = vadd.f32 %v15602_v15, %v17854_v55  ;;  %v4881_v31 = vadd.f32 %v12917_v26, %v4720_v53  ;;  %v5684_v44 = vld [vmem:[#allocation3 + $0x78] sm:$0x1]  ;;  %v5258_v46 = vrot.slane %v5256_v62, 7  ;;  %v5259_v15 = vshll.u32 %v12382_v35, 16 }
 0x26c   : > { %v11849_v39 = vrot.slane %v5574_v16, 9  ;;  %v5279_v1 = vsel %vm15354_vm9, %v5271_v30, %v5278_v41  ;;  %v5505_v36 = vsel %vm15339_vm4, %v5280_v63, %v5504_v19  ;;  %v15728_v47 = vrot.slane %v5299_v56, 7  ;;  %v5514_v58 = vld [vmem:[#allocation3 + $0x90] sm:$0xf]  ;;  %v13210_v52 = vld [vmem:[%s17738_s3 + $0x60] sm:$0xff]   ;;  %v15745_v63 = vpop.f32.mrf.mxu1 }
 0x26d   : > { %5503 = vst.msk [vmem:[#allocation3 + $0x7c] sm:$0xf] %vm3561_vm7, %v5279_v1  ;;  %5506 = vst [vmem:[#allocation3 + $0x80] sm:$0x1] %v5505_v36  ;;  %v12385_v23 = vpack.c.bf16 %v5000_v40, %v5000_v40  ;;  %v5302_v26 = vshll.u32 %v12387_v32, 16  ;;  %v15735_v38 = vadd.f32 %v4872_v2, %v4712_v27  ;;  %v15737_v21 = vadd.f32 %v12614_v22, %v12613_v6  ;;  %v13211_v28 = vld [vmem:[%s17738_s3 + $0x20] sm:$0xff]  }
 0x26e   : > { %v5685_v19 = vsel %vm15339_vm4, %v11849_v39, %v5684_v44  ;;  %v5573_v17 = vld [vmem:[#allocation3 + $0x6c] sm:$0x2]  ;;  %v5853_v20 = vld [vmem:[#allocation3] sm:$0xf]  ;;  %v5254_v35 = vrot.slane %v15670_v14, 4  ;;  %v5261_v56 = vor.u32 %v5259_v15, %v5258_v46  ;;  %v5263_v53 = vrot.slane %v5258_v46, 4  ;;  %7019 = vrot.lane.b32.xlu1 %v13204_v51, %s13616_s26  ;;  %12648 = vmatprep.subr.bf16.mxu1 %v13210_v52  ;;  %v12920_v44 = vpop.f32.mrf.mxu0 }
 0x26f   : > { %5686 = vst [vmem:[#allocation3 + $0x78] sm:$0x1] %v5685_v19  ;;  %v11848_v62 = vrot.slane %v5573_v17, 9  ;;  %v5854_v5 = vld [vmem:[#allocation3 + $0x4] sm:$0xf]  ;;  %v5304_v30 = vor.u32 %v5302_v26, %v15728_v47  ;;  %v5282_v41 = vshrl.u32 %v12385_v23, 16  ;;  %12649 = vmatpush3.bf16.msra.mxu1 %v13211_v28 }
 0x270   : > { %v5681_v32 = vld [vmem:[#allocation3 + $0x6c] sm:$0x1]  ;;  %v5285_v6 = vshll.u32 %v12385_v23, 16  ;;  %vm4939_vm10 = vcmp.ge.f32.partialorder %v4881_v31, 0.0  ;;  %v15747_v14 = vld [vmem:[#allocation3 + $0x60] sm:$0xe]  ;;  %v5262_v55 = vsel %vm15354_vm9, %v5254_v35, %v5261_v56  ;;  %v5498_v27 = vsel %vm15339_vm4, %v5263_v53, %v5497_v42 }
 0x271   : > { %17855 = vst [vmem:[#allocation17_spill] sm:$0xff] %v15747_v14  ;;  %v15749_v16 = vld [vmem:[#allocation3 + $0x54] sm:$0xe]  ;;  %v5682_v40 = vsel %vm15339_vm4, %v11848_v62, %v5681_v32  ;;  %v4971_v2 = vmul.f32 0.2, %v4881_v31  ;;  %v5515_v39 = vsel %vm15306_vm0, %v5304_v30, %v5514_v58  ;;  %v15762_v1 = vrot.slane %v5282_v41, 7 }
 0x272   : > { %17856 = vst [vmem:[#allocation18_spill] sm:$0xff] %v15749_v16  ;;  %v15757_v22 = vld [vmem:[#allocation3 + $0x44] sm:$0x1]  ;;  %5683 = vst [vmem:[#allocation3 + $0x6c] sm:$0x1] %v5682_v40  ;;  %v5902_v36 = vshrl.u32 %v5853_v20, 16 }
 0x273   : > { %5496 = vst.msk [vmem:[#allocation3 + $0x70] sm:$0xf] %vm3561_vm7, %v5262_v55  ;;  %5499 = vst [vmem:[#allocation3 + $0x74] sm:$0x1] %v5498_v27  ;;  %v5905_v51 = vshll.u32 %v5853_v20, 16  ;;  %v5003_v42 = vsel %vm4939_vm10, %v4881_v31, %v4971_v2  ;;  %v5911_v15 = vshll.u32 %v5854_v5, 16  ;;  %v5287_v58 = vor.u32 %v5285_v6, %v15762_v1  ;;  %v12617_v20 = vpop.f32.mrf.mxu1 }
 0x274   : > { %5516 = vst [vmem:[#allocation3 + $0x90] sm:$0xf] %v5515_v39  ;;  %v5507_v46 = vld [vmem:[#allocation3 + $0x84] sm:$0xf]  ;;  %v5915_v23 = vshrl.u32 %v5854_v5, 16  ;;  %v17857_v52 = vld [vmem:[#allocation23_spill] sm:$0xff]  ;;  %v12388_v62 = vpack.c.bf16 %v5003_v42, %v5003_v42 }
 0x275   : > { %v4733_v19 = vadd.f32 %v15686_v4, %v17857_v52  ;;  %v5718_v35 = vld [vmem:[#allocation3 + $0x7c] sm:$0x8]  ;;  %v5885_v56 = vld [vmem:[#allocation3 + $0x8] sm:$0x1]  ;;  %v15771_v28 = vld [vmem:[#allocation3 + $0x64] sm:$0xf]  ;;  %v5508_v41 = vsel %vm15306_vm0, %v5287_v58, %v5507_v46 }
 0x276   : > { %17858 = vst [vmem:[#allocation15_spill] sm:$0xff] %v15771_v28  ;;  %v11867_v31 = vrot.slane %v5718_v35, 11  ;;  %v5904_v32 = vrot.slane %v5902_v36, 4  ;;  %v15775_v30 = vld [vmem:[#allocation3 + $0x58] sm:$0xf]  ;;  %v5307_v40 = vshrl.u32 %v12388_v62, 16 }
 0x277   : > { %v15773_v5 = vadd.f32 %v12920_v44, %v4733_v19  ;;  %17859 = vst [vmem:[#allocation16_spill] sm:$0xff] %v15775_v30  ;;  %v5829_v4 = vld [vmem:[#allocation3 + $0x80] sm:$0x1]  ;;  %v5907_v55 = vrot.slane %v5905_v51, 5  ;;  %v17860_v6 = vld [vmem:[#allocation21_spill] sm:$0xff]  ;;  %v5310_v39 = vshll.u32 %v12388_v62, 16  ;;  %v4885_v44 = vpop.f32.mrf.mxu0  ;;  %v12619_v51 = vpop.f32.mrf.mxu1 }
 0x278   : > { %v4725_v27 = vadd.f32 %v15659_v3, %v17860_v6  ;;  %v5830_v2 = vsel %vm15404_vm13, %v11867_v31, %v5829_v4  ;;  %5509 = vst [vmem:[#allocation3 + $0x84] sm:$0xf] %v5508_v41  ;;  %v5913_v42 = vrot.slane %v5911_v15, 5  ;;  %v5917_v36 = vrot.slane %v5915_v23, 4  ;;  %v5518_v19 = vld [vmem:[#allocation3 + $0x98] sm:$0x1] }
 0x279   : > { %5831 = vst [vmem:[#allocation3 + $0x80] sm:$0x1] %v5830_v2  ;;  %v5309_v52 = vrot.slane %v5307_v40, 7  ;;  %v5908_v35 = vor.u32 %v5907_v55, %v5904_v32  ;;  %vm4937_vm11 = vcmp.ge.f32.partialorder %v15735_v38, 0.0  ;;  %v4969_v46 = vmul.f32 0.2, %v15735_v38 }
 0x27a   : > { %v17745_v3 = vrot.slane %v15775_v30, 5  ;;  %v5717_v6 = vld [vmem:[#allocation3 + $0x70] sm:$0x8]  ;;  %v5918_v31 = vor.u32 %v5917_v36, %v5913_v42  ;;  %v5921_v4 = vshll.u32 %v5885_v56, 16  ;;  %v5826_v15 = vld [vmem:[#allocation3 + $0x74] sm:$0x1]  ;;  %v15788_v2 = vadd.f32 %v4885_v44, %v4725_v27 }
 0x27b   : > { %v11866_v62 = vrot.slane %v5717_v6, 11  ;;  %v5305_v23 = vrot.slane %v15728_v47, 4  ;;  %v5576_v41 = vld [vmem:[#allocation3 + $0x90] sm:$0x2]  ;;  %v5312_v40 = vor.u32 %v5310_v39, %v5309_v52  ;;  %v5690_v55 = vld [vmem:[#allocation3 + $0x90] sm:$0x1]  ;;  %v5001_v58 = vsel %vm4937_vm11, %v15735_v38, %v4969_v46  ;;  %v12620_v39 = vpop.f32.mrf.mxu1 }
 0x27c   : > { %v11851_v32 = vrot.slane %v5576_v41, 9  ;;  %v5314_v17 = vrot.slane %v5309_v52, 4  ;;  %v5909_v26 = vrot.slane %v5908_v35, 4  ;;  %v5919_v6 = vrot.slane %v5918_v31, 4  ;;  %v15798_v27 = vld [vmem:[#allocation3 + $0x78] sm:$0xe]  ;;  %v12921_v31 = vpop.f32.mrf.mxu0 }
 0x27d   : > { %v5827_v36 = vsel %vm15404_vm13, %v11866_v62, %v5826_v15  ;;  %v5313_v56 = vsel %vm15354_vm9, %v5305_v23, %v5312_v40  ;;  %v12618_v47 = vadd.f32 %v12617_v20, %v15745_v63  ;;  %17861 = vst [vmem:[#allocation13_spill] sm:$0xff] %v15798_v27  ;;  %v5923_v46 = vrot.slane %v5921_v4, 5  ;;  %v5855_v62 = vld [vmem:[#allocation3 + $0xc] sm:$0xf]  ;;  %v5856_v23 = vld [vmem:[#allocation3 + $0x10] sm:$0xf] }
 0x27e   : > { %5828 = vst [vmem:[#allocation3 + $0x74] sm:$0x1] %v5827_v36  ;;  %v5691_v44 = vsel %vm15339_vm4, %v11851_v32, %v5690_v55  ;;  %5517 = vst.msk [vmem:[#allocation3 + $0x94] sm:$0xf] %vm3561_vm7, %v5313_v56  ;;  %v5519_v38 = vsel %vm15339_vm4, %v5314_v17, %v5518_v19  ;;  %v5914_v35 = vsel %vm13746_vm2, %v5909_v26, %v5913_v42  ;;  %v15809_v63 = vrot.slane %v17745_v3, 4  ;;  %v17864_v41 = vld [vmem:[#allocation24_spill] sm:$0xff] }
 0x27f   : > { %5692 = vst [vmem:[#allocation3 + $0x90] sm:$0x1] %v5691_v44  ;;  %v5575_v20 = vld [vmem:[#allocation3 + $0x84] sm:$0x2]  ;;  %5520 = vst [vmem:[#allocation3 + $0x98] sm:$0x1] %v5519_v38  ;;  %v12386_v15 = vpack.c.bf16 %v5001_v58, %v5001_v58  ;;  %v4736_v40 = vadd.f32 %v15706_v10, %v17864_v41  ;;  %v5924_v26 = vsel %vm13746_vm2, %v5919_v6, %v5923_v46  ;;  %v4888_v46 = vpop.f32.mrf.mxu0 }
 0x280   : > { %17863 = vst [vmem:[#allocation8_spill] sm:$0xff] %v15809_v63  ;;  %v17865_v32 = vld [vmem:[#allocation22_spill] sm:$0xff]  ;;  %v11850_v19 = vrot.slane %v5575_v20, 9  ;;  %vm4942_vm14 = vcmp.ge.f32.partialorder %v15773_v5, 0.0  ;;  %v15818_v42 = vadd.f32 %v12620_v39, %v12619_v51  ;;  %v13214_v4 = vld [vmem:[%s17738_s3 + $0x58] sm:$0xff]   ;;  %v11891_v36 = vcombine.low %v5914_v35, %v5924_v26 }
 0x281   : > { %v4728_v17 = vadd.f32 %v15682_v49, %v17865_v32  ;;  %v5687_v55 = vld [vmem:[#allocation3 + $0x84] sm:$0x1]  ;;  %v5290_v10 = vshrl.u32 %v12386_v15, 16  ;;  %v4974_v56 = vmul.f32 0.2, %v15773_v5  ;;  %v5926_v44 = vshrl.u32 %v5855_v62, 16  ;;  %12650 = vmatprep.subr.bf16.mxu1 %v13214_v4 }
 0x282   : > { %v5688_v49 = vsel %vm15339_vm4, %v11850_v19, %v5687_v55  ;;  %v5929_v6 = vshll.u32 %v5855_v62, 16  ;;  %v5935_v38 = vshll.u32 %v5856_v23, 16  ;;  %v13215_v51 = vld [vmem:[%s17738_s3 + $0x18] sm:$0xff]   ;;  %6413 = vrot.lane.b32.xlu0 %v11891_v36, %s13616_s26  ;;  %v5293_v35 = vshll.u32 %v12386_v15, 16  ;;  %v5886_v41 = vld [vmem:[#allocation3 + $0x14] sm:$0x1] }
 0x283   : > { %5689 = vst [vmem:[#allocation3 + $0x84] sm:$0x1] %v5688_v49  ;;  %v5292_v39 = vrot.slane %v5290_v10, 7  ;;  %v5006_v20 = vsel %vm4942_vm14, %v15773_v5, %v4974_v56  ;;  %v4897_v32 = vadd.f32 %v12921_v31, %v4736_v40  ;;  %v15834_v19 = vld [vmem:[#allocation3 + $0x6c] sm:$0xe]  ;;  %v5928_v26 = vrot.slane %v5926_v44, 4  ;;  %12651 = vmatpush3.bf16.msra.mxu1 %v13215_v51 }
 0x284   : > { %17866 = vst [vmem:[#allocation20_spill] sm:$0xff] %v15834_v19  ;;  %v12391_v62 = vpack.c.bf16 %v5006_v20, %v5006_v20  ;;  %v5931_v4 = vrot.slane %v5929_v6, 5  ;;  %v5939_v55 = vshrl.u32 %v5856_v23, 16  ;;  %v5288_v58 = vrot.slane %v15762_v1, 4  ;;  %v5511_v36 = vld [vmem:[#allocation3 + $0x8c] sm:$0x1] }
 0x285   : > { %v5720_v49 = vld [vmem:[#allocation3 + $0x94] sm:$0x8]  ;;  %v5295_v3 = vor.u32 %v5293_v35, %v5292_v39  ;;  %v15837_v10 = vadd.f32 %v4888_v46, %v4728_v17  ;;  %v17867_v15 = vld [vmem:[#allocation11_spill] sm:$0xff]  ;;  %v5297_v5 = vrot.slane %v5292_v39, 4  ;;  %v5937_v56 = vrot.slane %v5935_v38, 5 }
 0x286   : > { %v4749_v8 = vadd.f32 %v12618_v47, %v17867_v15  ;;  %v11869_v13 = vrot.slane %v5720_v49, 11  ;;  %v5945_v31 = vshll.u32 %v5886_v41, 16  ;;  %v5835_v20 = vld [vmem:[#allocation3 + $0x98] sm:$0x1]  ;;  %v5333_v44 = vshrl.u32 %v12391_v62, 16  ;;  %v12924_v15 = vpop.f32.mrf.mxu0 }
 0x287   : > { %v5296_v23 = vsel %vm15354_vm9, %v5288_v58, %v5295_v3  ;;  %v5932_v6 = vor.u32 %v5931_v4, %v5928_v26  ;;  %v5857_v1 = vld [vmem:[#allocation3 + $0x18] sm:$0xf]  ;;  %v15843_v51 = vld [vmem:[#allocation3 + $0x5c] sm:$0x1]  ;;  %v5512_v47 = vsel %vm15339_vm4, %v5297_v5, %v5511_v36  ;;  %v5336_v38 = vshll.u32 %v12391_v62, 16 }
 0x288   : > { %17868 = vst [vmem:[#allocation19_spill] sm:$0xff] %v15843_v51  ;;  %v5836_v17 = vsel %vm15404_vm13, %v11869_v13, %v5835_v20  ;;  %5510 = vst.msk [vmem:[#allocation3 + $0x88] sm:$0xf] %vm3561_vm7, %v5296_v23  ;;  %v5528_v46 = vld [vmem:[#allocation3 + $0xa8] sm:$0xf]  ;;  %v5941_v39 = vrot.slane %v5939_v55, 4  ;;  %v15863_v40 = vadd.f32 %v12924_v15, %v4749_v8 }
 0x289   : > { %v5858_v35 = vld [vmem:[#allocation3 + $0x1c] sm:$0xf]  ;;  %5837 = vst [vmem:[#allocation3 + $0x98] sm:$0x1] %v5836_v17  ;;  %5513 = vst [vmem:[#allocation3 + $0x8c] sm:$0x1] %v5512_v47 }
 0x28a   : > { %v15850_v3 = vrot.slane %v5333_v44, 7  ;;  %v5933_v58 = vrot.slane %v5932_v6, 4  ;;  %vm4940_vm8 = vcmp.ge.f32.partialorder %v15788_v2, 0.0  ;;  %v4972_v41 = vmul.f32 0.2, %v15788_v2 }
 0x28b   : > { %v5942_v26 = vor.u32 %v5941_v39, %v5937_v56  ;;  %v5947_v13 = vrot.slane %v5945_v31, 5  ;;  %vm4943_vm12 = vcmp.ge.f32.partialorder %v4897_v32, 0.0  ;;  %v4975_v4 = vmul.f32 0.2, %v4897_v32  ;;  %v15868_v15 = vld [vmem:[#allocation3 + $0x7c] sm:$0xf] }
 0x28c   : > { %v5338_v62 = vor.u32 %v5336_v38, %v15850_v3  ;;  %v5004_v55 = vsel %vm4940_vm8, %v15788_v2, %v4972_v41  ;;  %v5950_v36 = vshrl.u32 %v5857_v1, 16  ;;  %v5938_v5 = vsel %vm13746_vm2, %v5933_v58, %v5937_v56  ;;  %v5887_v2 = vld [vmem:[#allocation3 + $0x20] sm:$0x1]  ;;  %17869 = vst [vmem:[#allocation23_spill] sm:$0xff] %v15868_v15  ;;  %v7666_v27 = vld [vmem:[#allocation3 + $0x48] sm:$0xe] }
 0x28d   : > { %v5943_v20 = vrot.slane %v5942_v26, 4  ;;  %v12389_v23 = vpack.c.bf16 %v5004_v55, %v5004_v55  ;;  %v5007_v44 = vsel %vm4943_vm12, %v4897_v32, %v4975_v4  ;;  %v5953_v17 = vshll.u32 %v5857_v1, 16  ;;  %v5521_v26 = vld [vmem:[#allocation3 + $0x9c] sm:$0xf]  ;;  %v6637_v51 = vld [vmem:[#allocation3] sm:$0xe] }
 0x28e   : > { %v5529_v6 = vsel %vm15306_vm0, %v5338_v62, %v5528_v46  ;;  %v12392_v31 = vpack.c.bf16 %v5007_v44, %v5007_v44  ;;  %v5959_v47 = vshll.u32 %v5858_v35, 16  ;;  %v5963_v41 = vshrl.u32 %v5858_v35, 16  ;;  %v5532_v44 = vld [vmem:[#allocation3 + $0xb0] sm:$0x1] }
 0x28f   : > { %5530 = vst [vmem:[#allocation3 + $0xa8] sm:$0xf] %v5529_v6  ;;  %v5948_v38 = vsel %vm13746_vm2, %v5943_v20, %v5947_v13  ;;  %v5316_v39 = vshrl.u32 %v12389_v23, 16  ;;  %v5719_v49 = vld [vmem:[#allocation3 + $0x88] sm:$0x8]  ;;  %v5319_v58 = vshll.u32 %v12389_v23, 16 }
 0x290   : > { %v11892_v56 = vcombine.low %v5938_v5, %v5948_v38  ;;  %v5341_v32 = vshrl.u32 %v12392_v31, 16  ;;  %v5952_v4 = vrot.slane %v5950_v36, 4  ;;  %v11868_v55 = vrot.slane %v5719_v49, 11  ;;  %v5832_v46 = vld [vmem:[#allocation3 + $0x8c] sm:$0x1]  ;;  %v4901_v38 = vpop.f32.mrf.mxu0 }
 0x291   : > { %v15865_v62 = vrot.slane %v5316_v39, 7  ;;  %v5344_v1 = vshll.u32 %v12392_v31, 16  ;;  %v5955_v6 = vrot.slane %v5953_v17, 5  ;;  %v5961_v20 = vrot.slane %v5959_v47, 5  ;;  %v17870_v23 = vld [vmem:[#allocation9_spill] sm:$0xff] }
 0x292   : > { %6415 = vrot.lane.b32.xlu0 %v11892_v56, %s13616_s26  ;;  %v5343_v13 = vrot.slane %v5341_v32, 7  ;;  %v5965_v35 = vrot.slane %v5963_v41, 4  ;;  %v5969_v8 = vshll.u32 %v5887_v2, 16  ;;  %v5833_v5 = vsel %vm15404_vm13, %v11868_v55, %v5832_v46  ;;  %v15876_v17 = vld [vmem:[#allocation3 + $0x70] sm:$0xf] }
 0x293   : > { %v5339_v36 = vrot.slane %v15850_v3, 4  ;;  %v5321_v49 = vor.u32 %v5319_v58, %v15865_v62  ;;  %v4741_v31 = vadd.f32 %v15708_v12, %v17870_v23  ;;  %17871 = vst [vmem:[#allocation21_spill] sm:$0xff] %v15876_v17  ;;  %5834 = vst [vmem:[#allocation3 + $0x8c] sm:$0x1] %v5833_v5  ;;  %v5956_v41 = vor.u32 %v5955_v6, %v5952_v4  ;;  %v5859_v58 = vld [vmem:[#allocation3 + $0x24] sm:$0xf] }
 0x294   : > { %v5346_v39 = vor.u32 %v5344_v1, %v5343_v13  ;;  %v5348_v47 = vrot.slane %v5343_v13, 4  ;;  %v5966_v2 = vor.u32 %v5965_v35, %v5961_v20  ;;  %v5971_v32 = vrot.slane %v5969_v8, 5  ;;  %v15898_v23 = vld [vmem:[#allocation3 + $0x84] sm:$0xe] }
 0x295   : > { %v5522_v56 = vsel %vm15306_vm0, %v5321_v49, %v5521_v26  ;;  %vm4941_vm15 = vcmp.ge.f32.partialorder %v15837_v10, 0.0  ;;  %v4973_v3 = vmul.f32 0.2, %v15837_v10  ;;  %v15887_v1 = vadd.f32 %v4901_v38, %v4741_v31  ;;  %v15896_v49 = vld [vmem:[#allocation3 + $0x90] sm:$0xe]  ;;  %17873 = vst [vmem:[#allocation24_spill] sm:$0xff] %v15898_v23 }
 0x296   : > { %v5578_v12 = vld [vmem:[#allocation3 + $0xa8] sm:$0x2]  ;;  %5523 = vst [vmem:[#allocation3 + $0x9c] sm:$0xf] %v5522_v56  ;;  %v5347_v46 = vsel %vm15354_vm9, %v5339_v36, %v5346_v39  ;;  %v5533_v4 = vsel %vm15339_vm4, %v5348_v47, %v5532_v44  ;;  %v17746_v26 = vrot.slane %v15876_v17, 5  ;;  %v5957_v13 = vrot.slane %v5956_v41, 4 }
 0x297   : > { %v11853_v6 = vrot.slane %v5578_v12, 9  ;;  %5531 = vst.msk [vmem:[#allocation3 + $0xac] sm:$0xf] %vm3561_vm7, %v5347_v46  ;;  %5534 = vst [vmem:[#allocation3 + $0xb0] sm:$0x1] %v5533_v4  ;;  %v5967_v35 = vrot.slane %v5966_v2, 4  ;;  %v5005_v5 = vsel %vm4941_vm15, %v15837_v10, %v4973_v3  ;;  %v12925_v46 = vpop.f32.mrf.mxu0 }
 0x298   : > { %v5696_v8 = vld [vmem:[#allocation3 + $0xa8] sm:$0x1]  ;;  %vm4946_vm1 = vcmp.ge.f32.partialorder %v15863_v40, 0.0  ;;  %v4978_v36 = vmul.f32 0.2, %v15863_v40  ;;  %v5974_v44 = vshrl.u32 %v5859_v58, 16  ;;  %v5962_v38 = vsel %vm13746_vm2, %v5957_v13, %v5961_v20 }
 0x299   : > { %17872 = vst [vmem:[#allocation7_spill] sm:$0xff] %v15896_v49  ;;  %v5697_v31 = vsel %vm15339_vm4, %v11853_v6, %v5696_v8  ;;  %v5972_v39 = vsel %vm13746_vm2, %v5967_v35, %v5971_v32  ;;  %v12390_v47 = vpack.c.bf16 %v5005_v5, %v5005_v5  ;;  %v5860_v10 = vld [vmem:[#allocation3 + $0x28] sm:$0xf]  ;;  %v15906_v41 = vld [vmem:[#allocation3 + $0x74] sm:$0x1]  ;;  %v5977_v12 = vshll.u32 %v5859_v58, 16 }
 0x29a   : > { %17874 = vst [vmem:[#allocation22_spill] sm:$0xff] %v15906_v41  ;;  %5698 = vst [vmem:[#allocation3 + $0xa8] sm:$0x1] %v5697_v31  ;;  %v11893_v2 = vcombine.low %v5962_v38, %v5972_v39  ;;  %v5010_v56 = vsel %vm4946_vm1, %v15863_v40, %v4978_v36  ;;  %v5976_v3 = vrot.slane %v5974_v44, 4  ;;  %v15911_v4 = vrot.slane %v17746_v26, 4  ;;  %v17876_v8 = vld [vmem:[#allocation12_spill] sm:$0xff] }
 0x29b   : > { %v5324_v6 = vshrl.u32 %v12390_v47, 16  ;;  %v12395_v20 = vpack.c.bf16 %v5010_v56, %v5010_v56  ;;  %v5888_v13 = vld [vmem:[#allocation3 + $0x2c] sm:$0x1]  ;;  %v4752_v32 = vadd.f32 %v15818_v42, %v17876_v8  ;;  %v13218_v35 = vld [vmem:[%s17738_s3 + $0x50] sm:$0xff]   ;;  %v5979_v58 = vrot.slane %v5977_v12, 5 }
 0x29c   : > { %17875 = vst [vmem:[#allocation11_spill] sm:$0xff] %v15911_v4  ;;  %6417 = vrot.lane.b32.xlu0 %v11893_v2, %s13616_s26  ;;  %v5983_v36 = vshll.u32 %v5860_v10, 16  ;;  %v15922_v31 = vld [vmem:[#allocation3 + $0x88] sm:$0xf]  ;;  %v5322_v38 = vrot.slane %v15865_v62, 4  ;;  %v17878_v56 = vld [vmem:[#allocation10_spill] sm:$0xff]  ;;  %12652 = vmatprep.subr.bf16.mxu1 %v13218_v35 }
 0x29d   : > { %17877 = vst [vmem:[#allocation9_spill] sm:$0xff] %v15922_v31  ;;  %v5577_v39 = vld [vmem:[#allocation3 + $0x9c] sm:$0x2]  ;;  %v4913_v42 = vadd.f32 %v12925_v46, %v4752_v32  ;;  %v15927_v8 = vadd.f32 %v15737_v21, %v17878_v56  ;;  %v5525_v40 = vld [vmem:[#allocation3 + $0xa4] sm:$0x1]  ;;  %v5980_v26 = vor.u32 %v5979_v58, %v5976_v3  ;;  %v5987_v2 = vshrl.u32 %v5860_v10, 16 }
 0x29e   : > { %v11852_v5 = vrot.slane %v5577_v39, 9  ;;  %v5722_v55 = vld [vmem:[#allocation3 + $0xac] sm:$0x8]  ;;  %v5993_v12 = vshll.u32 %v5888_v13, 16  ;;  %v5693_v53 = vld [vmem:[#allocation3 + $0x9c] sm:$0x1] }
 0x29f   : > { %v11871_v25 = vrot.slane %v5722_v55, 11  ;;  %v5326_v44 = vrot.slane %v5324_v6, 7  ;;  %v5327_v61 = vshll.u32 %v12390_v47, 16  ;;  %v5367_v29 = vshrl.u32 %v12395_v20, 16  ;;  %v5841_v46 = vld [vmem:[#allocation3 + $0xb0] sm:$0x1] }
 0x2a0   : > { %v5694_v62 = vsel %vm15339_vm4, %v11852_v5, %v5693_v53  ;;  %v5370_v32 = vshll.u32 %v12395_v20, 16  ;;  %v5981_v48 = vrot.slane %v5980_v26, 4  ;;  %v5985_v21 = vrot.slane %v5983_v36, 5  ;;  %v13219_v35 = vld [vmem:[%s17738_s3 + $0x10] sm:$0xff]   ;;  %v5542_v47 = vld [vmem:[#allocation3 + $0xc0] sm:$0xf] }
 0x2a1   : > { %5695 = vst [vmem:[#allocation3 + $0x9c] sm:$0x1] %v5694_v62  ;;  %v5842_v10 = vsel %vm15404_vm13, %v11871_v25, %v5841_v46  ;;  %v5329_v3 = vor.u32 %v5327_v61, %v5326_v44  ;;  %v5331_v55 = vrot.slane %v5326_v44, 4  ;;  %v15936_v6 = vrot.slane %v5367_v29, 7  ;;  %v5861_v13 = vld [vmem:[#allocation3 + $0x30] sm:$0xf]  ;;  %12653 = vmatpush3.bf16.msra.mxu1 %v13219_v35  ;;  %v4904_v46 = vpop.f32.mrf.mxu0 }
 0x2a2   : > { %v17748_v53 = vrot.slane %v15922_v31, 5  ;;  %5843 = vst [vmem:[#allocation3 + $0xb0] sm:$0x1] %v5842_v10  ;;  %v5986_v26 = vsel %vm13746_vm2, %v5981_v48, %v5985_v21  ;;  %v5989_v20 = vrot.slane %v5987_v2, 4  ;;  %v5995_v5 = vrot.slane %v5993_v12, 5 }
 0x2a3   : > { %v5862_v58 = vld [vmem:[#allocation3 + $0x34] sm:$0xf]  ;;  %v5330_v36 = vsel %vm15354_vm9, %v5322_v38, %v5329_v3  ;;  %v5526_v25 = vsel %vm15339_vm4, %v5331_v55, %v5525_v40  ;;  %v5372_v29 = vor.u32 %v5370_v32, %v15936_v6  ;;  %vm4944_vm3 = vcmp.ge.f32.partialorder %v15887_v1, 0.0  ;;  %v15951_v56 = vld [vmem:[#allocation3 + $0xa8] sm:$0xe] }
 0x2a4   : > { %v15947_v61 = vld [vmem:[#allocation3 + $0x94] sm:$0xf]  ;;  %5524 = vst.msk [vmem:[#allocation3 + $0xa0] sm:$0xf] %vm3561_vm7, %v5330_v36  ;;  %5527 = vst [vmem:[#allocation3 + $0xa4] sm:$0x1] %v5526_v25  ;;  %v5990_v48 = vor.u32 %v5989_v20, %v5985_v21 }
 0x2a5   : > { %17879 = vst [vmem:[#allocation12_spill] sm:$0xff] %v15947_v61  ;;  %v4976_v44 = vmul.f32 0.2, %v15887_v1  ;;  %vm4947_vm10 = vcmp.ge.f32.partialorder %v4913_v42, 0.0  ;;  %v4979_v39 = vmul.f32 0.2, %v4913_v42  ;;  %v5543_v38 = vsel %vm15306_vm0, %v5372_v29, %v5542_v47 }
 0x2a6   : > { %17880 = vst [vmem:[#allocation10_spill] sm:$0xff] %v15951_v56  ;;  %v5889_v40 = vld [vmem:[#allocation3 + $0x38] sm:$0x1]  ;;  %v5998_v2 = vshrl.u32 %v5861_v13, 16  ;;  %v6001_v12 = vshll.u32 %v5861_v13, 16  ;;  %v6007_v62 = vshll.u32 %v5862_v58, 16 }
 0x2a7   : > { %v15955_v32 = vld [vmem:[#allocation3 + $0x8c] sm:$0x1]  ;;  %5544 = vst [vmem:[#allocation3 + $0xc0] sm:$0xf] %v5543_v38  ;;  %v5991_v35 = vrot.slane %v5990_v48, 4  ;;  %v5008_v21 = vsel %vm4944_vm3, %v15887_v1, %v4976_v44  ;;  %v5011_v10 = vsel %vm4947_vm10, %v4913_v42, %v4979_v39  ;;  %v6011_v3 = vshrl.u32 %v5862_v58, 16 }
 0x2a8   : > { %17881 = vst [vmem:[#allocation25_spill] sm:$0xff] %v15955_v32  ;;  %v15960_v55 = vld [vmem:[#allocation3 + $0x9c] sm:$0xe]  ;;  %v12393_v20 = vpack.c.bf16 %v5008_v21, %v5008_v21  ;;  %v12396_v36 = vpack.c.bf16 %v5011_v10, %v5011_v10  ;;  %v6000_v47 = vrot.slane %v5998_v2, 4  ;;  %v6003_v25 = vrot.slane %v6001_v12, 5 }
 0x2a9   : > { %17882 = vst [vmem:[#allocation26_spill] sm:$0xff] %v15960_v55  ;;  %v15962_v29 = vld [vmem:[#allocation3 + $0xac] sm:$0xf]  ;;  %v5996_v13 = vsel %vm13746_vm2, %v5991_v35, %v5995_v5  ;;  %v15966_v50 = vrot.slane %v6007_v62, 5  ;;  %v6013_v48 = vrot.slane %v6011_v3, 4  ;;  %v15969_v38 = vadd.f32 %v4904_v46, %v15927_v8 }
 0x2aa   : > { %17883 = vst [vmem:[#allocation27_spill] sm:$0xff] %v15962_v29  ;;  %v11894_v42 = vcombine.low %v5986_v26, %v5996_v13  ;;  %v5350_v58 = vshrl.u32 %v12393_v20, 16  ;;  %v5375_v44 = vshrl.u32 %v12396_v36, 16  ;;  %v15974_v39 = vrot.slane %v17748_v53, 4  ;;  %v5535_v1 = vld [vmem:[#allocation3 + $0xb4] sm:$0xf] }
 0x2ab   : > { %v6017_v5 = vshll.u32 %v5889_v40, 16  ;;  %v5721_v8 = vld [vmem:[#allocation3 + $0xa0] sm:$0x8]  ;;  %v6004_v26 = vor.u32 %v6003_v25, %v6000_v47  ;;  %v6014_v21 = vor.u32 %v6013_v48, %v15966_v50  ;;  %v5557_v12 = vld [vmem:[#allocation3 + $0xcc] sm:$0xf]  ;;  %v5353_v53 = vshll.u32 %v12393_v20, 16 }
 0x2ac   : > { %17884 = vst [vmem:[#allocation28_spill] sm:$0xff] %v15974_v39  ;;  %v15980_v46 = vld [vmem:[#allocation3 + $0xa0] sm:$0xf]  ;;  %6419 = vrot.lane.b32.xlu0 %v11894_v42, %s13616_s26  ;;  %v11870_v10 = vrot.slane %v5721_v8, 11  ;;  %v15985_v13 = vrot.slane %v5350_v58, 7  ;;  %v5377_v40 = vrot.slane %v5375_v44, 7 }
 0x2ad   : > { %17885 = vst [vmem:[#allocation29_spill] sm:$0xff] %v15980_v46  ;;  %v17752_v3 = vrot.slane %v15980_v46, 5  ;;  %v5838_v2 = vld [vmem:[#allocation3 + $0xa4] sm:$0x1]  ;;  %v5378_v35 = vshll.u32 %v12396_v36, 16  ;;  %v5373_v42 = vrot.slane %v15936_v6, 4 }
 0x2ae   : > { %v5580_v62 = vld [vmem:[#allocation3 + $0xc0] sm:$0x2]  ;;  %v5839_v59 = vsel %vm15404_vm13, %v11870_v10, %v5838_v2  ;;  %v5546_v25 = vld [vmem:[#allocation3 + $0xc8] sm:$0x1]  ;;  %v6019_v48 = vrot.slane %v6017_v5, 5  ;;  %v5355_v44 = vor.u32 %v5353_v53, %v15985_v13  ;;  %v5382_v29 = vrot.slane %v5377_v40, 4 }
 0x2af   : > { %v11855_v47 = vrot.slane %v5580_v62, 9  ;;  %5840 = vst [vmem:[#allocation3 + $0xa4] sm:$0x1] %v5839_v59  ;;  %v15992_v58 = vrot.slane %v17752_v3, 4  ;;  %v5702_v8 = vld [vmem:[#allocation3 + $0xc0] sm:$0x1]  ;;  %v5380_v56 = vor.u32 %v5378_v35, %v5377_v40 }
 0x2b0   : > { %v5863_v20 = vld [vmem:[#allocation3 + $0x3c] sm:$0xf]  ;;  %v6005_v2 = vrot.slane %v6004_v26, 4  ;;  %v6015_v10 = vrot.slane %v6014_v21, 4  ;;  %vm4945_vm11 = vcmp.ge.f32.partialorder %v15969_v38, 0.0  ;;  %v13221_v59 = vld [vmem:[%s17738_s3 + $0x48] sm:$0xff]   ;;  %v5536_v53 = vsel %vm15306_vm0, %v5355_v44, %v5535_v1 }
 0x2b1   : > { %17886 = vst [vmem:[#allocation30_spill] sm:$0xff] %v15992_v58  ;;  %v5703_v36 = vsel %vm15339_vm4, %v11855_v47, %v5702_v8  ;;  %v5864_v6 = vld [vmem:[#allocation3 + $0x40] sm:$0xf]  ;;  %v5558_v62 = vsel %vm15306_vm0, %v5355_v44, %v5557_v12  ;;  %v5381_v35 = vsel %vm15354_vm9, %v5373_v42, %v5380_v56  ;;  %v5547_v26 = vsel %vm15339_vm4, %v5382_v29, %v5546_v25  ;;  %v5890_v21 = vld [vmem:[#allocation3 + $0x44] sm:$0x1]  ;;  %v13222_v29 = vld [vmem:[%s17738_s3 + $0x8] sm:$0xff]  }
 0x2b2   : > { %5704 = vst [vmem:[#allocation3 + $0xc0] sm:$0x1] %v5703_v36  ;;  %v16001_v5 = vld [vmem:[#allocation3 + $0xc0] sm:$0xe]  ;;  %v5865_v40 = vld [vmem:[#allocation3 + $0x48] sm:$0xf]  ;;  %v6010_v1 = vsel %vm13746_vm2, %v6005_v2, %v15966_v50  ;;  %v6020_v43 = vsel %vm13746_vm2, %v6015_v10, %v6019_v48  ;;  %12654 = vmatprep.subr.bf16.mxu1 %v13221_v59 }
 0x2b3   : > { %17887 = vst [vmem:[#allocation31_spill] sm:$0xff] %v16001_v5  ;;  %5537 = vst [vmem:[#allocation3 + $0xb4] sm:$0xf] %v5536_v53  ;;  %v4977_v12 = vmul.f32 0.2, %v15969_v38  ;;  %v6022_v56 = vshrl.u32 %v5863_v20, 16  ;;  %v11895_v42 = vcombine.low %v6010_v1, %v6020_v43  ;;  %12655 = vmatpush3.bf16.msra.mxu1 %v13222_v29 }
 0x2b4   : > { %5559 = vst [vmem:[#allocation3 + $0xcc] sm:$0xf] %v5558_v62  ;;  %5545 = vst.msk [vmem:[#allocation3 + $0xc4] sm:$0xf] %vm3561_vm7, %v5381_v35  ;;  %v6025_v47 = vshll.u32 %v5863_v20, 16  ;;  %v6031_v25 = vshll.u32 %v5864_v6, 16 }
 0x2b5   : > { %5548 = vst [vmem:[#allocation3 + $0xc8] sm:$0x1] %v5547_v26  ;;  %v6035_v8 = vshrl.u32 %v5864_v6, 16  ;;  %v5866_v44 = vld [vmem:[#allocation3 + $0x4c] sm:$0xf]  ;;  %v5009_v50 = vsel %vm4945_vm11, %v15969_v38, %v4977_v12  ;;  %v6041_v48 = vshll.u32 %v5890_v21, 16  ;;  %6421 = vrot.lane.b32.xlu0 %v11895_v42, %s13616_s26 }
 0x2b6   : > { %v6046_v2 = vshrl.u32 %v5865_v40, 16  ;;  %v12394_v10 = vpack.c.bf16 %v5009_v50, %v5009_v50  ;;  %v6024_v59 = vrot.slane %v6022_v56, 4  ;;  %v6027_v53 = vrot.slane %v6025_v47, 5  ;;  %v16028_v20 = vld [vmem:[#allocation3 + $0xa4] sm:$0x1] }
 0x2b7   : > { %v16026_v62 = vrot.slane %v6031_v25, 5  ;;  %17888 = vst [vmem:[#allocation32_spill] sm:$0xff] %v16028_v20  ;;  %v6037_v6 = vrot.slane %v6035_v8, 4  ;;  %v6049_v26 = vshll.u32 %v5865_v40, 16  ;;  %v6055_v1 = vshll.u32 %v5866_v44, 16 }
 0x2b8   : > { %v6048_v35 = vrot.slane %v6046_v2, 4  ;;  %v5356_v38 = vrot.slane %v15985_v13, 4  ;;  %v5358_v21 = vshrl.u32 %v12394_v10, 16  ;;  %v6043_v12 = vrot.slane %v6041_v48, 5  ;;  %v5539_v58 = vld [vmem:[#allocation3 + $0xbc] sm:$0x1] }
 0x2b9   : > { %v5361_v29 = vshll.u32 %v12394_v10, 16  ;;  %v6051_v36 = vrot.slane %v6049_v26, 5  ;;  %v16032_v42 = vrot.slane %v6055_v1, 5  ;;  %v6059_v56 = vshrl.u32 %v5866_v44, 16  ;;  %v5561_v43 = vld [vmem:[#allocation3 + $0xd4] sm:$0x1] }
 0x2ba   : > { %v5579_v47 = vld [vmem:[#allocation3 + $0xb4] sm:$0x2]  ;;  %v5699_v50 = vld [vmem:[#allocation3 + $0xb4] sm:$0x1]  ;;  %v6028_v3 = vor.u32 %v6027_v53, %v6024_v59  ;;  %v6038_v13 = vor.u32 %v6037_v6, %v16026_v62  ;;  %v5360_v44 = vrot.slane %v5358_v21, 7 }
 0x2bb   : > { %v5581_v25 = vld [vmem:[#allocation3 + $0xcc] sm:$0x2]  ;;  %v11854_v5 = vrot.slane %v5579_v47, 9  ;;  %v5705_v2 = vld [vmem:[#allocation3 + $0xcc] sm:$0x1]  ;;  %v6052_v20 = vor.u32 %v6051_v36, %v6048_v35 }
 0x2bc   : > { %v11856_v8 = vrot.slane %v5581_v25, 9  ;;  %v16034_v40 = vld [vmem:[#allocation3 + $0xb4] sm:$0xe]  ;;  %v16037_v48 = vld [vmem:[#allocation3 + $0xcc] sm:$0xe]  ;;  %v5363_v21 = vor.u32 %v5361_v29, %v5360_v44  ;;  %v6029_v46 = vrot.slane %v6028_v3, 4 }
 0x2bd   : > { %17889 = vst [vmem:[#allocation33_spill] sm:$0xff] %v16034_v40  ;;  %17890 = vst [vmem:[#allocation34_spill] sm:$0xff] %v16037_v48  ;;  %v5724_v26 = vld [vmem:[#allocation3 + $0xc4] sm:$0x8]  ;;  %v5700_v1 = vsel %vm15339_vm4, %v11854_v5, %v5699_v50  ;;  %v5891_v55 = vld [vmem:[#allocation3 + $0x50] sm:$0x1] }
 0x2be   : > { %v5706_v59 = vsel %vm15339_vm4, %v11856_v8, %v5705_v2  ;;  %v11873_v47 = vrot.slane %v5724_v26, 11  ;;  %v16045_v25 = vld [vmem:[#allocation3 + $0xc4] sm:$0xf]  ;;  %v8158_v6 = vld [vmem:[#allocation3 + $0x18] sm:$0xf]  ;;  %v5365_v40 = vrot.slane %v5360_v44, 4  ;;  %v5364_v26 = vsel %vm15354_vm9, %v5356_v38, %v5363_v21 }
 0x2bf   : > { %17891 = vst [vmem:[#allocation35_spill] sm:$0xff] %v16045_v25  ;;  %v8159_v36 = vld [vmem:[#allocation3 + $0x1c] sm:$0xf]  ;;  %5701 = vst [vmem:[#allocation3 + $0xb4] sm:$0x1] %v5700_v1  ;;  %v6039_v50 = vrot.slane %v6038_v13, 4  ;;  %v6034_v3 = vsel %vm13746_vm2, %v6029_v46, %v16026_v62 }
 0x2c0   : > { %5707 = vst [vmem:[#allocation3 + $0xcc] sm:$0x1] %v5706_v59  ;;  %v5847_v35 = vld [vmem:[#allocation3 + $0xc8] sm:$0x1]  ;;  %v6053_v8 = vrot.slane %v6052_v20, 4  ;;  %v6061_v2 = vrot.slane %v6059_v56, 4  ;;  %v5540_v1 = vsel %vm15339_vm4, %v5365_v40, %v5539_v58  ;;  %v5562_v59 = vsel %vm15339_vm4, %v5365_v40, %v5561_v43 }
 0x2c1   : > { %v5848_v5 = vsel %vm15404_vm13, %v11873_v47, %v5847_v35  ;;  %v8190_v29 = vld [vmem:[#allocation3 + $0x20] sm:$0x1]  ;;  %5538 = vst.msk [vmem:[#allocation3 + $0xb8] sm:$0xf] %vm3561_vm7, %v5364_v26  ;;  %5541 = vst [vmem:[#allocation3 + $0xbc] sm:$0x1] %v5540_v1  ;;  %v6044_v60 = vsel %vm13746_vm2, %v6039_v50, %v6043_v12 }
 0x2c2   : > { %5849 = vst [vmem:[#allocation3 + $0xc8] sm:$0x1] %v5848_v5  ;;  %5560 = vst.msk [vmem:[#allocation3 + $0xd0] sm:$0xf] %vm3561_vm7, %v5364_v26  ;;  %v6058_v58 = vsel %vm13746_vm2, %v6053_v8, %v16032_v42  ;;  %v6062_v54 = vor.u32 %v6061_v2, %v16032_v42  ;;  %v6065_v20 = vshll.u32 %v5891_v55, 16  ;;  %v11896_v38 = vcombine.low %v6034_v3, %v6044_v60 }
 0x2c3   : > { %5563 = vst [vmem:[#allocation3 + $0xd4] sm:$0x1] %v5562_v59  ;;  %v5867_v43 = vld [vmem:[#allocation3 + $0x54] sm:$0xf]  ;;  %v8207_v46 = vshrl.u32 %v8158_v6, 16  ;;  %v8210_v62 = vshll.u32 %v8158_v6, 16 }
 0x2c4   : > { %v8216_v56 = vshll.u32 %v8159_v36, 16  ;;  %v6063_v40 = vrot.slane %v6062_v54, 4  ;;  %v6067_v13 = vrot.slane %v6065_v20, 5  ;;  %v8220_v44 = vshrl.u32 %v8159_v36, 16  ;;  %v5868_v35 = vld [vmem:[#allocation3 + $0x58] sm:$0xf]  ;;  %6423 = vrot.lane.b32.xlu0 %v11896_v38, %s13616_s26 }
 0x2c5   : > { %v8226_v47 = vshll.u32 %v8190_v29, 16  ;;  %v8209_v12 = vrot.slane %v8207_v46, 4  ;;  %v8212_v21 = vrot.slane %v8210_v62, 5  ;;  %v5892_v50 = vld [vmem:[#allocation3 + $0x5c] sm:$0x1]  ;;  %v6070_v8 = vshrl.u32 %v5867_v43, 16 }
 0x2c6   : > { %v8218_v5 = vrot.slane %v8216_v56, 5  ;;  %v6068_v55 = vsel %vm13746_vm2, %v6063_v40, %v6067_v13  ;;  %v8222_v42 = vrot.slane %v8220_v44, 4  ;;  %v6073_v26 = vshll.u32 %v5867_v43, 16  ;;  %v16073_v43 = vld [vmem:[#allocation3 + $0x10] sm:$0xf] }
 0x2c7   : > { %v8228_v2 = vrot.slane %v8226_v47, 5  ;;  %v11897_v6 = vcombine.low %v6058_v58, %v6068_v55  ;;  %v8213_v1 = vor.u32 %v8212_v21, %v8209_v12  ;;  %v6072_v59 = vrot.slane %v6070_v8, 4  ;;  %v16075_v58 = vld [vmem:[#allocation3 + $0x14] sm:$0x1]  ;;  %v7661_v44 = vld [vmem:[#allocation3 + $0xc] sm:$0xe] }
 0x2c8   : > { %v6079_v3 = vshll.u32 %v5868_v35, 16  ;;  %v8223_v36 = vor.u32 %v8222_v42, %v8218_v5  ;;  %v6075_v29 = vrot.slane %v6073_v26, 5  ;;  %v6083_v60 = vshrl.u32 %v5868_v35, 16  ;;  %v5723_v20 = vld [vmem:[#allocation3 + $0xb8] sm:$0x8] }
 0x2c9   : > { %v6089_v54 = vshll.u32 %v5892_v50, 16  ;;  %v5725_v38 = vld [vmem:[#allocation3 + $0xd0] sm:$0x8]  ;;  %v5844_v46 = vld [vmem:[#allocation3 + $0xbc] sm:$0x1]  ;;  %6425 = vrot.lane.b32.xlu0 %v11897_v6, %s13616_s26  ;;  %v11872_v62 = vrot.slane %v5723_v20, 11 }
 0x2ca   : > { %v11874_v56 = vrot.slane %v5725_v38, 11  ;;  %v5850_v53 = vld [vmem:[#allocation3 + $0xd4] sm:$0x1]  ;;  %v16071_v40 = vld [vmem:[#allocation3 + $0xb8] sm:$0xf]  ;;  %v6076_v13 = vor.u32 %v6075_v29, %v6072_v59  ;;  %v8214_v8 = vrot.slane %v8213_v1, 4 }
 0x2cb   : > { %17892 = vst [vmem:[#allocation36_spill] sm:$0xff] %v16071_v40  ;;  %v16077_v47 = vld [vmem:[#allocation3] sm:$0xf]  ;;  %v16079_v35 = vld [vmem:[#allocation3 + $0x4] sm:$0xf]  ;;  %v17759_v50 = vrot.slane %v16071_v40, 5  ;;  %v5845_v26 = vsel %vm15404_vm13, %v11872_v62, %v5844_v46 }
 0x2cc   : > { %v16083_v21 = vld [vmem:[#allocation3 + $0xd0] sm:$0xf]  ;;  %v8224_v55 = vrot.slane %v8223_v36, 4  ;;  %v6081_v42 = vrot.slane %v6079_v3, 5  ;;  %v5851_v6 = vsel %vm15404_vm13, %v11874_v56, %v5850_v53  ;;  %v6077_v29 = vrot.slane %v6076_v13, 4  ;;  %v13223_v20 = vld [vmem:[%s17738_s3 + $0x40] sm:$0xff]  }
 0x2cd   : > { %17893 = vst [vmem:[#allocation37_spill] sm:$0xff] %v16083_v21  ;;  %v17758_v59 = vrot.slane %v16083_v21, 5  ;;  %5846 = vst [vmem:[#allocation3 + $0xbc] sm:$0x1] %v5845_v26  ;;  %v16096_v1 = vrot.slane %v17759_v50, 4  ;;  %v8219_v3 = vsel %vm13746_vm2, %v8214_v8, %v8218_v5  ;;  %v6085_v53 = vrot.slane %v6083_v60, 4  ;;  %12656 = vmatprep.subr.bf16.mxu1 %v13223_v20 }
 0x2ce   : > { %5852 = vst [vmem:[#allocation3 + $0xd4] sm:$0x1] %v5851_v6  ;;  %v8229_v37 = vsel %vm13746_vm2, %v8224_v55, %v8228_v2  ;;  %v8160_v36 = vld [vmem:[#allocation3 + $0x24] sm:$0xf]  ;;  %v6082_v62 = vsel %vm13746_vm2, %v6077_v29, %v6081_v42  ;;  %v6091_v56 = vrot.slane %v6089_v54, 5  ;;  %v12019_v2 = vrot.slane %v7661_v44, 9 }
 0x2cf   : > { %17894 = vst [vmem:[#allocation38_spill] sm:$0xff] %v16096_v1  ;;  %v16104_v38 = vrot.slane %v17758_v59, 4  ;;  %v12115_v46 = vcombine.low %v8219_v3, %v8229_v37  ;;  %v8161_v13 = vld [vmem:[#allocation3 + $0x28] sm:$0xf]  ;;  %v8191_v26 = vld [vmem:[#allocation3 + $0x2c] sm:$0x1]  ;;  %v6086_v6 = vor.u32 %v6085_v53, %v6081_v42 }
 0x2d0   : > { %v13224_v60 = vld [vmem:[%s17738_s3] sm:$0xff]   ;;  %v7727_v55 = vrot.slane %v16073_v43, 5  ;;  %v7730_v29 = vrot.slane %v16075_v58, 5  ;;  %v8231_v54 = vshrl.u32 %v8160_v36, 16  ;;  %v8234_v3 = vshll.u32 %v8160_v36, 16  ;;  %v13205_v44 = vld [vmem:[#allocation3 + $0x6c] sm:$0xff]  }
 0x2d1   : > { %17895 = vst [vmem:[#allocation39_spill] sm:$0xff] %v16104_v38  ;;  %8718 = vrot.lane.b32.xlu1 %v12115_v46, %s13616_s26  ;;  %v5869_v37 = vld [vmem:[#allocation3 + $0x60] sm:$0xf]  ;;  %v6087_v20 = vrot.slane %v6086_v6, 4  ;;  %v8240_v42 = vshll.u32 %v8161_v13, 16  ;;  %v8244_v53 = vshrl.u32 %v8161_v13, 16  ;;  %12657 = vmatpush3.bf16.msra.mxu1 %v13224_v60 }
 0x2d2   : > { %v8250_v59 = vshll.u32 %v8191_v26, 16  ;;  %v5870_v10 = vld [vmem:[#allocation3 + $0x64] sm:$0xf]  ;;  %v7728_v50 = vsel %vm13955_vm5, %v12019_v2, %v7727_v55  ;;  %v7729_v8 = vrot.slane %v7727_v55, 4  ;;  %v8233_v5 = vrot.slane %v8231_v54, 4 }
 0x2d3   : > { %v8236_v46 = vrot.slane %v8234_v3, 5  ;;  %v5893_v12 = vld [vmem:[#allocation3 + $0x68] sm:$0x1]  ;;  %v6092_v38 = vsel %vm13746_vm2, %v6087_v20, %v6091_v56  ;;  %v8242_v48 = vrot.slane %v8240_v42, 5  ;;  %v8246_v36 = vrot.slane %v8244_v53, 4 }
 0x2d4   : > { %v8252_v21 = vrot.slane %v8250_v59, 5  ;;  %v16120_v6 = vld [vmem:[#allocation3 + $0x1c] sm:$0xf]  ;;  %v11898_v60 = vcombine.low %v6082_v62, %v6092_v38  ;;  %v7731_v2 = vsel %vm13955_vm5, %v7729_v8, %v7730_v29  ;;  %v6094_v54 = vshrl.u32 %v5869_v37, 16  ;;  %v16131_v42 = vld [vmem:[#allocation3 + $0x20] sm:$0x1] }
 0x2d5   : > { %v16122_v13 = vld [vmem:[#allocation3 + $0xbc] sm:$0x1]  ;;  %v16124_v26 = vld [vmem:[#allocation3 + $0xd4] sm:$0x1]  ;;  %7021 = vrot.lane.b32.xlu1 %v13205_v44, %s13616_s26  ;;  %v8237_v55 = vor.u32 %v8236_v46, %v8233_v5  ;;  %v12051_v20 = vcombine.low %v7728_v50, %v7731_v2  ;;  %v8247_v59 = vor.u32 %v8246_v36, %v8242_v48  ;;  %v6097_v38 = vshll.u32 %v5869_v37, 16 }
 0x2d6   : > { %17896 = vst [vmem:[#allocation40_spill] sm:$0xff] %v16122_v13  ;;  %17897 = vst [vmem:[#allocation41_spill] sm:$0xff] %v16124_v26  ;;  %6427 = vrot.lane.b32.xlu0 %v11898_v60, %s13616_s26  ;;  %v6096_v25 = vrot.slane %v6094_v54, 4  ;;  %v6103_v62 = vshll.u32 %v5870_v10, 16  ;;  %v7662_v44 = vld [vmem:[#allocation3 + $0x18] sm:$0xe] }
 0x2d7   : > { %v8238_v53 = vrot.slane %v8237_v55, 4  ;;  %v8248_v1 = vrot.slane %v8247_v59, 4  ;;  %v6107_v40 = vshrl.u32 %v5870_v10, 16  ;;  %v6113_v8 = vshll.u32 %v5893_v12, 16  ;;  %v8162_v29 = vld [vmem:[#allocation3 + $0x30] sm:$0xf] }
 0x2d8   : > { %v6099_v50 = vrot.slane %v6097_v38, 5  ;;  %v6105_v36 = vrot.slane %v6103_v62, 5  ;;  %v8163_v56 = vld [vmem:[#allocation3 + $0x34] sm:$0xf]  ;;  %v12020_v54 = vrot.slane %v7662_v44, 9  ;;  %v7734_v59 = vrot.slane %v16120_v6, 5 }
 0x2d9   : > { %v8243_v46 = vsel %vm13746_vm2, %v8238_v53, %v8242_v48  ;;  %v8253_v60 = vsel %vm13746_vm2, %v8248_v1, %v8252_v21  ;;  %v6109_v37 = vrot.slane %v6107_v40, 4  ;;  %v6115_v55 = vrot.slane %v6113_v8, 5  ;;  %v8192_v53 = vld [vmem:[#allocation3 + $0x38] sm:$0x1]  ;;  %v5894_v26 = vld [vmem:[#allocation3 + $0x74] sm:$0x1] }
 0x2da   : > { %7933 = vrot.lane.b32.xlu0 %v12051_v20, %s13616_s26  ;;  %v12116_v10 = vcombine.low %v8243_v46, %v8253_v60  ;;  %v6100_v12 = vor.u32 %v6099_v50, %v6096_v25  ;;  %v7737_v3 = vrot.slane %v16131_v42, 5  ;;  %v8255_v38 = vshrl.u32 %v8162_v29, 16  ;;  %v5871_v20 = vld [vmem:[#allocation3 + $0x6c] sm:$0xf]  ;;  %v13208_v60 = vld [vmem:[#allocation3 + $0x78] sm:$0xff]  }
 0x2db   : > { %v6110_v48 = vor.u32 %v6109_v37, %v6105_v36  ;;  %v8258_v62 = vshll.u32 %v8162_v29, 16  ;;  %v8264_v2 = vshll.u32 %v8163_v56, 16  ;;  %v7735_v40 = vsel %vm13955_vm5, %v12020_v54, %v7734_v59  ;;  %v16155_v13 = vld [vmem:[#allocation3 + $0x2c] sm:$0x1]  ;;  %v7663_v49 = vld [vmem:[#allocation3 + $0x24] sm:$0xe] }
 0x2dc   : > { %8720 = vrot.lane.b32.xlu1 %v12116_v10, %s13616_s26  ;;  %v6101_v5 = vrot.slane %v6100_v12, 4  ;;  %v7736_v21 = vrot.slane %v7734_v59, 4  ;;  %v8268_v1 = vshrl.u32 %v8163_v56, 16  ;;  %v8257_v25 = vrot.slane %v8255_v38, 4  ;;  %v5872_v12 = vld [vmem:[#allocation3 + $0x70] sm:$0xf] }
 0x2dd   : > { %v6111_v44 = vrot.slane %v6110_v48, 4  ;;  %v8260_v8 = vrot.slane %v8258_v62, 5  ;;  %v8266_v46 = vrot.slane %v8264_v2, 5  ;;  %v8274_v10 = vshll.u32 %v8192_v53, 16  ;;  %v16152_v38 = vld [vmem:[#allocation3 + $0x28] sm:$0xf] }
 0x2de   : > { %v6106_v50 = vsel %vm13746_vm2, %v6101_v5, %v6105_v36  ;;  %v7738_v29 = vsel %vm13955_vm5, %v7736_v21, %v7737_v3  ;;  %v8270_v37 = vrot.slane %v8268_v1, 4  ;;  %v6118_v48 = vshrl.u32 %v5871_v20, 16  ;;  %v16217_v23 = vld [vmem:[#allocation3 + $0x44] sm:$0x1]  ;;  %v7245_v31 = vld [vmem:[#allocation3 + $0x4c] sm:$0xf] }
 0x2df   : > { %v6116_v54 = vsel %vm13746_vm2, %v6111_v44, %v6115_v55  ;;  %v12052_v59 = vcombine.low %v7735_v40, %v7738_v29  ;;  %v8261_v56 = vor.u32 %v8260_v8, %v8257_v25  ;;  %v8276_v36 = vrot.slane %v8274_v10, 5  ;;  %v8164_v8 = vld [vmem:[#allocation3 + $0x3c] sm:$0xf]  ;;  %v8184_v16 = vld [vmem:[#allocation3 + $0xb4] sm:$0xf] }
 0x2e0   : > { %v11899_v2 = vcombine.low %v6106_v50, %v6116_v54  ;;  %7023 = vrot.lane.b32.xlu1 %v13208_v60, %s13616_s26  ;;  %v8271_v5 = vor.u32 %v8270_v37, %v8266_v46  ;;  %v6121_v62 = vshll.u32 %v5871_v20, 16  ;;  %v6120_v53 = vrot.slane %v6118_v48, 4  ;;  %v8165_v37 = vld [vmem:[#allocation3 + $0x40] sm:$0xf]  ;;  %v13230_v25 = vld [vmem:[%s17738_s3 + $0x118] sm:$0xff]  }
 0x2e1   : > { %v8262_v3 = vrot.slane %v8261_v56, 4  ;;  %v6127_v21 = vshll.u32 %v5872_v12, 16  ;;  %v6131_v1 = vshrl.u32 %v5872_v12, 16  ;;  %v6137_v44 = vshll.u32 %v5894_v26, 16  ;;  %12926 = vmatprep.subr.bf16.mxu1 %v13230_v25 }
 0x2e2   : > { %6429 = vrot.lane.b32.xlu0 %v11899_v2, %s13616_s26  ;;  %v8272_v55 = vrot.slane %v8271_v5, 4  ;;  %v6123_v40 = vrot.slane %v6121_v62, 5  ;;  %v12021_v56 = vrot.slane %v7663_v49, 9  ;;  %v7741_v26 = vrot.slane %v16152_v38, 5  ;;  %v8193_v62 = vld [vmem:[#allocation3 + $0x44] sm:$0x1] }
 0x2e3   : > { %v8267_v50 = vsel %vm13746_vm2, %v8262_v3, %v8266_v46  ;;  %v6129_v60 = vrot.slane %v6127_v21, 5  ;;  %v6133_v20 = vrot.slane %v6131_v1, 4  ;;  %v6139_v54 = vrot.slane %v6137_v44, 5 }
 0x2e4   : > { %v8277_v10 = vsel %vm13746_vm2, %v8272_v55, %v8276_v36  ;;  %v6124_v12 = vor.u32 %v6123_v40, %v6120_v53  ;;  %v7744_v5 = vrot.slane %v16155_v13, 5  ;;  %v8279_v3 = vshrl.u32 %v8164_v8, 16  ;;  %v5873_v55 = vld [vmem:[#allocation3 + $0x78] sm:$0xf] }
 0x2e5   : > { %v12117_v48 = vcombine.low %v8267_v50, %v8277_v10  ;;  %v6134_v2 = vor.u32 %v6133_v20, %v6129_v60  ;;  %v8282_v21 = vshll.u32 %v8164_v8, 16  ;;  %v8288_v1 = vshll.u32 %v8165_v37, 16  ;;  %v13225_v40 = vld [vmem:[%s17738_s3 + $0xf8] sm:$0xff]  }
 0x2e6   : > { %7935 = vrot.lane.b32.xlu0 %v12052_v59, %s13616_s26  ;;  %v6125_v46 = vrot.slane %v6124_v12, 4  ;;  %v7742_v36 = vsel %vm13955_vm5, %v12021_v56, %v7741_v26  ;;  %v7743_v49 = vrot.slane %v7741_v26, 4  ;;  %v8292_v53 = vshrl.u32 %v8165_v37, 16  ;;  %v5874_v20 = vld [vmem:[#allocation3 + $0x7c] sm:$0xf]  ;;  %v13209_v37 = vld [vmem:[#allocation3 + $0x84] sm:$0xff]   ;;  %12754 = vmatprep.subr.bf16.mxu0 %v13225_v40 }
 0x2e7   : > { %8722 = vrot.lane.b32.xlu1 %v12117_v48, %s13616_s26  ;;  %v6135_v29 = vrot.slane %v6134_v2, 4  ;;  %v8281_v44 = vrot.slane %v8279_v3, 4  ;;  %v8284_v50 = vrot.slane %v8282_v21, 5  ;;  %v8290_v8 = vrot.slane %v8288_v1, 5  ;;  %v13226_v10 = vld [vmem:[%s17738_s3 + $0xb8] sm:$0xff]  }
 0x2e8   : > { %v6130_v59 = vsel %vm13746_vm2, %v6125_v46, %v6129_v60  ;;  %v7745_v56 = vsel %vm13955_vm5, %v7743_v49, %v7744_v5  ;;  %v8294_v48 = vrot.slane %v8292_v53, 4  ;;  %v8298_v2 = vshll.u32 %v8193_v62, 16  ;;  %v5895_v26 = vld [vmem:[#allocation3 + $0x80] sm:$0x1]  ;;  %v16182_v1 = vld [vmem:[#allocation3 + $0x34] sm:$0xf]  ;;  %12755 = vmatpush3.bf16.msra.mxu0 %v13226_v10 }
 0x2e9   : > { %v6140_v12 = vsel %vm13746_vm2, %v6135_v29, %v6139_v54  ;;  %v12053_v46 = vcombine.low %v7742_v36, %v7745_v56  ;;  %v8285_v3 = vor.u32 %v8284_v50, %v8281_v44  ;;  %v6142_v21 = vshrl.u32 %v5873_v55, 16  ;;  %v16188_v62 = vld [vmem:[#allocation3 + $0x38] sm:$0x1]  ;;  %v7664_v44 = vld [vmem:[#allocation3 + $0x30] sm:$0xe] }
 0x2ea   : > { %v11900_v60 = vcombine.low %v6130_v59, %v6140_v12  ;;  %v8295_v29 = vor.u32 %v8294_v48, %v8290_v8  ;;  %v8300_v54 = vrot.slane %v8298_v2, 5  ;;  %v6145_v5 = vshll.u32 %v5873_v55, 16  ;;  %v5896_v56 = vld [vmem:[#allocation3 + $0x8c] sm:$0x1] }
 0x2eb   : > { %7025 = vrot.lane.b32.xlu1 %v13209_v37, %s13616_s26  ;;  %v6151_v49 = vshll.u32 %v5874_v20, 16  ;;  %v8286_v36 = vrot.slane %v8285_v3, 4  ;;  %v6144_v53 = vrot.slane %v6142_v21, 4  ;;  %v6155_v40 = vshrl.u32 %v5874_v20, 16  ;;  %v8166_v37 = vld [vmem:[#allocation3 + $0x48] sm:$0xf] }
 0x2ec   : > { %6431 = vrot.lane.b32.xlu0 %v11900_v60, %s13616_s26  ;;  %v6161_v59 = vshll.u32 %v5895_v26, 16  ;;  %v8296_v50 = vrot.slane %v8295_v29, 4  ;;  %v6147_v10 = vrot.slane %v6145_v5, 5  ;;  %v13233_v20 = vld [vmem:[%s17738_s3 + $0xf0] sm:$0xff]   ;;  %v12022_v60 = vrot.slane %v7664_v44, 9 }
 0x2ed   : > { %v6153_v12 = vrot.slane %v6151_v49, 5  ;;  %v8291_v55 = vsel %vm13746_vm2, %v8286_v36, %v8290_v8  ;;  %v6157_v48 = vrot.slane %v6155_v40, 4  ;;  %v7748_v3 = vrot.slane %v16182_v1, 5  ;;  %v8167_v21 = vld [vmem:[#allocation3 + $0x4c] sm:$0xf]  ;;  %12756 = vmatprep.subr.bf16.mxu0 %v13233_v20  ;;  %v13212_v20 = vld [vmem:[#allocation3 + $0x90] sm:$0xff]  }
 0x2ee   : > { %v6163_v2 = vrot.slane %v6161_v59, 5  ;;  %v8301_v25 = vsel %vm13746_vm2, %v8296_v50, %v8300_v54  ;;  %v6148_v26 = vor.u32 %v6147_v10, %v6144_v53  ;;  %v7751_v5 = vrot.slane %v16188_v62, 5  ;;  %v8194_v49 = vld [vmem:[#allocation3 + $0x50] sm:$0x1] }
 0x2ef   : > { %v12118_v29 = vcombine.low %v8291_v55, %v8301_v25  ;;  %v6158_v8 = vor.u32 %v6157_v48, %v6153_v12  ;;  %v8303_v36 = vshrl.u32 %v8166_v37, 16  ;;  %v7749_v59 = vsel %vm13955_vm5, %v12022_v60, %v7748_v3  ;;  %v13234_v53 = vld [vmem:[%s17738_s3 + $0xb0] sm:$0xff]   ;;  %v5875_v55 = vld [vmem:[#allocation3 + $0x84] sm:$0xf]  ;;  %v5876_v60 = vld [vmem:[#allocation3 + $0x88] sm:$0xf] }
 0x2f0   : > { %7937 = vrot.lane.b32.xlu0 %v12053_v46, %s13616_s26  ;;  %v6149_v40 = vrot.slane %v6148_v26, 4  ;;  %v7750_v61 = vrot.slane %v7748_v3, 4  ;;  %v8306_v54 = vshll.u32 %v8166_v37, 16  ;;  %v8312_v50 = vshll.u32 %v8167_v21, 16  ;;  %12757 = vmatpush3.bf16.msra.mxu0 %v13234_v53  ;;  %v7665_v53 = vld [vmem:[#allocation3 + $0x3c] sm:$0xe] }
 0x2f1   : > { %8724 = vrot.lane.b32.xlu1 %v12118_v29, %s13616_s26  ;;  %v6159_v46 = vrot.slane %v6158_v8, 4  ;;  %v8305_v44 = vrot.slane %v8303_v36, 4  ;;  %v8316_v10 = vshrl.u32 %v8167_v21, 16  ;;  %v8322_v37 = vshll.u32 %v8194_v49, 16  ;;  %v16215_v21 = vld [vmem:[#allocation3 + $0x40] sm:$0xf] }
 0x2f2   : > { %v6154_v48 = vsel %vm13746_vm2, %v6149_v40, %v6153_v12  ;;  %v7752_v25 = vsel %vm13955_vm5, %v7750_v61, %v7751_v5  ;;  %v8308_v26 = vrot.slane %v8306_v54, 5  ;;  %v8314_v8 = vrot.slane %v8312_v50, 5  ;;  %v13213_v50 = vld [vmem:[#allocation3 + $0x9c] sm:$0xff]  }
 0x2f3   : > { %v6164_v3 = vsel %vm13746_vm2, %v6159_v46, %v6163_v2  ;;  %v12054_v29 = vcombine.low %v7749_v59, %v7752_v25  ;;  %v8318_v36 = vrot.slane %v8316_v10, 4  ;;  %v8324_v12 = vrot.slane %v8322_v37, 5  ;;  %v13237_v2 = vld [vmem:[%s17738_s3 + $0xe8] sm:$0xff]  }
 0x2f4   : > { %v11901_v39 = vcombine.low %v6154_v48, %v6164_v3  ;;  %v8309_v32 = vor.u32 %v8308_v26, %v8305_v44  ;;  %v6166_v40 = vshrl.u32 %v5875_v55, 16  ;;  %v6169_v5 = vshll.u32 %v5875_v55, 16  ;;  %v8168_v26 = vld [vmem:[#allocation3 + $0x54] sm:$0xf]  ;;  %12758 = vmatprep.subr.bf16.mxu0 %v13237_v2 }
 0x2f5   : > { %7027 = vrot.lane.b32.xlu1 %v13212_v20, %s13616_s26  ;;  %v8319_v61 = vor.u32 %v8318_v36, %v8314_v8  ;;  %v6175_v49 = vshll.u32 %v5876_v60, 16  ;;  %v6179_v54 = vshrl.u32 %v5876_v60, 16  ;;  %v6185_v44 = vshll.u32 %v5896_v56, 16 }
 0x2f6   : > { %6433 = vrot.lane.b32.xlu0 %v11901_v39, %s13616_s26  ;;  %v8310_v59 = vrot.slane %v8309_v32, 4  ;;  %v6168_v46 = vrot.slane %v6166_v40, 4  ;;  %v6171_v48 = vrot.slane %v6169_v5, 5  ;;  %v12023_v3 = vrot.slane %v7665_v53, 9  ;;  %v13240_v32 = vld [vmem:[%s17738_s3 + $0xa8] sm:$0xff]  }
 0x2f7   : > { %v8320_v10 = vrot.slane %v8319_v61, 4  ;;  %v6177_v25 = vrot.slane %v6175_v49, 5  ;;  %v6181_v20 = vrot.slane %v6179_v54, 4  ;;  %v6187_v37 = vrot.slane %v6185_v44, 5  ;;  %v8169_v61 = vld [vmem:[#allocation3 + $0x58] sm:$0xf]  ;;  %12759 = vmatpush3.bf16.msra.mxu0 %v13240_v32 }
 0x2f8   : > { %v8315_v55 = vsel %vm13746_vm2, %v8310_v59, %v8314_v8  ;;  %v6172_v56 = vor.u32 %v6171_v48, %v6168_v46  ;;  %v7755_v40 = vrot.slane %v16215_v21, 5  ;;  %v13243_v8 = vld [vmem:[%s17738_s3 + $0xe0] sm:$0xff]   ;;  %v7758_v49 = vrot.slane %v16217_v23, 5  ;;  %v8195_v54 = vld [vmem:[#allocation3 + $0x5c] sm:$0x1] }
 0x2f9   : > { %v8325_v39 = vsel %vm13746_vm2, %v8320_v10, %v8324_v12  ;;  %v6182_v36 = vor.u32 %v6181_v20, %v6177_v25  ;;  %v8327_v53 = vshrl.u32 %v8168_v26, 16  ;;  %v8330_v2 = vshll.u32 %v8168_v26, 16  ;;  %v13244_v12 = vld [vmem:[%s17738_s3 + $0xa0] sm:$0xff]   ;;  %12760 = vmatprep.subr.bf16.mxu0 %v13243_v8  ;;  %v5877_v32 = vld [vmem:[#allocation3 + $0x90] sm:$0xf] }
 0x2fa   : > { %7939 = vrot.lane.b32.xlu0 %v12054_v29, %s13616_s26  ;;  %v12119_v5 = vcombine.low %v8315_v55, %v8325_v39  ;;  %v6173_v59 = vrot.slane %v6172_v56, 4  ;;  %v7756_v44 = vsel %vm13955_vm5, %v12023_v3, %v7755_v40  ;;  %v7757_v10 = vrot.slane %v7755_v40, 4  ;;  %v13247_v29 = vld [vmem:[%s17738_s3 + $0xd8] sm:$0xff]   ;;  %v5878_v40 = vld [vmem:[#allocation3 + $0x94] sm:$0xf] }
 0x2fb   : > { %v6183_v46 = vrot.slane %v6182_v36, 4  ;;  %v8329_v48 = vrot.slane %v8327_v53, 4  ;;  %v8332_v20 = vrot.slane %v8330_v2, 5  ;;  %v8336_v26 = vshll.u32 %v8169_v61, 16  ;;  %v5897_v8 = vld [vmem:[#allocation3 + $0x98] sm:$0x1]  ;;  %12761 = vmatpush3.bf16.msra.mxu0 %v13244_v12 }
 0x2fc   : > { %8726 = vrot.lane.b32.xlu1 %v12119_v5, %s13616_s26  ;;  %v8340_v55 = vshrl.u32 %v8169_v61, 16  ;;  %v6178_v39 = vsel %vm13746_vm2, %v6173_v59, %v6177_v25  ;;  %v7759_v3 = vsel %vm13955_vm5, %v7757_v10, %v7758_v49  ;;  %v8346_v36 = vshll.u32 %v8195_v54, 16  ;;  %v7246_v61 = vld [vmem:[#allocation3 + $0x50] sm:$0x1]  ;;  %v13250_v25 = vld [vmem:[%s17738_s3 + $0x98] sm:$0xff]   ;;  %12762 = vmatprep.subr.bf16.mxu0 %v13247_v29 }
 0x2fd   : > { %v6188_v56 = vsel %vm13746_vm2, %v6183_v46, %v6187_v37  ;;  %v12055_v5 = vcombine.low %v7756_v44, %v7759_v3  ;;  %v8333_v53 = vor.u32 %v8332_v20, %v8329_v48  ;;  %v8338_v2 = vrot.slane %v8336_v26, 5  ;;  %v13252_v54 = vld [vmem:[%s17738_s3 + $0xd0] sm:$0xff]   ;;  %v8170_v20 = vld [vmem:[#allocation3 + $0x60] sm:$0xf]  ;;  %v8171_v3 = vld [vmem:[#allocation3 + $0x64] sm:$0xf] }
 0x2fe   : > { %v11902_v60 = vcombine.low %v6178_v39, %v6188_v56  ;;  %v8342_v37 = vrot.slane %v8340_v55, 4  ;;  %v8348_v59 = vrot.slane %v8346_v36, 5  ;;  %v6190_v46 = vshrl.u32 %v5877_v32, 16 }
 0x2ff   : > { %v6193_v49 = vshll.u32 %v5877_v32, 16  ;;  %v8334_v44 = vrot.slane %v8333_v53, 4  ;;  %v6199_v10 = vshll.u32 %v5878_v40, 16  ;;  %v6203_v12 = vshrl.u32 %v5878_v40, 16  ;;  %12763 = vmatpush3.bf16.msra.mxu0 %v13250_v25 }
 0x300   : > { %6435 = vrot.lane.b32.xlu0 %v11902_v60, %s13616_s26  ;;  %7029 = vrot.lane.b32.xlu1 %v13213_v50, %s13616_s26  ;;  %v6209_v48 = vshll.u32 %v5897_v8, 16  ;;  %v8343_v26 = vor.u32 %v8342_v37, %v8338_v2  ;;  %v6192_v39 = vrot.slane %v6190_v46, 4  ;;  %v12024_v56 = vrot.slane %v7666_v27, 9  ;;  %v13253_v50 = vld [vmem:[%s17738_s3 + $0x90] sm:$0xff]   ;;  %v13256_v27 = vld [vmem:[%s17738_s3 + $0xc8] sm:$0xff]  }
 0x301   : > { %v6195_v55 = vrot.slane %v6193_v49, 5  ;;  %v8339_v29 = vsel %vm13746_vm2, %v8334_v44, %v8338_v2  ;;  %v6201_v32 = vrot.slane %v6199_v10, 5  ;;  %v6205_v36 = vrot.slane %v6203_v12, 4  ;;  %12764 = vmatprep.subr.bf16.mxu0 %v13252_v54 }
 0x302   : > { %v6211_v15 = vrot.slane %v6209_v48, 5  ;;  %v8344_v60 = vrot.slane %v8343_v26, 4  ;;  %v7762_v8 = vrot.slane %v7245_v31, 5  ;;  %v7765_v53 = vrot.slane %v7246_v61, 5  ;;  %v8196_v61 = vld [vmem:[#allocation3 + $0x68] sm:$0x1] }
 0x303   : > { %v6196_v40 = vor.u32 %v6195_v55, %v6192_v39  ;;  %v6206_v2 = vor.u32 %v6205_v36, %v6201_v32  ;;  %v8351_v37 = vshrl.u32 %v8170_v20, 16  ;;  %v8354_v46 = vshll.u32 %v8170_v20, 16  ;;  %v5879_v39 = vld [vmem:[#allocation3 + $0x9c] sm:$0xf]  ;;  %12765 = vmatpush3.bf16.msra.mxu0 %v13253_v50  ;;  %v5880_v36 = vld [vmem:[#allocation3 + $0xa0] sm:$0xf] }
 0x304   : > { %7941 = vrot.lane.b32.xlu0 %v12055_v5, %s13616_s26  ;;  %v8360_v49 = vshll.u32 %v8171_v3, 16  ;;  %v8349_v25 = vsel %vm13746_vm2, %v8344_v60, %v8348_v59  ;;  %v7763_v10 = vsel %vm13955_vm5, %v12024_v56, %v7762_v8  ;;  %v7764_v31 = vrot.slane %v7762_v8, 4  ;;  %v13259_v5 = vld [vmem:[%s17738_s3 + $0x88] sm:$0xff]   ;;  %12766 = vmatprep.subr.bf16.mxu0 %v13256_v27 }
 0x305   : > { %v6197_v44 = vrot.slane %v6196_v40, 4  ;;  %v12120_v54 = vcombine.low %v8339_v29, %v8349_v25  ;;  %v6207_v12 = vrot.slane %v6206_v2, 4  ;;  %v8353_v48 = vrot.slane %v8351_v37, 4  ;;  %v13261_v29 = vld [vmem:[%s17738_s3 + $0xc0] sm:$0xff]   ;;  %v13216_v60 = vld [vmem:[#allocation3 + $0xa8] sm:$0xff]  }
 0x306   : > { %v8356_v26 = vrot.slane %v8354_v46, 5  ;;  %v7766_v59 = vsel %vm13955_vm5, %v7764_v31, %v7765_v53  ;;  %v8362_v55 = vrot.slane %v8360_v49, 5  ;;  %v8364_v56 = vshrl.u32 %v8171_v3, 16  ;;  %v5898_v2 = vld [vmem:[#allocation3 + $0xa4] sm:$0x1] }
 0x307   : > { %v6202_v20 = vsel %vm13746_vm2, %v6197_v44, %v6201_v32  ;;  %8728 = vrot.lane.b32.xlu1 %v12120_v54, %s13616_s26  ;;  %v6212_v50 = vsel %vm13746_vm2, %v6207_v12, %v6211_v15  ;;  %v12056_v40 = vcombine.low %v7763_v10, %v7766_v59  ;;  %v8370_v32 = vshll.u32 %v8196_v61, 16  ;;  %v7248_v37 = vld [vmem:[#allocation3 + $0x58] sm:$0xf]  ;;  %v7667_v53 = vld [vmem:[#allocation3 + $0x54] sm:$0xe]  ;;  %v13262_v44 = vld [vmem:[%s17738_s3 + $0x80] sm:$0xff]   ;;  %12767 = vmatpush3.bf16.msra.mxu0 %v13259_v5 }
 0x308   : > { %v8357_v8 = vor.u32 %v8356_v26, %v8353_v48  ;;  %v11903_v46 = vcombine.low %v6202_v20, %v6212_v50  ;;  %v8366_v3 = vrot.slane %v8364_v56, 4  ;;  %v6214_v49 = vshrl.u32 %v5879_v39, 16  ;;  %v7249_v25 = vld [vmem:[#allocation3 + $0x5c] sm:$0x1]  ;;  %v8172_v26 = vld [vmem:[#allocation3 + $0x6c] sm:$0xf]  ;;  %12768 = vmatprep.subr.bf16.mxu0 %v13261_v29 }
 0x309   : > { %v6217_v27 = vshll.u32 %v5879_v39, 16  ;;  %v8372_v54 = vrot.slane %v8370_v32, 5  ;;  %v6223_v4 = vshll.u32 %v5880_v36, 16  ;;  %v6227_v15 = vshrl.u32 %v5880_v36, 16 }
 0x30a   : > { %v8358_v31 = vrot.slane %v8357_v8, 4  ;;  %6437 = vrot.lane.b32.xlu0 %v11903_v46, %s13616_s26  ;;  %v8367_v10 = vor.u32 %v8366_v3, %v8362_v55  ;;  %v6216_v61 = vrot.slane %v6214_v49, 4  ;;  %v6233_v48 = vshll.u32 %v5898_v2, 16  ;;  %v8173_v3 = vld [vmem:[#allocation3 + $0x70] sm:$0xf] }
 0x30b   : > { %v6219_v12 = vrot.slane %v6217_v27, 5  ;;  %7031 = vrot.lane.b32.xlu1 %v13216_v60, %s13616_s26  ;;  %v6225_v20 = vrot.slane %v6223_v4, 5  ;;  %v6229_v59 = vrot.slane %v6227_v15, 4  ;;  %v12025_v56 = vrot.slane %v7667_v53, 9  ;;  %12769 = vmatpush3.bf16.msra.mxu0 %v13262_v44  ;;  %v8197_v2 = vld [vmem:[#allocation3 + $0x74] sm:$0x1] }
 0x30c   : > { %v8363_v39 = vsel %vm13746_vm2, %v8358_v31, %v8362_v55  ;;  %v8368_v50 = vrot.slane %v8367_v10, 4  ;;  %v6235_v36 = vrot.slane %v6233_v48, 5  ;;  %v7769_v5 = vrot.slane %v7248_v37, 5 }
 0x30d   : > { %v6220_v8 = vor.u32 %v6219_v12, %v6216_v61  ;;  %v6230_v32 = vor.u32 %v6229_v59, %v6225_v20  ;;  %v7772_v46 = vrot.slane %v7249_v25, 5  ;;  %v8375_v49 = vshrl.u32 %v8172_v26, 16  ;;  %v5881_v25 = vld [vmem:[#allocation3 + $0xa8] sm:$0xf]  ;;  %v5899_v59 = vld [vmem:[#allocation3 + $0xb0] sm:$0x1] }
 0x30e   : > { %v8378_v27 = vshll.u32 %v8172_v26, 16  ;;  %7943 = vrot.lane.b32.xlu0 %v12056_v40, %s13616_s26  ;;  %v8373_v29 = vsel %vm13746_vm2, %v8368_v50, %v8372_v54  ;;  %v7770_v4 = vsel %vm13955_vm5, %v12025_v56, %v7769_v5  ;;  %v7771_v55 = vrot.slane %v7769_v5, 4  ;;  %v5882_v54 = vld [vmem:[#allocation3 + $0xac] sm:$0xf]  ;;  %v7251_v56 = vld [vmem:[#allocation3 + $0x64] sm:$0xf] }
 0x30f   : > { %v6221_v60 = vrot.slane %v6220_v8, 4  ;;  %v12121_v53 = vcombine.low %v8363_v39, %v8373_v29  ;;  %v6231_v31 = vrot.slane %v6230_v32, 4  ;;  %v8377_v37 = vrot.slane %v8375_v49, 4  ;;  %v7252_v32 = vld [vmem:[#allocation3 + $0x68] sm:$0x1] }
 0x310   : > { %v8380_v15 = vrot.slane %v8378_v27, 5  ;;  %v7773_v40 = vsel %vm13955_vm5, %v7771_v55, %v7772_v46  ;;  %v8384_v44 = vshll.u32 %v8173_v3, 16  ;;  %v8388_v61 = vshrl.u32 %v8173_v3, 16  ;;  %v7668_v49 = vld [vmem:[#allocation3 + $0x60] sm:$0xe]  ;;  %v13217_v46 = vld [vmem:[#allocation3 + $0xb4] sm:$0xff]  }
 0x311   : > { %v6226_v10 = vsel %vm13746_vm2, %v6221_v60, %v6225_v20  ;;  %8730 = vrot.lane.b32.xlu1 %v12121_v53, %s13616_s26  ;;  %v6236_v12 = vsel %vm13746_vm2, %v6231_v31, %v6235_v36  ;;  %v12057_v48 = vcombine.low %v7770_v4, %v7773_v40  ;;  %v8394_v39 = vshll.u32 %v8197_v2, 16  ;;  %v8174_v2 = vld [vmem:[#allocation3 + $0x78] sm:$0xf] }
 0x312   : > { %v8381_v26 = vor.u32 %v8380_v15, %v8377_v37  ;;  %v11904_v50 = vcombine.low %v6226_v10, %v6236_v12  ;;  %v8386_v8 = vrot.slane %v8384_v44, 5  ;;  %v8390_v5 = vrot.slane %v8388_v61, 4 }
 0x313   : > { %v6238_v20 = vshrl.u32 %v5881_v25, 16  ;;  %v8396_v3 = vrot.slane %v8394_v39, 5  ;;  %v6241_v29 = vshll.u32 %v5881_v25, 16  ;;  %v6247_v60 = vshll.u32 %v5882_v54, 16  ;;  %v8175_v39 = vld [vmem:[#allocation3 + $0x7c] sm:$0xf] }
 0x314   : > { %v8382_v27 = vrot.slane %v8381_v26, 4  ;;  %6439 = vrot.lane.b32.xlu0 %v11904_v50, %s13616_s26  ;;  %v8391_v55 = vor.u32 %v8390_v5, %v8386_v8  ;;  %v6251_v4 = vshrl.u32 %v5882_v54, 16  ;;  %v6257_v53 = vshll.u32 %v5899_v59, 16  ;;  %v16311_v54 = vpop.permute.xlu1 %7005 }
 0x315   : > { %v6240_v36 = vrot.slane %v6238_v20, 4  ;;  %7033 = vrot.lane.b32.xlu1 %v13217_v46, %s13616_s26  ;;  %v6243_v37 = vrot.slane %v6241_v29, 5  ;;  %v6249_v15 = vrot.slane %v6247_v60, 5  ;;  %v12026_v10 = vrot.slane %v7668_v49, 9  ;;  %v8198_v46 = vld [vmem:[#allocation3 + $0x80] sm:$0x1] }
 0x316   : > { %v8387_v31 = vsel %vm13746_vm2, %v8382_v27, %v8386_v8  ;;  %v8392_v40 = vrot.slane %v8391_v55, 4  ;;  %v6253_v44 = vrot.slane %v6251_v4, 4  ;;  %v6259_v61 = vrot.slane %v6257_v53, 5  ;;  %v5883_v60 = vld [vmem:[#allocation3 + $0xb4] sm:$0xf] }
 0x317   : > { %v7776_v25 = vrot.slane %v7251_v56, 5  ;;  %v6244_v12 = vor.u32 %v6243_v37, %v6240_v36  ;;  %v7779_v26 = vrot.slane %v7252_v32, 5  ;;  %v8399_v50 = vshrl.u32 %v8174_v2, 16 }
 0x318   : > { %v8402_v5 = vshll.u32 %v8174_v2, 16  ;;  %7945 = vrot.lane.b32.xlu0 %v12057_v48, %s13616_s26  ;;  %v8397_v59 = vsel %vm13746_vm2, %v8392_v40, %v8396_v3  ;;  %v6254_v8 = vor.u32 %v6253_v44, %v6249_v15  ;;  %v8408_v4 = vshll.u32 %v8175_v39, 16 }
 0x319   : > { %v7777_v20 = vsel %vm13955_vm5, %v12026_v10, %v7776_v25  ;;  %v7778_v49 = vrot.slane %v7776_v25, 4  ;;  %v12122_v27 = vcombine.low %v8387_v31, %v8397_v59  ;;  %v6245_v56 = vrot.slane %v6244_v12, 4  ;;  %v5884_v10 = vld [vmem:[#allocation3 + $0xb8] sm:$0xf]  ;;  %v8176_v31 = vld [vmem:[#allocation3 + $0x84] sm:$0xf] }
 0x31a   : > { %v8401_v29 = vrot.slane %v8399_v50, 4  ;;  %v8404_v32 = vrot.slane %v8402_v5, 5  ;;  %v6255_v55 = vrot.slane %v6254_v8, 4  ;;  %v8412_v48 = vshrl.u32 %v8175_v39, 16  ;;  %v5900_v12 = vld [vmem:[#allocation3 + $0xbc] sm:$0x1] }
 0x31b   : > { %v7780_v36 = vsel %vm13955_vm5, %v7778_v49, %v7779_v26  ;;  %8732 = vrot.lane.b32.xlu1 %v12122_v27, %s13616_s26  ;;  %v6250_v3 = vsel %vm13746_vm2, %v6245_v56, %v6249_v15  ;;  %v8418_v37 = vshll.u32 %v8198_v46, 16  ;;  %v8410_v44 = vrot.slane %v8408_v4, 5  ;;  %v13220_v5 = vld [vmem:[#allocation3 + $0xc0] sm:$0xff]   ;;  %v16325_v49 = vpop.permute.xlu1 %7007  ;;  %v8177_v56 = vld [vmem:[#allocation3 + $0x88] sm:$0xf] }
 0x31c   : > { %v12058_v53 = vcombine.low %v7777_v20, %v7780_v36  ;;  %v8405_v2 = vor.u32 %v8404_v32, %v8401_v29  ;;  %v6260_v40 = vsel %vm13746_vm2, %v6255_v55, %v6259_v61  ;;  %v8414_v25 = vrot.slane %v8412_v48, 4  ;;  %v8199_v48 = vld [vmem:[#allocation3 + $0x8c] sm:$0x1] }
 0x31d   : > { %v6262_v50 = vshrl.u32 %v5883_v60, 16  ;;  %v11905_v26 = vcombine.low %v6250_v3, %v6260_v40  ;;  %v8420_v59 = vrot.slane %v8418_v37, 5  ;;  %v6265_v8 = vshll.u32 %v5883_v60, 16 }
 0x31e   : > { %v8406_v39 = vrot.slane %v8405_v2, 4  ;;  %v8415_v15 = vor.u32 %v8414_v25, %v8410_v44  ;;  %v6271_v27 = vshll.u32 %v5884_v10, 16  ;;  %v6275_v46 = vshrl.u32 %v5884_v10, 16  ;;  %v7669_v25 = vld [vmem:[#allocation3 + $0x6c] sm:$0xe] }
 0x31f   : > { %v6264_v20 = vrot.slane %v6262_v50, 4  ;;  %6441 = vrot.lane.b32.xlu0 %v11905_v26, %s13616_s26  ;;  %7035 = vrot.lane.b32.xlu1 %v13220_v5, %s13616_s26  ;;  %v6267_v29 = vrot.slane %v6265_v8, 5  ;;  %v6281_v32 = vshll.u32 %v5900_v12, 16  ;;  %v8423_v55 = vshrl.u32 %v8176_v31, 16 }
 0x320   : > { %v8411_v61 = vsel %vm13746_vm2, %v8406_v39, %v8410_v44  ;;  %v8416_v36 = vrot.slane %v8415_v15, 4  ;;  %v6273_v4 = vrot.slane %v6271_v27, 5  ;;  %v6277_v60 = vrot.slane %v6275_v46, 4  ;;  %v7254_v44 = vld [vmem:[#allocation3 + $0x70] sm:$0xf] }
 0x321   : > { %v8426_v3 = vshll.u32 %v8176_v31, 16  ;;  %v6268_v2 = vor.u32 %v6267_v29, %v6264_v20  ;;  %v6283_v37 = vrot.slane %v6281_v32, 5  ;;  %v8425_v40 = vrot.slane %v8423_v55, 4  ;;  %v7255_v39 = vld [vmem:[#allocation3 + $0x74] sm:$0x1]  ;;  %v16334_v20 = vpop.permute.xlu1 %7009 }
 0x322   : > { %v8432_v10 = vshll.u32 %v8177_v56, 16  ;;  %v8421_v50 = vsel %vm13746_vm2, %v8416_v36, %v8420_v59  ;;  %v6278_v26 = vor.u32 %v6277_v60, %v6273_v4  ;;  %v8436_v41 = vshrl.u32 %v8177_v56, 16  ;;  %v8178_v31 = vld [vmem:[#allocation3 + $0x90] sm:$0xf] }
 0x323   : > { %v8428_v5 = vrot.slane %v8426_v3, 5  ;;  %7947 = vrot.lane.b32.xlu0 %v12058_v53, %s13616_s26  ;;  %v12123_v12 = vcombine.low %v8411_v61, %v8421_v50  ;;  %v6269_v8 = vrot.slane %v6268_v2, 4  ;;  %v8442_v27 = vshll.u32 %v8199_v48, 16  ;;  %v8179_v53 = vld [vmem:[#allocation3 + $0x94] sm:$0xf]  ;;  %v16339_v61 = vpop.permute.xlu0 %6413 }
 0x324   : > { %v8434_v15 = vrot.slane %v8432_v10, 5  ;;  %v6279_v46 = vrot.slane %v6278_v26, 4  ;;  %v8438_v32 = vrot.slane %v8436_v41, 4  ;;  %v12027_v55 = vrot.slane %v7669_v25, 9  ;;  %v8200_v10 = vld [vmem:[#allocation3 + $0x98] sm:$0x1] }
 0x325   : > { %v8429_v29 = vor.u32 %v8428_v5, %v8425_v40  ;;  %8734 = vrot.lane.b32.xlu1 %v12123_v12, %s13616_s26  ;;  %v6274_v59 = vsel %vm13746_vm2, %v6269_v8, %v6273_v4  ;;  %v8444_v56 = vrot.slane %v8442_v27, 5  ;;  %v7783_v36 = vrot.slane %v7254_v44, 5  ;;  %v7257_v4 = vld [vmem:[#allocation3 + $0x7c] sm:$0xf]  ;;  %v7670_v5 = vld [vmem:[#allocation3 + $0x78] sm:$0xe] }
 0x326   : > { %v7786_v60 = vrot.slane %v7255_v39, 5  ;;  %v6284_v48 = vsel %vm13746_vm2, %v6279_v46, %v6283_v37  ;;  %v8439_v2 = vor.u32 %v8438_v32, %v8434_v15  ;;  %v8447_v40 = vshrl.u32 %v8178_v31, 16  ;;  %v7258_v27 = vld [vmem:[#allocation3 + $0x80] sm:$0x1] }
 0x327   : > { %v8430_v3 = vrot.slane %v8429_v29, 4  ;;  %v11906_v41 = vcombine.low %v6274_v59, %v6284_v48  ;;  %v7784_v25 = vsel %vm13955_vm5, %v12027_v55, %v7783_v36  ;;  %v7785_v50 = vrot.slane %v7783_v36, 4  ;;  %v8180_v55 = vld [vmem:[#allocation3 + $0x9c] sm:$0xf]  ;;  %v16350_v59 = vpop.permute.xlu1 %7011  ;;  %v16354_v17 = vpop.permute.xlu0 %6415 }
 0x328   : > { %v8450_v26 = vshll.u32 %v8178_v31, 16  ;;  %v8440_v39 = vrot.slane %v8439_v2, 4  ;;  %v8449_v12 = vrot.slane %v8447_v40, 4  ;;  %v8456_v8 = vshll.u32 %v8179_v53, 16 }
 0x329   : > { %v8435_v44 = vsel %vm13746_vm2, %v8430_v3, %v8434_v15  ;;  %6443 = vrot.lane.b32.xlu0 %v11906_v41, %s13616_s26  ;;  %v7787_v37 = vsel %vm13955_vm5, %v7785_v50, %v7786_v60  ;;  %v8460_v29 = vshrl.u32 %v8179_v53, 16  ;;  %v8466_v32 = vshll.u32 %v8200_v10, 16  ;;  %v8181_v3 = vld [vmem:[#allocation3 + $0xa0] sm:$0xf]  ;;  %v8201_v53 = vld [vmem:[#allocation3 + $0xa4] sm:$0x1] }
 0x32a   : > { %v8452_v46 = vrot.slane %v8450_v26, 5  ;;  %v8445_v31 = vsel %vm13746_vm2, %v8440_v39, %v8444_v56  ;;  %v12059_v36 = vcombine.low %v7784_v25, %v7787_v37  ;;  %v8458_v15 = vrot.slane %v8456_v8, 5  ;;  %v7671_v8 = vld [vmem:[#allocation3 + $0x84] sm:$0xe] }
 0x32b   : > { %v12028_v48 = vrot.slane %v7670_v5, 9  ;;  %v12124_v2 = vcombine.low %v8435_v44, %v8445_v31  ;;  %v8462_v19 = vrot.slane %v8460_v29, 4  ;;  %v8468_v41 = vrot.slane %v8466_v32, 5  ;;  %v7261_v31 = vld [vmem:[#allocation3 + $0x8c] sm:$0x1] }
 0x32c   : > { %v8453_v40 = vor.u32 %v8452_v46, %v8449_v12  ;;  %v7790_v60 = vrot.slane %v7257_v4, 5  ;;  %v7793_v50 = vrot.slane %v7258_v27, 5  ;;  %v8471_v10 = vshrl.u32 %v8180_v55, 16  ;;  %v7260_v4 = vld [vmem:[#allocation3 + $0x88] sm:$0xf] }
 0x32d   : > { %v8474_v26 = vshll.u32 %v8180_v55, 16  ;;  %8736 = vrot.lane.b32.xlu1 %v12124_v2, %s13616_s26  ;;  %7949 = vrot.lane.b32.xlu0 %v12059_v36, %s13616_s26  ;;  %v8463_v25 = vor.u32 %v8462_v19, %v8458_v15  ;;  %v8480_v39 = vshll.u32 %v8181_v3, 16  ;;  %v8484_v5 = vshrl.u32 %v8181_v3, 16  ;;  %v16362_v36 = vpop.permute.xlu1 %7013 }
 0x32e   : > { %v8454_v56 = vrot.slane %v8453_v40, 4  ;;  %v7791_v44 = vsel %vm13955_vm5, %v12028_v48, %v7790_v60  ;;  %v7792_v12 = vrot.slane %v7790_v60, 4  ;;  %v8473_v37 = vrot.slane %v8471_v10, 4  ;;  %v8182_v48 = vld [vmem:[#allocation3 + $0xa8] sm:$0xf] }
 0x32f   : > { %v8476_v46 = vrot.slane %v8474_v26, 5  ;;  %v8464_v29 = vrot.slane %v8463_v25, 4  ;;  %v8482_v32 = vrot.slane %v8480_v39, 5  ;;  %v8486_v55 = vrot.slane %v8484_v5, 4  ;;  %v16368_v25 = vpop.permute.xlu0 %6417 }
 0x330   : > { %v8459_v27 = vsel %vm13746_vm2, %v8454_v56, %v8458_v15  ;;  %v7794_v19 = vsel %vm13955_vm5, %v7792_v12, %v7793_v50  ;;  %v8490_v2 = vshll.u32 %v8201_v53, 16  ;;  %v12029_v40 = vrot.slane %v7671_v8, 9  ;;  %v8183_v15 = vld [vmem:[#allocation3 + $0xac] sm:$0xf]  ;;  %v8202_v56 = vld [vmem:[#allocation3 + $0xb0] sm:$0x1] }
 0x331   : > { %v8477_v3 = vor.u32 %v8476_v46, %v8473_v37  ;;  %v8469_v60 = vsel %vm13746_vm2, %v8464_v29, %v8468_v41  ;;  %v12060_v10 = vcombine.low %v7791_v44, %v7794_v19  ;;  %v8487_v26 = vor.u32 %v8486_v55, %v8482_v32  ;;  %v6638_v44 = vld [vmem:[#allocation3 + $0x4] sm:$0xf] }
 0x332   : > { %v7797_v14 = vrot.slane %v7260_v4, 5  ;;  %v12125_v39 = vcombine.low %v8459_v27, %v8469_v60  ;;  %v8492_v28 = vrot.slane %v8490_v2, 5  ;;  %v7800_v63 = vrot.slane %v7261_v31, 5  ;;  %v6639_v27 = vld [vmem:[#allocation3 + $0x8] sm:$0x1]  ;;  %v16380_v2 = vpop.permute.xlu1 %7015 }
 0x333   : > { %v8478_v5 = vrot.slane %v8477_v3, 4  ;;  %7951 = vrot.lane.b32.xlu0 %v12060_v10, %s13616_s26  ;;  %v8488_v50 = vrot.slane %v8487_v26, 4  ;;  %v8495_v41 = vshrl.u32 %v8182_v48, 16  ;;  %v8498_v37 = vshll.u32 %v8182_v48, 16  ;;  %v7672_v3 = vld [vmem:[#allocation3 + $0x90] sm:$0xe] }
 0x334   : > { %v7798_v53 = vsel %vm13955_vm5, %v12029_v40, %v7797_v14  ;;  %v7799_v8 = vrot.slane %v7797_v14, 4  ;;  %8738 = vrot.lane.b32.xlu1 %v12125_v39, %s13616_s26  ;;  %v8504_v46 = vshll.u32 %v8183_v15, 16  ;;  %v8508_v4 = vshrl.u32 %v8183_v15, 16  ;;  %v7263_v14 = vld [vmem:[#allocation3 + $0x94] sm:$0xf] }
 0x335   : > { %v8483_v12 = vsel %vm13746_vm2, %v8478_v5, %v8482_v32  ;;  %v8493_v29 = vsel %vm13746_vm2, %v8488_v50, %v8492_v28  ;;  %v8497_v31 = vrot.slane %v8495_v41, 4  ;;  %v8514_v19 = vshll.u32 %v8202_v56, 16  ;;  %v7264_v48 = vld [vmem:[#allocation3 + $0x98] sm:$0x1]  ;;  %v16382_v28 = vpop.permute.xlu0 %6419 }
 0x336   : > { %v7801_v55 = vsel %vm13955_vm5, %v7799_v8, %v7800_v63  ;;  %v12126_v40 = vcombine.low %v8483_v12, %v8493_v29  ;;  %v8500_v10 = vrot.slane %v8498_v37, 5  ;;  %v8506_v32 = vrot.slane %v8504_v46, 5  ;;  %v8185_v41 = vld [vmem:[#allocation3 + $0xb8] sm:$0xf] }
 0x337   : > { %v12061_v60 = vcombine.low %v7798_v53, %v7801_v55  ;;  %v8510_v26 = vrot.slane %v8508_v4, 4  ;;  %v8516_v15 = vrot.slane %v8514_v19, 5  ;;  %v11939_v39 = vrot.slane %v6637_v51, 9 }
 0x338   : > { %v6735_v5 = vrot.slane %v6638_v44, 5  ;;  %8740 = vrot.lane.b32.xlu1 %v12126_v40, %s13616_s26  ;;  %v8501_v63 = vor.u32 %v8500_v10, %v8497_v31  ;;  %v6738_v56 = vrot.slane %v6639_v27, 5  ;;  %v12030_v50 = vrot.slane %v7672_v3, 9  ;;  %v8203_v27 = vld [vmem:[#allocation3 + $0xbc] sm:$0x1]  ;;  %v16392_v3 = vpop.permute.xlu1 %7017 }
 0x339   : > { %7953 = vrot.lane.b32.xlu0 %v12061_v60, %s13616_s26  ;;  %v7804_v8 = vrot.slane %v7263_v14, 5  ;;  %v8511_v53 = vor.u32 %v8510_v26, %v8506_v32  ;;  %v7807_v46 = vrot.slane %v7264_v48, 5  ;;  %v8519_v29 = vshrl.u32 %v8184_v16, 16  ;;  %v6640_v26 = vld [vmem:[#allocation3 + $0xc] sm:$0xe] }
 0x33a   : > { %v6736_v12 = vsel %vm13955_vm5, %v11939_v39, %v6735_v5  ;;  %v6737_v37 = vrot.slane %v6735_v5, 4  ;;  %v8502_v51 = vrot.slane %v8501_v63, 4  ;;  %v8522_v19 = vshll.u32 %v8184_v16, 16  ;;  %v6641_v39 = vld [vmem:[#allocation3 + $0x10] sm:$0xf] }
 0x33b   : > { %v7805_v44 = vsel %vm13955_vm5, %v12030_v50, %v7804_v8  ;;  %v7806_v4 = vrot.slane %v7804_v8, 4  ;;  %v8512_v55 = vrot.slane %v8511_v53, 4  ;;  %v8528_v14 = vshll.u32 %v8185_v41, 16  ;;  %v6642_v16 = vld [vmem:[#allocation3 + $0x14] sm:$0x1]  ;;  %v16400_v53 = vpop.permute.xlu0 %6421 }
 0x33c   : > { %v6739_v31 = vsel %vm13955_vm5, %v6737_v37, %v6738_v56  ;;  %v8507_v40 = vsel %vm13746_vm2, %v8502_v51, %v8506_v32  ;;  %v8521_v48 = vrot.slane %v8519_v29, 4  ;;  %v8524_v56 = vrot.slane %v8522_v19, 5  ;;  %v7266_v8 = vld [vmem:[#allocation3 + $0xa0] sm:$0xf]  ;;  %v16406_v30 = vpop.permute.xlu1 %7019 }
 0x33d   : > { %v11955_v60 = vcombine.low %v6736_v12, %v6739_v31  ;;  %v7808_v10 = vsel %vm13955_vm5, %v7806_v4, %v7807_v46  ;;  %v8517_v5 = vsel %vm13746_vm2, %v8512_v55, %v8516_v15  ;;  %v8530_v50 = vrot.slane %v8528_v14, 5  ;;  %v7267_v46 = vld [vmem:[#allocation3 + $0xa4] sm:$0x1]  ;;  %v7673_v4 = vld [vmem:[#allocation3 + $0x9c] sm:$0xe] }
 0x33e   : > { %v12062_v63 = vcombine.low %v7805_v44, %v7808_v10  ;;  %v12127_v37 = vcombine.low %v8507_v40, %v8517_v5  ;;  %v8532_v12 = vshrl.u32 %v8185_v41, 16  ;;  %v8538_v51 = vshll.u32 %v8203_v27, 16  ;;  %v8186_v55 = vld [vmem:[#allocation3 + $0xc0] sm:$0xf]  ;;  %v8187_v5 = vld [vmem:[#allocation3 + $0xc4] sm:$0xf] }
 0x33f   : > { %v7039_v32 = vsel %vm819_vm6, %v11955_v60, %v16311_v54  ;;  %v8525_v15 = vor.u32 %v8524_v56, %v8521_v48  ;;  %v11940_v44 = vrot.slane %v6640_v26, 9  ;;  %v6742_v10 = vrot.slane %v6641_v39, 5 }
 0x340   : > { %v11987_v29 = vcombine.low %v7039_v32, %v7039_v32  ;;  %v11988_v31 = vcombine.high %v7039_v32, %v7039_v32  ;;  %7955 = vrot.lane.b32.xlu0 %v12062_v63, %s13616_s26  ;;  %8742 = vrot.lane.b32.xlu1 %v12127_v37, %s13616_s26  ;;  %v8534_v19 = vrot.slane %v8532_v12, 4  ;;  %v8540_v14 = vrot.slane %v8538_v51, 5  ;;  %v8204_v37 = vld [vmem:[#allocation3 + $0xc8] sm:$0x1] }
 0x341   : > { %v6745_v40 = vrot.slane %v6642_v16, 5  ;;  %v8526_v54 = vrot.slane %v8525_v15, 4  ;;  %v12031_v41 = vrot.slane %v7673_v4, 9  ;;  %v7811_v27 = vrot.slane %v7266_v8, 5  ;;  %v16414_v8 = vpop.permute.xlu0 %6423 }
 0x342   : > { %7197 = vst [vmem:[#allocation2 + $0x4] sm:$0xf] %v11987_v29  ;;  %7198 = vst [vmem:[#allocation2 + $0x18] sm:$0xf] %v11988_v31  ;;  %v7814_v60 = vrot.slane %v7267_v46, 5  ;;  %v8535_v32 = vor.u32 %v8534_v19, %v8530_v50  ;;  %v6743_v48 = vsel %vm13955_vm5, %v11940_v44, %v6742_v10  ;;  %v6744_v26 = vrot.slane %v6742_v10, 4 }
 0x343   : > { %v8543_v63 = vshrl.u32 %v8186_v55, 16  ;;  %v8531_v56 = vsel %vm13746_vm2, %v8526_v54, %v8530_v50  ;;  %v7812_v39 = vsel %vm13955_vm5, %v12031_v41, %v7811_v27  ;;  %v7813_v16 = vrot.slane %v7811_v27, 4  ;;  %v6643_v41 = vld [vmem:[#allocation3 + $0x18] sm:$0xe]  ;;  %v6644_v27 = vld [vmem:[#allocation3 + $0x1c] sm:$0xf]  ;;  %v16424_v24 = vpop.permute.xlu1 %8718 }
 0x344   : > { %v8546_v12 = vshll.u32 %v8186_v55, 16  ;;  %v8536_v51 = vrot.slane %v8535_v32, 4  ;;  %v6746_v46 = vsel %vm13955_vm5, %v6744_v26, %v6745_v40  ;;  %v8552_v29 = vshll.u32 %v8187_v5, 16 }
 0x345   : > { %v8545_v4 = vrot.slane %v8543_v63, 4  ;;  %v11956_v31 = vcombine.low %v6743_v48, %v6746_v46  ;;  %v7815_v15 = vsel %vm13955_vm5, %v7813_v16, %v7814_v60  ;;  %v8556_v50 = vshrl.u32 %v8187_v5, 16  ;;  %v6645_v48 = vld [vmem:[#allocation3 + $0x20] sm:$0x1]  ;;  %v7674_v46 = vld [vmem:[#allocation3 + $0xa8] sm:$0xe] }
 0x346   : > { %v8548_v44 = vrot.slane %v8546_v12, 5  ;;  %v8541_v19 = vsel %vm13746_vm2, %v8536_v51, %v8540_v14  ;;  %v12063_v10 = vcombine.low %v7812_v39, %v7815_v15  ;;  %v8554_v54 = vrot.slane %v8552_v29, 5  ;;  %v7269_v16 = vld [vmem:[#allocation3 + $0xac] sm:$0xf] }
 0x347   : > { %v8562_v55 = vshll.u32 %v8204_v37, 16  ;;  %v12128_v32 = vcombine.low %v8531_v56, %v8541_v19  ;;  %v7042_v40 = vsel %vm819_vm6, %v11956_v31, %v16325_v49  ;;  %v8558_v63 = vrot.slane %v8556_v50, 4  ;;  %v7270_v37 = vld [vmem:[#allocation3 + $0xb0] sm:$0x1]  ;;  %v8188_v29 = vld [vmem:[#allocation3 + $0xcc] sm:$0xf]  ;;  %v16433_v31 = vpop.permute.xlu0 %6425 }
 0x348   : > { %v8549_v26 = vor.u32 %v8548_v44, %v8545_v4  ;;  %v11989_v60 = vcombine.low %v7042_v40, %v7042_v40  ;;  %v11990_v5 = vcombine.high %v7042_v40, %v7042_v40  ;;  %7957 = vrot.lane.b32.xlu0 %v12063_v10, %s13616_s26  ;;  %v17898_v39 = vcombine.low %v16077_v47, %v16079_v35  ;;  %v8189_v47 = vld [vmem:[#allocation3 + $0xd0] sm:$0xf] }
 0x349   : > { %v8564_v14 = vrot.slane %v8562_v55, 5  ;;  %8744 = vrot.lane.b32.xlu1 %v12128_v32, %s13616_s26  ;;  %v8559_v12 = vor.u32 %v8558_v63, %v8554_v54  ;;  %v11941_v15 = vrot.slane %v6643_v41, 9  ;;  %v6749_v44 = vrot.slane %v6644_v27, 5 }
 0x34a   : > { %v6447_v56 = vsel %vm819_vm6, %v17898_v39, %v16339_v61  ;;  %v8550_v49 = vrot.slane %v8549_v26, 4  ;;  %7199 = vst [vmem:[#allocation2 + $0x2c] sm:$0xf] %v11989_v60  ;;  %7200 = vst [vmem:[#allocation2 + $0x40] sm:$0xf] %v11990_v5  ;;  %v6752_v50 = vrot.slane %v6645_v48, 5  ;;  %v16443_v60 = vpop.permute.xlu1 %7021 }
 0x34b   : > { %v11907_v51 = vcombine.low %v6447_v56, %v6447_v56  ;;  %v11908_v4 = vcombine.high %v6447_v56, %v6447_v56  ;;  %v12032_v19 = vrot.slane %v7674_v46, 9  ;;  %v8560_v61 = vrot.slane %v8559_v12, 4  ;;  %v8205_v46 = vld [vmem:[#allocation3 + $0xd4] sm:$0x1] }
 0x34c   : > { %v8555_v35 = vsel %vm13746_vm2, %v8550_v49, %v8554_v54  ;;  %v7818_v10 = vrot.slane %v7269_v16, 5  ;;  %v7821_v55 = vrot.slane %v7270_v37, 5  ;;  %v6750_v32 = vsel %vm13955_vm5, %v11941_v15, %v6749_v44  ;;  %v6646_v37 = vld [vmem:[#allocation3 + $0x24] sm:$0xe]  ;;  %v6647_v49 = vld [vmem:[#allocation3 + $0x28] sm:$0xf]  ;;  %v16451_v15 = vpop.permute.xlu0 %6427 }
 0x34d   : > { %6605 = vst [vmem:[#allocation2] sm:$0xf] %v11907_v51  ;;  %6606 = vst [vmem:[#allocation2 + $0x14] sm:$0xf] %v11908_v4  ;;  %v6751_v40 = vrot.slane %v6749_v44, 4  ;;  %v8567_v26 = vshrl.u32 %v8188_v29, 16  ;;  %v8565_v41 = vsel %vm13746_vm2, %v8560_v61, %v8564_v14 }
 0x34e   : > { %v8570_v63 = vshll.u32 %v8188_v29, 16  ;;  %v7819_v27 = vsel %vm13955_vm5, %v12032_v19, %v7818_v10  ;;  %v7820_v48 = vrot.slane %v7818_v10, 4  ;;  %v8576_v54 = vshll.u32 %v8189_v47, 16  ;;  %v6648_v29 = vld [vmem:[#allocation3 + $0x2c] sm:$0x1] }
 0x34f   : > { %v12129_v5 = vcombine.low %v8555_v35, %v8565_v41  ;;  %v6753_v39 = vsel %vm13955_vm5, %v6751_v40, %v6752_v50  ;;  %v8569_v56 = vrot.slane %v8567_v26, 4  ;;  %v8580_v4 = vshrl.u32 %v8189_v47, 16  ;;  %v13463_v50 = vld [vmem:[#allocation3 + $0xc] sm:$0xf]  ;;  %v13464_v61 = vld [vmem:[#allocation3 + $0x10] sm:$0xf] }
 0x350   : > { %v8572_v16 = vrot.slane %v8570_v63, 5  ;;  %v11957_v12 = vcombine.low %v6750_v32, %v6753_v39  ;;  %v7822_v14 = vsel %vm13955_vm5, %v7820_v48, %v7821_v55  ;;  %v16449_v51 = vrot.slane %v8576_v54, 5  ;;  %v7272_v40 = vld [vmem:[#allocation3 + $0xb8] sm:$0xf]  ;;  %v7273_v26 = vld [vmem:[#allocation3 + $0xbc] sm:$0x1] }
 0x351   : > { %8746 = vrot.lane.b32.xlu1 %v12129_v5, %s13616_s26  ;;  %v12064_v44 = vcombine.low %v7819_v27, %v7822_v14  ;;  %v8586_v35 = vshll.u32 %v8205_v46, 16  ;;  %v11876_v10 = vcombine.low %v13463_v50, %v13464_v61  ;;  %v7675_v32 = vld [vmem:[#allocation3 + $0xb4] sm:$0xe]  ;;  %v8582_v63 = vrot.slane %v8580_v4, 4  ;;  %v6649_v48 = vld [vmem:[#allocation3 + $0x30] sm:$0xe] }
 0x352   : > { %v8573_v19 = vor.u32 %v8572_v16, %v8569_v56  ;;  %v7045_v55 = vsel %vm819_vm6, %v11957_v12, %v16334_v20  ;;  %v11942_v41 = vrot.slane %v6646_v37, 9  ;;  %v6756_v47 = vrot.slane %v6647_v49, 5  ;;  %v6650_v12 = vld [vmem:[#allocation3 + $0x34] sm:$0xf]  ;;  %v13229_v37 = vld [vmem:[#allocation2 + $0x4] ss:$20 sps:$4 sm:$0xff]   ;;  %v16462_v49 = vpop.permute.xlu1 %8720 }
 0x353   : > { %v11991_v54 = vcombine.low %v7045_v55, %v7045_v55  ;;  %v11992_v39 = vcombine.high %v7045_v55, %v7045_v55  ;;  %7959 = vrot.lane.b32.xlu0 %v12064_v44, %s13616_s26  ;;  %v8588_v5 = vrot.slane %v8586_v35, 5  ;;  %v8583_v56 = vor.u32 %v8582_v63, %v16449_v51  ;;  %10085 = vmatprep.mubr.bf16.mxu1 %v13229_v37  ;;  %v16470_v63 = vpop.permute.xlu0 %7933 }
 0x354   : > { %v8574_v27 = vrot.slane %v8573_v19, 4  ;;  %v13227_v46 = vld [vmem:[#allocation2] ss:$20 sps:$4 sm:$0xff]   ;;  %v6450_v16 = vsel %vm819_vm6, %v11876_v10, %v16354_v17  ;;  %v6757_v14 = vsel %vm13955_vm5, %v11942_v41, %v6756_v47  ;;  %v6758_v20 = vrot.slane %v6756_v47, 4  ;;  %v13466_v47 = vld [vmem:[#allocation3 + $0x1c] sm:$0xf] }
 0x355   : > { %7201 = vst [vmem:[#allocation2 + $0x54] sm:$0xf] %v11991_v54  ;;  %7202 = vst [vmem:[#allocation2 + $0x68] sm:$0xf] %v11992_v39  ;;  %v11909_v44 = vcombine.low %v6450_v16, %v6450_v16  ;;  %v11910_v19 = vcombine.high %v6450_v16, %v6450_v16  ;;  %v6759_v35 = vrot.slane %v6648_v29, 5  ;;  %v13267_v17 = vld [vmem:[%s17738_s3 + $0x110] sm:$0xff]   ;;  %10086 = vmatmul.mubr.bf16.vlgmr.msra.gmra.mxu1 %v13227_v46 }
 0x356   : > { %v8579_v4 = vsel %vm13746_vm2, %v8574_v27, %v16449_v51  ;;  %v8584_v50 = vrot.slane %v8583_v56, 4  ;;  %v12033_v61 = vrot.slane %v7675_v32, 9  ;;  %v7825_v10 = vrot.slane %v7272_v40, 5  ;;  %v13465_v51 = vld [vmem:[#allocation3 + $0x18] sm:$0xf] }
 0x357   : > { %v7828_v55 = vrot.slane %v7273_v26, 5  ;;  %6607 = vst [vmem:[#allocation2 + $0x28] sm:$0xf] %v11909_v44  ;;  %6608 = vst [vmem:[#allocation2 + $0x3c] sm:$0xf] %v11910_v19  ;;  %v6760_v41 = vsel %vm13955_vm5, %v6758_v20, %v6759_v35  ;;  %v11877_v54 = vcombine.low %v13465_v51, %v13466_v47  ;;  %v11943_v29 = vrot.slane %v6649_v48, 9 }
 0x358   : > { %v6763_v39 = vrot.slane %v6650_v12, 5  ;;  %v8589_v27 = vsel %vm13746_vm2, %v8584_v50, %v8588_v5  ;;  %v11958_v32 = vcombine.low %v6757_v14, %v6760_v41  ;;  %v7826_v40 = vsel %vm13955_vm5, %v12033_v61, %v7825_v10  ;;  %v6651_v56 = vld [vmem:[#allocation3 + $0x38] sm:$0x1]  ;;  %v7275_v16 = vld [vmem:[#allocation3 + $0xc4] sm:$0xf]  ;;  %v13300_v44 = vld [vmem:[%s17738_s3 + $0x108] sm:$0xff]   ;;  %v16492_v41 = vpop.permute.xlu1 %7023 }
 0x359   : > { %v7827_v26 = vrot.slane %v7825_v10, 4  ;;  %v13467_v20 = vld [vmem:[%s17738_s3 + $0x118] sm:$0xff]   ;;  %v12130_v37 = vcombine.low %v8579_v4, %v8589_v27  ;;  %v6453_v48 = vsel %vm819_vm6, %v11877_v54, %v16368_v25  ;;  %v7276_v14 = vld [vmem:[#allocation3 + $0xc8] sm:$0x1]  ;;  %v7676_v12 = vld [vmem:[#allocation3 + $0xc0] sm:$0xe] }
 0x35a   : > { %12927 = vmatpush3.bf16.msra.mxu1 %v13467_v20  ;;  %v6764_v46 = vsel %vm13955_vm5, %v11943_v29, %v6763_v39  ;;  %v6765_v5 = vrot.slane %v6763_v39, 4  ;;  %v7048_v19 = vsel %vm819_vm6, %v11958_v32, %v16350_v59  ;;  %v11911_v35 = vcombine.low %v6453_v48, %v6453_v48  ;;  %v6652_v25 = vld [vmem:[#allocation3 + $0x3c] sm:$0xe]  ;;  %v6653_v61 = vld [vmem:[#allocation3 + $0x40] sm:$0xf] }
 0x35b   : > { %12928 = vmatprep.subr.bf16.mxu1 %v13267_v17  ;;  %v7829_v4 = vsel %vm13955_vm5, %v7827_v26, %v7828_v55  ;;  %v11912_v50 = vcombine.high %v6453_v48, %v6453_v48  ;;  %v6654_v10 = vld [vmem:[#allocation3 + $0x44] sm:$0x1]  ;;  %8748 = vrot.lane.b32.xlu1 %v12130_v37, %s13616_s26  ;;  %v11993_v51 = vcombine.low %v7048_v19, %v7048_v19  ;;  %v6766_v29 = vrot.slane %v6651_v56, 5  ;;  %v13469_v55 = vld [vmem:[#allocation3 + $0x28] sm:$0xf]  ;;  %v16495_v48 = vpop.permute.xlu0 %6429 }
 0x35c   : > { %v11994_v47 = vcombine.high %v7048_v19, %v7048_v19  ;;  %v12065_v54 = vcombine.low %v7826_v40, %v7829_v4  ;;  %6609 = vst [vmem:[#allocation2 + $0x50] sm:$0xf] %v11911_v35  ;;  %v12034_v39 = vrot.slane %v7676_v12, 9  ;;  %v7832_v59 = vrot.slane %v7275_v16, 5  ;;  %v13468_v32 = vld [vmem:[#allocation3 + $0x24] sm:$0xf] }
 0x35d   : > { %6610 = vst [vmem:[#allocation2 + $0x64] sm:$0xf] %v11912_v50  ;;  %v7835_v27 = vrot.slane %v7276_v14, 5  ;;  %v11878_v26 = vcombine.low %v13468_v32, %v13469_v55  ;;  %v6655_v20 = vld [vmem:[#allocation3 + $0x48] sm:$0xe]  ;;  %v6767_v40 = vsel %vm13955_vm5, %v6765_v5, %v6766_v29  ;;  %v11944_v56 = vrot.slane %v6652_v25, 9  ;;  %v16513_v55 = vpop.permute.xlu1 %8722 }
 0x35e   : > { %12929 = vmatpush3.bf16.msra.mxu1 %v13267_v17  ;;  %7203 = vst [vmem:[#allocation2 + $0x7c] sm:$0xf] %v11993_v51  ;;  %7204 = vst [vmem:[#allocation2 + $0x90] sm:$0xf] %v11994_v47  ;;  %7961 = vrot.lane.b32.xlu0 %v12065_v54, %s13616_s26  ;;  %v6770_v37 = vrot.slane %v6653_v61, 5  ;;  %v6773_v19 = vrot.slane %v6654_v10, 5  ;;  %v11959_v14 = vcombine.low %v6764_v46, %v6767_v40 }
 0x35f   : > { %v6656_v12 = vld [vmem:[#allocation3 + $0x4c] sm:$0xf]  ;;  %12930 = vmatprep.subr.bf16.mxu1 %v13300_v44  ;;  %v13335_v16 = vld [vmem:[%s17738_s3 + $0x100] sm:$0xff]   ;;  %v7833_v17 = vsel %vm13955_vm5, %v12034_v39, %v7832_v59  ;;  %v7834_v4 = vrot.slane %v7832_v59, 4  ;;  %v6456_v35 = vsel %vm819_vm6, %v11878_v26, %v16382_v28  ;;  %v6657_v10 = vld [vmem:[#allocation3 + $0x50] sm:$0x1] }
 0x360   : > { %v13231_v50 = vld [vmem:[#allocation2 + $0x2c] ss:$20 sps:$4 sm:$0xff]   ;;  %v11913_v51 = vcombine.low %v6456_v35, %v6456_v35  ;;  %v11914_v5 = vcombine.high %v6456_v35, %v6456_v35  ;;  %v6771_v25 = vsel %vm13955_vm5, %v11944_v56, %v6770_v37  ;;  %v6772_v61 = vrot.slane %v6770_v37, 4  ;;  %v13236_v47 = vld [vmem:[#allocation2 + $0x28] ss:$20 sps:$4 sm:$0xff]  }
 0x361   : > { %v7051_v54 = vsel %vm819_vm6, %v11959_v14, %v16362_v36  ;;  %v7836_v46 = vsel %vm13955_vm5, %v7834_v4, %v7835_v27  ;;  %v13470_v29 = vld [vmem:[#allocation3 + $0x30] sm:$0xf]  ;;  %v13471_v39 = vld [vmem:[#allocation3 + $0x34] sm:$0xf]  ;;  %v11945_v32 = vrot.slane %v6655_v20, 9  ;;  %10093 = vmatprep.mubr.bf16.mxu1 %v13231_v50  ;;  %v6777_v20 = vrot.slane %v6656_v12, 5  ;;  %v16519_v50 = vpop.permute.xlu0 %7935 }
 0x362   : > { %v11879_v59 = vcombine.low %v13470_v29, %v13471_v39  ;;  %v6658_v28 = vld [vmem:[#allocation3 + $0x54] sm:$0xe]  ;;  %12931 = vmatpush3.bf16.msra.mxu1 %v13300_v44  ;;  %v11995_v26 = vcombine.low %v7051_v54, %v7051_v54  ;;  %v11996_v40 = vcombine.high %v7051_v54, %v7051_v54  ;;  %v12066_v56 = vcombine.low %v7833_v17, %v7836_v46  ;;  %v6659_v37 = vld [vmem:[#allocation3 + $0x58] sm:$0xf]  ;;  %v6660_v35 = vld [vmem:[#allocation3 + $0x5c] sm:$0x1] }
 0x363   : > { %6611 = vst [vmem:[#allocation2 + $0x78] sm:$0xf] %v11913_v51  ;;  %6612 = vst [vmem:[#allocation2 + $0x8c] sm:$0xf] %v11914_v5  ;;  %v6774_v36 = vsel %vm13955_vm5, %v6772_v61, %v6773_v19  ;;  %10094 = vmatmul.mubr.bf16.gmra.mxu1 %v13236_v47  ;;  %v6780_v4 = vrot.slane %v6657_v10, 5  ;;  %12932 = vmatprep.subr.bf16.mxu1 %v13335_v16  ;;  %v11946_v61 = vrot.slane %v6658_v28, 9 }
 0x364   : > { %v11960_v27 = vcombine.low %v6771_v25, %v6774_v36  ;;  %v6459_v14 = vsel %vm819_vm6, %v11879_v59, %v16400_v53  ;;  %7205 = vst [vmem:[#allocation2 + $0xa4] sm:$0xf] %v11995_v26  ;;  %7206 = vst [vmem:[#allocation2 + $0xb8] sm:$0xf] %v11996_v40  ;;  %7963 = vrot.lane.b32.xlu0 %v12066_v56, %s13616_s26  ;;  %v13472_v51 = vld [vmem:[#allocation3 + $0x3c] sm:$0xf]  ;;  %v6778_v12 = vsel %vm13955_vm5, %v11945_v32, %v6777_v20  ;;  %v16534_v56 = vpop.permute.xlu1 %7025 }
 0x365   : > { %v11915_v44 = vcombine.low %v6459_v14, %v6459_v14  ;;  %v11916_v17 = vcombine.high %v6459_v14, %v6459_v14  ;;  %v13473_v19 = vld [vmem:[#allocation3 + $0x40] sm:$0xf]  ;;  %v13238_v25 = vld [vmem:[#allocation2 + $0x54] ss:$20 sps:$4 sm:$0xff]   ;;  %v6779_v10 = vrot.slane %v6777_v20, 4  ;;  %v6784_v47 = vrot.slane %v6659_v37, 5 }
 0x366   : > { %v11880_v5 = vcombine.low %v13472_v51, %v13473_v19  ;;  %v7054_v53 = vsel %vm819_vm6, %v11960_v27, %v16380_v2  ;;  %v6661_v54 = vld [vmem:[#allocation3 + $0x60] sm:$0xe]  ;;  %12933 = vmatpush3.bf16.msra.mxu1 %v13335_v16  ;;  %v6787_v59 = vrot.slane %v6660_v35, 5  ;;  %10101 = vmatprep.mubr.bf16.mxu1 %v13238_v25  ;;  %v6662_v28 = vld [vmem:[#allocation3 + $0x64] sm:$0xf] }
 0x367   : > { %v11997_v46 = vcombine.low %v7054_v53, %v7054_v53  ;;  %v11998_v29 = vcombine.high %v7054_v53, %v7054_v53  ;;  %6613 = vst [vmem:[#allocation2 + $0xa0] sm:$0xf] %v11915_v44  ;;  %6614 = vst [vmem:[#allocation2 + $0xb4] sm:$0xf] %v11916_v17  ;;  %v16528_v26 = vld [vmem:[#allocation3 + $0x68] sm:$0x1]  ;;  %v6781_v2 = vsel %vm13955_vm5, %v6779_v10, %v6780_v4  ;;  %v16537_v53 = vpop.permute.xlu0 %6431 }
 0x368   : > { %v6462_v39 = vsel %vm819_vm6, %v11880_v5, %v16414_v8  ;;  %v6785_v16 = vsel %vm13955_vm5, %v11946_v61, %v6784_v47  ;;  %v11961_v36 = vcombine.low %v6778_v12, %v6781_v2  ;;  %v6786_v37 = vrot.slane %v6784_v47, 4  ;;  %v13474_v8 = vld [vmem:[#allocation3 + $0x48] sm:$0xf]  ;;  %v13475_v27 = vld [vmem:[#allocation3 + $0x4c] sm:$0xf] }
 0x369   : > { %v11917_v32 = vcombine.low %v6462_v39, %v6462_v39  ;;  %v11918_v40 = vcombine.high %v6462_v39, %v6462_v39  ;;  %7207 = vst [vmem:[#allocation2 + $0xcc] sm:$0xf] %v11997_v46  ;;  %7208 = vst [vmem:[#allocation2 + $0xe0] sm:$0xf] %v11998_v29  ;;  %v11881_v14 = vcombine.low %v13474_v8, %v13475_v27  ;;  %v13476_v20 = vld [vmem:[#allocation3 + $0x18] sm:$0xf] }
 0x36a   : > { %v13477_v35 = vld [vmem:[#allocation3 + $0x1c] sm:$0xf]  ;;  %v13246_v17 = vld [vmem:[#allocation2 + $0x50] ss:$20 sps:$4 sm:$0xff]   ;;  %v13478_v4 = vld [vmem:[#allocation3 + $0x54] sm:$0xf]  ;;  %v7057_v12 = vsel %vm819_vm6, %v11961_v36, %v16392_v3  ;;  %v6788_v10 = vsel %vm13955_vm5, %v6786_v37, %v6787_v59  ;;  %v16553_v36 = vpop.permute.xlu1 %8724 }
 0x36b   : > { %v12099_v44 = vcombine.low %v13476_v20, %v13477_v35  ;;  %6615 = vst [vmem:[#allocation2 + $0xc8] sm:$0xf] %v11917_v32  ;;  %6616 = vst [vmem:[#allocation2 + $0xdc] sm:$0xf] %v11918_v40  ;;  %v13479_v51 = vld [vmem:[#allocation3 + $0x58] sm:$0xf]  ;;  %v6465_v47 = vsel %vm819_vm6, %v11881_v14, %v16433_v31  ;;  %10102 = vmatmul.mubr.bf16.gmra.mxu1 %v13246_v17  ;;  %v12000_v39 = vcombine.high %v7057_v12, %v7057_v12 }
 0x36c   : > { %v11882_v19 = vcombine.low %v13478_v4, %v13479_v51  ;;  %v11947_v5 = vrot.slane %v6661_v54, 9  ;;  %v6791_v61 = vrot.slane %v6662_v28, 5  ;;  %v6794_v25 = vrot.slane %v16528_v26, 5  ;;  %v13248_v29 = vld [vmem:[#allocation2 + $0x7c] ss:$20 sps:$4 sm:$0xff]  }
 0x36d   : > { %v8752_v46 = vsel %vm819_vm6, %v12099_v44, %v16424_v24  ;;  %v11999_v54 = vcombine.low %v7057_v12, %v7057_v12  ;;  %v11962_v28 = vcombine.low %v6785_v16, %v6788_v10  ;;  %v11919_v26 = vcombine.low %v6465_v47, %v6465_v47  ;;  %v7229_v2 = vld [vmem:[#allocation3 + $0xc] sm:$0xf]  ;;  %10109 = vmatprep.mubr.bf16.mxu1 %v13248_v29  ;;  %v6665_v35 = vld [vmem:[#allocation3 + $0x70] sm:$0xf]  ;;  %v6666_v12 = vld [vmem:[#allocation3 + $0x74] sm:$0x1]  ;;  %v16559_v10 = vpop.permute.xlu0 %7937 }
 0x36e   : > { %v11920_v32 = vcombine.high %v6465_v47, %v6465_v47  ;;  %v12131_v40 = vcombine.low %v8752_v46, %v8752_v46  ;;  %v12132_v8 = vcombine.high %v8752_v46, %v8752_v46  ;;  %v6468_v3 = vsel %vm819_vm6, %v11882_v19, %v16451_v15  ;;  %7210 = vst [vmem:[#allocation2 + $0x108] sm:$0xf] %v12000_v39  ;;  %v6664_v20 = vld [vmem:[#allocation3 + $0x6c] sm:$0xe]  ;;  %v13480_v44 = vld [vmem:[#allocation3 + $0x10] sm:$0xf] }
 0x36f   : > { %7209 = vst [vmem:[#allocation2 + $0xf4] sm:$0xf] %v11999_v54  ;;  %v7060_v31 = vsel %vm819_vm6, %v11962_v28, %v16406_v30  ;;  %6617 = vst [vmem:[#allocation2 + $0xf0] sm:$0xf] %v11919_v26  ;;  %v11921_v24 = vcombine.low %v6468_v3, %v6468_v3  ;;  %v11922_v59 = vcombine.high %v6468_v3, %v6468_v3  ;;  %v6793_v15 = vrot.slane %v6791_v61, 4 }
 0x370   : > { %v6792_v16 = vsel %vm13955_vm5, %v11947_v5, %v6791_v61  ;;  %v12001_v37 = vcombine.low %v7060_v31, %v7060_v31  ;;  %v12002_v27 = vcombine.high %v7060_v31, %v7060_v31  ;;  %6618 = vst [vmem:[#allocation2 + $0x104] sm:$0xf] %v11920_v32  ;;  %8910 = vst [vmem:[#allocation2 + $0xc] sm:$0xf] %v12131_v40  ;;  %v7278_v14 = vshrl.u32 %v7229_v2, 16 }
 0x371   : > { %8911 = vst [vmem:[#allocation2 + $0x20] sm:$0xf] %v12132_v8  ;;  %6619 = vst [vmem:[#allocation2 + $0x118] sm:$0xf] %v11921_v24  ;;  %v7281_v30 = vshll.u32 %v7229_v2, 16  ;;  %v7287_v17 = vshll.u32 %v13480_v44, 16  ;;  %v6795_v61 = vsel %vm13955_vm5, %v6793_v15, %v6794_v25 }
 0x372   : > { %6620 = vst [vmem:[#allocation2 + $0x12c] sm:$0xf] %v11922_v59  ;;  %v17899_v4 = vshrl.u32 %v16073_v43, 16  ;;  %v17900_v19 = vshll.u32 %v16075_v58, 16  ;;  %7211 = vst [vmem:[#allocation2 + $0x11c] sm:$0xf] %v12001_v37  ;;  %v11963_v2 = vcombine.low %v6792_v16, %v6795_v61 }
 0x373   : > { %7212 = vst [vmem:[#allocation2 + $0x130] sm:$0xf] %v12002_v27  ;;  %v7280_v47 = vrot.slane %v7278_v14, 4  ;;  %v13481_v46 = vld [vmem:[#allocation3 + $0x24] sm:$0xf]  ;;  %v7283_v32 = vrot.slane %v7281_v30, 5  ;;  %v16569_v14 = vpop.permute.xlu1 %7027 }
 0x374   : > { %v7293_v51 = vrot.slane %v17899_v4, 4  ;;  %v7299_v5 = vrot.slane %v17900_v19, 5  ;;  %v13482_v29 = vld [vmem:[#allocation3 + $0x28] sm:$0xf]  ;;  %v13483_v39 = vld [vmem:[#allocation3 + $0x60] sm:$0xf]  ;;  %v7063_v59 = vsel %vm819_vm6, %v11963_v2, %v16443_v60  ;;  %v16573_v19 = vpop.permute.xlu0 %6433 }
 0x375   : > { %v12100_v54 = vcombine.low %v13481_v46, %v13482_v29  ;;  %v13484_v28 = vld [vmem:[#allocation3 + $0x64] sm:$0xf]  ;;  %v13255_v43 = vld [vmem:[#allocation2 + $0x78] ss:$20 sps:$4 sm:$0xff]   ;;  %v7289_v58 = vrot.slane %v7287_v17, 5  ;;  %v11948_v40 = vrot.slane %v6664_v20, 9  ;;  %v7284_v37 = vor.u32 %v7283_v32, %v7280_v47 }
 0x376   : > { %v11883_v26 = vcombine.low %v13483_v39, %v13484_v28  ;;  %v13257_v8 = vld [vmem:[#allocation2 + $0xa4] ss:$20 sps:$4 sm:$0xff]   ;;  %v6798_v25 = vrot.slane %v6665_v35, 5  ;;  %v6801_v24 = vrot.slane %v6666_v12, 5  ;;  %10110 = vmatmul.mubr.bf16.gmra.mxu1 %v13255_v43  ;;  %v12003_v20 = vcombine.low %v7063_v59, %v7063_v59  ;;  %v13485_v61 = vld [vmem:[#allocation3 + $0x1c] sm:$0xf] }
 0x377   : > { %v8755_v3 = vsel %vm819_vm6, %v12100_v54, %v16462_v49  ;;  %v7294_v27 = vor.u32 %v7293_v51, %v7289_v58  ;;  %10117 = vmatprep.mubr.bf16.mxu1 %v13257_v8  ;;  %v7232_v16 = vld [vmem:[#allocation3 + $0x18] sm:$0xf]  ;;  %v12004_v30 = vcombine.high %v7063_v59, %v7063_v59  ;;  %v7285_v17 = vrot.slane %v7284_v37, 4  ;;  %v6668_v2 = vld [vmem:[#allocation3 + $0x7c] sm:$0xf] }
 0x378   : > { %v6471_v31 = vsel %vm819_vm6, %v11883_v26, %v16495_v48  ;;  %v12133_v15 = vcombine.low %v8755_v3, %v8755_v3  ;;  %v12134_v44 = vcombine.high %v8755_v3, %v8755_v3  ;;  %v6799_v35 = vsel %vm13955_vm5, %v11948_v40, %v6798_v25  ;;  %7213 = vst [vmem:[#allocation2 + $0x144] sm:$0xf] %v12003_v20  ;;  %v6667_v46 = vld [vmem:[#allocation3 + $0x78] sm:$0xe]  ;;  %v13486_v59 = vld [vmem:[#allocation3 + $0x30] sm:$0xf]  ;;  %v16585_v20 = vpop.permute.xlu1 %8726 }
 0x379   : > { %v11923_v49 = vcombine.low %v6471_v31, %v6471_v31  ;;  %v7295_v4 = vrot.slane %v7294_v27, 4  ;;  %v11924_v48 = vcombine.high %v6471_v31, %v6471_v31  ;;  %7214 = vst [vmem:[#allocation2 + $0x158] sm:$0xf] %v12004_v30  ;;  %v6800_v60 = vrot.slane %v6798_v25, 4  ;;  %v13268_v31 = vld [vmem:[#allocation2 + $0xa0] ss:$20 sps:$4 sm:$0xff]  }
 0x37a   : > { %8912 = vst [vmem:[#allocation2 + $0x34] sm:$0xf] %v12133_v15  ;;  %8913 = vst [vmem:[#allocation2 + $0x48] sm:$0xf] %v12134_v44  ;;  %v7302_v51 = vshrl.u32 %v7232_v16, 16  ;;  %v7305_v12 = vshll.u32 %v7232_v16, 16  ;;  %v7290_v29 = vsel %vm13746_vm2, %v7285_v17, %v7289_v58 }
 0x37b   : > { %6621 = vst [vmem:[#allocation2 + $0x140] sm:$0xf] %v11923_v49  ;;  %v7311_v47 = vshll.u32 %v13485_v61, 16  ;;  %v7300_v54 = vsel %vm13746_vm2, %v7295_v4, %v7299_v5  ;;  %6622 = vst [vmem:[#allocation2 + $0x154] sm:$0xf] %v11924_v48  ;;  %v17901_v39 = vshrl.u32 %v16120_v6, 16  ;;  %v6802_v40 = vsel %vm13955_vm5, %v6800_v60, %v6801_v24 }
 0x37c   : > { %v17902_v26 = vshll.u32 %v16131_v42, 16  ;;  %v12035_v32 = vcombine.low %v7290_v29, %v7300_v54  ;;  %v7304_v8 = vrot.slane %v7302_v51, 4  ;;  %v7307_v3 = vrot.slane %v7305_v12, 5  ;;  %v13487_v37 = vld [vmem:[#allocation3 + $0x34] sm:$0xf] }
 0x37d   : > { %v7317_v28 = vrot.slane %v17901_v39, 4  ;;  %v11964_v25 = vcombine.low %v6799_v35, %v6802_v40  ;;  %v7313_v58 = vrot.slane %v7311_v47, 5  ;;  %v12101_v5 = vcombine.low %v13486_v59, %v13487_v37  ;;  %v13488_v27 = vld [vmem:[#allocation3 + $0x6c] sm:$0xf]  ;;  %v13489_v15 = vld [vmem:[#allocation3 + $0x70] sm:$0xf]  ;;  %v16591_v35 = vpop.permute.xlu0 %7939 }
 0x37e   : > { %v7323_v43 = vrot.slane %v17902_v26, 5  ;;  %v11884_v6 = vcombine.low %v13488_v27, %v13489_v15  ;;  %v13269_v16 = vld [vmem:[#allocation2 + $0xcc] ss:$20 sps:$4 sm:$0xff]   ;;  %v7967_v42 = vsel %vm819_vm6, %v12035_v32, %v16470_v63  ;;  %v7308_v30 = vor.u32 %v7307_v3, %v7304_v8  ;;  %10118 = vmatmul.mubr.bf16.gmra.mxu1 %v13268_v31  ;;  %v7235_v47 = vld [vmem:[#allocation3 + $0x24] sm:$0xf]  ;;  %v16603_v3 = vpop.permute.xlu1 %7029 }
 0x37f   : > { %v11949_v44 = vrot.slane %v6667_v46, 9  ;;  %v6805_v24 = vrot.slane %v6668_v2, 5  ;;  %v12067_v49 = vcombine.low %v7967_v42, %v7967_v42  ;;  %v12068_v17 = vcombine.high %v7967_v42, %v7967_v42  ;;  %10125 = vmatprep.mubr.bf16.mxu1 %v13269_v16  ;;  %v6669_v63 = vld [vmem:[#allocation3 + $0x80] sm:$0x1]  ;;  %v13491_v16 = vld [vmem:[#allocation3 + $0x3c] sm:$0xf] }
 0x380   : > { %v7066_v4 = vsel %vm819_vm6, %v11964_v25, %v16492_v41  ;;  %v7318_v48 = vor.u32 %v7317_v28, %v7313_v58  ;;  %v7309_v12 = vrot.slane %v7308_v30, 4  ;;  %v8758_v61 = vsel %vm819_vm6, %v12101_v5, %v16513_v55  ;;  %v13490_v25 = vld [vmem:[#allocation3 + $0x28] sm:$0xf]  ;;  %v13492_v42 = vld [vmem:[#allocation3 + $0x40] sm:$0xf] }
 0x381   : > { %v12005_v60 = vcombine.low %v7066_v4, %v7066_v4  ;;  %v12006_v51 = vcombine.high %v7066_v4, %v7066_v4  ;;  %8125 = vst [vmem:[#allocation2 + $0x8] sm:$0xf] %v12067_v49  ;;  %8126 = vst [vmem:[#allocation2 + $0x1c] sm:$0xf] %v12068_v17  ;;  %v12135_v29 = vcombine.low %v8758_v61, %v8758_v61  ;;  %v6807_v32 = vrot.slane %v6805_v24, 4 }
 0x382   : > { %v7319_v46 = vrot.slane %v7318_v48, 4  ;;  %v12136_v54 = vcombine.high %v8758_v61, %v8758_v61  ;;  %v6474_v41 = vsel %vm819_vm6, %v11884_v6, %v16537_v53  ;;  %v7314_v39 = vsel %vm13746_vm2, %v7309_v12, %v7313_v58  ;;  %v13275_v5 = vld [vmem:[#allocation2 + $0xc8] ss:$20 sps:$4 sm:$0xff]   ;;  %v7238_v48 = vld [vmem:[#allocation3 + $0x30] sm:$0xf] }
 0x383   : > { %7215 = vst [vmem:[#allocation2 + $0x16c] sm:$0xf] %v12005_v60  ;;  %7216 = vst [vmem:[#allocation2 + $0x180] sm:$0xf] %v12006_v51  ;;  %v11925_v28 = vcombine.low %v6474_v41, %v6474_v41  ;;  %v11926_v26 = vcombine.high %v6474_v41, %v6474_v41  ;;  %v6806_v55 = vsel %vm13955_vm5, %v11949_v44, %v6805_v24  ;;  %v6808_v40 = vrot.slane %v6669_v63, 5  ;;  %v16611_v24 = vpop.permute.xlu0 %6435 }
 0x384   : > { %v7324_v2 = vsel %vm13746_vm2, %v7319_v46, %v7323_v43  ;;  %8914 = vst [vmem:[#allocation2 + $0x5c] sm:$0xf] %v12135_v29  ;;  %8915 = vst [vmem:[#allocation2 + $0x70] sm:$0xf] %v12136_v54  ;;  %v7326_v8 = vshrl.u32 %v7235_v47, 16  ;;  %v7329_v31 = vshll.u32 %v7235_v47, 16  ;;  %v12102_v30 = vcombine.low %v13491_v16, %v13492_v42 }
 0x385   : > { %v12036_v53 = vcombine.low %v7314_v39, %v7324_v2  ;;  %6623 = vst [vmem:[#allocation2 + $0x168] sm:$0xf] %v11925_v28  ;;  %6624 = vst [vmem:[#allocation2 + $0x17c] sm:$0xf] %v11926_v26  ;;  %v7335_v58 = vshll.u32 %v13490_v25, 16  ;;  %v17903_v59 = vshrl.u32 %v16152_v38, 16  ;;  %v6809_v43 = vsel %vm13955_vm5, %v6807_v32, %v6808_v40  ;;  %v16621_v40 = vpop.permute.xlu1 %8728 }
 0x386   : > { %v7328_v27 = vrot.slane %v7326_v8, 4  ;;  %v17904_v15 = vshll.u32 %v16155_v13, 16  ;;  %v13277_v44 = vld [vmem:[#allocation2 + $0xf4] ss:$20 sps:$4 sm:$0xff]   ;;  %v11965_v17 = vcombine.low %v6806_v55, %v6809_v43  ;;  %v7331_v38 = vrot.slane %v7329_v31, 5  ;;  %10126 = vmatmul.mubr.bf16.gmra.mxu1 %v13275_v5 }
 0x387   : > { %v7341_v37 = vrot.slane %v17903_v59, 4  ;;  %v7970_v49 = vsel %vm819_vm6, %v12036_v53, %v16519_v50  ;;  %v7337_v4 = vrot.slane %v7335_v58, 5  ;;  %v8761_v13 = vsel %vm819_vm6, %v12102_v30, %v16553_v36  ;;  %v13493_v12 = vld [vmem:[#allocation3 + $0x78] sm:$0xf]  ;;  %v13494_v61 = vld [vmem:[#allocation3 + $0x7c] sm:$0xf]  ;;  %10133 = vmatprep.mubr.bf16.mxu1 %v13277_v44  ;;  %v16623_v5 = vpop.permute.xlu0 %7941 }
 0x388   : > { %v7347_v6 = vrot.slane %v17904_v15, 5  ;;  %v12069_v60 = vcombine.low %v7970_v49, %v7970_v49  ;;  %v12070_v51 = vcombine.high %v7970_v49, %v7970_v49  ;;  %v11885_v63 = vcombine.low %v13493_v12, %v13494_v61  ;;  %v6670_v47 = vld [vmem:[#allocation3 + $0x84] sm:$0xe]  ;;  %v6671_v46 = vld [vmem:[#allocation3 + $0x88] sm:$0xf] }
 0x389   : > { %v6672_v29 = vld [vmem:[#allocation3 + $0x8c] sm:$0x1]  ;;  %v7069_v50 = vsel %vm819_vm6, %v11965_v17, %v16534_v56  ;;  %v13264_v54 = vld [vmem:[#allocation2 + $0x8] ss:$20 sps:$4 sm:$0xff]   ;;  %v7332_v41 = vor.u32 %v7331_v38, %v7328_v27  ;;  %v7342_v39 = vor.u32 %v7341_v37, %v7337_v4  ;;  %v12137_v28 = vcombine.low %v8761_v13, %v8761_v13  ;;  %v13495_v15 = vld [vmem:[#allocation3 + $0x34] sm:$0xf] }
 0x38a   : > { %8127 = vst [vmem:[#allocation2 + $0x30] sm:$0xf] %v12069_v60  ;;  %8128 = vst [vmem:[#allocation2 + $0x44] sm:$0xf] %v12070_v51  ;;  %v12007_v26 = vcombine.low %v7069_v50, %v7069_v50  ;;  %v12008_v55 = vcombine.high %v7069_v50, %v7069_v50  ;;  %v13266_v2 = vld [vmem:[#allocation2 + $0xc] ss:$20 sps:$4 sm:$0xff]   ;;  %v12138_v36 = vcombine.high %v8761_v13, %v8761_v13 }
 0x38b   : > { %v6477_v32 = vsel %vm819_vm6, %v11885_v63, %v16573_v19  ;;  %v7333_v8 = vrot.slane %v7332_v41, 4  ;;  %v7343_v53 = vrot.slane %v7342_v39, 4  ;;  %8916 = vst [vmem:[#allocation2 + $0x84] sm:$0xf] %v12137_v28  ;;  %10246 = vmatprep.mubr.bf16.mxu0 %v13266_v2  ;;  %v11950_v25 = vrot.slane %v6670_v47, 9 }
 0x38c   : > { %v11927_v31 = vcombine.low %v6477_v32, %v6477_v32  ;;  %v11928_v56 = vcombine.high %v6477_v32, %v6477_v32  ;;  %7217 = vst [vmem:[#allocation2 + $0x194] sm:$0xf] %v12007_v26  ;;  %7218 = vst [vmem:[#allocation2 + $0x1a8] sm:$0xf] %v12008_v55  ;;  %v6812_v58 = vrot.slane %v6671_v46, 5  ;;  %v6815_v59 = vrot.slane %v6672_v29, 5  ;;  %10247 = vmatmul.mubr.bf16.vlgmr.msra.gmra.mxu0 %v13264_v54 }
 0x38d   : > { %8917 = vst [vmem:[#allocation2 + $0x98] sm:$0xf] %v12138_v36  ;;  %v7350_v37 = vshrl.u32 %v7238_v48, 16  ;;  %v7338_v19 = vsel %vm13746_vm2, %v7333_v8, %v7337_v4  ;;  %v7348_v43 = vsel %vm13746_vm2, %v7343_v53, %v7347_v6  ;;  %v7353_v27 = vshll.u32 %v7238_v48, 16  ;;  %v13283_v42 = vld [vmem:[#allocation2 + $0xf0] ss:$20 sps:$4 sm:$0xff]  }
 0x38e   : > { %6625 = vst [vmem:[#allocation2 + $0x190] sm:$0xf] %v11927_v31  ;;  %6626 = vst [vmem:[#allocation2 + $0x1a4] sm:$0xf] %v11928_v56  ;;  %v7359_v16 = vshll.u32 %v13495_v15, 16  ;;  %v12037_v30 = vcombine.low %v7338_v19, %v7348_v43  ;;  %v6813_v44 = vsel %vm13955_vm5, %v11950_v25, %v6812_v58  ;;  %v6814_v49 = vrot.slane %v6812_v58, 4  ;;  %10134 = vmatmul.mubr.bf16.gmra.mxu1 %v13283_v42  ;;  %v6438_v56 = vpop.permute.xlu0 %6437 }
 0x38f   : > { %v7352_v17 = vrot.slane %v7350_v37, 4  ;;  %v13285_v38 = vld [vmem:[#allocation2 + $0x11c] ss:$20 sps:$4 sm:$0xff]   ;;  %v7355_v60 = vrot.slane %v7353_v27, 5  ;;  %v17905_v4 = vshrl.u32 %v16182_v1, 16  ;;  %v17906_v6 = vshll.u32 %v16188_v62, 16  ;;  %v16639_v1 = vpop.permute.xlu1 %7031 }
 0x390   : > { %v7361_v51 = vrot.slane %v7359_v16, 5  ;;  %v6673_v61 = vld [vmem:[#allocation3 + $0x90] sm:$0xe]  ;;  %v7973_v48 = vsel %vm819_vm6, %v12037_v30, %v16559_v10  ;;  %v6816_v63 = vsel %vm13955_vm5, %v6814_v49, %v6815_v59  ;;  %v13496_v47 = vld [vmem:[#allocation3 + $0x48] sm:$0xf]  ;;  %10141 = vmatprep.mubr.bf16.mxu1 %v13285_v38 }
 0x391   : > { %v7365_v13 = vrot.slane %v17905_v4, 4  ;;  %v7371_v12 = vrot.slane %v17906_v6, 5  ;;  %v13497_v46 = vld [vmem:[#allocation3 + $0x4c] sm:$0xf]  ;;  %v13498_v50 = vld [vmem:[#allocation3 + $0x84] sm:$0xf]  ;;  %v12071_v62 = vcombine.low %v7973_v48, %v7973_v48  ;;  %v12072_v28 = vcombine.high %v7973_v48, %v7973_v48 }
 0x392   : > { %v12103_v29 = vcombine.low %v13496_v47, %v13497_v46  ;;  %v13499_v54 = vld [vmem:[#allocation3 + $0x88] sm:$0xf]  ;;  %v6674_v39 = vld [vmem:[#allocation3 + $0x94] sm:$0xf]  ;;  %v11966_v26 = vcombine.low %v6813_v44, %v6816_v63  ;;  %v7356_v2 = vor.u32 %v7355_v60, %v7352_v17  ;;  %v13276_v36 = vld [vmem:[#allocation2 + $0x30] ss:$20 sps:$4 sm:$0xff]  }
 0x393   : > { %v11886_v41 = vcombine.low %v13498_v50, %v13499_v54  ;;  %v13273_v55 = vld [vmem:[#allocation2 + $0x34] ss:$20 sps:$4 sm:$0xff]   ;;  %v7366_v10 = vor.u32 %v7365_v13, %v7361_v51  ;;  %v6675_v53 = vld [vmem:[#allocation3 + $0x98] sm:$0x1]  ;;  %v11951_v31 = vrot.slane %v6673_v61, 9  ;;  %v6819_v42 = vrot.slane %v6674_v39, 5  ;;  %v16651_v13 = vpop.permute.xlu1 %8730 }
 0x394   : > { %v8764_v32 = vsel %vm819_vm6, %v12103_v29, %v16585_v20  ;;  %8129 = vst [vmem:[#allocation2 + $0x58] sm:$0xf] %v12071_v62  ;;  %8130 = vst [vmem:[#allocation2 + $0x6c] sm:$0xf] %v12072_v28  ;;  %v7072_v25 = vsel %vm819_vm6, %v11966_v26, %v16569_v14  ;;  %10254 = vmatprep.mubr.bf16.mxu0 %v13273_v55  ;;  %v7357_v58 = vrot.slane %v7356_v2, 4  ;;  %v6822_v30 = vrot.slane %v6675_v53, 5 }
 0x395   : > { %v6480_v8 = vsel %vm819_vm6, %v11886_v41, %v16611_v24  ;;  %v12139_v59 = vcombine.low %v8764_v32, %v8764_v32  ;;  %v12140_v37 = vcombine.high %v8764_v32, %v8764_v32  ;;  %v7241_v19 = vld [vmem:[#allocation3 + $0x3c] sm:$0xf]  ;;  %v12009_v43 = vcombine.low %v7072_v25, %v7072_v25  ;;  %10255 = vmatmul.mubr.bf16.gmra.mxu0 %v13276_v36  ;;  %v13291_v44 = vld [vmem:[#allocation2 + $0x118] ss:$20 sps:$4 sm:$0xff]   ;;  %v13500_v38 = vld [vmem:[#allocation3 + $0x40] sm:$0xf]  ;;  %v16659_v41 = vpop.permute.xlu0 %7943 }
 0x396   : > { %v12010_v27 = vcombine.high %v7072_v25, %v7072_v25  ;;  %v7367_v15 = vrot.slane %v7366_v10, 4  ;;  %v11929_v20 = vcombine.low %v6480_v8, %v6480_v8  ;;  %v7362_v24 = vsel %vm13746_vm2, %v7357_v58, %v7361_v51  ;;  %v13293_v4 = vld [vmem:[#allocation2 + $0x144] ss:$20 sps:$4 sm:$0xff]   ;;  %10142 = vmatmul.mubr.bf16.gmra.mxu1 %v13291_v44  ;;  %v6676_v54 = vld [vmem:[#allocation3 + $0x9c] sm:$0xe] }
 0x397   : > { %8918 = vst [vmem:[#allocation2 + $0xac] sm:$0xf] %v12139_v59  ;;  %8919 = vst [vmem:[#allocation2 + $0xc0] sm:$0xf] %v12140_v37  ;;  %v11930_v16 = vcombine.high %v6480_v8, %v6480_v8  ;;  %v7374_v49 = vshrl.u32 %v7241_v19, 16  ;;  %v7377_v17 = vshll.u32 %v7241_v19, 16  ;;  %v6820_v6 = vsel %vm13955_vm5, %v11951_v31, %v6819_v42  ;;  %10149 = vmatprep.mubr.bf16.mxu1 %v13293_v4 }
 0x398   : > { %7219 = vst [vmem:[#allocation2 + $0x1bc] sm:$0xf] %v12009_v43  ;;  %7220 = vst [vmem:[#allocation2 + $0x1d0] sm:$0xf] %v12010_v27  ;;  %v7372_v14 = vsel %vm13746_vm2, %v7367_v15, %v7371_v12  ;;  %v7383_v60 = vshll.u32 %v13500_v38, 16  ;;  %v6821_v61 = vrot.slane %v6819_v42, 4 }
 0x399   : > { %6627 = vst [vmem:[#allocation2 + $0x1b8] sm:$0xf] %v11929_v20  ;;  %v12038_v51 = vcombine.low %v7362_v24, %v7372_v14  ;;  %6628 = vst [vmem:[#allocation2 + $0x1cc] sm:$0xf] %v11930_v16  ;;  %v17907_v48 = vshrl.u32 %v16215_v21, 16  ;;  %v7376_v47 = vrot.slane %v7374_v49, 4  ;;  %v16670_v16 = vpop.permute.xlu1 %7033  ;;  %v6440_v38 = vpop.permute.xlu0 %6439 }
 0x39a   : > { %v7379_v12 = vrot.slane %v7377_v17, 5  ;;  %v7385_v46 = vrot.slane %v7383_v60, 5  ;;  %v17908_v29 = vshll.u32 %v16217_v23, 16  ;;  %v6823_v62 = vsel %vm13955_vm5, %v6821_v61, %v6822_v30  ;;  %v13501_v28 = vld [vmem:[#allocation3 + $0x54] sm:$0xf] }
 0x39b   : > { %v7389_v63 = vrot.slane %v17907_v48, 4  ;;  %v7976_v39 = vsel %vm819_vm6, %v12038_v51, %v16591_v35  ;;  %v13502_v21 = vld [vmem:[#allocation3 + $0x58] sm:$0xf]  ;;  %v13503_v55 = vld [vmem:[#allocation3 + $0x90] sm:$0xf]  ;;  %v11967_v8 = vcombine.low %v6820_v6, %v6823_v62  ;;  %v11952_v19 = vrot.slane %v6676_v54, 9 }
 0x39c   : > { %v7395_v50 = vrot.slane %v17908_v29, 5  ;;  %v12104_v26 = vcombine.low %v13501_v28, %v13502_v21  ;;  %v13504_v2 = vld [vmem:[#allocation3 + $0x94] sm:$0xf]  ;;  %v6677_v10 = vld [vmem:[#allocation3 + $0xa0] sm:$0xf]  ;;  %v12073_v32 = vcombine.low %v7976_v39, %v7976_v39  ;;  %v12074_v23 = vcombine.high %v7976_v39, %v7976_v39 }
 0x39d   : > { %v11887_v36 = vcombine.low %v13503_v55, %v13504_v2  ;;  %v13281_v53 = vld [vmem:[#allocation2 + $0x5c] ss:$20 sps:$4 sm:$0xff]   ;;  %v7380_v31 = vor.u32 %v7379_v12, %v7376_v47  ;;  %v13284_v25 = vld [vmem:[#allocation2 + $0x58] ss:$20 sps:$4 sm:$0xff]   ;;  %v7390_v58 = vor.u32 %v7389_v63, %v7385_v46  ;;  %v6678_v37 = vld [vmem:[#allocation3 + $0xa4] sm:$0x1]  ;;  %v7075_v43 = vsel %vm819_vm6, %v11967_v8, %v16603_v3 }
 0x39e   : > { %v8767_v35 = vsel %vm819_vm6, %v12104_v26, %v16621_v40  ;;  %8131 = vst [vmem:[#allocation2 + $0x80] sm:$0xf] %v12073_v32  ;;  %8132 = vst [vmem:[#allocation2 + $0x94] sm:$0xf] %v12074_v23  ;;  %10262 = vmatprep.mubr.bf16.mxu0 %v13281_v53  ;;  %v7244_v24 = vld [vmem:[#allocation3 + $0x48] sm:$0xf]  ;;  %v12011_v42 = vcombine.low %v7075_v43, %v7075_v43  ;;  %v12012_v30 = vcombine.high %v7075_v43, %v7075_v43  ;;  %v16682_v32 = vpop.permute.xlu1 %8732 }
 0x39f   : > { %v6483_v59 = vsel %vm819_vm6, %v11887_v36, %v6438_v56  ;;  %v7381_v27 = vrot.slane %v7380_v31, 4  ;;  %v12141_v15 = vcombine.low %v8767_v35, %v8767_v35  ;;  %v12142_v20 = vcombine.high %v8767_v35, %v8767_v35  ;;  %10263 = vmatmul.mubr.bf16.gmra.mxu0 %v13284_v25  ;;  %v13301_v56 = vld [vmem:[#allocation2 + $0x140] ss:$20 sps:$4 sm:$0xff]   ;;  %v13505_v61 = vld [vmem:[#allocation3 + $0x4c] sm:$0xf] }
 0x3a0   : > { %v7391_v40 = vrot.slane %v7390_v58, 4  ;;  %v11931_v44 = vcombine.low %v6483_v59, %v6483_v59  ;;  %v11932_v49 = vcombine.high %v6483_v59, %v6483_v59  ;;  %v6826_v3 = vrot.slane %v6677_v10, 5  ;;  %v13302_v60 = vld [vmem:[#allocation2 + $0x16c] ss:$20 sps:$4 sm:$0xff]   ;;  %7221 = vst [vmem:[#allocation2 + $0x1e4] sm:$0xf] %v12011_v42  ;;  %10150 = vmatmul.mubr.bf16.gmra.mxu1 %v13301_v56 }
 0x3a1   : > { %v7386_v14 = vsel %vm13746_vm2, %v7381_v27, %v7385_v46  ;;  %8920 = vst [vmem:[#allocation2 + $0xd4] sm:$0xf] %v12141_v15  ;;  %8921 = vst [vmem:[#allocation2 + $0xe8] sm:$0xf] %v12142_v20  ;;  %v6829_v17 = vrot.slane %v6678_v37, 5  ;;  %v7398_v51 = vshrl.u32 %v7244_v24, 16  ;;  %10157 = vmatprep.mubr.bf16.mxu1 %v13302_v60  ;;  %v16686_v20 = vpop.permute.xlu0 %7945 }
 0x3a2   : > { %7222 = vst [vmem:[#allocation2 + $0x1f8] sm:$0xf] %v12012_v30  ;;  %v7396_v4 = vsel %vm13746_vm2, %v7391_v40, %v7395_v50  ;;  %6629 = vst [vmem:[#allocation2 + $0x1e0] sm:$0xf] %v11931_v44  ;;  %v7401_v6 = vshll.u32 %v7244_v24, 16  ;;  %v7407_v48 = vshll.u32 %v13505_v61, 16  ;;  %v6827_v47 = vsel %vm13955_vm5, %v11952_v19, %v6826_v3 }
 0x3a3   : > { %v12039_v63 = vcombine.low %v7386_v14, %v7396_v4  ;;  %6630 = vst [vmem:[#allocation2 + $0x1f4] sm:$0xf] %v11932_v49  ;;  %v6828_v12 = vrot.slane %v6826_v3, 4  ;;  %v7411_v46 = vshrl.u32 %v13505_v61, 16  ;;  %v7400_v29 = vrot.slane %v7398_v51, 4 }
 0x3a4   : > { %v7403_v54 = vrot.slane %v7401_v6, 5  ;;  %v7409_v39 = vrot.slane %v7407_v48, 5  ;;  %v13506_v62 = vld [vmem:[#allocation3 + $0x50] sm:$0x1]  ;;  %v13507_v55 = vld [vmem:[#allocation3 + $0x60] sm:$0xf] }
 0x3a5   : > { %v7417_v28 = vshll.u32 %v13506_v62, 16  ;;  %v7979_v50 = vsel %vm819_vm6, %v12039_v63, %v16623_v5  ;;  %v6830_v21 = vsel %vm13955_vm5, %v6828_v12, %v6829_v17  ;;  %v7413_v26 = vrot.slane %v7411_v46, 4  ;;  %v13508_v2 = vld [vmem:[#allocation3 + $0x64] sm:$0xf]  ;;  %v6679_v10 = vld [vmem:[#allocation3 + $0xa8] sm:$0xe] }
 0x3a6   : > { %v12105_v36 = vcombine.low %v13507_v55, %v13508_v2  ;;  %v12075_v23 = vcombine.low %v7979_v50, %v7979_v50  ;;  %v12076_v8 = vcombine.high %v7979_v50, %v7979_v50  ;;  %v11968_v53 = vcombine.low %v6827_v47, %v6830_v21  ;;  %v13289_v31 = vld [vmem:[#allocation2 + $0x84] ss:$20 sps:$4 sm:$0xff]   ;;  %v6680_v58 = vld [vmem:[#allocation3 + $0xac] sm:$0xf]  ;;  %v13292_v35 = vld [vmem:[#allocation2 + $0x80] ss:$20 sps:$4 sm:$0xff]   ;;  %v16695_v47 = vpop.permute.xlu1 %7035  ;;  %v6442_v55 = vpop.permute.xlu0 %6441 }
 0x3a7   : > { %v7404_v25 = vor.u32 %v7403_v54, %v7400_v29  ;;  %v7414_v59 = vor.u32 %v7413_v26, %v7409_v39  ;;  %v7419_v37 = vrot.slane %v7417_v28, 5  ;;  %v13509_v19 = vld [vmem:[#allocation3 + $0x9c] sm:$0xf]  ;;  %v13510_v43 = vld [vmem:[#allocation3 + $0xa0] sm:$0xf]  ;;  %10270 = vmatprep.mubr.bf16.mxu0 %v13289_v31  ;;  %v11953_v51 = vrot.slane %v6679_v10, 9 }
 0x3a8   : > { %v8770_v5 = vsel %vm819_vm6, %v12105_v36, %v16651_v13  ;;  %v11888_v27 = vcombine.low %v13509_v19, %v13510_v43  ;;  %v6681_v15 = vld [vmem:[#allocation3 + $0xb0] sm:$0x1]  ;;  %8133 = vst [vmem:[#allocation2 + $0xa8] sm:$0xf] %v12075_v23  ;;  %8134 = vst [vmem:[#allocation2 + $0xbc] sm:$0xf] %v12076_v8  ;;  %v7078_v24 = vsel %vm819_vm6, %v11968_v53, %v16639_v1  ;;  %10271 = vmatmul.mubr.bf16.gmra.mxu0 %v13292_v35 }
 0x3a9   : > { %v7405_v42 = vrot.slane %v7404_v25, 4  ;;  %v12143_v30 = vcombine.low %v8770_v5, %v8770_v5  ;;  %v12144_v40 = vcombine.high %v8770_v5, %v8770_v5  ;;  %v7247_v44 = vld [vmem:[#allocation3 + $0x54] sm:$0xf]  ;;  %v13309_v56 = vld [vmem:[#allocation2 + $0x168] ss:$20 sps:$4 sm:$0xff]   ;;  %v12013_v14 = vcombine.low %v7078_v24, %v7078_v24 }
 0x3aa   : > { %v12014_v49 = vcombine.high %v7078_v24, %v7078_v24  ;;  %v7415_v13 = vrot.slane %v7414_v59, 4  ;;  %v6486_v3 = vsel %vm819_vm6, %v11888_v27, %v6440_v38  ;;  %v13310_v17 = vld [vmem:[#allocation2 + $0x194] ss:$20 sps:$4 sm:$0xff]   ;;  %10158 = vmatmul.mubr.bf16.gmra.mxu1 %v13309_v56  ;;  %v6833_v61 = vrot.slane %v6680_v58, 5  ;;  %v13511_v46 = vld [vmem:[#allocation3 + $0x58] sm:$0xf] }
 0x3ab   : > { %v7410_v60 = vsel %vm13746_vm2, %v7405_v42, %v7409_v39  ;;  %8922 = vst [vmem:[#allocation2 + $0xfc] sm:$0xf] %v12143_v30  ;;  %8923 = vst [vmem:[#allocation2 + $0x110] sm:$0xf] %v12144_v40  ;;  %v11933_v4 = vcombine.low %v6486_v3, %v6486_v3  ;;  %v11934_v1 = vcombine.high %v6486_v3, %v6486_v3  ;;  %v6836_v48 = vrot.slane %v6681_v15, 5 }
 0x3ac   : > { %7223 = vst [vmem:[#allocation2 + $0x20c] sm:$0xf] %v12013_v14  ;;  %7224 = vst [vmem:[#allocation2 + $0x220] sm:$0xf] %v12014_v49  ;;  %v7420_v6 = vsel %vm13746_vm2, %v7415_v13, %v7419_v37  ;;  %v7422_v63 = vshrl.u32 %v7247_v44, 16  ;;  %10165 = vmatprep.mubr.bf16.mxu1 %v13310_v17  ;;  %v7425_v12 = vshll.u32 %v7247_v44, 16  ;;  %v6834_v62 = vsel %vm13955_vm5, %v11953_v51, %v6833_v61  ;;  %v8735_v49 = vpop.permute.xlu1 %8734 }
 0x3ad   : > { %v12040_v38 = vcombine.low %v7410_v60, %v7420_v6  ;;  %6631 = vst [vmem:[#allocation2 + $0x208] sm:$0xf] %v11933_v4  ;;  %6632 = vst [vmem:[#allocation2 + $0x21c] sm:$0xf] %v11934_v1  ;;  %v7431_v29 = vshll.u32 %v13511_v46, 16  ;;  %v7435_v54 = vshrl.u32 %v13511_v46, 16 }
 0x3ae   : > { %v6682_v39 = vld [vmem:[#allocation3 + $0xb4] sm:$0xe]  ;;  %v6835_v28 = vrot.slane %v6833_v61, 4  ;;  %v7424_v50 = vrot.slane %v7422_v63, 4  ;;  %v13512_v21 = vld [vmem:[#allocation3 + $0x5c] sm:$0x1]  ;;  %v16707_v63 = vpop.permute.xlu0 %7947 }
 0x3af   : > { %v7441_v26 = vshll.u32 %v13512_v21, 16  ;;  %v6683_v2 = vld [vmem:[#allocation3 + $0xb8] sm:$0xf]  ;;  %v7982_v36 = vsel %vm819_vm6, %v12040_v38, %v16659_v41  ;;  %v7427_v10 = vrot.slane %v7425_v12, 5  ;;  %v7433_v23 = vrot.slane %v7431_v29, 5 }
 0x3b0   : > { %v7437_v8 = vrot.slane %v7435_v54, 4  ;;  %v6684_v53 = vld [vmem:[#allocation3 + $0xbc] sm:$0x1]  ;;  %v12077_v31 = vcombine.low %v7982_v36, %v7982_v36  ;;  %v12078_v25 = vcombine.high %v7982_v36, %v7982_v36  ;;  %v6837_v58 = vsel %vm13955_vm5, %v6835_v28, %v6836_v48  ;;  %v13299_v5 = vld [vmem:[#allocation2 + $0xac] ss:$20 sps:$4 sm:$0xff]  }
 0x3b1   : > { %v13297_v35 = vld [vmem:[#allocation2 + $0xa8] ss:$20 sps:$4 sm:$0xff]   ;;  %v7443_v59 = vrot.slane %v7441_v26, 5  ;;  %v11969_v37 = vcombine.low %v6834_v62, %v6837_v58  ;;  %v7428_v19 = vor.u32 %v7427_v10, %v7424_v50  ;;  %v13513_v27 = vld [vmem:[#allocation3 + $0x6c] sm:$0xf]  ;;  %v11954_v44 = vrot.slane %v6682_v39, 9  ;;  %10278 = vmatprep.mubr.bf16.mxu0 %v13299_v5 }
 0x3b2   : > { %v7438_v43 = vor.u32 %v7437_v8, %v7433_v23  ;;  %v13514_v15 = vld [vmem:[#allocation3 + $0x70] sm:$0xf]  ;;  %8135 = vst [vmem:[#allocation2 + $0xd0] sm:$0xf] %v12077_v31  ;;  %8136 = vst [vmem:[#allocation2 + $0xe4] sm:$0xf] %v12078_v25  ;;  %10279 = vmatmul.mubr.bf16.gmra.mxu0 %v13297_v35  ;;  %v8737_v31 = vpop.permute.xlu1 %8736 }
 0x3b3   : > { %v12106_v24 = vcombine.low %v13513_v27, %v13514_v15  ;;  %v13318_v42 = vld [vmem:[#allocation2 + $0x190] ss:$20 sps:$4 sm:$0xff]   ;;  %v13515_v41 = vld [vmem:[#allocation3 + $0xa8] sm:$0xf]  ;;  %v13516_v30 = vld [vmem:[#allocation3 + $0xac] sm:$0xf]  ;;  %v7081_v13 = vsel %vm819_vm6, %v11969_v37, %v16670_v16 }
 0x3b4   : > { %v11889_v40 = vcombine.low %v13515_v41, %v13516_v30  ;;  %v6840_v56 = vrot.slane %v6683_v2, 5  ;;  %v6843_v14 = vrot.slane %v6684_v53, 5  ;;  %v7429_v3 = vrot.slane %v7428_v19, 4  ;;  %10166 = vmatmul.mubr.bf16.gmra.mxu1 %v13318_v42  ;;  %v13319_v4 = vld [vmem:[#allocation2 + $0x1bc] ss:$20 sps:$4 sm:$0xff]  }
 0x3b5   : > { %v7439_v17 = vrot.slane %v7438_v43, 4  ;;  %v8773_v60 = vsel %vm819_vm6, %v12106_v24, %v16682_v32  ;;  %v12015_v1 = vcombine.low %v7081_v13, %v7081_v13  ;;  %v12016_v51 = vcombine.high %v7081_v13, %v7081_v13  ;;  %v7250_v48 = vld [vmem:[#allocation3 + $0x60] sm:$0xf]  ;;  %10173 = vmatprep.mubr.bf16.mxu1 %v13319_v4  ;;  %v13517_v50 = vld [vmem:[#allocation3 + $0x64] sm:$0xf]  ;;  %v6444_v24 = vpop.permute.xlu0 %6443 }
 0x3b6   : > { %v12145_v6 = vcombine.low %v8773_v60, %v8773_v60  ;;  %v12146_v61 = vcombine.high %v8773_v60, %v8773_v60  ;;  %v7434_v38 = vsel %vm13746_vm2, %v7429_v3, %v7433_v23  ;;  %v6489_v12 = vsel %vm819_vm6, %v11889_v40, %v6442_v55  ;;  %v13518_v36 = vld [vmem:[#allocation3 + $0x68] sm:$0x1]  ;;  %v13519_v23 = vld [vmem:[#allocation3 + $0x78] sm:$0xf]  ;;  %v13520_v8 = vld [vmem:[#allocation3 + $0x7c] sm:$0xf] }
 0x3b7   : > { %v7444_v16 = vsel %vm13746_vm2, %v7439_v17, %v7443_v59  ;;  %v6841_v32 = vsel %vm13955_vm5, %v11954_v44, %v6840_v56  ;;  %7225 = vst [vmem:[#allocation2 + $0x234] sm:$0xf] %v12015_v1  ;;  %7226 = vst [vmem:[#allocation2 + $0x248] sm:$0xf] %v12016_v51  ;;  %v11935_v29 = vcombine.low %v6489_v12, %v6489_v12  ;;  %v6842_v39 = vrot.slane %v6840_v56, 4 }
 0x3b8   : > { %v12041_v46 = vcombine.low %v7434_v38, %v7444_v16  ;;  %8924 = vst [vmem:[#allocation2 + $0x124] sm:$0xf] %v12145_v6  ;;  %8925 = vst [vmem:[#allocation2 + $0x138] sm:$0xf] %v12146_v61  ;;  %v11936_v54 = vcombine.high %v6489_v12, %v6489_v12  ;;  %v7446_v62 = vshrl.u32 %v7250_v48, 16  ;;  %v7449_v28 = vshll.u32 %v7250_v48, 16 }
 0x3b9   : > { %v7455_v21 = vshll.u32 %v13517_v50, 16  ;;  %v7459_v26 = vshrl.u32 %v13517_v50, 16  ;;  %6633 = vst [vmem:[#allocation2 + $0x230] sm:$0xf] %v11935_v29  ;;  %v6844_v2 = vsel %vm13955_vm5, %v6842_v39, %v6843_v14  ;;  %v7465_v10 = vshll.u32 %v13518_v36, 16 }
 0x3ba   : > { %v7985_v55 = vsel %vm819_vm6, %v12041_v46, %v16686_v20  ;;  %6634 = vst [vmem:[#allocation2 + $0x244] sm:$0xf] %v11936_v54  ;;  %v12107_v53 = vcombine.low %v13519_v23, %v13520_v8  ;;  %v13326_v25 = vld [vmem:[#allocation2 + $0x1b8] ss:$20 sps:$4 sm:$0xff]   ;;  %v11970_v59 = vcombine.low %v6841_v32, %v6844_v2  ;;  %v13306_v37 = vld [vmem:[#allocation2 + $0xd0] ss:$20 sps:$4 sm:$0xff]   ;;  %v8739_v32 = vpop.permute.xlu1 %8738 }
 0x3bb   : > { %v12079_v58 = vcombine.low %v7985_v55, %v7985_v55  ;;  %v12080_v35 = vcombine.high %v7985_v55, %v7985_v55  ;;  %v7448_v5 = vrot.slane %v7446_v62, 4  ;;  %v13308_v19 = vld [vmem:[#allocation2 + $0xd4] ss:$20 sps:$4 sm:$0xff]   ;;  %v7451_v43 = vrot.slane %v7449_v28, 5  ;;  %v13522_v40 = vld [vmem:[#allocation3 + $0xb8] sm:$0xf] }
 0x3bc   : > { %v7457_v20 = vrot.slane %v7455_v21, 5  ;;  %v7461_v27 = vrot.slane %v7459_v26, 4  ;;  %v7467_v15 = vrot.slane %v7465_v10, 5  ;;  %v7084_v42 = vsel %vm819_vm6, %v11970_v59, %v16695_v47  ;;  %v13521_v30 = vld [vmem:[#allocation3 + $0xb4] sm:$0xf]  ;;  %10174 = vmatmul.mubr.bf16.gmra.mxu1 %v13326_v25  ;;  %10286 = vmatprep.mubr.bf16.mxu0 %v13308_v19 }
 0x3bd   : > { %8137 = vst [vmem:[#allocation2 + $0xf8] sm:$0xf] %v12079_v58  ;;  %8138 = vst [vmem:[#allocation2 + $0x10c] sm:$0xf] %v12080_v35  ;;  %v8776_v41 = vsel %vm819_vm6, %v12107_v53, %v8735_v49  ;;  %v11890_v44 = vcombine.low %v13521_v30, %v13522_v40  ;;  %v13523_v56 = vld [vmem:[#allocation3 + $0x84] sm:$0xf]  ;;  %v12017_v3 = vcombine.low %v7084_v42, %v7084_v42  ;;  %10287 = vmatmul.mubr.bf16.gmra.mxu0 %v13306_v37 }
 0x3be   : > { %v13524_v14 = vld [vmem:[#allocation3 + $0x88] sm:$0xf]  ;;  %v12018_v17 = vcombine.high %v7084_v42, %v7084_v42  ;;  %v7452_v60 = vor.u32 %v7451_v43, %v7448_v5  ;;  %v7462_v4 = vor.u32 %v7461_v27, %v7457_v20  ;;  %v7253_v1 = vld [vmem:[#allocation3 + $0x6c] sm:$0xf]  ;;  %v13329_v51 = vld [vmem:[#allocation2 + $0x1e4] ss:$20 sps:$4 sm:$0xff]   ;;  %v12147_v6 = vcombine.low %v8776_v41, %v8776_v41 }
 0x3bf   : > { %v12108_v13 = vcombine.low %v13523_v56, %v13524_v14  ;;  %v12148_v61 = vcombine.high %v8776_v41, %v8776_v41  ;;  %v6492_v47 = vsel %vm819_vm6, %v11890_v44, %v6444_v24  ;;  %7227 = vst [vmem:[#allocation2 + $0x25c] sm:$0xf] %v12017_v3  ;;  %10181 = vmatprep.mubr.bf16.mxu1 %v13329_v51  ;;  %v7470_v54 = vshrl.u32 %v7253_v1, 16  ;;  %v13525_v50 = vld [vmem:[#allocation3 + $0x70] sm:$0xf]  ;;  %v8741_v14 = vpop.permute.xlu1 %8740 }
 0x3c0   : > { %7228 = vst [vmem:[#allocation2 + $0x270] sm:$0xf] %v12018_v17  ;;  %v7453_v48 = vrot.slane %v7452_v60, 4  ;;  %v7463_v38 = vrot.slane %v7462_v4, 4  ;;  %v11937_v16 = vcombine.low %v6492_v47, %v6492_v47  ;;  %v11938_v12 = vcombine.high %v6492_v47, %v6492_v47  ;;  %8926 = vst [vmem:[#allocation2 + $0x14c] sm:$0xf] %v12147_v6 }
 0x3c1   : > { %v8779_v49 = vsel %vm819_vm6, %v12108_v13, %v8737_v31  ;;  %8927 = vst [vmem:[#allocation2 + $0x160] sm:$0xf] %v12148_v61  ;;  %v7473_v39 = vshll.u32 %v7253_v1, 16  ;;  %v7479_v21 = vshll.u32 %v13525_v50, 16  ;;  %v7483_v26 = vshrl.u32 %v13525_v50, 16 }
 0x3c2   : > { %v12149_v46 = vcombine.low %v8779_v49, %v8779_v49  ;;  %v12150_v29 = vcombine.high %v8779_v49, %v8779_v49  ;;  %v7458_v62 = vsel %vm13746_vm2, %v7453_v48, %v7457_v20  ;;  %v7468_v28 = vsel %vm13746_vm2, %v7463_v38, %v7467_v15  ;;  %6635 = vst [vmem:[#allocation2 + $0x258] sm:$0xf] %v11937_v16  ;;  %v7256_v55 = vld [vmem:[#allocation3 + $0x78] sm:$0xf]  ;;  %v13327_v2 = vld [vmem:[#allocation2 + $0x1e0] ss:$20 sps:$4 sm:$0xff]   ;;  %v7950_v49 = vpop.permute.xlu0 %7949 }
 0x3c3   : > { %6636 = vst [vmem:[#allocation2 + $0x26c] sm:$0xf] %v11938_v12  ;;  %v12042_v36 = vcombine.low %v7458_v62, %v7468_v28  ;;  %v7472_v10 = vrot.slane %v7470_v54, 4  ;;  %v7475_v23 = vrot.slane %v7473_v39, 5  ;;  %v13526_v8 = vld [vmem:[#allocation3 + $0x74] sm:$0x1] }
 0x3c4   : > { %8928 = vst [vmem:[#allocation2 + $0x174] sm:$0xf] %v12149_v46  ;;  %8929 = vst [vmem:[#allocation2 + $0x188] sm:$0xf] %v12150_v29  ;;  %v7489_v53 = vshll.u32 %v13526_v8, 16  ;;  %v7481_v58 = vrot.slane %v7479_v21, 5  ;;  %10182 = vmatmul.mubr.bf16.gmra.mxu1 %v13327_v2 }
 0x3c5   : > { %v13338_v31 = vld [vmem:[#allocation2 + $0x20c] ss:$20 sps:$4 sm:$0xff]   ;;  %v7485_v35 = vrot.slane %v7483_v26, 4  ;;  %v13527_v59 = vld [vmem:[#allocation3 + $0x90] sm:$0xf]  ;;  %v7988_v27 = vsel %vm819_vm6, %v12042_v36, %v16707_v63  ;;  %v7476_v24 = vor.u32 %v7475_v23, %v7472_v10  ;;  %v7494_v41 = vshrl.u32 %v7256_v55, 16 }
 0x3c6   : > { %v13315_v25 = vld [vmem:[#allocation2 + $0xf8] ss:$20 sps:$4 sm:$0xff]   ;;  %v13528_v37 = vld [vmem:[#allocation3 + $0x94] sm:$0xf]  ;;  %v13529_v19 = vld [vmem:[#allocation3 + $0x9c] sm:$0xf]  ;;  %v12081_v30 = vcombine.low %v7988_v27, %v7988_v27  ;;  %v12082_v40 = vcombine.high %v7988_v27, %v7988_v27  ;;  %10189 = vmatprep.mubr.bf16.mxu1 %v13338_v31 }
 0x3c7   : > { %v12109_v5 = vcombine.low %v13527_v59, %v13528_v37  ;;  %v13530_v43 = vld [vmem:[#allocation3 + $0xa0] sm:$0xf]  ;;  %v13317_v15 = vld [vmem:[#allocation2 + $0xfc] ss:$20 sps:$4 sm:$0xff]   ;;  %v7491_v42 = vrot.slane %v7489_v53, 5  ;;  %v7486_v44 = vor.u32 %v7485_v35, %v7481_v58  ;;  %v7477_v3 = vrot.slane %v7476_v24, 4  ;;  %v8743_v35 = vpop.permute.xlu1 %8742 }
 0x3c8   : > { %v12110_v20 = vcombine.low %v13529_v19, %v13530_v43  ;;  %v7259_v13 = vld [vmem:[#allocation3 + $0x84] sm:$0xf]  ;;  %10294 = vmatprep.mubr.bf16.mxu0 %v13317_v15  ;;  %v7496_v4 = vrot.slane %v7494_v41, 4  ;;  %8139 = vst [vmem:[#allocation2 + $0x120] sm:$0xf] %v12081_v30  ;;  %v7497_v1 = vshll.u32 %v7256_v55, 16 }
 0x3c9   : > { %v8782_v56 = vsel %vm819_vm6, %v12109_v5, %v8739_v32  ;;  %8140 = vst [vmem:[#allocation2 + $0x134] sm:$0xf] %v12082_v40  ;;  %10295 = vmatmul.mubr.bf16.gmra.mxu0 %v13315_v25  ;;  %v7487_v63 = vrot.slane %v7486_v44, 4  ;;  %v13531_v51 = vld [vmem:[#allocation3 + $0x7c] sm:$0xf]  ;;  %v7482_v47 = vsel %vm13746_vm2, %v7477_v3, %v7481_v58  ;;  %v7518_v12 = vshrl.u32 %v7259_v13, 16 }
 0x3ca   : > { %v12151_v17 = vcombine.low %v8782_v56, %v8782_v56  ;;  %v12152_v60 = vcombine.high %v8782_v56, %v8782_v56  ;;  %v7503_v6 = vshll.u32 %v13531_v51, 16  ;;  %v7507_v61 = vshrl.u32 %v13531_v51, 16  ;;  %v13532_v48 = vld [vmem:[#allocation3 + $0x80] sm:$0x1]  ;;  %v13336_v21 = vld [vmem:[#allocation2 + $0x208] ss:$20 sps:$4 sm:$0xff]  }
 0x3cb   : > { %v7513_v38 = vshll.u32 %v13532_v48, 16  ;;  %v8785_v16 = vsel %vm819_vm6, %v12110_v20, %v8741_v14  ;;  %v7492_v32 = vsel %vm13746_vm2, %v7487_v63, %v7491_v42  ;;  %v7499_v46 = vrot.slane %v7497_v1, 5  ;;  %v13346_v10 = vld [vmem:[#allocation2 + $0x234] ss:$20 sps:$4 sm:$0xff]   ;;  %v13534_v25 = vld [vmem:[#allocation3 + $0x8c] sm:$0x1]  ;;  %v7952_v20 = vpop.permute.xlu0 %7951 }
 0x3cc   : > { %8930 = vst [vmem:[#allocation2 + $0x19c] sm:$0xf] %v12151_v17  ;;  %8931 = vst [vmem:[#allocation2 + $0x1b0] sm:$0xf] %v12152_v60  ;;  %v7505_v29 = vrot.slane %v7503_v6, 5  ;;  %v7509_v54 = vrot.slane %v7507_v61, 4  ;;  %v12043_v39 = vcombine.low %v7482_v47, %v7492_v32  ;;  %v12153_v28 = vcombine.low %v8785_v16, %v8785_v16  ;;  %10190 = vmatmul.mubr.bf16.gmra.mxu1 %v13336_v21 }
 0x3cd   : > { %v7515_v62 = vrot.slane %v7513_v38, 5  ;;  %v12154_v50 = vcombine.high %v8785_v16, %v8785_v16  ;;  %v7500_v26 = vor.u32 %v7499_v46, %v7496_v4  ;;  %v7520_v2 = vrot.slane %v7518_v12, 4  ;;  %v13533_v8 = vld [vmem:[#allocation3 + $0x88] sm:$0xf]  ;;  %v7262_v43 = vld [vmem:[#allocation3 + $0x90] sm:$0xf]  ;;  %10197 = vmatprep.mubr.bf16.mxu1 %v13346_v10 }
 0x3ce   : > { %v7510_v55 = vor.u32 %v7509_v54, %v7505_v29  ;;  %v7521_v36 = vshll.u32 %v7259_v13, 16  ;;  %v7991_v23 = vsel %vm819_vm6, %v12043_v39, %v7950_v49  ;;  %8932 = vst [vmem:[#allocation2 + $0x1c4] sm:$0xf] %v12153_v28  ;;  %v7527_v53 = vshll.u32 %v13533_v8, 16  ;;  %v13535_v42 = vld [vmem:[#allocation3 + $0xa8] sm:$0xf] }
 0x3cf   : > { %8933 = vst [vmem:[#allocation2 + $0x1d8] sm:$0xf] %v12154_v50  ;;  %v7531_v31 = vshrl.u32 %v13533_v8, 16  ;;  %v7537_v58 = vshll.u32 %v13534_v25, 16  ;;  %v12083_v59 = vcombine.low %v7991_v23, %v7991_v23  ;;  %v12084_v37 = vcombine.high %v7991_v23, %v7991_v23  ;;  %v13536_v41 = vld [vmem:[#allocation3 + $0xac] sm:$0xf] }
 0x3d0   : > { %v7501_v5 = vrot.slane %v7500_v26, 4  ;;  %v7511_v19 = vrot.slane %v7510_v55, 4  ;;  %v13323_v27 = vld [vmem:[#allocation2 + $0x120] ss:$20 sps:$4 sm:$0xff]   ;;  %v7523_v15 = vrot.slane %v7521_v36, 5  ;;  %v7529_v24 = vrot.slane %v7527_v53, 5  ;;  %v7954_v55 = vpop.permute.xlu0 %7953 }
 0x3d1   : > { %v12111_v30 = vcombine.low %v13535_v42, %v13536_v41  ;;  %v13537_v40 = vld [vmem:[#allocation3 + $0xb4] sm:$0xf]  ;;  %v13538_v44 = vld [vmem:[#allocation3 + $0xb8] sm:$0xf]  ;;  %8141 = vst [vmem:[#allocation2 + $0x148] sm:$0xf] %v12083_v59 }
 0x3d2   : > { %v12112_v56 = vcombine.low %v13537_v40, %v13538_v44  ;;  %8142 = vst [vmem:[#allocation2 + $0x15c] sm:$0xf] %v12084_v37  ;;  %v7506_v14 = vsel %vm13746_vm2, %v7501_v5, %v7505_v29  ;;  %v7516_v13 = vsel %vm13746_vm2, %v7511_v19, %v7515_v62  ;;  %v13325_v3 = vld [vmem:[#allocation2 + $0x124] ss:$20 sps:$4 sm:$0xff]   ;;  %v7533_v17 = vrot.slane %v7531_v31, 4  ;;  %v8745_v29 = vpop.permute.xlu1 %8744 }
 0x3d3   : > { %v7539_v60 = vrot.slane %v7537_v58, 5  ;;  %v12044_v4 = vcombine.low %v7506_v14, %v7516_v13  ;;  %v7524_v63 = vor.u32 %v7523_v15, %v7520_v2  ;;  %v8788_v1 = vsel %vm819_vm6, %v12111_v30, %v8743_v35  ;;  %10302 = vmatprep.mubr.bf16.mxu0 %v13325_v3  ;;  %v7265_v48 = vld [vmem:[#allocation3 + $0x9c] sm:$0xf]  ;;  %v13539_v32 = vld [vmem:[#allocation3 + $0x94] sm:$0xf] }
 0x3d4   : > { %v7542_v51 = vshrl.u32 %v7262_v43, 16  ;;  %v7534_v6 = vor.u32 %v7533_v17, %v7529_v24  ;;  %v12155_v61 = vcombine.low %v8788_v1, %v8788_v1  ;;  %v12156_v47 = vcombine.high %v8788_v1, %v8788_v1  ;;  %10303 = vmatmul.mubr.bf16.gmra.mxu0 %v13323_v27  ;;  %v13344_v54 = vld [vmem:[#allocation2 + $0x230] ss:$20 sps:$4 sm:$0xff]   ;;  %v13540_v10 = vld [vmem:[#allocation3 + $0x98] sm:$0x1] }
 0x3d5   : > { %v7545_v49 = vshll.u32 %v7262_v43, 16  ;;  %v7994_v38 = vsel %vm819_vm6, %v12044_v4, %v7952_v20  ;;  %v7525_v16 = vrot.slane %v7524_v63, 4  ;;  %v7551_v46 = vshll.u32 %v13539_v32, 16  ;;  %v13352_v21 = vld [vmem:[#allocation2 + $0x25c] ss:$20 sps:$4 sm:$0xff]   ;;  %10198 = vmatmul.mubr.bf16.gmra.mxu1 %v13344_v54 }
 0x3d6   : > { %v7544_v12 = vrot.slane %v7542_v51, 4  ;;  %v12085_v39 = vcombine.low %v7994_v38, %v7994_v38  ;;  %v12086_v62 = vcombine.high %v7994_v38, %v7994_v38  ;;  %v7535_v28 = vrot.slane %v7534_v6, 4  ;;  %8934 = vst [vmem:[#allocation2 + $0x1ec] sm:$0xf] %v12155_v61  ;;  %8935 = vst [vmem:[#allocation2 + $0x200] sm:$0xf] %v12156_v47  ;;  %10205 = vmatprep.mubr.bf16.mxu1 %v13352_v21  ;;  %v8747_v6 = vpop.permute.xlu1 %8746 }
 0x3d7   : > { %v7547_v50 = vrot.slane %v7545_v49, 5  ;;  %v7530_v26 = vsel %vm13746_vm2, %v7525_v16, %v7529_v24  ;;  %v7553_v2 = vrot.slane %v7551_v46, 5  ;;  %v7555_v36 = vshrl.u32 %v13539_v32, 16  ;;  %v13334_v20 = vld [vmem:[#allocation2 + $0x14c] ss:$20 sps:$4 sm:$0xff]  }
 0x3d8   : > { %v7561_v23 = vshll.u32 %v13540_v10, 16  ;;  %8143 = vst [vmem:[#allocation2 + $0x170] sm:$0xf] %v12085_v39  ;;  %8144 = vst [vmem:[#allocation2 + $0x184] sm:$0xf] %v12086_v62  ;;  %v7540_v8 = vsel %vm13746_vm2, %v7535_v28, %v7539_v60  ;;  %v8791_v31 = vsel %vm819_vm6, %v12112_v56, %v8745_v29  ;;  %v7566_v25 = vshrl.u32 %v7265_v48, 16  ;;  %10310 = vmatprep.mubr.bf16.mxu0 %v13334_v20  ;;  %v7956_v60 = vpop.permute.xlu0 %7955 }
 0x3d9   : > { %v7548_v53 = vor.u32 %v7547_v50, %v7544_v12  ;;  %v12045_v58 = vcombine.low %v7530_v26, %v7540_v8  ;;  %v7557_v35 = vrot.slane %v7555_v36, 4  ;;  %v12157_v37 = vcombine.low %v8791_v31, %v8791_v31  ;;  %v13332_v5 = vld [vmem:[#allocation2 + $0x148] ss:$20 sps:$4 sm:$0xff]   ;;  %v13541_v41 = vld [vmem:[#allocation3 + $0xa0] sm:$0xf] }
 0x3da   : > { %v7563_v59 = vrot.slane %v7561_v23, 5  ;;  %v12158_v43 = vcombine.high %v8791_v31, %v8791_v31  ;;  %v7568_v27 = vrot.slane %v7566_v25, 4  ;;  %v7569_v15 = vshll.u32 %v7265_v48, 16  ;;  %v7268_v44 = vld [vmem:[#allocation3 + $0xa8] sm:$0xf] }
 0x3db   : > { %v7549_v19 = vrot.slane %v7548_v53, 4  ;;  %v7997_v24 = vsel %vm819_vm6, %v12045_v58, %v7954_v55  ;;  %v7558_v42 = vor.u32 %v7557_v35, %v7553_v2  ;;  %8936 = vst [vmem:[#allocation2 + $0x214] sm:$0xf] %v12157_v37  ;;  %v7575_v30 = vshll.u32 %v13541_v41, 16  ;;  %v13542_v1 = vld [vmem:[#allocation3 + $0xa4] sm:$0x1] }
 0x3dc   : > { %v7579_v40 = vshrl.u32 %v13541_v41, 16  ;;  %v12087_v56 = vcombine.low %v7997_v24, %v7997_v24  ;;  %v12088_v14 = vcombine.high %v7997_v24, %v7997_v24  ;;  %8937 = vst [vmem:[#allocation2 + $0x228] sm:$0xf] %v12158_v43  ;;  %v7571_v3 = vrot.slane %v7569_v15, 5  ;;  %10311 = vmatmul.mubr.bf16.gmra.mxu0 %v13332_v5  ;;  %v13350_v61 = vld [vmem:[#allocation2 + $0x258] ss:$20 sps:$4 sm:$0xff]   ;;  %v7958_v37 = vpop.permute.xlu0 %7957  ;;  %v8749_v43 = vpop.permute.xlu1 %8748 }
 0x3dd   : > { %v7554_v13 = vsel %vm13746_vm2, %v7549_v19, %v7553_v2  ;;  %v7559_v17 = vrot.slane %v7558_v42, 4  ;;  %v7577_v4 = vrot.slane %v7575_v30, 5  ;;  %v7585_v51 = vshll.u32 %v13542_v1, 16  ;;  %v13543_v49 = vld [vmem:[#allocation3 + $0xc0] sm:$0xf]  ;;  %10206 = vmatmul.mubr.bf16.gmra.mxu1 %v13350_v61 }
 0x3de   : > { %v7581_v63 = vrot.slane %v7579_v40, 4  ;;  %8145 = vst [vmem:[#allocation2 + $0x198] sm:$0xf] %v12087_v56  ;;  %8146 = vst [vmem:[#allocation2 + $0x1ac] sm:$0xf] %v12088_v14  ;;  %v7572_v47 = vor.u32 %v7571_v3, %v7568_v27  ;;  %v7590_v16 = vshrl.u32 %v7268_v44, 16 }
 0x3df   : > { %v13544_v48 = vld [vmem:[#allocation3 + $0xc4] sm:$0xf]  ;;  %v7593_v12 = vshll.u32 %v7268_v44, 16  ;;  %v7564_v32 = vsel %vm13746_vm2, %v7559_v17, %v7563_v59  ;;  %v7587_v29 = vrot.slane %v7585_v51, 5  ;;  %v13545_v54 = vld [vmem:[#allocation3 + $0xac] sm:$0xf] }
 0x3e0   : > { %v12113_v38 = vcombine.low %v13543_v49, %v13544_v48  ;;  %v7582_v46 = vor.u32 %v7581_v63, %v7577_v4  ;;  %v7599_v39 = vshll.u32 %v13545_v54, 16  ;;  %v12046_v62 = vcombine.low %v7554_v13, %v7564_v32  ;;  %v13342_v21 = vld [vmem:[#allocation2 + $0x174] ss:$20 sps:$4 sm:$0xff]   ;;  %v13340_v5 = vld [vmem:[#allocation2 + $0x170] ss:$20 sps:$4 sm:$0xff]   ;;  %v7960_v32 = vpop.permute.xlu0 %7959 }
 0x3e1   : > { %v7573_v28 = vrot.slane %v7572_v47, 4  ;;  %v7592_v26 = vrot.slane %v7590_v16, 4  ;;  %v7595_v10 = vrot.slane %v7593_v12, 5  ;;  %10318 = vmatprep.mubr.bf16.mxu0 %v13342_v21  ;;  %v7603_v31 = vshrl.u32 %v13545_v54, 16  ;;  %v7271_v25 = vld [vmem:[#allocation3 + $0xb4] sm:$0xf] }
 0x3e2   : > { %v8794_v50 = vsel %vm819_vm6, %v12113_v38, %v8747_v6  ;;  %v7583_v55 = vrot.slane %v7582_v46, 4  ;;  %v8000_v23 = vsel %vm819_vm6, %v12046_v62, %v7956_v60  ;;  %v7601_v53 = vrot.slane %v7599_v39, 5  ;;  %v13546_v15 = vld [vmem:[#allocation3 + $0xb0] sm:$0x1]  ;;  %v13547_v42 = vld [vmem:[#allocation3 + $0xcc] sm:$0xf] }
 0x3e3   : > { %v12159_v2 = vcombine.low %v8794_v50, %v8794_v50  ;;  %v12160_v36 = vcombine.high %v8794_v50, %v8794_v50  ;;  %v7578_v8 = vsel %vm13746_vm2, %v7573_v28, %v7577_v4  ;;  %v12089_v58 = vcombine.low %v8000_v23, %v8000_v23  ;;  %v13548_v41 = vld [vmem:[#allocation3 + $0xd0] sm:$0xf]  ;;  %v7274_v61 = vld [vmem:[#allocation3 + $0xc0] sm:$0xf]  ;;  %v13549_v46 = vld [vmem:[#allocation3 + $0xb8] sm:$0xf] }
 0x3e4   : > { %v12090_v35 = vcombine.high %v8000_v23, %v8000_v23  ;;  %v7588_v59 = vsel %vm13746_vm2, %v7583_v55, %v7587_v29  ;;  %v7596_v19 = vor.u32 %v7595_v10, %v7592_v26  ;;  %v7605_v27 = vrot.slane %v7603_v31, 4  ;;  %10319 = vmatmul.mubr.bf16.gmra.mxu0 %v13340_v5  ;;  %v13349_v6 = vld [vmem:[#allocation2 + $0x19c] ss:$20 sps:$4 sm:$0xff]   ;;  %v13551_v55 = vld [vmem:[#allocation3 + $0xc4] sm:$0xf] }
 0x3e5   : > { %8938 = vst [vmem:[#allocation2 + $0x23c] sm:$0xf] %v12159_v2  ;;  %8939 = vst [vmem:[#allocation2 + $0x250] sm:$0xf] %v12160_v36  ;;  %v12047_v20 = vcombine.low %v7578_v8, %v7588_v59  ;;  %v7609_v24 = vshll.u32 %v13546_v15, 16  ;;  %v12114_v30 = vcombine.low %v13547_v42, %v13548_v41  ;;  %v7614_v44 = vshrl.u32 %v7271_v25, 16  ;;  %10326 = vmatprep.mubr.bf16.mxu0 %v13349_v6 }
 0x3e6   : > { %8147 = vst [vmem:[#allocation2 + $0x1c0] sm:$0xf] %v12089_v58  ;;  %8148 = vst [vmem:[#allocation2 + $0x1d4] sm:$0xf] %v12090_v35  ;;  %v7597_v40 = vrot.slane %v7596_v19, 4  ;;  %v17909_v56 = vrot.slane %v15575_v45, 5  ;;  %v7606_v63 = vor.u32 %v7605_v27, %v7601_v53 }
 0x3e7   : > { %v17910_v14 = vrot.slane %v15488_v34, 9  ;;  %v17911_v3 = vrot.slane %v15636_v9, 5  ;;  %v17912_v17 = vrot.slane %v15577_v7, 9  ;;  %v8003_v4 = vsel %vm819_vm6, %v12047_v20, %v7958_v37  ;;  %v13550_v39 = vld [vmem:[#allocation3 + $0xbc] sm:$0x1] }
 0x3e8   : > { %v7611_v1 = vrot.slane %v7609_v24, 5  ;;  %v8797_v51 = vsel %vm819_vm6, %v12114_v30, %v8749_v43  ;;  %v12091_v34 = vcombine.low %v8003_v4, %v8003_v4  ;;  %v12092_v47 = vcombine.high %v8003_v4, %v8003_v4  ;;  %v13347_v10 = vld [vmem:[#allocation2 + $0x198] ss:$20 sps:$4 sm:$0xff]   ;;  %v8944_v31 = vld [vmem:[#allocation3 + $0x20] sm:$0x1] }
 0x3e9   : > { %v9041_v13 = vsel %vm13955_vm5, %v17910_v14, %v17909_v56  ;;  %v9055_v60 = vsel %vm13955_vm5, %v17912_v17, %v17911_v3  ;;  %v7602_v7 = vsel %vm13746_vm2, %v7597_v40, %v7601_v53  ;;  %v12161_v49 = vcombine.low %v8797_v51, %v8797_v51  ;;  %v13552_v43 = vld [vmem:[#allocation3 + $0xc8] sm:$0x1]  ;;  %v13355_v27 = vld [vmem:[#allocation2 + $0x1c4] ss:$20 sps:$4 sm:$0xff]  }
 0x3ea   : > { %9182 = vst.msk [vmem:[#allocation2 + $0x10] sm:$0xf] %vm3561_vm7, %v9041_v13  ;;  %9186 = vst.msk [vmem:[#allocation2 + $0x60] sm:$0xf] %vm3561_vm7, %v9055_v60  ;;  %v7607_v48 = vrot.slane %v7606_v63, 4  ;;  %v12162_v38 = vcombine.high %v8797_v51, %v8797_v51  ;;  %v7616_v16 = vrot.slane %v7614_v44, 4  ;;  %v7962_v44 = vpop.permute.xlu0 %7961 }
 0x3eb   : > { %v7617_v12 = vshll.u32 %v7271_v25, 16  ;;  %8149 = vst [vmem:[#allocation2 + $0x1e8] sm:$0xf] %v12091_v34  ;;  %8150 = vst [vmem:[#allocation2 + $0x1fc] sm:$0xf] %v12092_v47  ;;  %v7623_v29 = vshll.u32 %v13549_v46, 16 }
 0x3ec   : > { %8940 = vst [vmem:[#allocation2 + $0x264] sm:$0xf] %v12161_v49  ;;  %v7627_v54 = vshrl.u32 %v13549_v46, 16  ;;  %v7633_v62 = vshll.u32 %v13550_v39, 16  ;;  %v7638_v28 = vshrl.u32 %v7274_v61, 16  ;;  %v7612_v50 = vsel %vm13746_vm2, %v7607_v48, %v7611_v1  ;;  %10327 = vmatmul.mubr.bf16.gmra.mxu0 %v13347_v10  ;;  %v17919_v46 = vld [vmem:[#allocation14_spill] sm:$0xff] }
 0x3ed   : > { %8941 = vst [vmem:[#allocation2 + $0x278] sm:$0xf] %v12162_v38  ;;  %v7619_v21 = vrot.slane %v7617_v12, 5  ;;  %v7641_v26 = vshll.u32 %v7274_v61, 16  ;;  %v7647_v2 = vshll.u32 %v13551_v55, 16  ;;  %v12048_v36 = vcombine.low %v7602_v7, %v7612_v50  ;;  %10334 = vmatprep.mubr.bf16.mxu0 %v13355_v27  ;;  %v17926_v10 = vld [vmem:[#allocation19_spill] sm:$0xff] }
 0x3ee   : > { %v7625_v23 = vrot.slane %v7623_v29, 5  ;;  %v7629_v8 = vrot.slane %v7627_v54, 4  ;;  %v7635_v53 = vrot.slane %v7633_v62, 5  ;;  %v7640_v58 = vrot.slane %v7638_v28, 4  ;;  %v8950_v15 = vld [vmem:[#allocation3 + $0x38] sm:$0x1] }
 0x3ef   : > { %v7620_v25 = vor.u32 %v7619_v21, %v7616_v16  ;;  %v7643_v35 = vrot.slane %v7641_v26, 5  ;;  %v7649_v59 = vrot.slane %v7647_v2, 5  ;;  %v8006_v37 = vsel %vm819_vm6, %v12048_v36, %v7960_v32  ;;  %v8956_v7 = vld [vmem:[#allocation3 + $0x50] sm:$0x1]  ;;  %v13358_v28 = vld [vmem:[#allocation2 + $0x1ec] ss:$20 sps:$4 sm:$0xff]  }
 0x3f0   : > { %v7630_v5 = vor.u32 %v7629_v8, %v7625_v23  ;;  %v7651_v19 = vshrl.u32 %v13551_v55, 16  ;;  %v7657_v20 = vshll.u32 %v13552_v43, 16  ;;  %v12093_v24 = vcombine.low %v8006_v37, %v8006_v37  ;;  %v17922_v21 = vld [vmem:[#allocation16_spill] sm:$0xff]  ;;  %v17924_v55 = vld [vmem:[#allocation18_spill] sm:$0xff] }
 0x3f1   : > { %v12094_v42 = vcombine.high %v8006_v37, %v8006_v37  ;;  %v7621_v41 = vrot.slane %v7620_v25, 4  ;;  %v7644_v30 = vor.u32 %v7643_v35, %v7640_v58  ;;  %v17913_v13 = vrot.slane %v15575_v45, 5  ;;  %v7964_v58 = vpop.permute.xlu0 %7963  ;;  %v17929_v35 = vld [vmem:[#allocation15_spill] sm:$0xff]  ;;  %v17931_v37 = vld [vmem:[#allocation17_spill] sm:$0xff]  ;;  %v8968_v43 = vld [vmem:[#allocation3 + $0x80] sm:$0x1] }
 0x3f2   : > { %v7631_v40 = vrot.slane %v7630_v5, 4  ;;  %v7653_v56 = vrot.slane %v7651_v19, 4  ;;  %v7659_v14 = vrot.slane %v7657_v20, 5  ;;  %8151 = vst [vmem:[#allocation2 + $0x210] sm:$0xf] %v12093_v24  ;;  %v9043_v4 = vrot.slane %v8944_v31, 5 }
 0x3f3   : > { %v9042_v3 = vrot.slane %v17913_v13, 4  ;;  %8152 = vst [vmem:[#allocation2 + $0x224] sm:$0xf] %v12094_v42  ;;  %v7626_v17 = vsel %vm13746_vm2, %v7621_v41, %v7625_v23  ;;  %v7645_v60 = vrot.slane %v7644_v30, 4  ;;  %v17914_v63 = vrot.slane %v15674_v18, 5  ;;  %v17934_v41 = vld [vmem:[#allocation21_spill] sm:$0xff] }
 0x3f4   : > { %v17915_v1 = vrot.slane %v15668_v57, 9  ;;  %v7636_v6 = vsel %vm13746_vm2, %v7631_v40, %v7635_v53  ;;  %v7654_v61 = vor.u32 %v7653_v56, %v7649_v59  ;;  %v17916_v45 = vrot.slane %v15636_v9, 5  ;;  %v13353_v9 = vld [vmem:[#allocation2 + $0x1c0] ss:$20 sps:$4 sm:$0xff]  }
 0x3f5   : > { %v9057_v47 = vrot.slane %v8950_v15, 5  ;;  %v12049_v49 = vcombine.low %v7626_v17, %v7636_v6  ;;  %v7650_v18 = vsel %vm13746_vm2, %v7645_v60, %v7649_v59  ;;  %v9044_v57 = vsel %vm13955_vm5, %v9042_v3, %v9043_v4  ;;  %10335 = vmatmul.mubr.bf16.gmra.mxu0 %v13353_v9  ;;  %v17936_v40 = vld [vmem:[#allocation20_spill] sm:$0xff]  ;;  %v17940_v3 = vld [vmem:[#allocation11_spill] sm:$0xff] }
 0x3f6   : > { %v9062_v51 = vsel %vm13955_vm5, %v17915_v1, %v17914_v63  ;;  %v9056_v34 = vrot.slane %v17916_v45, 4  ;;  %v17917_v48 = vrot.slane %v15757_v22, 5  ;;  %v7655_v16 = vrot.slane %v7654_v61, 4  ;;  %9183 = vst.msk [vmem:[#allocation2 + $0x24] sm:$0xf] %vm3561_vm7, %v9044_v57  ;;  %10342 = vmatprep.mubr.bf16.mxu0 %v13358_v28  ;;  %v17941_v60 = vld [vmem:[#allocation23_spill] sm:$0xff] }
 0x3f7   : > { %9188 = vst.msk [vmem:[#allocation2 + $0x88] sm:$0xf] %vm3561_vm7, %v9062_v51  ;;  %v17918_v32 = vrot.slane %v15700_v33, 5  ;;  %v17920_v29 = vrot.slane %v17919_v46, 9  ;;  %v8009_v62 = vsel %vm819_vm6, %v12049_v49, %v7962_v44  ;;  %v9071_v50 = vrot.slane %v8956_v7, 5  ;;  %v17928_v33 = vld [vmem:[#allocation8_spill] sm:$0xff] }
 0x3f8   : > { %v9065_v38 = vsel %vm13955_vm5, %v15717_v11, %v17917_v48  ;;  %v9058_v12 = vsel %vm13955_vm5, %v9056_v34, %v9057_v47  ;;  %v8962_v11 = vld [vmem:[#allocation3 + $0x68] sm:$0x1]  ;;  %v17923_v26 = vrot.slane %v17922_v21, 5  ;;  %v17925_v2 = vrot.slane %v17924_v55, 9  ;;  %v8980_v21 = vld [vmem:[#allocation3 + $0xb0] sm:$0x1] }
 0x3f9   : > { %9189 = vst.msk [vmem:[#allocation2 + $0x9c] sm:$0xf] %vm3561_vm7, %v9065_v38  ;;  %v9069_v22 = vsel %vm13955_vm5, %v17920_v29, %v17918_v32  ;;  %v17921_v54 = vmov %v17918_v32  ;;  %9187 = vst.msk [vmem:[#allocation2 + $0x74] sm:$0xf] %vm3561_vm7, %v9058_v12  ;;  %v17927_v23 = vrot.slane %v17926_v10, 5  ;;  %v12095_v53 = vcombine.low %v8009_v62, %v8009_v62  ;;  %v17943_v63 = vld [vmem:[#allocation13_spill] sm:$0xff] }
 0x3fa   : > { %v9070_v39 = vrot.slane %v17921_v54, 4  ;;  %9190 = vst.msk [vmem:[#allocation2 + $0xb0] sm:$0xf] %vm3561_vm7, %v9069_v22  ;;  %v9076_v36 = vsel %vm13955_vm5, %v17925_v2, %v17923_v26  ;;  %v12096_v31 = vcombine.high %v8009_v62, %v8009_v62  ;;  %v7660_v25 = vsel %vm13746_vm2, %v7655_v16, %v7659_v14  ;;  %v17938_v14 = vld [vmem:[#allocation22_spill] sm:$0xff]  ;;  %v17946_v7 = vld [vmem:[#allocation9_spill] sm:$0xff]  ;;  %v17952_v29 = vld [vmem:[#allocation28_spill] sm:$0xff] }
 0x3fb   : > { %v9079_v8 = vsel %vm13955_vm5, %v17928_v33, %v17927_v23  ;;  %9192 = vst.msk [vmem:[#allocation2 + $0xd8] sm:$0xf] %vm3561_vm7, %v9076_v36  ;;  %v17930_v59 = vrot.slane %v17929_v35, 5  ;;  %v17932_v5 = vrot.slane %v17931_v37, 9  ;;  %v12050_v20 = vcombine.low %v7650_v18, %v7660_v25  ;;  %8153 = vst [vmem:[#allocation2 + $0x238] sm:$0xf] %v12095_v53 }
 0x3fc   : > { %9193 = vst.msk [vmem:[#allocation2 + $0xec] sm:$0xf] %vm3561_vm7, %v9079_v8  ;;  %v9072_v27 = vsel %vm13955_vm5, %v9070_v39, %v9071_v50  ;;  %v9085_v42 = vrot.slane %v8962_v11, 5  ;;  %8154 = vst [vmem:[#allocation2 + $0x24c] sm:$0xf] %v12096_v31  ;;  %v17935_v30 = vrot.slane %v17934_v41, 5 }
 0x3fd   : > { %v9083_v19 = vsel %vm13955_vm5, %v17932_v5, %v17930_v59  ;;  %v17933_v15 = vmov %v17930_v59  ;;  %9191 = vst.msk [vmem:[#allocation2 + $0xc4] sm:$0xf] %vm3561_vm7, %v9072_v27  ;;  %v17937_v44 = vrot.slane %v17936_v40, 9  ;;  %v17939_v13 = vrot.slane %v17938_v14, 5  ;;  %v17948_v18 = vld [vmem:[#allocation24_spill] sm:$0xff]  ;;  %v17950_v32 = vld [vmem:[#allocation25_spill] sm:$0xff] }
 0x3fe   : > { %v9084_v24 = vrot.slane %v17933_v15, 4  ;;  %9194 = vst.msk [vmem:[#allocation2 + $0x100] sm:$0xf] %vm3561_vm7, %v9083_v19  ;;  %v17942_v4 = vrot.slane %v17941_v60, 5  ;;  %v17944_v1 = vrot.slane %v17943_v63, 9  ;;  %v8012_v45 = vsel %vm819_vm6, %v12050_v20, %v7964_v58  ;;  %v17953_v39 = vld [vmem:[#allocation12_spill] sm:$0xff] }
 0x3ff   : > { %v9090_v56 = vsel %vm13955_vm5, %v17937_v44, %v17935_v30  ;;  %v9093_v17 = vsel %vm13955_vm5, %v17940_v3, %v17939_v13  ;;  %v9099_v47 = vrot.slane %v8968_v43, 5  ;;  %v17947_v49 = vrot.slane %v17946_v7, 5  ;;  %v13356_v9 = vld [vmem:[#allocation2 + $0x1e8] ss:$20 sps:$4 sm:$0xff]   ;;  %v13360_v12 = vld [vmem:[#allocation2 + $0x38] ss:$20 sps:$4 sm:$0xff]  }
 0x400   : > { %v9097_v51 = vsel %vm13955_vm5, %v17944_v1, %v17942_v4  ;;  %v17945_v6 = vmov %v17942_v4  ;;  %v9086_v34 = vsel %vm13955_vm5, %v9084_v24, %v9085_v42  ;;  %9196 = vst.msk [vmem:[#allocation2 + $0x128] sm:$0xf] %vm3561_vm7, %v9090_v56  ;;  %9197 = vst.msk [vmem:[#allocation2 + $0x13c] sm:$0xf] %vm3561_vm7, %v9093_v17  ;;  %v17949_v57 = vrot.slane %v17948_v18, 9  ;;  %v17955_v62 = vld [vmem:[#allocation7_spill] sm:$0xff]  ;;  %10343 = vmatmul.mubr.bf16.gmra.mxu0 %v13356_v9 }
 0x401   : > { %v9098_v61 = vrot.slane %v17945_v6, 4  ;;  %9198 = vst.msk [vmem:[#allocation2 + $0x150] sm:$0xf] %vm3561_vm7, %v9097_v51  ;;  %v12097_v38 = vcombine.low %v8012_v45, %v8012_v45  ;;  %v12098_v16 = vcombine.high %v8012_v45, %v8012_v45  ;;  %9195 = vst.msk [vmem:[#allocation2 + $0x114] sm:$0xf] %vm3561_vm7, %v9086_v34  ;;  %v17951_v46 = vrot.slane %v17950_v32, 5 }
 0x402   : > { %v9104_v48 = vsel %vm13955_vm5, %v17949_v57, %v17947_v49  ;;  %v8974_v54 = vld [vmem:[#allocation3 + $0x98] sm:$0x1]  ;;  %v17954_v11 = vrot.slane %v17953_v39, 5  ;;  %v17956_v28 = vrot.slane %v17955_v62, 9  ;;  %v13359_v26 = vld [vmem:[#allocation2 + $0x10] ss:$20 sps:$4 sm:$0xff]  }
 0x403   : > { %v9107_v22 = vsel %vm13955_vm5, %v17952_v29, %v17951_v46  ;;  %9200 = vst.msk [vmem:[#allocation2 + $0x178] sm:$0xf] %vm3561_vm7, %v9104_v48  ;;  %v9100_v55 = vsel %vm13955_vm5, %v9098_v61, %v9099_v47  ;;  %v17957_v2 = vld [vmem:[#allocation29_spill] sm:$0xff]  ;;  %v17959_v10 = vld [vmem:[#allocation26_spill] sm:$0xff]  ;;  %v17961_v8 = vld [vmem:[#allocation32_spill] sm:$0xff]  ;;  %12934 = vmatprep.mubr.msk.bf16.mxu1 %vm819_vm6, %v13359_v26  ;;  %v9113_v49 = vrot.slane %v8974_v54, 5 }
 0x404   : > { %v9111_v50 = vsel %vm13955_vm5, %v17956_v28, %v17954_v11  ;;  %9201 = vst.msk [vmem:[#allocation2 + $0x18c] sm:$0xf] %vm3561_vm7, %v9107_v22  ;;  %v17958_v36 = vrot.slane %v17957_v2, 5  ;;  %v17960_v23 = vrot.slane %v17959_v10, 9  ;;  %v17962_v53 = vrot.slane %v17961_v8, 5  ;;  %v17963_v31 = vld [vmem:[#allocation30_spill] sm:$0xff]  ;;  %12935 = vmatmul.mubr.msk.bf16.vlgmr.msra.gmra.mxu1 %vm819_vm6, %v13360_v12 }
 0x405   : > { %9202 = vst.msk [vmem:[#allocation2 + $0x1a0] sm:$0xf] %vm3561_vm7, %v9111_v50  ;;  %v17964_v58 = vld [vmem:[#allocation27_spill] sm:$0xff]  ;;  %v17966_v59 = vld [vmem:[#allocation10_spill] sm:$0xff]  ;;  %8155 = vst [vmem:[#allocation2 + $0x260] sm:$0xf] %v12097_v38  ;;  %v17986_v47 = vmov %v17954_v11 }
 0x406   : > { %v9118_v33 = vsel %vm13955_vm5, %v17960_v23, %v17958_v36  ;;  %v9121_v25 = vsel %vm13955_vm5, %v17963_v31, %v17962_v53  ;;  %v17965_v35 = vrot.slane %v17964_v58, 5  ;;  %v17967_v37 = vrot.slane %v17966_v59, 9  ;;  %8156 = vst [vmem:[#allocation2 + $0x274] sm:$0xf] %v12098_v16  ;;  %v13363_v19 = vld [vmem:[#allocation2 + $0x214] ss:$20 sps:$4 sm:$0xff]  }
 0x407   : > { %v13364_v43 = vld [vmem:[#allocation2 + $0x60] ss:$20 sps:$4 sm:$0xff]   ;;  %9199 = vst.msk [vmem:[#allocation2 + $0x164] sm:$0xf] %vm3561_vm7, %v9100_v55  ;;  %9204 = vst.msk [vmem:[#allocation2 + $0x1c8] sm:$0xf] %vm3561_vm7, %v9118_v33  ;;  %10350 = vmatprep.mubr.bf16.mxu0 %v13363_v19 }
 0x408   : > { %v9125_v5 = vsel %vm13955_vm5, %v17967_v37, %v17965_v35  ;;  %9205 = vst.msk [vmem:[#allocation2 + $0x1dc] sm:$0xf] %vm3561_vm7, %v9121_v25  ;;  %v17968_v20 = vld [vmem:[#allocation36_spill] sm:$0xff]  ;;  %v17970_v15 = vld [vmem:[#allocation33_spill] sm:$0xff]  ;;  %v17974_v40 = vld [vmem:[#allocation38_spill] sm:$0xff]  ;;  %v9112_v7 = vrot.slane %v17986_v47, 4  ;;  %12938 = vmatprep.mubr.msk.bf16.mxu1 %vm819_vm6, %v13364_v43  ;;  %v17987_v18 = vmov %v17965_v35 }
 0x409   : > { %9206 = vst.msk [vmem:[#allocation2 + $0x1f0] sm:$0xf] %vm3561_vm7, %v9125_v5  ;;  %v17969_v27 = vrot.slane %v17968_v20, 5  ;;  %v17971_v24 = vrot.slane %v17970_v15, 9  ;;  %v17972_v41 = vld [vmem:[#allocation40_spill] sm:$0xff]  ;;  %v17975_v56 = vld [vmem:[#allocation35_spill] sm:$0xff] }
 0x40a   : > { %v17973_v30 = vrot.slane %v17972_v41, 5  ;;  %v17976_v14 = vrot.slane %v17975_v56, 5  ;;  %v17977_v13 = vld [vmem:[#allocation31_spill] sm:$0xff]  ;;  %v17979_v60 = vld [vmem:[#allocation37_spill] sm:$0xff]  ;;  %v17981_v63 = vld [vmem:[#allocation34_spill] sm:$0xff]  ;;  %v9126_v57 = vrot.slane %v17987_v18, 4  ;;  %v9114_v38 = vsel %vm13955_vm5, %v9112_v7, %v9113_v49 }
 0x40b   : > { %v9132_v42 = vsel %vm13955_vm5, %v17971_v24, %v17969_v27  ;;  %v17978_v3 = vrot.slane %v17977_v13, 9  ;;  %v17980_v4 = vrot.slane %v17979_v60, 5  ;;  %v17982_v1 = vrot.slane %v17981_v63, 9  ;;  %v17983_v6 = vld [vmem:[#allocation41_spill] sm:$0xff]  ;;  %v17985_v45 = vld [vmem:[#allocation39_spill] sm:$0xff] }
 0x40c   : > { %v9135_v44 = vsel %vm13955_vm5, %v17974_v40, %v17973_v30  ;;  %9208 = vst.msk [vmem:[#allocation2 + $0x218] sm:$0xf] %vm3561_vm7, %v9132_v42  ;;  %v17984_v61 = vrot.slane %v17983_v6, 5  ;;  %v9127_v48 = vrot.slane %v8980_v21, 5  ;;  %v8986_v16 = vld [vmem:[#allocation3 + $0xc8] sm:$0x1]  ;;  %v17988_v32 = vmov %v17976_v14 }
 0x40d   : > { %v9139_v17 = vsel %vm13955_vm5, %v17978_v3, %v17976_v14  ;;  %v9146_v51 = vsel %vm13955_vm5, %v17982_v1, %v17980_v4  ;;  %9209 = vst.msk [vmem:[#allocation2 + $0x22c] sm:$0xf] %vm3561_vm7, %v9135_v44  ;;  %9203 = vst.msk [vmem:[#allocation2 + $0x1b4] sm:$0xf] %vm3561_vm7, %v9114_v38  ;;  %v13361_v12 = vld [vmem:[#allocation2 + $0x210] ss:$20 sps:$4 sm:$0xff]  }
 0x40e   : > { %9210 = vst.msk [vmem:[#allocation2 + $0x240] sm:$0xf] %vm3561_vm7, %v9139_v17  ;;  %v9149_v34 = vsel %vm13955_vm5, %v17985_v45, %v17984_v61  ;;  %9212 = vst.msk [vmem:[#allocation2 + $0x268] sm:$0xf] %vm3561_vm7, %v9146_v51  ;;  %v9128_v9 = vsel %vm13955_vm5, %v9126_v57, %v9127_v48  ;;  %v9140_v46 = vrot.slane %v17988_v32, 4  ;;  %v9141_v29 = vrot.slane %v8986_v16, 5  ;;  %10351 = vmatmul.mubr.bf16.gmra.mxu0 %v13361_v12 }
 0x40f   : > { %9213 = vst.msk [vmem:[#allocation2 + $0x27c] sm:$0xf] %vm3561_vm7, %v9149_v34  ;;  %9207 = vst.msk [vmem:[#allocation2 + $0x204] sm:$0xf] %vm3561_vm7, %v9128_v9  ;;  %v13365_v22 = vld [vmem:[#allocation2 + $0x88] ss:$20 sps:$4 sm:$0xff]  }
 0x410   : > { %v13368_v54 = vld [vmem:[#allocation2 + $0x23c] ss:$20 sps:$4 sm:$0xff]   ;;  %v9142_v11 = vsel %vm13955_vm5, %v9140_v46, %v9141_v29  ;;  %12939 = vmatmul.mubr.msk.bf16.gmra.mxu1 %vm819_vm6, %v13365_v22  ;;  %v13366_v62 = vld [vmem:[#allocation2 + $0x238] ss:$20 sps:$4 sm:$0xff]   ;;  %v13374_v21 = vld [vmem:[#allocation2 + $0x100] ss:$20 sps:$4 sm:$0xff]  }
 0x411   : > { %v13369_v39 = vld [vmem:[#allocation2 + $0xb0] ss:$20 sps:$4 sm:$0xff]   ;;  %9211 = vst.msk [vmem:[#allocation2 + $0x254] sm:$0xf] %vm3561_vm7, %v9142_v11  ;;  %10358 = vmatprep.mubr.bf16.mxu0 %v13368_v54  ;;  %v13370_v28 = vld [vmem:[#allocation2 + $0xd8] ss:$20 sps:$4 sm:$0xff]  }
 0x412   : > { %12942 = vmatprep.mubr.msk.bf16.mxu1 %vm819_vm6, %v13369_v39  ;;  %v13373_v50 = vld [vmem:[#allocation2 + $0x264] ss:$20 sps:$4 sm:$0xff]   ;;  %v13371_v0 = vld [vmem:[#allocation2 + $0x260] ss:$20 sps:$4 sm:$0xff]   ;;  %v13375_v26 = vld [vmem:[#allocation2 + $0x128] ss:$20 sps:$4 sm:$0xff]  }
 0x413   : > { %v13376_v55 = vld [vmem:[#allocation2 + $0x150] ss:$20 sps:$4 sm:$0xff]   ;;  %v13377_v2 = vld [vmem:[#allocation2 + $0x178] ss:$20 sps:$4 sm:$0xff]   ;;  %v13379_v10 = vld [vmem:[#allocation2 + $0x1c8] ss:$20 sps:$4 sm:$0xff]  }
 0x414   : > { %v13378_v36 = vld [vmem:[#allocation2 + $0x1a0] ss:$20 sps:$4 sm:$0xff]   ;;  %v13381_v25 = vld [vmem:[#allocation2 + $0x218] ss:$20 sps:$4 sm:$0xff]  }
 0x415   : > { %v12658_v33 = vpop.f32.mrf.mxu1  ;;  %v17001_v49 = vld [vmem:[%s17739_s4] ss:$0 sm:$0xff] }
 0x416   : > { %10359 = vmatmul.mubr.bf16.gmra.mxu0 %v13366_v62  ;;  %v13380_v23 = vld [vmem:[#allocation2 + $0x1f0] ss:$20 sps:$4 sm:$0xff]   ;;  %v13383_v43 = vld [vmem:[#allocation2 + $0x268] ss:$20 sps:$4 sm:$0xff]  }
 0x417   : > { %10366 = vmatprep.mubr.bf16.mxu0 %v13373_v50  ;;  %v12659_v8 = vpop.f32.mrf.mxu1 }
 0x418   : > { %12943 = vmatmul.mubr.msk.bf16.gmra.mxu1 %vm819_vm6, %v13370_v28  ;;  %v12660_v53 = vadd.f32 %v12659_v8, %v12658_v33  ;;  %v13382_v35 = vld [vmem:[#allocation2 + $0x240] ss:$20 sps:$4 sm:$0xff]  }
 0x419   : > { %12946 = vmatprep.mubr.msk.bf16.mxu1 %vm819_vm6, %v13374_v21  ;;  %v12661_v31 = vpop.f32.mrf.mxu1 }
 0x41a   : > { %v10088_v9 = vadd.f32 %v12660_v53, %v17001_v49 }
 0x41b   : > { %v12662_v58 = vpop.f32.mrf.mxu1 }
 0x41c   : > { %v12663_v59 = vadd.f32 %v12662_v58, %v12661_v31 }
 0x41e   : > { %10367 = vmatmul.mubr.bf16.gmra.mxu0 %v13371_v0  ;;  %v10091_v11 = vadd.f32 %v12663_v59, %v17001_v49 }
 0x420   : > { %12947 = vmatmul.mubr.msk.bf16.gmra.mxu1 %vm819_vm6, %v13375_v26 }
 0x421   : > { %12950 = vmatprep.mubr.msk.bf16.mxu1 %vm819_vm6, %v13376_v55 }
 0x423   : > { %v12664_v37 = vpop.f32.mrf.mxu1 }
 0x425   : > { %v12665_v5 = vpop.f32.mrf.mxu1 }
 0x426   : > { %v16979_v19 = vadd.f32 %v12665_v5, %v12664_v37 }
 0x427   : > { %v12667_v20 = vpop.f32.mrf.mxu1 }
 0x428   : > { %12951 = vmatmul.mubr.msk.bf16.gmra.mxu1 %vm819_vm6, %v13377_v2 }
 0x429   : > { %12954 = vmatprep.mubr.msk.bf16.mxu1 %vm819_vm6, %v13378_v36  ;;  %v12668_v27 = vpop.f32.mrf.mxu1 }
 0x42a   : > { %v16982_v15 = vadd.f32 %v12668_v27, %v12667_v20 }
 0x42b   : > { %v12670_v24 = vpop.f32.mrf.mxu1 }
 0x42d   : > { %v12671_v42 = vpop.f32.mrf.mxu1 }
 0x42e   : > { %v16984_v41 = vadd.f32 %v12671_v42, %v12670_v24 }
 0x42f   : > { %v12673_v30 = vpop.f32.mrf.mxu1 }
 0x430   : > { %12955 = vmatmul.mubr.msk.bf16.gmra.mxu1 %vm819_vm6, %v13379_v10 }
 0x431   : > { %12958 = vmatprep.mubr.msk.bf16.mxu1 %vm819_vm6, %v13380_v23  ;;  %v12674_v40 = vpop.f32.mrf.mxu1 }
 0x432   : > { %v16986_v44 = vadd.f32 %v12674_v40, %v12673_v30 }
 0x436   : > { %v12676_v56 = vpop.f32.mrf.mxu1 }
 0x438   : > { %12959 = vmatmul.mubr.msk.bf16.gmra.mxu1 %vm819_vm6, %v13381_v25  ;;  %v12677_v14 = vpop.f32.mrf.mxu1 }
 0x439   : > { %12962 = vmatprep.mubr.msk.bf16.mxu1 %vm819_vm6, %v13382_v35  ;;  %v16988_v13 = vadd.f32 %v12677_v14, %v12676_v56 }
 0x43a   : > { %v12679_v3 = vpop.f32.mrf.mxu1 }
 0x43c   : > { %v12680_v17 = vpop.f32.mrf.mxu1 }
 0x43d   : > { %v16990_v60 = vadd.f32 %v12680_v17, %v12679_v3 }
 0x43e   : > { %v12682_v4 = vpop.f32.mrf.mxu1 }
 0x440   : > { %12963 = vmatmul.mubr.msk.bf16.gmra.mxu1 %vm819_vm6, %v13383_v43  ;;  %v12683_v63 = vpop.f32.mrf.mxu1 }
 0x441   : > { %v16992_v1 = vadd.f32 %v12683_v63, %v12682_v4 }
 0x442   : > { %v12685_v51 = vpop.f32.mrf.mxu1 }
 0x444   : > { %v12686_v6 = vpop.f32.mrf.mxu1 }
 0x445   : > { %v16994_v61 = vadd.f32 %v12686_v6, %v12685_v51 }
 0x446   : > { %v12688_v45 = vpop.f32.mrf.mxu1 }
 0x448   : > { %v12689_v34 = vpop.f32.mrf.mxu1 }
 0x449   : > { %v16996_v47 = vadd.f32 %v12689_v34, %v12688_v45 }
 0x44a   : > { %v12691_v7 = vpop.f32.mrf.mxu1 }
 0x44c   : > { %v12770_v18 = vpop.f32.mrf.mxu0  ;;  %v12692_v57 = vpop.f32.mrf.mxu1 }
 0x44d   : > { %v17003_v48 = vadd.f32 %v12692_v57, %v12691_v7 }
 0x44e   : > { %v12771_v38 = vpop.f32.mrf.mxu0  ;;  %v12694_v16 = vpop.f32.mrf.mxu1 }
 0x44f   : > { %v12772_v12 = vadd.f32 %v12771_v38, %v12770_v18 }
 0x450   : > { %v12773_v32 = vpop.f32.mrf.mxu0  ;;  %v12695_v46 = vpop.f32.mrf.mxu1 }
 0x451   : > { %v17006_v29 = vadd.f32 %v12695_v46, %v12694_v16  ;;  %v17008_v22 = vadd.f32 %v12772_v12, %v10088_v9  ;;  %v12315_v12 = vld [vmem:[%s13715_s17 + $0x18] sm:$0xf] }
 0x452   : > { %v12774_v54 = vpop.f32.mrf.mxu0  ;;  %v12697_v39 = vpop.f32.mrf.mxu1 }
 0x453   : > { %17989 = vst [vmem:[#allocation14_spill] sm:$0xff] %v17008_v22  ;;  %v12775_v62 = vadd.f32 %v12774_v54, %v12773_v32 }
 0x454   : > { %v12698_v50 = vpop.f32.mrf.mxu1 }
 0x455   : > { %v17011_v28 = vpop.f32.mrf.mxu0  ;;  %v17013_v21 = vadd.f32 %v12698_v50, %v12697_v39  ;;  %v17015_v0 = vadd.f32 %v12775_v62, %v10091_v11  ;;  %v12316_v39 = vld [vmem:[%s13715_s17 + $0x1c] sm:$0xf]  ;;  %v10609_v11 = vshrl.u32 %v12315_v12, 16  ;;  %v10612_v62 = vshll.u32 %v12315_v12, 16 }
 0x456   : > { %v12700_v55 = vpop.f32.mrf.mxu1 }
 0x457   : > { %17990 = vst [vmem:[#allocation16_spill] sm:$0xff] %v17015_v0  ;;  %v17017_v26 = vpop.f32.mrf.mxu0 }
 0x458   : > { %v12701_v36 = vpop.f32.mrf.mxu1 }
 0x459   : > { %v17019_v2 = vpop.f32.mrf.mxu0  ;;  %v17021_v10 = vadd.f32 %v12701_v36, %v12700_v55 }
 0x45a   : > { %v12703_v33 = vpop.f32.mrf.mxu1 }
 0x45b   : > { %v17023_v23 = vpop.f32.mrf.mxu0 }
 0x45c   : > { %v12704_v53 = vpop.f32.mrf.mxu1 }
 0x45d   : > { %v17027_v31 = vadd.f32 %v12704_v53, %v12703_v33  ;;  %v12312_v33 = vld [vmem:[%s13715_s17 + $0xc] sm:$0xf]  ;;  %v10618_v53 = vshll.u32 %v12316_v39, 16 }
 0x45f   : > { %v17025_v8 = vpop.f32.mrf.mxu0 }
 0x460   : > { %v12706_v58 = vpop.f32.mrf.mxu1 }
 0x461   : > { %v17029_v25 = vpop.f32.mrf.mxu0 }
 0x462   : > { %v12707_v59 = vpop.f32.mrf.mxu1 }
 0x463   : > { %v17031_v35 = vpop.f32.mrf.mxu0  ;;  %v17033_v37 = vadd.f32 %v12707_v59, %v12706_v58  ;;  %v10622_v58 = vshrl.u32 %v12316_v39, 16 }
 0x464   : > { %v12709_v43 = vpop.f32.mrf.mxu1 }
 0x465   : > { %v17035_v5 = vpop.f32.mrf.mxu0  ;;  %v10624_v12 = vrot.slane %v10622_v58, 4  ;;  %v12321_v58 = vld [vmem:[%s13715_s17 + $0x30] sm:$0xf] }
 0x466   : > { %v12710_v20 = vpop.f32.mrf.mxu1 }
 0x467   : > { %v17039_v24 = vadd.f32 %v12710_v20, %v12709_v43  ;;  %v10611_v20 = vrot.slane %v10609_v11, 4 }
 0x468   : > { %v17037_v27 = vpop.f32.mrf.mxu0 }
 0x46a   : > { %v12712_v42 = vpop.f32.mrf.mxu1  ;;  %v17041_v30 = vpop.f32.mrf.mxu0 }
 0x46c   : > { %v12713_v40 = vpop.f32.mrf.mxu1  ;;  %v17043_v56 = vpop.f32.mrf.mxu0 }
 0x46d   : > { %v17045_v14 = vadd.f32 %v12713_v40, %v12712_v42  ;;  %v10614_v42 = vrot.slane %v10612_v62, 5 }
 0x46e   : > { %v12715_v3 = vpop.f32.mrf.mxu1  ;;  %v17047_v17 = vpop.f32.mrf.mxu0 }
 0x470   : > { %v12716_v4 = vpop.f32.mrf.mxu1 }
 0x471   : > { %v17049_v63 = vadd.f32 %v12716_v4, %v12715_v3  ;;  %v12313_v3 = vld [vmem:[%s13715_s17 + $0x10] sm:$0xf]  ;;  %v10585_v4 = vshrl.u32 %v12312_v33, 16 }
 0x472   : > { %v17051_v6 = vpop.f32.mrf.mxu0  ;;  %v10594_v39 = vshll.u32 %v12313_v3, 16 }
 0x473   : > { %17991 = vst [vmem:[#allocation18_spill] sm:$0xff] %v17049_v63  ;;  %17992 = vst [vmem:[#allocation19_spill] sm:$0xff] %v17051_v6  ;;  %v10587_v62 = vrot.slane %v10585_v4, 4  ;;  %v12314_v4 = vld [vmem:[%s13715_s17 + $0x14] sm:$0x1] }
 0x474   : > { %v12718_v51 = vpop.f32.mrf.mxu1  ;;  %v17053_v34 = vpop.f32.mrf.mxu0  ;;  %v12320_v63 = vld [vmem:[%s13715_s17 + $0x2c] sm:$0x1] }
 0x475   : > { %17993 = vst [vmem:[#allocation8_spill] sm:$0xff] %v17053_v34 }
 0x476   : > { %v12719_v45 = vpop.f32.mrf.mxu1  ;;  %v17057_v57 = vpop.f32.mrf.mxu0 }
 0x477   : > { %v17055_v7 = vadd.f32 %v12719_v45, %v12718_v51  ;;  %17995 = vst [vmem:[#allocation17_spill] sm:$0xff] %v17057_v57  ;;  %v10588_v51 = vshll.u32 %v12312_v33, 16 }
 0x478   : > { %v12721_v18 = vpop.f32.mrf.mxu1  ;;  %v17059_v16 = vpop.f32.mrf.mxu0 }
 0x479   : > { %17994 = vst [vmem:[#allocation15_spill] sm:$0xff] %v17055_v7  ;;  %17996 = vst [vmem:[#allocation21_spill] sm:$0xff] %v17059_v16 }
 0x47a   : > { %v12722_v38 = vpop.f32.mrf.mxu1 }
 0x47b   : > { %v17061_v9 = vadd.f32 %v12722_v38, %v12721_v18  ;;  %v10620_v38 = vrot.slane %v10618_v53, 5 }
 0x47c   : > { %v12724_v32 = vpop.f32.mrf.mxu1 }
 0x47d   : > { %17997 = vst [vmem:[#allocation20_spill] sm:$0xff] %v17061_v9  ;;  %v17064_v46 = vpop.f32.mrf.mxu0 }
 0x47e   : > { %17998 = vst [vmem:[#allocation22_spill] sm:$0xff] %v17064_v46  ;;  %v12725_v54 = vpop.f32.mrf.mxu1 }
 0x47f   : > { %v17067_v50 = vadd.f32 %v12725_v54, %v12724_v32  ;;  %v17069_v55 = vpop.f32.mrf.mxu0  ;;  %v10615_v54 = vor.u32 %v10614_v42, %v10611_v20  ;;  %v12318_v20 = vld [vmem:[%s13715_s17 + $0x24] sm:$0xf] }
 0x480   : > { %18000 = vst [vmem:[#allocation23_spill] sm:$0xff] %v17069_v55  ;;  %v12727_v36 = vpop.f32.mrf.mxu1 }
 0x481   : > { %17999 = vst [vmem:[#allocation11_spill] sm:$0xff] %v17067_v50  ;;  %v17072_v59 = vpop.f32.mrf.mxu0  ;;  %v12317_v50 = vld [vmem:[%s13715_s17 + $0x20] sm:$0x1]  ;;  %v10616_v55 = vrot.slane %v10615_v54, 4  ;;  %v12322_v54 = vld [vmem:[%s13715_s17 + $0x34] sm:$0xf] }
 0x482   : > { %18001 = vst [vmem:[#allocation13_spill] sm:$0xff] %v17072_v59  ;;  %v12728_v43 = vpop.f32.mrf.mxu1  ;;  %v10628_v53 = vshll.u32 %v12317_v50, 16  ;;  %v17101_v50 = vadd.f32 %v16982_v15, %v17001_v49  ;;  %v10666_v46 = vshll.u32 %v12322_v54, 16 }
 0x483   : > { %v17074_v40 = vadd.f32 %v12728_v43, %v12727_v36  ;;  %v17077_v45 = vpop.f32.mrf.mxu0  ;;  %v10590_v36 = vrot.slane %v10588_v51, 5  ;;  %v10598_v43 = vshrl.u32 %v12313_v3, 16  ;;  %v17097_v51 = vadd.f32 %v16979_v19, %v17001_v49 }
 0x484   : > { %18003 = vst [vmem:[#allocation24_spill] sm:$0xff] %v17077_v45  ;;  %v12730_v18 = vpop.f32.mrf.mxu1  ;;  %v10625_v45 = vor.u32 %v10624_v12, %v10620_v38  ;;  %v17111_v19 = vadd.f32 %v16986_v44, %v17001_v49  ;;  %v10670_v44 = vshrl.u32 %v12322_v54, 16  ;;  %v12327_v54 = vld [vmem:[%s13715_s17 + $0x48] sm:$0xf] }
 0x485   : > { %18002 = vst [vmem:[#allocation9_spill] sm:$0xff] %v17074_v40  ;;  %v10600_v3 = vrot.slane %v10598_v43, 4 }
 0x486   : > { %v12731_v32 = vpop.f32.mrf.mxu1 }
 0x487   : > { %v17082_v11 = vadd.f32 %v12731_v32, %v12730_v18  ;;  %v10591_v18 = vor.u32 %v10590_v36, %v10587_v62  ;;  %v17092_v32 = vrot.slane %v10594_v39, 5  ;;  %v10633_v62 = vshrl.u32 %v12318_v20, 16 }
 0x488   : > { %v12733_v33 = vpop.f32.mrf.mxu1  ;;  %v10636_v39 = vshll.u32 %v12318_v20, 16  ;;  %v17107_v36 = vadd.f32 %v16984_v41, %v17001_v49 }
 0x489   : > { %v17080_v59 = vpop.f32.mrf.mxu0  ;;  %18005 = vst [vmem:[#allocation28_spill] sm:$0xff] %v17082_v11  ;;  %v10657_v11 = vshrl.u32 %v12321_v58, 16  ;;  %v10601_v20 = vor.u32 %v10600_v3, %v17092_v32  ;;  %v17130_v3 = vadd.f32 %v16990_v60, %v17001_v49  ;;  %v17143_v60 = vrot.slane %v10666_v46, 5 }
 0x48a   : > { %18004 = vst [vmem:[#allocation25_spill] sm:$0xff] %v17080_v59  ;;  %v12734_v9 = vpop.f32.mrf.mxu1 }
 0x48b   : > { %v17084_v40 = vpop.f32.mrf.mxu0  ;;  %v17090_v59 = vadd.f32 %v12734_v9, %v12733_v33  ;;  %v10630_v9 = vrot.slane %v10628_v53, 5  ;;  %v12319_v33 = vld [vmem:[%s13715_s17 + $0x28] sm:$0xf]  ;;  %v17119_v53 = vrot.slane %v10591_v18, 4  ;;  %v10659_v16 = vrot.slane %v10657_v11, 4  ;;  %18011 = vst [vmem:[#allocation30_spill] sm:$0xff] %v17130_v3 }
 0x48c   : > { %18006 = vst [vmem:[#allocation12_spill] sm:$0xff] %v17084_v40  ;;  %v12736_v12 = vpop.f32.mrf.mxu1  ;;  %v10660_v40 = vshll.u32 %v12321_v58, 16  ;;  %v10604_v58 = vshll.u32 %v12314_v4, 16  ;;  %v10642_v7 = vshll.u32 %v12319_v33, 16  ;;  %v10646_v4 = vshrl.u32 %v12319_v33, 16 }
 0x48d   : > { %v17088_v42 = vpop.f32.mrf.mxu0  ;;  %18008 = vst [vmem:[#allocation29_spill] sm:$0xff] %v17090_v59  ;;  %v10621_v59 = vsel %vm13746_vm2, %v10616_v55, %v10620_v38  ;;  %v10635_v55 = vrot.slane %v10633_v62, 4  ;;  %v10638_v38 = vrot.slane %v10636_v39, 5  ;;  %v17126_v18 = vadd.f32 %v16988_v13, %v17001_v49  ;;  %v12328_v62 = vld [vmem:[%s13715_s17 + $0x4c] sm:$0xf] }
 0x48e   : > { %18007 = vst [vmem:[#allocation7_spill] sm:$0xff] %v17088_v42  ;;  %v10626_v42 = vrot.slane %v10625_v45, 4  ;;  %v12737_v15 = vpop.f32.mrf.mxu1  ;;  %v10662_v57 = vrot.slane %v10660_v40, 5  ;;  %v10597_v13 = vsel %vm13746_vm2, %v17119_v53, %v17092_v32  ;;  %v10602_v33 = vrot.slane %v10601_v20, 4  ;;  %v12324_v39 = vld [vmem:[%s13715_s17 + $0x3c] sm:$0xf] }
 0x48f   : > { %v17113_v43 = vpop.f32.mrf.mxu0  ;;  %v17117_v45 = vadd.f32 %v12737_v15, %v12736_v12  ;;  %v17134_v12 = vunpack.c.l.bf16 %v10621_v59  ;;  %v10639_v0 = vor.u32 %v10638_v38, %v10635_v55  ;;  %v10648_v34 = vrot.slane %v10646_v4, 4 }
 0x490   : > { %18009 = vst [vmem:[#allocation26_spill] sm:$0xff] %v17113_v43  ;;  %v12739_v41 = vpop.f32.mrf.mxu1  ;;  %v10631_v43 = vsel %vm13746_vm2, %v10626_v42, %v10630_v9  ;;  %v10606_v42 = vrot.slane %v10604_v58, 5  ;;  %v10663_v58 = vor.u32 %v10662_v57, %v10659_v16  ;;  %v10705_v32 = vshrl.u32 %v12327_v54, 16 }
 0x491   : > { %18010 = vst [vmem:[#allocation32_spill] sm:$0xff] %v17117_v45  ;;  %v17149_v45 = vunpack.c.l.bf16 %v10631_v43  ;;  %v10708_v53 = vshll.u32 %v12327_v54, 16  ;;  %v10714_v6 = vshll.u32 %v12328_v62, 16  ;;  %v10718_v3 = vshrl.u32 %v12328_v62, 16 }
 0x492   : > { %v12740_v40 = vpop.f32.mrf.mxu1  ;;  %v10684_v22 = vshll.u32 %v12324_v39, 16  ;;  %v10664_v38 = vrot.slane %v10663_v58, 4 }
 0x493   : > { %v17137_v9 = vadd.f32 %v12740_v40, %v12739_v41  ;;  %18015 = vst [vmem:[#allocation33_spill] sm:$0xff] %v17149_v45  ;;  %v12323_v41 = vld [vmem:[%s13715_s17 + $0x38] sm:$0x1]  ;;  %v10672_v40 = vrot.slane %v10670_v44, 4  ;;  %v10640_v45 = vrot.slane %v10639_v0, 4  ;;  %v10720_v58 = vrot.slane %v10718_v3, 4 }
 0x494   : > { %v17132_v11 = vpop.f32.mrf.mxu0  ;;  %v10676_v54 = vshll.u32 %v12323_v41, 16  ;;  %v12326_v3 = vld [vmem:[%s13715_s17 + $0x44] sm:$0x1] }
 0x495   : > { %18012 = vst [vmem:[#allocation27_spill] sm:$0xff] %v17132_v11  ;;  %18013 = vst [vmem:[#allocation10_spill] sm:$0xff] %v17137_v9  ;;  %v12742_v59 = vpop.f32.mrf.mxu1  ;;  %v17151_v11 = vrot.slane %v10642_v7, 5  ;;  %v12325_v9 = vld [vmem:[%s13715_s17 + $0x40] sm:$0xf]  ;;  %v10607_v7 = vsel %vm13746_vm2, %v10602_v33, %v10606_v42  ;;  %v10673_v4 = vor.u32 %v10672_v40, %v17143_v60  ;;  %v17172_v40 = vadd.f32 %v16992_v1, %v17001_v49 }
 0x496   : > { %v17147_v15 = vpop.f32.mrf.mxu0  ;;  %v10690_v57 = vshll.u32 %v12325_v9, 16  ;;  %v10694_v16 = vshrl.u32 %v12325_v9, 16  ;;  %v17168_v9 = vrot.slane %v10714_v6, 5  ;;  %v17183_v6 = vunpack.c.l.bf16 %v10607_v7 }
 0x497   : > { %18014 = vst [vmem:[#allocation36_spill] sm:$0xff] %v17147_v15  ;;  %v12743_v20 = vpop.f32.mrf.mxu1  ;;  %v10681_v15 = vshrl.u32 %v12324_v39, 16  ;;  %v10649_v62 = vor.u32 %v10648_v34, %v17151_v11  ;;  %v10707_v39 = vrot.slane %v10705_v32, 4  ;;  %v12329_v34 = vld [vmem:[%s13715_s17 + $0x50] sm:$0x1]  ;;  %v10669_v1 = vsel %vm13746_vm2, %v10664_v38, %v17143_v60 }
 0x498   : > { %v17156_v46 = vpop.f32.mrf.mxu0  ;;  %v17158_v43 = vadd.f32 %v12743_v20, %v12742_v59  ;;  %v10710_v59 = vrot.slane %v10708_v53, 5  ;;  %v17176_v0 = vrot.slane %v10690_v57, 5  ;;  %v10696_v41 = vrot.slane %v10694_v16, 4  ;;  %18022 = vst [vmem:[#allocation41_spill] sm:$0xff] %v17183_v6 }
 0x499   : > { %18016 = vst [vmem:[#allocation40_spill] sm:$0xff] %v17156_v46  ;;  %v12745_v55 = vpop.f32.mrf.mxu1  ;;  %v10652_v46 = vshll.u32 %v12320_v63, 16  ;;  %v10683_v33 = vrot.slane %v10681_v15, 4  ;;  %v17181_v53 = vunpack.c.l.bf16 %v10597_v13  ;;  %v10674_v15 = vrot.slane %v10673_v4, 4 }
 0x49a   : > { %18017 = vst [vmem:[#allocation38_spill] sm:$0xff] %v17158_v43  ;;  %v17162_v44 = vpop.f32.mrf.mxu0  ;;  %v10686_v43 = vrot.slane %v10684_v22, 5  ;;  %v10678_v22 = vrot.slane %v10676_v54, 5  ;;  %v10645_v57 = vsel %vm13746_vm2, %v10640_v45, %v17151_v11  ;;  %v10650_v16 = vrot.slane %v10649_v62, 4 }
 0x49b   : > { %18018 = vst [vmem:[#allocation35_spill] sm:$0xff] %v17162_v44  ;;  %v12746_v42 = vpop.f32.mrf.mxu1  ;;  %v10711_v13 = vor.u32 %v10710_v59, %v10707_v39  ;;  %v10721_v4 = vor.u32 %v10720_v58, %v17168_v9  ;;  %v10724_v54 = vshll.u32 %v12329_v34, 16  ;;  %v10700_v44 = vshll.u32 %v12326_v3, 16  ;;  %v12334_v59 = vld [vmem:[%s13715_s17 + $0x64] sm:$0xf] }
 0x49c   : > { %v17166_v20 = vpop.f32.mrf.mxu0  ;;  %v17174_v63 = vadd.f32 %v12746_v42, %v12745_v55  ;;  %v10654_v55 = vrot.slane %v10652_v46, 5  ;;  %v10687_v7 = vor.u32 %v10686_v43, %v10683_v33  ;;  %v17200_v45 = vadd.f32 %v16994_v61, %v17001_v49  ;;  %v12331_v3 = vld [vmem:[%s13715_s17 + $0x58] sm:$0xf] }
 0x49d   : > { %18019 = vst [vmem:[#allocation31_spill] sm:$0xff] %v17166_v20  ;;  %v12333_v20 = vld [vmem:[%s13715_s17 + $0x60] sm:$0xf]  ;;  %v17204_v11 = vadd.f32 %v16996_v47, %v17001_v49  ;;  %v17208_v43 = vunpack.c.l.bf16 %v10669_v1  ;;  %v10679_v38 = vsel %vm13746_vm2, %v10674_v15, %v10678_v22  ;;  %v17212_v62 = vunpack.c.l.bf16 %v10645_v57 }
 0x49e   : > { %18020 = vst [vmem:[#allocation37_spill] sm:$0xff] %v17174_v63  ;;  %v17179_v32 = vpop.f32.mrf.mxu0  ;;  %v12330_v63 = vld [vmem:[%s13715_s17 + $0x54] sm:$0xf]  ;;  %v10753_v6 = vshrl.u32 %v12333_v20, 16  ;;  %v10756_v60 = vshll.u32 %v12333_v20, 16  ;;  %v10655_v39 = vsel %vm13746_vm2, %v10650_v16, %v10654_v55  ;;  %v10712_v58 = vrot.slane %v10711_v13, 4 }
 0x49f   : > { %18021 = vst [vmem:[#allocation34_spill] sm:$0xff] %v17179_v32  ;;  %v10697_v32 = vor.u32 %v10696_v41, %v17176_v0  ;;  %v10729_v20 = vshrl.u32 %v12330_v63, 16  ;;  %v10732_v61 = vshll.u32 %v12330_v63, 16  ;;  %v10688_v47 = vrot.slane %v10687_v7, 4 }
 0x4a0   : > { %v17193_v42 = vpop.f32.mrf.mxu0  ;;  %v10722_v34 = vrot.slane %v10721_v4, 4  ;;  %v10726_v41 = vrot.slane %v10724_v54, 5  ;;  %v10758_v15 = vrot.slane %v10756_v60, 5  ;;  %v17222_v22 = vadd.f32 %v17003_v48, %v17001_v49 }
 0x4a1   : > { %18023 = vst [vmem:[#allocation39_spill] sm:$0xff] %v17193_v42  ;;  %v10698_v1 = vrot.slane %v10697_v32, 4  ;;  %v10755_v42 = vrot.slane %v10753_v6, 4  ;;  %v17226_v16 = vunpack.c.l.bf16 %v10679_v38  ;;  %v10762_v63 = vshll.u32 %v12334_v59, 16 }
 0x4a2   : > { %v17206_v46 = vpop.f32.mrf.mxu0  ;;  %v10766_v55 = vshrl.u32 %v12334_v59, 16  ;;  %v10731_v13 = vrot.slane %v10729_v20, 4  ;;  %v10734_v7 = vrot.slane %v10732_v61, 5  ;;  %v10738_v4 = vshll.u32 %v12331_v3, 16 }
 0x4a3   : > { %18024 = vst [vmem:[#allocation42_spill] sm:$0xff] %v17206_v46  ;;  %v10702_v46 = vrot.slane %v10700_v44, 5  ;;  %v10742_v54 = vshrl.u32 %v12331_v3, 16  ;;  %v12778_v44 = vadd.f32 %v17017_v26, %v17011_v28  ;;  %v17233_v32 = vadd.f32 %v17006_v29, %v17001_v49 }
 0x4a4   : > { %v17217_v33 = vpop.f32.mrf.mxu0  ;;  %v17237_v6 = vunpack.c.l.bf16 %v10655_v39  ;;  %v10717_v60 = vsel %vm13746_vm2, %v10712_v58, %v17168_v9  ;;  %v10693_v38 = vsel %vm13746_vm2, %v10688_v47, %v17176_v0  ;;  %v10727_v28 = vsel %vm13746_vm2, %v10722_v34, %v10726_v41  ;;  %v12335_v39 = vld [vmem:[%s13715_s17 + $0x68] sm:$0x1]  ;;  %v12332_v47 = vld [vmem:[%s13715_s17 + $0x5c] sm:$0x1]  ;;  %v17261_v41 = vpop.f32.mrf.mxu1 }
 0x4a5   : > { %18025 = vst [vmem:[#allocation43_spill] sm:$0xff] %v17217_v33  ;;  %v12339_v33 = vld [vmem:[%s13715_s17 + $0x78] sm:$0xf]  ;;  %18027 = vst [vmem:[#allocation45_spill] sm:$0xff] %v17233_v32  ;;  %v10703_v29 = vsel %vm13746_vm2, %v10698_v1, %v10702_v46  ;;  %v10759_v26 = vor.u32 %v10758_v15, %v10755_v42  ;;  %v10764_v20 = vrot.slane %v10762_v63, 5  ;;  %v10768_v61 = vrot.slane %v10766_v55, 4 }
 0x4a6   : > { %v17224_v57 = vpop.f32.mrf.mxu0  ;;  %v10801_v3 = vshrl.u32 %v12339_v33, 16  ;;  %v10804_v9 = vshll.u32 %v12339_v33, 16  ;;  %v17252_v58 = vunpack.c.l.bf16 %v10717_v60  ;;  %v10740_v0 = vrot.slane %v10738_v4, 5  ;;  %18032 = vst [vmem:[#allocation50_spill] sm:$0xff] %v17261_v41  ;;  %v12340_v63 = vld [vmem:[%s13715_s17 + $0x7c] sm:$0xf]  ;;  %v17281_v32 = vpop.f32.mrf.mxu1 }
 0x4a7   : > { %18026 = vst [vmem:[#allocation44_spill] sm:$0xff] %v17224_v57  ;;  %v10744_v34 = vrot.slane %v10742_v54, 4  ;;  %v17257_v46 = vadd.f32 %v17013_v21, %v17001_v49  ;;  %v17264_v1 = vadd.f32 %v12778_v44, %v17097_v51  ;;  %v17266_v15 = vunpack.c.l.bf16 %v10693_v38  ;;  %v12336_v55 = vld [vmem:[%s13715_s17 + $0x6c] sm:$0xf]  ;;  %v12337_v54 = vld [vmem:[%s13715_s17 + $0x70] sm:$0xf] }
 0x4a8   : > { %v17235_v48 = vpop.f32.mrf.mxu0  ;;  %v17268_v33 = vunpack.c.l.bf16 %v10727_v28  ;;  %v10760_v21 = vrot.slane %v10759_v26, 4  ;;  %v10772_v4 = vshll.u32 %v12335_v39, 16  ;;  %v10769_v41 = vor.u32 %v10768_v61, %v10764_v20  ;;  %18034 = vst [vmem:[#allocation52_spill] sm:$0xff] %v17281_v32  ;;  %v12341_v32 = vld [vmem:[%s13715_s17 + $0x80] sm:$0x1] }
 0x4a9   : > { %18028 = vst [vmem:[#allocation46_spill] sm:$0xff] %v17235_v48  ;;  %v10735_v48 = vor.u32 %v10734_v7, %v10731_v13  ;;  %18030 = vst [vmem:[#allocation48_spill] sm:$0xff] %v17257_v46  ;;  %v12781_v13 = vadd.f32 %v17023_v23, %v17019_v2  ;;  %v17274_v7 = vunpack.c.l.bf16 %v10703_v29  ;;  %v10803_v51 = vrot.slane %v10801_v3, 4 }
 0x4aa   : > { %v17249_v59 = vpop.f32.mrf.mxu0  ;;  %v10806_v44 = vrot.slane %v10804_v9, 5  ;;  %v10810_v28 = vshll.u32 %v12340_v63, 16  ;;  %v10777_v46 = vshrl.u32 %v12336_v55, 16  ;;  %v10814_v2 = vshrl.u32 %v12340_v63, 16 }
 0x4ab   : > { %18029 = vst [vmem:[#allocation47_spill] sm:$0xff] %v17249_v59  ;;  %v10736_v38 = vrot.slane %v10735_v48, 4  ;;  %v10745_v59 = vor.u32 %v10744_v34, %v10740_v0  ;;  %v10780_v23 = vshll.u32 %v12336_v55, 16  ;;  %v10786_v29 = vshll.u32 %v12337_v54, 16 }
 0x4ac   : > { %v17259_v42 = vpop.f32.mrf.mxu0  ;;  %v10790_v26 = vshrl.u32 %v12337_v54, 16  ;;  %v12784_v39 = vadd.f32 %v17029_v25, %v17025_v8  ;;  %v17287_v61 = vadd.f32 %v17021_v10, %v17001_v49  ;;  %v17290_v48 = vadd.f32 %v12781_v13, %v17101_v50  ;;  %v17301_v13 = vpop.f32.mrf.mxu1 }
 0x4ad   : > { %18031 = vst [vmem:[#allocation49_spill] sm:$0xff] %v17259_v42  ;;  %v10748_v42 = vshll.u32 %v12332_v47, 16  ;;  %v10765_v3 = vsel %vm13746_vm2, %v10760_v21, %v10764_v20  ;;  %v10770_v47 = vrot.slane %v10769_v41, 4  ;;  %v10774_v34 = vrot.slane %v10772_v4, 5  ;;  %18036 = vst [vmem:[#allocation54_spill] sm:$0xff] %v17301_v13 }
 0x4ae   : > { %v17277_v60 = vpop.f32.mrf.mxu0  ;;  %v10807_v55 = vor.u32 %v10806_v44, %v10803_v51  ;;  %v10741_v8 = vsel %vm13746_vm2, %v10736_v38, %v10740_v0  ;;  %v10746_v25 = vrot.slane %v10745_v59, 4  ;;  %v10812_v10 = vrot.slane %v10810_v28, 5  ;;  %v12338_v51 = vld [vmem:[%s13715_s17 + $0x74] sm:$0x1] }
 0x4af   : > { %v10750_v63 = vrot.slane %v10748_v42, 5  ;;  %v10779_v54 = vrot.slane %v10777_v46, 4  ;;  %v10782_v20 = vrot.slane %v10780_v23, 5  ;;  %v17303_v21 = vrot.slane %v10786_v29, 5  ;;  %v12345_v42 = vld [vmem:[%s13715_s17 + $0x90] sm:$0xf] }
 0x4b0   : > { %v17279_v57 = vpop.f32.mrf.mxu0  ;;  %v10792_v41 = vrot.slane %v10790_v26, 4  ;;  %v12787_v4 = vadd.f32 %v17035_v5, %v17031_v35  ;;  %v17310_v59 = vadd.f32 %v17027_v31, %v17001_v49  ;;  %v17313_v0 = vadd.f32 %v12784_v39, %v17107_v36  ;;  %v12342_v29 = vld [vmem:[%s13715_s17 + $0x84] sm:$0xf] }
 0x4b1   : > { %18033 = vst [vmem:[#allocation51_spill] sm:$0xff] %v17279_v57  ;;  %v17315_v46 = vunpack.c.l.bf16 %v10765_v3  ;;  %v17320_v44 = vadd.f32 %v17033_v37, %v17001_v49  ;;  %v17324_v28 = vunpack.c.l.bf16 %v10741_v8  ;;  %v10775_v35 = vsel %vm13746_vm2, %v10770_v47, %v10774_v34  ;;  %v17333_v37 = vpop.f32.mrf.mxu1  ;;  %v18044_v57 = vld [vmem:[#allocation8_spill] sm:$0xff] }
 0x4b2   : > { %v17294_v9 = vpop.f32.mrf.mxu0  ;;  %v10808_v31 = vrot.slane %v10807_v55, 4  ;;  %v10751_v5 = vsel %vm13746_vm2, %v10746_v25, %v10750_v63  ;;  %v10820_v36 = vshll.u32 %v12341_v32, 16  ;;  %v10852_v23 = vshll.u32 %v12345_v42, 16  ;;  %18037 = vst [vmem:[#allocation55_spill] sm:$0xff] %v17333_v37 }
 0x4b3   : > { %18035 = vst [vmem:[#allocation53_spill] sm:$0xff] %v17294_v9  ;;  %v10816_v9 = vrot.slane %v10814_v2, 4  ;;  %v10849_v2 = vshrl.u32 %v12345_v42, 16  ;;  %v10783_v39 = vor.u32 %v10782_v20, %v10779_v54  ;;  %v10793_v8 = vor.u32 %v10792_v41, %v17303_v21  ;;  %v12346_v54 = vld [vmem:[%s13715_s17 + $0x94] sm:$0xf] }
 0x4b4   : > { %v10796_v47 = vshll.u32 %v12338_v51, 16  ;;  %v12790_v34 = vadd.f32 %v17041_v30, %v17037_v27  ;;  %v17341_v32 = vadd.f32 %v17039_v24, %v17001_v49  ;;  %v17344_v63 = vadd.f32 %v12787_v4, %v17111_v19 }
 0x4b5   : > { %v17299_v50 = vpop.f32.mrf.mxu0  ;;  %v10817_v3 = vor.u32 %v10816_v9, %v10812_v10  ;;  %v17346_v55 = vunpack.c.l.bf16 %v10775_v35  ;;  %v17350_v42 = vunpack.c.l.bf16 %v10751_v5  ;;  %v10813_v9 = vsel %vm13746_vm2, %v10808_v31, %v10812_v10 }
 0x4b6   : > { %v10825_v20 = vshrl.u32 %v12342_v29, 16  ;;  %v10828_v41 = vshll.u32 %v12342_v29, 16  ;;  %v12793_v27 = vadd.f32 %v17047_v17, %v17043_v56  ;;  %v10822_v24 = vrot.slane %v10820_v36, 5 }
 0x4b7   : > { %v17322_v38 = vpop.f32.mrf.mxu0  ;;  %v10851_v30 = vrot.slane %v10849_v2, 4  ;;  %v10854_v19 = vrot.slane %v10852_v23, 5  ;;  %v10784_v35 = vrot.slane %v10783_v39, 4  ;;  %v10818_v5 = vrot.slane %v10817_v3, 4 }
 0x4b8   : > { %v10794_v37 = vrot.slane %v10793_v8, 4  ;;  %v10798_v10 = vrot.slane %v10796_v47, 5  ;;  %v10273_v29 = vadd.f32 %v12790_v34, %v17126_v18  ;;  %v10858_v13 = vshll.u32 %v12346_v54, 16  ;;  %v18041_v47 = vld [vmem:[#allocation14_spill] sm:$0xff] }
 0x4b9   : > { %v17331_v26 = vpop.f32.mrf.mxu0  ;;  %v10862_v56 = vshrl.u32 %v12346_v54, 16  ;;  %v17367_v17 = vadd.f32 %v17045_v14, %v17001_v49  ;;  %v17371_v23 = vunpack.c.l.bf16 %v10813_v9  ;;  %v10827_v39 = vrot.slane %v10825_v20, 4  ;;  %v12343_v54 = vld [vmem:[%s13715_s17 + $0x88] sm:$0xf] }
 0x4ba   : > { %v10830_v3 = vrot.slane %v10828_v41, 5  ;;  %v10855_v34 = vor.u32 %v10854_v19, %v10851_v30  ;;  %v10789_v9 = vsel %vm13746_vm2, %v10784_v35, %v17303_v21  ;;  %v10799_v20 = vsel %vm13746_vm2, %v10794_v37, %v10798_v10  ;;  %v18046_v21 = vld [vmem:[#allocation18_spill] sm:$0xff]  ;;  %v12347_v10 = vld [vmem:[%s13715_s17 + $0x98] sm:$0x1] }
 0x4bb   : > { %v17348_v25 = vpop.f32.mrf.mxu0  ;;  %v10864_v30 = vrot.slane %v10862_v56, 4  ;;  %v17397_v19 = vadd.f32 %v18046_v21, %v17001_v49  ;;  %v10834_v35 = vshll.u32 %v12343_v54, 16  ;;  %v17406_v56 = vunpack.c.l.bf16 %v10789_v9  ;;  %v12344_v21 = vld [vmem:[%s13715_s17 + $0x8c] sm:$0x1] }
 0x4bc   : > { %18038 = vst [vmem:[#allocation56_spill] sm:$0xff] %v17348_v25  ;;  %v10831_v37 = vor.u32 %v10830_v3, %v10827_v39 }
 0x4c0   : > { %v17361_v4 = vpop.f32.mrf.mxu0 }
 0x4c1   : > { %18039 = vst [vmem:[#allocation57_spill] sm:$0xff] %v17361_v4  ;;  %v18043_v4 = vld [vmem:[#allocation19_spill] sm:$0xff] }
 0x4c2   : > { %v17369_v36 = vpop.f32.mrf.mxu0  ;;  %v12796_v14 = vadd.f32 %v18044_v57, %v18043_v4 }
 0x4c3   : > { %18040 = vst [vmem:[#allocation58_spill] sm:$0xff] %v17369_v36 }
 0x4c4   : > { %v12936_v51 = vpop.f32.mrf.mxu1  ;;  %v17379_v25 = vpop.f32.mrf.mxu0  ;;  %v17415_v3 = vadd.f32 %v12796_v14, %v17172_v40  ;;  %v10832_v14 = vrot.slane %v10831_v37, 4 }
 0x4c5   : > { %v10418_v31 = vadd.f32 %v12936_v51, %v17264_v1  ;;  %v18042_v51 = vld [vmem:[#allocation30_spill] sm:$0xff]  ;;  %18045 = vst [vmem:[#allocation14_spill] sm:$0xff] %v17379_v25 }
 0x4c6   : > { %v10409_v2 = vpop.f32.mrf.mxu1  ;;  %v10276_v18 = vadd.f32 %v12793_v27, %v18042_v51  ;;  %v10860_v27 = vrot.slane %v10858_v13, 5  ;;  %v17419_v51 = vunpack.c.l.bf16 %v10799_v20  ;;  %v18055_v25 = vld [vmem:[#allocation22_spill] sm:$0xff]  ;;  %v18056_v20 = vld [vmem:[#allocation23_spill] sm:$0xff] }
 0x4c7   : > { %v11034_v8 = vadd.f32 %v17134_v12, %v10418_v31  ;;  %v10410_v1 = vadd.f32 %v10409_v2, %v18041_v47  ;;  %v10823_v12 = vsel %vm13746_vm2, %v10818_v5, %v10822_v24  ;;  %v17399_v24 = vpop.f32.mrf.mxu0  ;;  %v10838_v5 = vshrl.u32 %v12343_v54, 16  ;;  %v18048_v31 = vld [vmem:[#allocation33_spill] sm:$0xff]  ;;  %v18050_v2 = vld [vmem:[#allocation15_spill] sm:$0xff] }
 0x4c8   : > { %v12937_v36 = vpop.f32.mrf.mxu1  ;;  %18047 = vst [vmem:[#allocation30_spill] sm:$0xff] %v17399_v24  ;;  %v18052_v54 = vld [vmem:[#allocation41_spill] sm:$0xff]  ;;  %v10836_v24 = vrot.slane %v10834_v35, 5 }
 0x4c9   : > { %11066 = vst.msk [vmem:[%s17389_s8 + $0x10] sm:$0xff] %vm819_vm6, %v11034_v8  ;;  %v11032_v57 = vadd.f32 %v17181_v53, %v10410_v1  ;;  %v10421_v41 = vadd.f32 %v12937_v36, %v17290_v48  ;;  %v18049_v48 = vld [vmem:[#allocation16_spill] sm:$0xff]  ;;  %v10856_v36 = vrot.slane %v10855_v34, 4  ;;  %v17410_v8 = vadd.f32 %v18050_v2, %v17001_v49 }
 0x4ca   : > { %v10412_v4 = vpop.f32.mrf.mxu1  ;;  %v17417_v1 = vunpack.c.l.bf16 %v10823_v12  ;;  %v10840_v12 = vrot.slane %v10838_v5, 4  ;;  %v10844_v5 = vshll.u32 %v12344_v21, 16  ;;  %v10837_v21 = vsel %vm13746_vm2, %v10832_v14, %v10836_v24 }
 0x4cb   : > { %11064 = vst.msk [vmem:[%s17389_s8] sm:$0xff] %vm819_vm6, %v11032_v57  ;;  %v11035_v53 = vadd.f32 %v18048_v31, %v10421_v41  ;;  %v10413_v13 = vadd.f32 %v10412_v4, %v18049_v48  ;;  %v10865_v57 = vor.u32 %v10864_v30, %v10860_v27  ;;  %v10868_v41 = vshll.u32 %v12347_v10, 16  ;;  %v12351_v4 = vld [vmem:[%s13715_s17 + $0xa8] sm:$0xf] }
 0x4cc   : > { %v18053_v31 = vld [vmem:[#allocation17_spill] sm:$0xff]  ;;  %v10861_v10 = vsel %vm13746_vm2, %v10856_v36, %v10860_v27 }
 0x4cd   : > { %11067 = vst.msk [vmem:[%s17389_s8 + $0x18] sm:$0xff] %vm819_vm6, %v11035_v53  ;;  %v11033_v9 = vadd.f32 %v18052_v54, %v10413_v13  ;;  %v18054_v48 = vld [vmem:[#allocation21_spill] sm:$0xff]  ;;  %v18057_v53 = vld [vmem:[#allocation20_spill] sm:$0xff]  ;;  %v10866_v54 = vrot.slane %v10865_v57, 4 }
 0x4ce   : > { %v17412_v47 = vpop.f32.mrf.mxu0  ;;  %v12799_v2 = vadd.f32 %v18054_v48, %v18053_v31  ;;  %v17438_v13 = vadd.f32 %v18057_v53, %v17001_v49  ;;  %v12352_v27 = vld [vmem:[%s13715_s17 + $0xac] sm:$0xf]  ;;  %v17447_v31 = vunpack.c.l.bf16 %v10861_v10  ;;  %v10841_v48 = vor.u32 %v10840_v12, %v10836_v24 }
 0x4cf   : > { %18051 = vst [vmem:[#allocation19_spill] sm:$0xff] %v17412_v47  ;;  %v12802_v47 = vadd.f32 %v18056_v20, %v18055_v25  ;;  %11065 = vst.msk [vmem:[%s17389_s8 + $0x8] sm:$0xff] %vm819_vm6, %v11033_v9  ;;  %v10897_v25 = vshrl.u32 %v12351_v4, 16  ;;  %v10870_v9 = vrot.slane %v10868_v41, 5  ;;  %v10906_v12 = vshll.u32 %v12352_v27, 16 }
 0x4d0   : > { %v12940_v39 = vpop.f32.mrf.mxu1  ;;  %v17440_v37 = vpop.f32.mrf.mxu0 }
 0x4d1   : > { %v10434_v34 = vadd.f32 %v12940_v39, %v10273_v29  ;;  %v10900_v39 = vshll.u32 %v12351_v4, 16  ;;  %v18058_v4 = vld [vmem:[#allocation13_spill] sm:$0xff]  ;;  %v10289_v57 = vadd.f32 %v12802_v47, %v17204_v11  ;;  %v10899_v24 = vrot.slane %v10897_v25, 4  ;;  %v12349_v47 = vld [vmem:[%s13715_s17 + $0xa0] sm:$0xf] }
 0x4d2   : > { %v10425_v40 = vpop.f32.mrf.mxu1  ;;  %v17459_v41 = vpop.f32.mrf.mxu0  ;;  %v10871_v11 = vsel %vm13746_vm2, %v10866_v54, %v10870_v9 }
 0x4d3   : > { %v11038_v29 = vadd.f32 %v17208_v43, %v10434_v34  ;;  %v10426_v30 = vadd.f32 %v10425_v40, %v17313_v0  ;;  %v10284_v34 = vadd.f32 %v12799_v2, %v17200_v45  ;;  %v18059_v40 = vld [vmem:[#allocation24_spill] sm:$0xff]  ;;  %v12348_v45 = vld [vmem:[%s13715_s17 + $0x9c] sm:$0xf]  ;;  %v10902_v14 = vrot.slane %v10900_v39, 5 }
 0x4d4   : > { %v12941_v35 = vpop.f32.mrf.mxu1  ;;  %v12805_v20 = vadd.f32 %v18059_v40, %v18058_v4  ;;  %v10873_v25 = vshrl.u32 %v12348_v45, 16  ;;  %v10876_v39 = vshll.u32 %v12348_v45, 16  ;;  %v17482_v54 = vpop.f32.mrf.mxu0  ;;  %v18064_v45 = vld [vmem:[#allocation12_spill] sm:$0xff] }
 0x4d5   : > { %11070 = vst.msk [vmem:[%s17389_s8 + $0x30] sm:$0xff] %vm819_vm6, %v11038_v29  ;;  %v11036_v43 = vadd.f32 %v17212_v62, %v10426_v30  ;;  %v10437_v0 = vadd.f32 %v12941_v35, %v10276_v18  ;;  %v17461_v29 = vrot.slane %v10844_v5, 5  ;;  %v18060_v30 = vld [vmem:[#allocation11_spill] sm:$0xff]  ;;  %v17473_v35 = vunpack.c.l.bf16 %v10837_v21 }
 0x4d6   : > { %v10428_v36 = vpop.f32.mrf.mxu1  ;;  %v17465_v10 = vadd.f32 %v18060_v30, %v17001_v49  ;;  %v10910_v5 = vshrl.u32 %v12352_v27, 16  ;;  %v10292_v40 = vadd.f32 %v12805_v20, %v17222_v22  ;;  %v17484_v21 = vunpack.c.l.bf16 %v10871_v11 }
 0x4d7   : > { %11068 = vst.msk [vmem:[%s17389_s8 + $0x20] sm:$0xff] %vm819_vm6, %v11036_v43  ;;  %v11039_v62 = vadd.f32 %v17226_v16, %v10437_v0  ;;  %v10429_v18 = vadd.f32 %v10428_v36, %v17344_v63  ;;  %v18061_v43 = vld [vmem:[#allocation27_spill] sm:$0xff]  ;;  %v18062_v0 = vld [vmem:[#allocation36_spill] sm:$0xff]  ;;  %v10842_v27 = vrot.slane %v10841_v48, 4  ;;  %v10908_v30 = vrot.slane %v10906_v12, 5  ;;  %v18067_v12 = vld [vmem:[#allocation9_spill] sm:$0xff] }
 0x4d8   : > { %v12944_v2 = vpop.f32.mrf.mxu1  ;;  %v12814_v36 = vadd.f32 %v18062_v0, %v18061_v43  ;;  %v10875_v20 = vrot.slane %v10873_v25, 4  ;;  %v10912_v11 = vrot.slane %v10910_v5, 4  ;;  %v18066_v48 = vld [vmem:[#allocation35_spill] sm:$0xff]  ;;  %v17502_v25 = vpop.f32.mrf.mxu0 }
 0x4d9   : > { %11071 = vst.msk [vmem:[%s17389_s8 + $0x38] sm:$0xff] %vm819_vm6, %v11039_v62  ;;  %v11037_v16 = vadd.f32 %v17237_v6, %v10429_v18  ;;  %v10450_v63 = vadd.f32 %v12944_v2, %v10289_v57  ;;  %v10903_v62 = vor.u32 %v10902_v14, %v10899_v24  ;;  %v10882_v18 = vshll.u32 %v12349_v47, 16  ;;  %v18063_v57 = vld [vmem:[#allocation25_spill] sm:$0xff] }
 0x4da   : > { %v10441_v53 = vpop.f32.mrf.mxu1  ;;  %v12808_v2 = vadd.f32 %v18064_v45, %v18063_v57  ;;  %v10305_v0 = vadd.f32 %v12814_v36, %v17287_v61  ;;  %v10847_v5 = vsel %vm13746_vm2, %v10842_v27, %v17461_v29  ;;  %v12350_v45 = vld [vmem:[%s13715_s17 + $0xa4] sm:$0x1]  ;;  %v18071_v27 = vld [vmem:[#allocation43_spill] sm:$0xff] }
 0x4db   : > { %11069 = vst.msk [vmem:[%s17389_s8 + $0x28] sm:$0xff] %vm819_vm6, %v11037_v16  ;;  %v11042_v4 = vadd.f32 %v17252_v58, %v10450_v63  ;;  %v10442_v6 = vadd.f32 %v10441_v53, %v17415_v3  ;;  %v10878_v16 = vrot.slane %v10876_v39, 5  ;;  %v10886_v63 = vshrl.u32 %v12349_v47, 16  ;;  %v18065_v53 = vld [vmem:[#allocation40_spill] sm:$0xff] }
 0x4dc   : > { %v12945_v9 = vpop.f32.mrf.mxu1  ;;  %v12817_v24 = vadd.f32 %v18066_v48, %v18065_v53  ;;  %v10904_v39 = vrot.slane %v10903_v62, 4  ;;  %v18072_v62 = vld [vmem:[#allocation44_spill] sm:$0xff] }
 0x4dd   : > { %11074 = vst.msk [vmem:[%s17389_s8 + $0x50] sm:$0xff] %vm819_vm6, %v11042_v4  ;;  %v11040_v58 = vadd.f32 %v17266_v15, %v10442_v6  ;;  %v10453_v3 = vadd.f32 %v12945_v9, %v10292_v40  ;;  %v12353_v15 = vld [vmem:[%s13715_s17 + $0xb0] sm:$0x1]  ;;  %v17500_v4 = vadd.f32 %v18067_v12, %v17001_v49  ;;  %v17507_v6 = vrot.slane %v10882_v18, 5  ;;  %v18070_v9 = vld [vmem:[#allocation45_spill] sm:$0xff] }
 0x4de   : > { %v10444_v22 = vpop.f32.mrf.mxu1  ;;  %v10297_v57 = vadd.f32 %v12808_v2, %v18070_v9  ;;  %v10916_v53 = vshll.u32 %v12353_v15, 16  ;;  %v10888_v29 = vrot.slane %v10886_v63, 4  ;;  %v12826_v18 = vadd.f32 %v18072_v62, %v18071_v27  ;;  %v18073_v2 = vld [vmem:[#allocation28_spill] sm:$0xff]  ;;  %v18074_v15 = vld [vmem:[#allocation31_spill] sm:$0xff]  ;;  %v18075_v12 = vld [vmem:[#allocation34_spill] sm:$0xff] }
 0x4df   : > { %11072 = vst.msk [vmem:[%s17389_s8 + $0x40] sm:$0xff] %vm819_vm6, %v11040_v58  ;;  %v11043_v14 = vadd.f32 %v17268_v33, %v10453_v3  ;;  %v10445_v43 = vadd.f32 %v10444_v22, %v10284_v34  ;;  %v18068_v33 = vld [vmem:[#allocation7_spill] sm:$0xff]  ;;  %v18069_v34 = vld [vmem:[#allocation26_spill] sm:$0xff]  ;;  %v10879_v3 = vor.u32 %v10878_v16, %v10875_v20  ;;  %v10913_v22 = vor.u32 %v10912_v11, %v10908_v30  ;;  %v17526_v20 = vpop.f32.mrf.mxu0 }
 0x4e0   : > { %v12948_v47 = vpop.f32.mrf.mxu1  ;;  %v12811_v40 = vadd.f32 %v18069_v34, %v18068_v33  ;;  %v17528_v63 = vunpack.c.l.bf16 %v10847_v5  ;;  %v10909_v11 = vsel %vm13746_vm2, %v10904_v39, %v10908_v30  ;;  %v12357_v33 = vld [vmem:[%s13715_s17 + $0xc0] sm:$0xf]  ;;  %v10889_v9 = vor.u32 %v10888_v29, %v17507_v6  ;;  %v18077_v30 = vld [vmem:[#allocation46_spill] sm:$0xff]  ;;  %v18078_v39 = vld [vmem:[#allocation47_spill] sm:$0xff] }
 0x4e1   : > { %11075 = vst.msk [vmem:[%s17389_s8 + $0x58] sm:$0xff] %vm819_vm6, %v11043_v14  ;;  %v11041_v61 = vadd.f32 %v17274_v7, %v10445_v43  ;;  %v10466_v36 = vadd.f32 %v12948_v47, %v10305_v0  ;;  %v10308_v7 = vadd.f32 %v12817_v24, %v17310_v59  ;;  %v17524_v43 = vadd.f32 %v18073_v2, %v17001_v49  ;;  %v18076_v49 = vld [vmem:[#allocation48_spill] sm:$0xff]  ;;  %v18079_v62 = vld [vmem:[#allocation39_spill] sm:$0xff] }
 0x4e2   : > { %v10457_v58 = vpop.f32.mrf.mxu1  ;;  %v10892_v0 = vshll.u32 %v12350_v45, 16  ;;  %v10300_v47 = vadd.f32 %v12811_v40, %v18076_v49  ;;  %v10914_v5 = vrot.slane %v10913_v22, 4  ;;  %v17546_v40 = vpop.f32.mrf.mxu0  ;;  %v10948_v29 = vshll.u32 %v12357_v33, 16  ;;  %v17562_v2 = vld [vmem:[%s17739_s4] ss:$0 sm:$0xff] }
 0x4e3   : > { %11073 = vst.msk [vmem:[%s17389_s8 + $0x48] sm:$0xff] %vm819_vm6, %v11041_v61  ;;  %v11046_v48 = vadd.f32 %v17315_v46, %v10466_v36  ;;  %v10458_v14 = vadd.f32 %v10457_v58, %v10297_v57  ;;  %v12820_v46 = vadd.f32 %v18075_v12, %v18074_v15  ;;  %v10880_v61 = vrot.slane %v10879_v3, 4  ;;  %v12358_v49 = vld [vmem:[%s13715_s17 + $0xc4] sm:$0xf] }
 0x4e4   : > { %v12949_v16 = vpop.f32.mrf.mxu1  ;;  %v10918_v36 = vrot.slane %v10916_v53, 5  ;;  %v12829_v57 = vadd.f32 %v18078_v39, %v18077_v30  ;;  %v10321_v58 = vadd.f32 %v12826_v18, %v17367_v17  ;;  %v17548_v3 = vunpack.c.l.bf16 %v10909_v11  ;;  %v12354_v18 = vld [vmem:[%s13715_s17 + $0xb4] sm:$0xf] }
 0x4e5   : > { %11078 = vst.msk [vmem:[%s17389_s8 + $0x70] sm:$0xff] %vm819_vm6, %v11046_v48  ;;  %v11044_v59 = vadd.f32 %v17324_v28, %v10458_v14  ;;  %v10469_v24 = vadd.f32 %v12949_v16, %v10308_v7  ;;  %v17550_v22 = vrot.slane %v10892_v0, 5  ;;  %v10945_v53 = vshrl.u32 %v12357_v33, 16  ;;  %v18080_v48 = vld [vmem:[#allocation42_spill] sm:$0xff]  ;;  %v18081_v16 = vld [vmem:[#allocation29_spill] sm:$0xff] }
 0x4e6   : > { %v10460_v34 = vpop.f32.mrf.mxu1  ;;  %v12823_v14 = vadd.f32 %v18080_v48, %v18079_v62  ;;  %v10313_v17 = vadd.f32 %v12820_v46, %v17320_v44  ;;  %v17566_v11 = vadd.f32 %v17562_v2, %v18081_v16  ;;  %v10885_v15 = vsel %vm13746_vm2, %v10880_v61, %v17507_v6 }
 0x4e7   : > { %11076 = vst.msk [vmem:[%s17389_s8 + $0x60] sm:$0xff] %vm819_vm6, %v11044_v59  ;;  %v11047_v45 = vadd.f32 %v17346_v55, %v10469_v24  ;;  %v10461_v28 = vadd.f32 %v10460_v34, %v10300_v47  ;;  %v10890_v44 = vrot.slane %v10889_v9, 4  ;;  %v12838_v12 = vadd.f32 %v17322_v38, %v17299_v50  ;;  %v17580_v47 = vpop.f32.mrf.mxu0 }
 0x4e8   : > { %v12952_v27 = vpop.f32.mrf.mxu1  ;;  %v10324_v24 = vadd.f32 %v12829_v57, %v17397_v19  ;;  %v10947_v6 = vrot.slane %v10945_v53, 4  ;;  %v10950_v34 = vrot.slane %v10948_v29, 5  ;;  %v10921_v61 = vshrl.u32 %v12354_v18, 16  ;;  %v12355_v53 = vld [vmem:[%s13715_s17 + $0xb8] sm:$0xf] }
 0x4e9   : > { %11079 = vst.msk [vmem:[%s17389_s8 + $0x78] sm:$0xff] %vm819_vm6, %v11047_v45  ;;  %v11045_v55 = vadd.f32 %v17350_v42, %v10461_v28  ;;  %v10482_v7 = vadd.f32 %v12952_v27, %v10321_v58  ;;  %v10919_v42 = vsel %vm13746_vm2, %v10914_v5, %v10918_v36  ;;  %v10924_v5 = vshll.u32 %v12354_v18, 16  ;;  %v18082_v36 = vld [vmem:[#allocation49_spill] sm:$0xff]  ;;  %v18083_v28 = vld [vmem:[#allocation56_spill] sm:$0xff] }
 0x4ea   : > { %v10473_v0 = vpop.f32.mrf.mxu1  ;;  %v12832_v50 = vadd.f32 %v17277_v60, %v18082_v36  ;;  %v10316_v19 = vadd.f32 %v12823_v14, %v17341_v32  ;;  %v17588_v30 = vunpack.c.l.bf16 %v10885_v15  ;;  %v17590_v39 = vunpack.c.l.bf16 %v10919_v42  ;;  %v12860_v32 = vpop.f32.mrf.mxu0  ;;  %v18088_v36 = vld [vmem:[#allocation57_spill] sm:$0xff] }
 0x4eb   : > { %11077 = vst.msk [vmem:[%s17389_s8 + $0x68] sm:$0xff] %vm819_vm6, %v11045_v55  ;;  %v11050_v46 = vadd.f32 %v17371_v23, %v10482_v7  ;;  %v10474_v59 = vadd.f32 %v10473_v0, %v10313_v17  ;;  %v10954_v57 = vshll.u32 %v12358_v49, 16  ;;  %v10958_v45 = vshrl.u32 %v12358_v49, 16  ;;  %v18084_v7 = vld [vmem:[#allocation51_spill] sm:$0xff]  ;;  %v18087_v49 = vld [vmem:[#allocation32_spill] sm:$0xff] }
 0x4ec   : > { %v12953_v33 = vpop.f32.mrf.mxu1  ;;  %v12841_v58 = vadd.f32 %v18083_v28, %v17331_v26  ;;  %v10895_v62 = vsel %vm13746_vm2, %v10890_v44, %v17550_v22  ;;  %v10951_v48 = vor.u32 %v10950_v34, %v10947_v6  ;;  %v10923_v14 = vrot.slane %v10921_v61, 4  ;;  %v18085_v26 = vld [vmem:[#allocation53_spill] sm:$0xff]  ;;  %v18086_v44 = vld [vmem:[#allocation19_spill] sm:$0xff] }
 0x4ed   : > { %11082 = vst.msk [vmem:[%s17389_s8 + $0x90] sm:$0xff] %vm819_vm6, %v11050_v46  ;;  %v11048_v38 = vadd.f32 %v17406_v56, %v10474_v59  ;;  %v10485_v23 = vadd.f32 %v12953_v33, %v10324_v24  ;;  %v10337_v56 = vadd.f32 %v12838_v12, %v17465_v10  ;;  %v10926_v55 = vrot.slane %v10924_v5, 5  ;;  %v12861_v33 = vpop.f32.mrf.mxu0 }
 0x4ee   : > { %v10476_v9 = vpop.f32.mrf.mxu1  ;;  %v12835_v17 = vadd.f32 %v18085_v26, %v18084_v7  ;;  %v10329_v18 = vadd.f32 %v12832_v50, %v17410_v8  ;;  %v10956_v0 = vrot.slane %v10954_v57, 5  ;;  %v10930_v15 = vshll.u32 %v12355_v53, 16  ;;  %v18094_v7 = vld [vmem:[#allocation30_spill] sm:$0xff] }
 0x4ef   : > { %11080 = vst.msk [vmem:[%s17389_s8 + $0x80] sm:$0xff] %vm819_vm6, %v11048_v38  ;;  %v11051_v60 = vadd.f32 %v17417_v1, %v10485_v23  ;;  %v10477_v27 = vadd.f32 %v10476_v9, %v10316_v19  ;;  %v10934_v42 = vshrl.u32 %v12355_v53, 16  ;;  %v10960_v22 = vrot.slane %v10958_v45, 4 }
 0x4f0   : > { %v12956_v29 = vpop.f32.mrf.mxu1  ;;  %v12850_v12 = vadd.f32 %v17440_v37, %v18086_v44  ;;  %v10340_v24 = vadd.f32 %v12841_v58, %v17500_v4  ;;  %v10192_v8 = vadd.f32 %v17562_v2, %v18087_v49  ;;  %v17617_v34 = vunpack.c.l.bf16 %v10895_v62  ;;  %v18089_v37 = vld [vmem:[#allocation58_spill] sm:$0xff] }
 0x4f1   : > { %11083 = vst.msk [vmem:[%s17389_s8 + $0x98] sm:$0xff] %vm819_vm6, %v11051_v60  ;;  %v11049_v1 = vadd.f32 %v17419_v51, %v10477_v27  ;;  %v10498_v10 = vadd.f32 %v12956_v29, %v10337_v56  ;;  %v12359_v51 = vld [vmem:[%s13715_s17 + $0xc8] sm:$0x1]  ;;  %v10952_v61 = vrot.slane %v10951_v48, 4  ;;  %v10927_v5 = vor.u32 %v10926_v55, %v10923_v14  ;;  %v12356_v56 = vld [vmem:[%s13715_s17 + $0xbc] sm:$0x1]  ;;  %v12863_v48 = vpop.f32.mrf.mxu0 }
 0x4f2   : > { %v10489_v16 = vpop.f32.mrf.mxu1  ;;  %v12844_v50 = vadd.f32 %v18089_v37, %v18088_v36  ;;  %v10332_v38 = vadd.f32 %v12835_v17, %v17438_v13  ;;  %v10932_v19 = vrot.slane %v10930_v15, 5  ;;  %v10961_v9 = vor.u32 %v10960_v22, %v10956_v0  ;;  %v18091_v13 = vld [vmem:[#allocation50_spill] sm:$0xff]  ;;  %v18092_v29 = vld [vmem:[#allocation52_spill] sm:$0xff]  ;;  %s12397_s17 = sshll.u32 %s13671_s22, 12  ;;  %s17695_s22 = scalar_lea.sflag [#allocation5], %s215_s6 }
 0x4f3   : > { %11081 = vst.msk [vmem:[%s17389_s8 + $0x88] sm:$0xff] %vm819_vm6, %v11049_v1  ;;  %v11054_v46 = vadd.f32 %v17447_v31, %v10498_v10  ;;  %v10490_v59 = vadd.f32 %v10489_v16, %v10329_v18  ;;  %v10964_v57 = vshll.u32 %v12359_v51, 16  ;;  %v10936_v45 = vrot.slane %v10934_v42, 4  ;;  %s17685_s14 = scalar_lea.hbm %s17740_s5, %s12397_s17 }
 0x4f4   : > { %v12957_v6 = vpop.f32.mrf.mxu1  ;;  %v12853_v28 = vadd.f32 %v17482_v54, %v17459_v41  ;;  %v10353_v27 = vadd.f32 %v12850_v12, %v10192_v8  ;;  %v12750_v62 = vadd.f32 %v18092_v29, %v18091_v13  ;;  %v10957_v55 = vsel %vm13746_vm2, %v10952_v61, %v10956_v0  ;;  %v18093_v54 = vld [vmem:[#allocation14_spill] sm:$0xff] }
 0x4f5   : > { %11086 = vst.msk [vmem:[%s17389_s8 + $0xb0] sm:$0xff] %vm819_vm6, %v11054_v46  ;;  %v11052_v31 = vadd.f32 %v17473_v35, %v10490_v59  ;;  %v10501_v4 = vadd.f32 %v12957_v6, %v10340_v24  ;;  %v18090_v35 = vld [vmem:[#allocation10_spill] sm:$0xff]  ;;  %v10928_v41 = vrot.slane %v10927_v5, 4  ;;  %v12847_v26 = vadd.f32 %v18094_v7, %v18093_v54 }
 0x4f6   : > { %v10492_v23 = vpop.f32.mrf.mxu1  ;;  %v10195_v53 = vadd.f32 %v17562_v2, %v18090_v35  ;;  %v10345_v1 = vadd.f32 %v12844_v50, %v17524_v43  ;;  %v10962_v18 = vrot.slane %v10961_v9, 4  ;;  %v10966_v16 = vrot.slane %v10964_v57, 5  ;;  %v18095_v59 = vld [vmem:[#allocation54_spill] sm:$0xff]  ;;  %v12864_v43 = vpop.f32.mrf.mxu0 }
 0x4f7   : > { %11084 = vst.msk [vmem:[%s17389_s8 + $0xa0] sm:$0xff] %vm819_vm6, %v11052_v31  ;;  %v11055_v58 = vadd.f32 %v17484_v21, %v10501_v4  ;;  %v10493_v60 = vadd.f32 %v10492_v23, %v10332_v38  ;;  %v10937_v15 = vor.u32 %v10936_v45, %v10932_v19  ;;  %v10940_v42 = vshll.u32 %v12356_v56, 16  ;;  %v18097_v61 = vld [vmem:[#allocation38_spill] sm:$0xff] }
 0x4f8   : > { %v12960_v14 = vpop.f32.mrf.mxu1  ;;  %v12862_v22 = vadd.f32 %v12861_v33, %v12860_v32  ;;  %v10356_v12 = vadd.f32 %v12853_v28, %v10195_v53  ;;  %v10208_v46 = vadd.f32 %v17562_v2, %v12750_v62  ;;  %v11030_v49 = vunpack.c.l.bf16 %v10957_v55 }
 0x4f9   : > { %11087 = vst.msk [vmem:[%s17389_s8 + $0xb8] sm:$0xff] %vm819_vm6, %v11055_v58  ;;  %v11053_v21 = vadd.f32 %v17528_v63, %v10493_v60  ;;  %v10514_v17 = vadd.f32 %v12960_v14, %v10353_v27  ;;  %v18096_v63 = vld [vmem:[#allocation55_spill] sm:$0xff]  ;;  %v10933_v8 = vsel %vm13746_vm2, %v10928_v41, %v10932_v19  ;;  %v12856_v32 = vadd.f32 %v17526_v20, %v17502_v25  ;;  %v18098_v60 = vld [vmem:[#allocation37_spill] sm:$0xff] }
 0x4fa   : > { %v10505_v10 = vpop.f32.mrf.mxu1  ;;  %v12753_v24 = vadd.f32 %v18096_v63, %v18095_v59  ;;  %v10348_v6 = vadd.f32 %v12847_v26, %v17566_v11  ;;  %v10200_v5 = vadd.f32 %v17562_v2, %v18097_v61  ;;  %v10967_v37 = vsel %vm13746_vm2, %v10962_v18, %v10966_v16 }
 0x4fb   : > { %11085 = vst.msk [vmem:[%s17389_s8 + $0xa8] sm:$0xff] %vm819_vm6, %v11053_v21  ;;  %v11058_v0 = vadd.f32 %v17548_v3, %v10514_v17  ;;  %v10506_v44 = vadd.f32 %v10505_v10, %v10345_v1  ;;  %v10938_v50 = vrot.slane %v10937_v15, 4  ;;  %v10942_v31 = vrot.slane %v10940_v42, 5 }
 0x4fc   : > { %v12961_v51 = vpop.f32.mrf.mxu1  ;;  %v12865_v4 = vadd.f32 %v12864_v43, %v12863_v48  ;;  %v10211_v38 = vadd.f32 %v17562_v2, %v12753_v24  ;;  %v11028_v23 = vunpack.c.l.bf16 %v10933_v8  ;;  %v12859_v19 = vadd.f32 %v17580_v47, %v17546_v40 }
 0x4fd   : > { %11090 = vst.msk [vmem:[%s17389_s8 + $0xd0] sm:$0xff] %vm819_vm6, %v11058_v0  ;;  %v11056_v3 = vadd.f32 %v17588_v30, %v10506_v44  ;;  %v10517_v33 = vadd.f32 %v12961_v51, %v10356_v12  ;;  %v10369_v30 = vadd.f32 %v12862_v22, %v10208_v46  ;;  %v10361_v45 = vadd.f32 %v12856_v32, %v10200_v5 }
 0x4fe   : > { %v10508_v36 = vpop.f32.mrf.mxu1  ;;  %v10943_v58 = vsel %vm13746_vm2, %v10938_v50, %v10942_v31  ;;  %v10203_v27 = vadd.f32 %v17562_v2, %v18098_v60  ;;  %v10372_v56 = vadd.f32 %v12865_v4, %v10211_v38 }
 0x4ff   : > { %11088 = vst.msk [vmem:[%s17389_s8 + $0xc0] sm:$0xff] %vm819_vm6, %v11056_v3  ;;  %v11059_v25 = vadd.f32 %v17590_v39, %v10517_v33  ;;  %v10509_v20 = vadd.f32 %v10508_v36, %v10348_v6  ;;  %v11031_v39 = vunpack.c.l.bf16 %v10967_v37  ;;  %v11029_v52 = vunpack.c.l.bf16 %v10943_v58 }
 0x500   : > { %v12964_v11 = vpop.f32.mrf.mxu1  ;;  %v10364_v13 = vadd.f32 %v12859_v19, %v10203_v27 }
 0x501   : > { %11091 = vst.msk [vmem:[%s17389_s8 + $0xd8] sm:$0xff] %vm819_vm6, %v11059_v25  ;;  %v11057_v9 = vadd.f32 %v17617_v34, %v10509_v20  ;;  %v10530_v57 = vadd.f32 %v12964_v11, %v10369_v30 }
 0x502   : > { %v10521_v28 = vpop.f32.mrf.mxu1 }
 0x503   : > { %11089 = vst.msk [vmem:[%s17389_s8 + $0xc8] sm:$0xff] %vm819_vm6, %v11057_v9  ;;  %v11062_v40 = vadd.f32 %v11030_v49, %v10530_v57  ;;  %v10522_v47 = vadd.f32 %v10521_v28, %v10361_v45 }
 0x504   : > { %v12965_v34 = vpop.f32.mrf.mxu1 }
 0x505   : > { %11094 = vst.msk [vmem:[%s17389_s8 + $0xf0] sm:$0xff] %vm819_vm6, %v11062_v40  ;;  %v11060_v35 = vadd.f32 %v11028_v23, %v10522_v47  ;;  %v10533_v53 = vadd.f32 %v12965_v34, %v10372_v56 }
 0x506   : > { %v10524_v29 = vpop.f32.mrf.mxu1 }
 0x507   : > { %11092 = vst.msk [vmem:[%s17389_s8 + $0xe0] sm:$0xff] %vm819_vm6, %v11060_v35  ;;  %v11063_v2 = vadd.f32 %v11031_v39, %v10533_v53  ;;  %v10525_v62 = vadd.f32 %v10524_v29, %v10364_v13 }
 0x509   : > { %11095 = vst.msk [vmem:[%s17389_s8 + $0xf8] sm:$0xff] %vm819_vm6, %v11063_v2  ;;  %v11061_v48 = vadd.f32 %v11029_v52, %v10525_v62 }
 0x50b   : > { %11093 = vst.msk [vmem:[%s17389_s8 + $0xe8] sm:$0xff] %vm819_vm6, %v11061_v48 }
 0x50c   : > { %13567 = shalt.err (!%p13564_p3)
}
 0x50d   : > { %s13568_s26 = scalar_lea.hbm %s17685_s14, 4096  ;;  %s13572_s7 = scalar_lea.hbm %s17740_s5, 8192 }
 0x50e   : > { %p13569_p4 = scmp.ne.s32.totalorder %s17685_s14, %s13568_s26  ;;  %p13573_p9 = scmp.lt.s32.totalorder %s17685_s14, %s17740_s5 }
 0x50f   : > { %p13574_p10 = scmp.lt.s32.totalorder %s13572_s7, %s13568_s26 }
 0x510   : > { %p13570_p7 = pnand %p13569_p4, %p13688_p5 }
 0x511   : > { %p13575_p11 = por %p13574_p10, %p13573_p9 }
 0x512   : > { %p13571_p8 = pneg %p13570_p7 }
 0x514   : > { %p13576_p12 = pnand %p13575_p11, %p13571_p8 }
 0x516   : > { %13579 = shalt.err (!%p13576_p12)
}
 0x517   : > { %s13618_s10 = smov 128   ;;  %s13619_s17 = smov 8  }
 0x518   : > { %12967 = dma.vmem_to_hbm [thread:$0]  (%p13688_p5), %s17687_s11, 4096, %s17685_s14, %s17695_s22, %s13618_s10, %s13618_s10, %s13619_s17  }
 0x519 PF: > { %p12973_p13 = scmp.ge.s32.totalorder %s13614_s21, 2  ;;  %s11125_s12 = sand.u32 1, %s13602_s18  }
 0x51a   : > { %s11126_s13 = scalar_lea.sflag [#allocation5], %s11125_s12 }
 0x51b   : > { %p12970_p0 = pnand %p12973_p13, %p13692_p6 }
 0x51d   : > { %p12971_p1 = pneg %p12970_p0 }
 0x51f   : > { %13597 = dma.done.wait (%p12971_p1), %s11126_s13, 4096  }
 0x520   : > { %13599 = vsyncadd (%p12971_p1), %s11126_s13, 4294963200  ;;  %p15_p2 = scmp.ge.s32.totalorder %s13675_s24, 4   ;;  %s18099_s18 = smov %s13606_s19 }
 0x521   : > { %s18100_s19 = smov %s13610_s20  ;;  %s18101_s20 = smov %s13686_s27 }
 0x522   : > { %s18102_s21 = smov %s13675_s24  ;;  %17 = sbr.rel (!%p15_p2) target bundleno = 3 (0x3), region = 80 }
 0x527   :  { %11131 = vsyncpa [#allocation5], 1 }
 0x528   :  { %11133 = vsyncpa [#allocation5 + $0x1], 1 }

</bundles_post_ra>
